<compile_context>
chip_gen: v7x
topology: tpu7x:2x2x1
jax: 0.10.0
libtpu: 0.0.40
codegen_flags: <defaults>
</compile_context>

<pallas_src>
import functools

import jax
import jax.numpy as jnp
from jax import lax
from jax.experimental import pallas as pl
from jax.experimental.pallas import tpu as pltpu

HEAD_PAD = 128   # lane-dense padded width of the fused prediction-head slab
N_TIMING = 10


def _wspec(a):
    """Whole-array spec for grid-invariant weights / small activations.
    TODO(synk): at reference scale these become K/N-tiled specs with
    pipeline_mode=pl.Buffered(1) on invariant blocks (see header)."""
    r = a.ndim
    return pl.BlockSpec(a.shape, lambda *_: (0,) * r)


# ---------------------------------------------------------------------------
# kernel 1: multi-scale temporal convs + temporal fusion, folded to ONE matmul
# ---------------------------------------------------------------------------

def _conv_fusion_kernel(xp_ref, w_ref, b_ref, fused_ref, pooled_ref, *,
                        seq_len, n_win):
    B, _, cin = xp_ref.shape
    x = xp_ref[...].astype(jnp.float32)                       # [B, Spad, Cin]
    # one shared im2col for the widest (tap-clamped) window, built once
    cols = jnp.concatenate([x[:, r:r + seq_len, :] for r in range(n_win)],
                           axis=-1)                            # [B, S, n_win*Cin]
    cols = cols.reshape(B * seq_len, n_win * cin)              # batch folded into M
    y = jnp.dot(cols.astype(w_ref.dtype), w_ref[...],
                preferred_element_type=jnp.float32) + b_ref[...]
    y = y.reshape(B, seq_len, -1)                              # [B, S, D]
    fused_ref[...] = y.astype(fused_ref.dtype)                 # bf16 to HBM
    pooled_ref[...] = jnp.mean(y, axis=1)                      # [B, D] for meta-learner


def _fold_conv_fusion(conv_params, fusion_w, fusion_b, conv_ks, cin, seq_len):
    """Fold the 7 convs + fusion Linear into one [n_win*Cin, D] matrix.
    Valid because the reference applies no nonlinearity between the temporal
    convs and temporal_fusion; taps that only ever see zero padding are dropped
    exactly (k >> seq_len)."""
    P = min(max(conv_ks) // 2, seq_len - 1)
    n_win = 2 * P + 1
    d_model = fusion_w.shape[1]
    cout = conv_params[0][0].shape[2]
    w_big = jnp.zeros((n_win * cin, d_model), jnp.float32)
    b_big = fusion_b.astype(jnp.float32)
    for s, (k, (w, b)) in enumerate(zip(conv_ks, conv_params)):
        pad = k // 2
        p_eff = min(pad, seq_len - 1)
        taps = 2 * p_eff + 1
        lo = P - p_eff
        w_eff = w[pad - p_eff: pad + p_eff + 1].astype(jnp.float32)
        w_eff = w_eff.reshape(taps * cin, cout)
        fw = fusion_w[s * cout:(s + 1) * cout].astype(jnp.float32)   # [Cout, D]
        w_big = w_big.at[lo * cin:(lo + taps) * cin].add(w_eff @ fw)
        b_big = b_big + b.astype(jnp.float32) @ fw
    return w_big.astype(jnp.bfloat16), b_big, P, n_win


def multiscale_conv_fusion(x, conv_params, fusion_w, fusion_b, conv_ks, d_model):
    """x: [B, S, Cin] f32 -> (fused [B,S,D] bf16, pooled_fused [B,D] f32)."""
    B, S, cin = x.shape
    w_big, b_big, P, n_win = _fold_conv_fusion(conv_params, fusion_w, fusion_b,
                                               conv_ks, cin, S)
    xp = jnp.pad(x, ((0, 0), (P, P), (0, 0)))
    spad = S + 2 * P
    return pl.pallas_call(
        functools.partial(_conv_fusion_kernel, seq_len=S, n_win=n_win),
        grid=(1,),
        out_shape=(jax.ShapeDtypeStruct((B, S, d_model), jnp.bfloat16),
                   jax.ShapeDtypeStruct((B, d_model), jnp.float32)),
        in_specs=[pl.BlockSpec((B, spad, cin), lambda i: (0, 0, 0)),
                  _wspec(w_big), _wspec(b_big)],
        out_specs=(pl.BlockSpec((B, S, d_model), lambda i: (0, 0, 0)),
                   pl.BlockSpec((B, d_model), lambda i: (0, 0))),
        compiler_params=pltpu.CompilerParams(dimension_semantics=("arbitrary",)),
    )(xp, w_big, b_big)


# ---------------------------------------------------------------------------
# kernel 2: fused pre-norm transformer encoder layer (whole batch per step)
# ---------------------------------------------------------------------------

def _encoder_layer_kernel(x_ref, ln1g, ln1b, wqkv, bqkv, wo, bo,
                          ln2g, ln2b, w1, b1, w2, b2,
                          o_ref, pooled_ref, *, n_heads, d_head, eps):
    B, S, D = x_ref.shape

    def ln(v, g, b):
        mu = jnp.mean(v, axis=-1, keepdims=True)
        var = jnp.mean(jnp.square(v - mu), axis=-1, keepdims=True)
        return (v - mu) * lax.rsqrt(var + eps) * g[...] + b[...]

    def mm(a, w, b):
        return jnp.dot(a.astype(w.dtype), w[...],
                       preferred_element_type=jnp.float32) + b[...]

    # batch folded into M for every projection / FFN matmul
    x = x_ref[...].astype(jnp.float32).reshape(B * S, D)

    # --- self-attention block (pre-norm, fused QKV projection) ---
    x2 = ln(x, ln1g, ln1b)
    qkv = mm(x2, wqkv, bqkv).reshape(B, S, 3 * D)
    scale = 1.0 / (d_head ** 0.5)
    q = qkv[:, :, :D] * scale                     # scale folded into q once
    k = qkv[:, :, D:2 * D]
    v = qkv[:, :, 2 * D:]
    heads = []
    # TODO(synk): at reference scale (64 heads) move heads into the grid or a
    # head-major relayout so the per-head lane slices disappear as well.
    for h in range(n_heads):
        sl = slice(h * d_head, (h + 1) * d_head)
        s = jnp.einsum('bqd,bkd->bqk', q[:, :, sl], k[:, :, sl],
                       preferred_element_type=jnp.float32)   # no k.T materialized
        s = s - jnp.max(s, axis=-1, keepdims=True)
        es = jnp.exp(s)
        p = es * pl.reciprocal(jnp.sum(es, axis=-1, keepdims=True), approx=True)
        heads.append(jnp.einsum('bqk,bkd->bqd', p, v[:, :, sl],
                                preferred_element_type=jnp.float32))
    attn = jnp.concatenate(heads, axis=-1).reshape(B * S, D)
    x = x + mm(attn, wo, bo)

    # --- feed-forward block (pre-norm) ---
    x2 = ln(x, ln2g, ln2b)
    ff = jnp.maximum(mm(x2, w1, b1), 0.0)
    x = x + mm(ff, w2, b2)

    x = x.reshape(B, S, D)
    o_ref[...] = x.astype(o_ref.dtype)            # bf16 inter-layer activation
    pooled_ref[...] = jnp.mean(x, axis=1)         # seq-mean emitted here so the
                                                  # head kernel never re-reads [B,S,D]
    # TODO(synk): reference also emits per-layer random (torch.randn->softmax)
    # attention weights for explanations only; not reproduced.


def encoder_layer(h, lp, n_heads, d_head):
    B, S, D = h.shape
    weights = [lp["ln1_g"], lp["ln1_b"], lp["wqkv"], lp["bqkv"], lp["wo"], lp["bo"],
               lp["ln2_g"], lp["ln2_b"], lp["w1"], lp["b1"], lp["w2"], lp["b2"]]
    return pl.pallas_call(
        functools.partial(_encoder_layer_kernel, n_heads=n_heads,
                          d_head=d_head, eps=1e-5),
        grid=(1,),
        out_shape=(jax.ShapeDtypeStruct((B, S, D), jnp.bfloat16),
                   jax.ShapeDtypeStruct((B, D), jnp.float32)),
        in_specs=[pl.BlockSpec((B, S, D), lambda i: (0, 0, 0))]
                 + [_wspec(w) for w in weights],
        out_specs=(pl.BlockSpec((B, S, D), lambda i: (0, 0, 0)),
                   pl.BlockSpec((B, D), lambda i: (0, 0))),
        compiler_params=pltpu.CompilerParams(dimension_semantics=("arbitrary",)),
    )(h, *weights)


# ---------------------------------------------------------------------------
# kernel 3: meta-learner + gating + MoE (grid over experts) + decision + heads
# ---------------------------------------------------------------------------

def _head_kernel(att_ref, pool_ref,
                 m1aw, m1bw, m1b, m2w, m2b,
                 g1w, g1b, g2w, g2b,
                 ew1, eb1, ew2, eb2, ew3, eb3, d1w,
                 d1b, d2w, d2b, d3w, d3b, hw, hb,
                 o_ref, meta_sc, gate_sc, d1_sc, *, n_timing):
    def mm(a, w, b):
        return jnp.dot(a.astype(w.dtype), w[...],
                       preferred_element_type=jnp.float32) + b[...]

    e = pl.program_id(0)

    @pl.when(e == 0)
    def _():
        att = att_ref[...].astype(jnp.float32)             # [B, D]
        pool = pool_ref[...].astype(jnp.float32)           # [B, D]
        # meta learner: Linear(cat([att, pool])) split into two matmuls (no concat)
        a = jnp.dot(att.astype(m1aw.dtype), m1aw[...],
                    preferred_element_type=jnp.float32)
        a = a + jnp.dot(pool.astype(m1bw.dtype), m1bw[...],
                        preferred_element_type=jnp.float32)
        a = jnp.maximum(a + m1b[...], 0.0)
        a = mm(a, m2w, m2b)
        meta_sc[...] = att + 0.1 * a
        # gating network -> softmax over experts
        g = jnp.maximum(mm(meta_sc[...], g1w, g1b), 0.0)
        logits = mm(g, g2w, g2b)                           # [B, E]
        logits = logits - jnp.max(logits, axis=-1, keepdims=True)
        eg = jnp.exp(logits)
        gate_sc[...] = eg * pl.reciprocal(jnp.sum(eg, axis=-1, keepdims=True),
                                          approx=True)
        d1_sc[...] = jnp.zeros_like(d1_sc)

    # one expert per grid step: only this expert's weights (+ its row-block of
    # decision layer 1) are resident; its gated output is accumulated straight
    # into the decision-layer-1 scratch (no [B, E*expert_out] concat).
    meta = meta_sc[...]
    t = jnp.maximum(mm(meta, ew1, eb1), 0.0)
    t = jnp.maximum(mm(t, ew2, eb2), 0.0)
    t = mm(t, ew3, eb3)                                    # [B, eo]
    col = lax.broadcasted_iota(jnp.int32, gate_sc.shape, 1)
    g_e = jnp.sum(jnp.where(col == e, gate_sc[...], 0.0), axis=-1, keepdims=True)
    d1_sc[...] += jnp.dot((t * g_e).astype(d1w.dtype), d1w[...],
                          preferred_element_type=jnp.float32)

    @pl.when(e == pl.num_programs(0) - 1)
    def _():
        d = jnp.maximum(d1_sc[...] + d1b[...], 0.0)
        d = jnp.maximum(mm(d, d2w, d2b), 0.0)
        d = mm(d, d3w, d3b)                                # [B, dec_out]
        # fused, lane-dense prediction heads in one 128-wide slab:
        #   col 0 = profit, 1 = sigmoid(confidence), 2 = sigmoid(risk),
        #   3..12 = softmax(timing), rest = zero padding.
        raw = mm(d, hw, hb)                                # [B, 128]
        c = lax.broadcasted_iota(jnp.int32, raw.shape, 1)
        is_sig = (c == 1) | (c == 2)
        tmask = (c >= 3) & (c < 3 + n_timing)
        tlog = jnp.where(tmask, raw, -1e30)                # mask BEFORE exp (no inf)
        tlog = tlog - jnp.max(tlog, axis=-1, keepdims=True)
        et = jnp.exp(tlog)
        timing = et * pl.reciprocal(jnp.sum(et, axis=-1, keepdims=True),
                                    approx=True)
        o_ref[...] = jnp.where(is_sig, jax.nn.sigmoid(raw),
                               jnp.where(tmask, timing, raw))


def prediction_head(attended, pooled_fused, p, cfg):
    B, D = attended.shape
    E = cfg["n_experts"]

    flat_w = [p["meta1a_w"], p["meta1b_w"], p["meta1_b"], p["meta2_w"], p["meta2_b"],
              p["gate1_w"], p["gate1_b"], p["gate2_w"], p["gate2_b"]]
    exp_w = [p["exp_w1"], p["exp_b1"], p["exp_w2"], p["exp_b2"],
             p["exp_w3"], p["exp_b3"], p["dec1_w"]]
    tail_w = [p["dec1_b"], p["dec2_w"], p["dec2_b"], p["dec3_w"], p["dec3_b"],
              p["heads_w"], p["heads_b"]]

    def eblk(a):   # per-expert block of an [E, ...]-stacked weight
        nd = a.ndim
        return pl.BlockSpec((None,) + a.shape[1:],
                            lambda e: (e,) + (0,) * (nd - 1))

    in_specs = ([_wspec(attended), _wspec(pooled_fused)]
                + [_wspec(w) for w in flat_w]
                + [eblk(w) for w in exp_w]
                + [_wspec(w) for w in tail_w])

    return pl.pallas_call(
        functools.partial(_head_kernel, n_timing=N_TIMING),
        grid=(E,),
        out_shape=jax.ShapeDtypeStruct((B, HEAD_PAD), jnp.float32),
        in_specs=in_specs,
        out_specs=pl.BlockSpec((B, HEAD_PAD), lambda e: (0, 0)),
        scratch_shapes=[pltpu.VMEM((B, D), jnp.float32),
                        pltpu.VMEM((B, E), jnp.float32),
                        pltpu.VMEM((B, cfg["dec_h1"]), jnp.float32)],
        compiler_params=pltpu.CompilerParams(dimension_semantics=("arbitrary",)),
    )(attended, pooled_fused, *flat_w, *exp_w, *tail_w)


# ------------------------------- parameters --------------------------------

def init_params(key, cfg):
    keys = [key]

    def nxt():
        keys[0], sub = jax.random.split(keys[0])
        return sub

    def wmat(fi, fo, dtype=jnp.bfloat16):     # bf16 weights, f32 MXU accumulation
        w = jax.random.normal(nxt(), (fi, fo), jnp.float32) / (fi ** 0.5)
        return w.astype(dtype)

    def bvec(fo):                             # biases / LN params stay f32
        return jax.random.normal(nxt(), (1, fo), jnp.float32) * 0.01

    D = cfg["d_model"]
    ci, co = cfg["c_in"], cfg["conv_out"]
    E = cfg["n_experts"]
    h1, h2, eo = cfg["expert_h1"], cfg["expert_h2"], cfg["expert_out"]
    p = {}

    # convs + fusion kept in f32: folded into one bf16 matmul in the wrapper
    p["convs"] = []
    for k in cfg["conv_ks"]:
        w = jax.random.normal(nxt(), (k, ci, co), jnp.float32) / ((ci * k) ** 0.5)
        p["convs"].append((w, bvec(co)))
    nsc = len(cfg["conv_ks"])
    p["fusion_w"] = (jax.random.normal(nxt(), (co * nsc, D), jnp.float32)
                     / ((co * nsc) ** 0.5))
    p["fusion_b"] = bvec(D)

    p["layers"] = []
    for _ in range(cfg["n_layers"]):
        p["layers"].append({
            "ln1_g": jnp.ones((1, D), jnp.float32),
            "ln1_b": jnp.zeros((1, D), jnp.float32),
            "wqkv": wmat(D, 3 * D), "bqkv": bvec(3 * D),
            "wo": wmat(D, D), "bo": bvec(D),
            "ln2_g": jnp.ones((1, D), jnp.float32),
            "ln2_b": jnp.zeros((1, D), jnp.float32),
            "w1": wmat(D, cfg["d_ff"]), "b1": bvec(cfg["d_ff"]),
            "w2": wmat(cfg["d_ff"], D), "b2": bvec(D),
        })

    # meta learner: Linear(2D -> D) stored as its attended / pooled halves
    p["meta1a_w"], p["meta1b_w"], p["meta1_b"] = wmat(D, D), wmat(D, D), bvec(D)
    p["meta2_w"], p["meta2_b"] = wmat(D, D), bvec(D)

    p["gate1_w"], p["gate1_b"] = wmat(D, cfg["gate_hidden"]), bvec(cfg["gate_hidden"])
    p["gate2_w"], p["gate2_b"] = wmat(cfg["gate_hidden"], E), bvec(E)

    p["exp_w1"] = jnp.stack([wmat(D, h1) for _ in range(E)])
    p["exp_b1"] = jnp.stack([bvec(h1) for _ in range(E)])
    p["exp_w2"] = jnp.stack([wmat(h1, h2) for _ in range(E)])
    p["exp_b2"] = jnp.stack([bvec(h2) for _ in range(E)])
    p["exp_w3"] = jnp.stack([wmat(h2, eo) for _ in range(E)])
    p["exp_b3"] = jnp.stack([bvec(eo) for _ in range(E)])

    # decision layer 1 stored expert-blocked [E, eo, dec_h1] == row blocks of the
    # reference [E*eo, dec_h1] matrix (so each expert grid step loads only its block)
    p["dec1_w"] = jnp.stack([wmat(eo, cfg["dec_h1"]) for _ in range(E)])
    p["dec1_b"] = bvec(cfg["dec_h1"])
    p["dec2_w"], p["dec2_b"] = wmat(cfg["dec_h1"], cfg["dec_h2"]), bvec(cfg["dec_h2"])
    p["dec3_w"], p["dec3_b"] = wmat(cfg["dec_h2"], cfg["dec_out"]), bvec(cfg["dec_out"])

    # profit(1) | confidence(1) | risk(1) | timing(10) -> one lane-dense [.,128] slab
    hw = jnp.concatenate([wmat(cfg["dec_out"], 1, jnp.float32),
                          wmat(cfg["dec_out"], 1, jnp.float32),
                          wmat(cfg["dec_out"], 1, jnp.float32),
                          wmat(cfg["dec_out"], N_TIMING, jnp.float32)], axis=-1)
    hb = jnp.concatenate([bvec(1), bvec(1), bvec(1), bvec(N_TIMING)], axis=-1)
    p["heads_w"] = jnp.pad(hw, ((0, 0), (0, HEAD_PAD - 3 - N_TIMING))).astype(jnp.bfloat16)
    p["heads_b"] = jnp.pad(hb, ((0, 0), (0, HEAD_PAD - 3 - N_TIMING)))
    return p


# --------------------------------- forward ----------------------------------

def beyond_human_forward(x_ncw, params, cfg):
    # PyTorch Conv1d layout [B, C, S] -> channels-last [B, S, C]
    x = jnp.transpose(x_ncw, (0, 2, 1)).astype(jnp.float32)

    # 1+2. multi-scale temporal convs + fusion (one folded matmul kernel); also
    #      emits the seq-pooled fused features needed by the meta learner.
    fused, pooled_fused = multiscale_conv_fusion(
        x, params["convs"], params["fusion_w"], params["fusion_b"],
        cfg["conv_ks"], cfg["d_model"])

    # 3. pre-norm transformer encoder, one fused kernel per layer (dropout =
    #    identity); each layer also emits its seq-mean, so `attended` from the
    #    last layer is output.mean(dim=1) without re-reading [B, S, D].
    h = fused
    attended = None
    for lp in params["layers"]:
        h, attended = encoder_layer(h, lp, cfg["n_heads"], cfg["d_head"])

    # 4-6. meta learner + MoE (grid over experts) + decision MLP + heads.
    # TODO(synk): reference torch.cat([attended, fused_features], -1) is
    # rank-mismatched ([B,D] vs [B,S,D]); fused features are seq-pooled here.
    out = prediction_head(attended, pooled_fused, params, cfg)

    preds = {
        "profit": out[:, 0:1],
        "confidence": out[:, 1:2],
        "risk": out[:, 2:3],
        "timing": out[:, 3:3 + N_TIMING],
    }
    # TODO(synk): NeuralExplanation generation (IntegratedGradients backward
    # passes, AttentionExplainer on random weights, ConceptBottleneck) is
    # host-side diagnostic Python and is not implemented as kernels.
    return preds


# ----------------------------------- main ------------------------------------

if __name__ == "__main__":
    cfg = {
        # scaled-down hyperparameters (structure faithful to the module)
        "c_in": 8,            # input_dim (1000 in reference)
        "seq": 16,            # sequence length
        "conv_ks": [3, 7, 15, 31, 63, 127, 255],
        "conv_out": 16,       # per-scale conv channels (256 in reference)
        "d_model": 128,       # 2048 in reference; multiple of 128 -> lane-dense
        "n_heads": 4,         # 64 in reference
        "d_head": 32,
        "d_ff": 256,          # 8192 in reference
        "n_layers": 2,        # 12 in reference
        "gate_hidden": 32,    # 512 in reference
        "n_experts": 4,       # 32 in reference
        "expert_h1": 64, "expert_h2": 32, "expert_out": 16,
        "dec_h1": 32, "dec_h2": 32, "dec_out": 16,
    }
    assert cfg["n_heads"] * cfg["d_head"] == cfg["d_model"]

    key = jax.random.PRNGKey(0)
    kparams, kx = jax.random.split(key)
    params = init_params(kparams, cfg)

    # PyTorch layout: [batch, channels(=input_dim), sequence]  (NCW)
    x = jax.random.normal(kx, (2, cfg["c_in"], cfg["seq"]), jnp.float32)

    fwd = jax.jit(lambda xx: beyond_human_forward(xx, params, cfg))
    preds = fwd(x)
    preds = jax.tree_util.tree_map(jax.block_until_ready, preds)

    assert preds["profit"].shape == (2, 1)
    assert preds["confidence"].shape == (2, 1)
    assert preds["risk"].shape == (2, 1)
    assert preds["timing"].shape == (2, N_TIMING)
    for v in preds.values():
        assert bool(jnp.all(jnp.isfinite(v)))
    # approx-reciprocal softmax: sums ~1 but not exact
    assert bool(jnp.all(jnp.abs(jnp.sum(preds["timing"], axis=-1) - 1.0) < 1e-2))
    print("KERNEL_OK")
</pallas_src>

<mosaic_0001>
module attributes {stable_mosaic.version = 11 : i64} {
  func.func @_conv_fusion_kernel(%arg0: i32, %arg1: memref<2x46x8xf32, #tpu.memory_space<vmem>>, %arg2: memref<248x128xbf16, #tpu.memory_space<vmem>>, %arg3: memref<1x128xf32, #tpu.memory_space<vmem>>, %arg4: memref<2x16x128xbf16, #tpu.memory_space<vmem>>, %arg5: memref<2x128xf32, #tpu.memory_space<vmem>>) attributes {dimension_semantics = [#tpu.dimension_semantics<arbitrary>], iteration_bounds = array<i64: 1>, scalar_prefetch = 0 : i64, scratch_operands = 0 : i64, tpu.core_type = #tpu.core_type<tc>, window_params = [{pipeline_mode = #tpu.pipeline_mode<synchronous>, transform_indices = @transform_0, window_bounds = array<i64: 2, 46, 8>}, {pipeline_mode = #tpu.pipeline_mode<synchronous>, transform_indices = @transform_1, window_bounds = array<i64: 248, 128>}, {pipeline_mode = #tpu.pipeline_mode<synchronous>, transform_indices = @transform_2, window_bounds = array<i64: 1, 128>}, {pipeline_mode = #tpu.pipeline_mode<synchronous>, transform_indices = @transform_3, window_bounds = array<i64: 2, 16, 128>}, {pipeline_mode = #tpu.pipeline_mode<synchronous>, transform_indices = @transform_4, window_bounds = array<i64: 2, 128>}]} {
    %c0 = arith.constant 0 : index
    %c0_0 = arith.constant 0 : index
    %c0_1 = arith.constant 0 : index
    %0 = vector.load %arg1[%c0, %c0_0, %c0_1] : memref<2x46x8xf32, #tpu.memory_space<vmem>>, vector<2x46x8xf32>
    %1 = vector.extract_strided_slice %0 {offsets = [0, 0, 0], sizes = [2, 16, 8], strides = [1, 1, 1]} : vector<2x46x8xf32> to vector<2x16x8xf32>
    %2 = vector.extract_strided_slice %0 {offsets = [0, 1, 0], sizes = [2, 16, 8], strides = [1, 1, 1]} : vector<2x46x8xf32> to vector<2x16x8xf32>
    %3 = vector.extract_strided_slice %0 {offsets = [0, 2, 0], sizes = [2, 16, 8], strides = [1, 1, 1]} : vector<2x46x8xf32> to vector<2x16x8xf32>
    %4 = vector.extract_strided_slice %0 {offsets = [0, 3, 0], sizes = [2, 16, 8], strides = [1, 1, 1]} : vector<2x46x8xf32> to vector<2x16x8xf32>
    %5 = vector.extract_strided_slice %0 {offsets = [0, 4, 0], sizes = [2, 16, 8], strides = [1, 1, 1]} : vector<2x46x8xf32> to vector<2x16x8xf32>
    %6 = vector.extract_strided_slice %0 {offsets = [0, 5, 0], sizes = [2, 16, 8], strides = [1, 1, 1]} : vector<2x46x8xf32> to vector<2x16x8xf32>
    %7 = vector.extract_strided_slice %0 {offsets = [0, 6, 0], sizes = [2, 16, 8], strides = [1, 1, 1]} : vector<2x46x8xf32> to vector<2x16x8xf32>
    %8 = vector.extract_strided_slice %0 {offsets = [0, 7, 0], sizes = [2, 16, 8], strides = [1, 1, 1]} : vector<2x46x8xf32> to vector<2x16x8xf32>
    %9 = vector.extract_strided_slice %0 {offsets = [0, 8, 0], sizes = [2, 16, 8], strides = [1, 1, 1]} : vector<2x46x8xf32> to vector<2x16x8xf32>
    %10 = vector.extract_strided_slice %0 {offsets = [0, 9, 0], sizes = [2, 16, 8], strides = [1, 1, 1]} : vector<2x46x8xf32> to vector<2x16x8xf32>
    %11 = vector.extract_strided_slice %0 {offsets = [0, 10, 0], sizes = [2, 16, 8], strides = [1, 1, 1]} : vector<2x46x8xf32> to vector<2x16x8xf32>
    %12 = vector.extract_strided_slice %0 {offsets = [0, 11, 0], sizes = [2, 16, 8], strides = [1, 1, 1]} : vector<2x46x8xf32> to vector<2x16x8xf32>
    %13 = vector.extract_strided_slice %0 {offsets = [0, 12, 0], sizes = [2, 16, 8], strides = [1, 1, 1]} : vector<2x46x8xf32> to vector<2x16x8xf32>
    %14 = vector.extract_strided_slice %0 {offsets = [0, 13, 0], sizes = [2, 16, 8], strides = [1, 1, 1]} : vector<2x46x8xf32> to vector<2x16x8xf32>
    %15 = vector.extract_strided_slice %0 {offsets = [0, 14, 0], sizes = [2, 16, 8], strides = [1, 1, 1]} : vector<2x46x8xf32> to vector<2x16x8xf32>
    %16 = vector.extract_strided_slice %0 {offsets = [0, 15, 0], sizes = [2, 16, 8], strides = [1, 1, 1]} : vector<2x46x8xf32> to vector<2x16x8xf32>
    %17 = vector.extract_strided_slice %0 {offsets = [0, 16, 0], sizes = [2, 16, 8], strides = [1, 1, 1]} : vector<2x46x8xf32> to vector<2x16x8xf32>
    %18 = vector.extract_strided_slice %0 {offsets = [0, 17, 0], sizes = [2, 16, 8], strides = [1, 1, 1]} : vector<2x46x8xf32> to vector<2x16x8xf32>
    %19 = vector.extract_strided_slice %0 {offsets = [0, 18, 0], sizes = [2, 16, 8], strides = [1, 1, 1]} : vector<2x46x8xf32> to vector<2x16x8xf32>
    %20 = vector.extract_strided_slice %0 {offsets = [0, 19, 0], sizes = [2, 16, 8], strides = [1, 1, 1]} : vector<2x46x8xf32> to vector<2x16x8xf32>
    %21 = vector.extract_strided_slice %0 {offsets = [0, 20, 0], sizes = [2, 16, 8], strides = [1, 1, 1]} : vector<2x46x8xf32> to vector<2x16x8xf32>
    %22 = vector.extract_strided_slice %0 {offsets = [0, 21, 0], sizes = [2, 16, 8], strides = [1, 1, 1]} : vector<2x46x8xf32> to vector<2x16x8xf32>
    %23 = vector.extract_strided_slice %0 {offsets = [0, 22, 0], sizes = [2, 16, 8], strides = [1, 1, 1]} : vector<2x46x8xf32> to vector<2x16x8xf32>
    %24 = vector.extract_strided_slice %0 {offsets = [0, 23, 0], sizes = [2, 16, 8], strides = [1, 1, 1]} : vector<2x46x8xf32> to vector<2x16x8xf32>
    %25 = vector.extract_strided_slice %0 {offsets = [0, 24, 0], sizes = [2, 16, 8], strides = [1, 1, 1]} : vector<2x46x8xf32> to vector<2x16x8xf32>
    %26 = vector.extract_strided_slice %0 {offsets = [0, 25, 0], sizes = [2, 16, 8], strides = [1, 1, 1]} : vector<2x46x8xf32> to vector<2x16x8xf32>
    %27 = vector.extract_strided_slice %0 {offsets = [0, 26, 0], sizes = [2, 16, 8], strides = [1, 1, 1]} : vector<2x46x8xf32> to vector<2x16x8xf32>
    %28 = vector.extract_strided_slice %0 {offsets = [0, 27, 0], sizes = [2, 16, 8], strides = [1, 1, 1]} : vector<2x46x8xf32> to vector<2x16x8xf32>
    %29 = vector.extract_strided_slice %0 {offsets = [0, 28, 0], sizes = [2, 16, 8], strides = [1, 1, 1]} : vector<2x46x8xf32> to vector<2x16x8xf32>
    %30 = vector.extract_strided_slice %0 {offsets = [0, 29, 0], sizes = [2, 16, 8], strides = [1, 1, 1]} : vector<2x46x8xf32> to vector<2x16x8xf32>
    %31 = vector.extract_strided_slice %0 {offsets = [0, 30, 0], sizes = [2, 16, 8], strides = [1, 1, 1]} : vector<2x46x8xf32> to vector<2x16x8xf32>
    %32 = tpu.concatenate %1, %2, %3, %4, %5, %6, %7, %8, %9, %10, %11, %12, %13, %14, %15, %16 in 2 : vector<2x16x8xf32>, vector<2x16x8xf32>, vector<2x16x8xf32>, vector<2x16x8xf32>, vector<2x16x8xf32>, vector<2x16x8xf32>, vector<2x16x8xf32>, vector<2x16x8xf32>, vector<2x16x8xf32>, vector<2x16x8xf32>, vector<2x16x8xf32>, vector<2x16x8xf32>, vector<2x16x8xf32>, vector<2x16x8xf32>, vector<2x16x8xf32>, vector<2x16x8xf32> -> vector<2x16x128xf32>
    %33 = tpu.concatenate %17, %18, %19, %20, %21, %22, %23, %24, %25, %26, %27, %28, %29, %30, %31 in 2 : vector<2x16x8xf32>, vector<2x16x8xf32>, vector<2x16x8xf32>, vector<2x16x8xf32>, vector<2x16x8xf32>, vector<2x16x8xf32>, vector<2x16x8xf32>, vector<2x16x8xf32>, vector<2x16x8xf32>, vector<2x16x8xf32>, vector<2x16x8xf32>, vector<2x16x8xf32>, vector<2x16x8xf32>, vector<2x16x8xf32>, vector<2x16x8xf32> -> vector<2x16x120xf32>
    %34 = tpu.concatenate %32, %33 in 2 : vector<2x16x128xf32>, vector<2x16x120xf32> -> vector<2x16x248xf32>
    %35 = vector.shape_cast %34 : vector<2x16x248xf32> to vector<32x248xf32>
    %36 = arith.truncf %35 : vector<32x248xf32> to vector<32x248xbf16>
    %c0_2 = arith.constant 0 : index
    %c0_3 = arith.constant 0 : index
    %37 = vector.load %arg2[%c0_2, %c0_3] : memref<248x128xbf16, #tpu.memory_space<vmem>>, vector<248x128xbf16>
    %cst = arith.constant dense<0.000000e+00> : vector<32x128xf32>
    %38 = tpu.matmul %36, %37, %cst {dimension_numbers = #tpu.dot_dimension_numbers<[1], [0], [0], [1], [0, 0, 1, 1], [], []>} : vector<32x248xbf16>, vector<248x128xbf16>, vector<32x128xf32> -> vector<32x128xf32>
    %c0_4 = arith.constant 0 : index
    %c0_5 = arith.constant 0 : index
    %39 = vector.load %arg3[%c0_4, %c0_5] : memref<1x128xf32, #tpu.memory_space<vmem>>, vector<1x128xf32>
    %40 = vector.broadcast %39 : vector<1x128xf32> to vector<32x128xf32>
    %41 = arith.addf %38, %40 : vector<32x128xf32>
    %42 = vector.shape_cast %41 : vector<32x128xf32> to vector<2x16x128xf32>
    %43 = arith.truncf %42 : vector<2x16x128xf32> to vector<2x16x128xbf16>
    %c0_6 = arith.constant 0 : index
    %c0_7 = arith.constant 0 : index
    %c0_8 = arith.constant 0 : index
    %44 = vector.load %arg4[%c0_6, %c0_7, %c0_8] : memref<2x16x128xbf16, #tpu.memory_space<vmem>>, vector<2x16x128xbf16>
    tpu.vector_store %arg4[%c0_6, %c0_7, %c0_8], %43 {strides = array<i32>} : memref<2x16x128xbf16, #tpu.memory_space<vmem>>, vector<2x16x128xbf16>,
    %cst_9 = arith.constant dense<0.000000e+00> : vector<2x128xf32>
    %45 = vector.multi_reduction <add>, %42, %cst_9 [1] : vector<2x16x128xf32> to vector<2x128xf32>
    %cst_10 = arith.constant 1.600000e+01 : f32
    %46 = vector.broadcast %cst_10 : f32 to vector<2x128xf32>
    %47 = arith.divf %45, %46 : vector<2x128xf32>
    %c0_11 = arith.constant 0 : index
    %c0_12 = arith.constant 0 : index
    %48 = vector.load %arg5[%c0_11, %c0_12] : memref<2x128xf32, #tpu.memory_space<vmem>>, vector<2x128xf32>
    tpu.vector_store %arg5[%c0_11, %c0_12], %47 {strides = array<i32>} : memref<2x128xf32, #tpu.memory_space<vmem>>, vector<2x128xf32>,
    return
  }
  func.func @transform_0(%arg0: i32) -> (i32, i32, i32) {
    %c0_i32 = arith.constant 0 : i32
    %c0_i32_0 = arith.constant 0 : i32
    %c0_i32_1 = arith.constant 0 : i32
    %c0_i32_2 = arith.constant 0 : i32
    return %c0_i32, %c0_i32_0, %c0_i32_1 : i32, i32, i32
  }
  func.func @transform_1(%arg0: i32) -> (i32, i32) {
    %c0_i32 = arith.constant 0 : i32
    %c0_i32_0 = arith.constant 0 : i32
    %c0_i32_1 = arith.constant 0 : i32
    return %c0_i32, %c0_i32_0 : i32, i32
  }
  func.func @transform_2(%arg0: i32) -> (i32, i32) {
    %c0_i32 = arith.constant 0 : i32
    %c0_i32_0 = arith.constant 0 : i32
    %c0_i32_1 = arith.constant 0 : i32
    return %c0_i32, %c0_i32_0 : i32, i32
  }
  func.func @transform_3(%arg0: i32) -> (i32, i32, i32) {
    %c0_i32 = arith.constant 0 : i32
    %c0_i32_0 = arith.constant 0 : i32
    %c0_i32_1 = arith.constant 0 : i32
    %c0_i32_2 = arith.constant 0 : i32
    return %c0_i32, %c0_i32_0, %c0_i32_1 : i32, i32, i32
  }
  func.func @transform_4(%arg0: i32) -> (i32, i32) {
    %c0_i32 = arith.constant 0 : i32
    %c0_i32_0 = arith.constant 0 : i32
    %c0_i32_1 = arith.constant 0 : i32
    return %c0_i32, %c0_i32_0 : i32, i32
  }
}

module attributes {stable_mosaic.version = 11 : i64} {
  func.func @_encoder_layer_kernel(%arg0: i32, %arg1: memref<2x16x128xbf16, #tpu.memory_space<vmem>>, %arg2: memref<1x128xf32, #tpu.memory_space<vmem>>, %arg3: memref<1x128xf32, #tpu.memory_space<vmem>>, %arg4: memref<128x384xbf16, #tpu.memory_space<vmem>>, %arg5: memref<1x384xf32, #tpu.memory_space<vmem>>, %arg6: memref<128x128xbf16, #tpu.memory_space<vmem>>, %arg7: memref<1x128xf32, #tpu.memory_space<vmem>>, %arg8: memref<1x128xf32, #tpu.memory_space<vmem>>, %arg9: memref<1x128xf32, #tpu.memory_space<vmem>>, %arg10: memref<128x256xbf16, #tpu.memory_space<vmem>>, %arg11: memref<1x256xf32, #tpu.memory_space<vmem>>, %arg12: memref<256x128xbf16, #tpu.memory_space<vmem>>, %arg13: memref<1x128xf32, #tpu.memory_space<vmem>>, %arg14: memref<2x16x128xbf16, #tpu.memory_space<vmem>>, %arg15: memref<2x128xf32, #tpu.memory_space<vmem>>) attributes {dimension_semantics = [#tpu.dimension_semantics<arbitrary>], iteration_bounds = array<i64: 1>, scalar_prefetch = 0 : i64, scratch_operands = 0 : i64, tpu.core_type = #tpu.core_type<tc>, window_params = [{pipeline_mode = #tpu.pipeline_mode<synchronous>, transform_indices = @transform_0, window_bounds = array<i64: 2, 16, 128>}, {pipeline_mode = #tpu.pipeline_mode<synchronous>, transform_indices = @transform_1, window_bounds = array<i64: 1, 128>}, {pipeline_mode = #tpu.pipeline_mode<synchronous>, transform_indices = @transform_2, window_bounds = array<i64: 1, 128>}, {pipeline_mode = #tpu.pipeline_mode<synchronous>, transform_indices = @transform_3, window_bounds = array<i64: 128, 384>}, {pipeline_mode = #tpu.pipeline_mode<synchronous>, transform_indices = @transform_4, window_bounds = array<i64: 1, 384>}, {pipeline_mode = #tpu.pipeline_mode<synchronous>, transform_indices = @transform_5, window_bounds = array<i64: 128, 128>}, {pipeline_mode = #tpu.pipeline_mode<synchronous>, transform_indices = @transform_6, window_bounds = array<i64: 1, 128>}, {pipeline_mode = #tpu.pipeline_mode<synchronous>, transform_indices = @transform_7, window_bounds = array<i64: 1, 128>}, {pipeline_mode = #tpu.pipeline_mode<synchronous>, transform_indices = @transform_8, window_bounds = array<i64: 1, 128>}, {pipeline_mode = #tpu.pipeline_mode<synchronous>, transform_indices = @transform_9, window_bounds = array<i64: 128, 256>}, {pipeline_mode = #tpu.pipeline_mode<synchronous>, transform_indices = @transform_10, window_bounds = array<i64: 1, 256>}, {pipeline_mode = #tpu.pipeline_mode<synchronous>, transform_indices = @transform_11, window_bounds = array<i64: 256, 128>}, {pipeline_mode = #tpu.pipeline_mode<synchronous>, transform_indices = @transform_12, window_bounds = array<i64: 1, 128>}, {pipeline_mode = #tpu.pipeline_mode<synchronous>, transform_indices = @transform_13, window_bounds = array<i64: 2, 16, 128>}, {pipeline_mode = #tpu.pipeline_mode<synchronous>, transform_indices = @transform_14, window_bounds = array<i64: 2, 128>}]} {
    %c0 = arith.constant 0 : index
    %c0_0 = arith.constant 0 : index
    %c0_1 = arith.constant 0 : index
    %0 = vector.load %arg1[%c0, %c0_0, %c0_1] : memref<2x16x128xbf16, #tpu.memory_space<vmem>>, vector<2x16x128xbf16>
    %1 = arith.extf %0 : vector<2x16x128xbf16> to vector<2x16x128xf32>
    %2 = vector.shape_cast %1 : vector<2x16x128xf32> to vector<32x128xf32>
    %cst = arith.constant dense<0.000000e+00> : vector<32xf32>
    %3 = vector.multi_reduction <add>, %2, %cst [1] : vector<32x128xf32> to vector<32xf32>
    %4 = vector.shape_cast %3 : vector<32xf32> to vector<32x1xf32>
    %cst_2 = arith.constant 1.280000e+02 : f32
    %5 = vector.broadcast %cst_2 : f32 to vector<32x1xf32>
    %6 = arith.divf %4, %5 : vector<32x1xf32>
    %7 = vector.broadcast %6 : vector<32x1xf32> to vector<32x128xf32>
    %8 = arith.subf %2, %7 : vector<32x128xf32>
    %9 = arith.mulf %8, %8 : vector<32x128xf32>
    %cst_3 = arith.constant dense<0.000000e+00> : vector<32xf32>
    %10 = vector.multi_reduction <add>, %9, %cst_3 [1] : vector<32x128xf32> to vector<32xf32>
    %11 = vector.shape_cast %10 : vector<32xf32> to vector<32x1xf32>
    %cst_4 = arith.constant 1.280000e+02 : f32
    %12 = vector.broadcast %cst_4 : f32 to vector<32x1xf32>
    %13 = arith.divf %11, %12 : vector<32x1xf32>
    %14 = vector.broadcast %6 : vector<32x1xf32> to vector<32x128xf32>
    %15 = arith.subf %2, %14 : vector<32x128xf32>
    %cst_5 = arith.constant 9.99999974E-6 : f32
    %16 = vector.broadcast %cst_5 : f32 to vector<32x1xf32>
    %17 = arith.addf %13, %16 : vector<32x1xf32>
    %18 = math.rsqrt %17 : vector<32x1xf32>
    %19 = vector.broadcast %18 : vector<32x1xf32> to vector<32x128xf32>
    %20 = arith.mulf %15, %19 : vector<32x128xf32>
    %c0_6 = arith.constant 0 : index
    %c0_7 = arith.constant 0 : index
    %21 = vector.load %arg2[%c0_6, %c0_7] : memref<1x128xf32, #tpu.memory_space<vmem>>, vector<1x128xf32>
    %22 = vector.broadcast %21 : vector<1x128xf32> to vector<32x128xf32>
    %23 = arith.mulf %20, %22 : vector<32x128xf32>
    %c0_8 = arith.constant 0 : index
    %c0_9 = arith.constant 0 : index
    %24 = vector.load %arg3[%c0_8, %c0_9] : memref<1x128xf32, #tpu.memory_space<vmem>>, vector<1x128xf32>
    %25 = vector.broadcast %24 : vector<1x128xf32> to vector<32x128xf32>
    %26 = arith.addf %23, %25 : vector<32x128xf32>
    %27 = arith.truncf %26 : vector<32x128xf32> to vector<32x128xbf16>
    %c0_10 = arith.constant 0 : index
    %c0_11 = arith.constant 0 : index
    %28 = vector.load %arg4[%c0_10, %c0_11] : memref<128x384xbf16, #tpu.memory_space<vmem>>, vector<128x384xbf16>
    %cst_12 = arith.constant dense<0.000000e+00> : vector<32x384xf32>
    %29 = tpu.matmul %27, %28, %cst_12 {dimension_numbers = #tpu.dot_dimension_numbers<[1], [0], [0], [1], [0, 0, 1, 1], [], []>} : vector<32x128xbf16>, vector<128x384xbf16>, vector<32x384xf32> -> vector<32x384xf32>
    %c0_13 = arith.constant 0 : index
    %c0_14 = arith.constant 0 : index
    %30 = vector.load %arg5[%c0_13, %c0_14] : memref<1x384xf32, #tpu.memory_space<vmem>>, vector<1x384xf32>
    %31 = vector.broadcast %30 : vector<1x384xf32> to vector<32x384xf32>
    %32 = arith.addf %29, %31 : vector<32x384xf32>
    %33 = vector.shape_cast %32 : vector<32x384xf32> to vector<2x16x384xf32>
    %34 = vector.extract_strided_slice %33 {offsets = [0, 0, 0], sizes = [2, 16, 128], strides = [1, 1, 1]} : vector<2x16x384xf32> to vector<2x16x128xf32>
    %cst_15 = arith.constant 0.176776692 : f32
    %35 = vector.broadcast %cst_15 : f32 to vector<2x16x128xf32>
    %36 = arith.mulf %34, %35 : vector<2x16x128xf32>
    %37 = vector.extract_strided_slice %33 {offsets = [0, 0, 128], sizes = [2, 16, 128], strides = [1, 1, 1]} : vector<2x16x384xf32> to vector<2x16x128xf32>
    %38 = vector.extract_strided_slice %33 {offsets = [0, 0, 256], sizes = [2, 16, 128], strides = [1, 1, 1]} : vector<2x16x384xf32> to vector<2x16x128xf32>
    %39 = vector.extract_strided_slice %36 {offsets = [0, 0, 0], sizes = [2, 16, 32], strides = [1, 1, 1]} : vector<2x16x128xf32> to vector<2x16x32xf32>
    %40 = vector.extract_strided_slice %37 {offsets = [0, 0, 0], sizes = [2, 16, 32], strides = [1, 1, 1]} : vector<2x16x128xf32> to vector<2x16x32xf32>
    "tpu.trace_start"() <{level = 10 : i32, message = "bqd,bkd->bqk"}> : () -> ()
    %cst_16 = arith.constant dense<0.000000e+00> : vector<2x16x16xf32>
    %41 = tpu.matmul %39, %40, %cst_16 {dimension_numbers = #tpu.dot_dimension_numbers<[2], [2], [1], [1], [0, 0, 0, 1, 1, 1], [0], [0]>} : vector<2x16x32xf32>, vector<2x16x32xf32>, vector<2x16x16xf32> -> vector<2x16x16xf32>
    "tpu.trace_stop"() : () -> ()
    %cst_17 = arith.constant dense<0xFF800000> : vector<2x16xf32>
    %42 = vector.multi_reduction <maximumf>, %41, %cst_17 [2] : vector<2x16x16xf32> to vector<2x16xf32>
    %43 = vector.shape_cast %42 : vector<2x16xf32> to vector<2x16x1xf32>
    %44 = vector.broadcast %43 : vector<2x16x1xf32> to vector<2x16x16xf32>
    %45 = arith.subf %41, %44 : vector<2x16x16xf32>
    %46 = math.exp %45 : vector<2x16x16xf32>
    %cst_18 = arith.constant dense<0.000000e+00> : vector<2x16xf32>
    %47 = vector.multi_reduction <add>, %46, %cst_18 [2] : vector<2x16x16xf32> to vector<2x16xf32>
    %48 = vector.shape_cast %47 : vector<2x16xf32> to vector<2x16x1xf32>
    %49 = tpu.reciprocal %48 {approx = true} : vector<2x16x1xf32> -> vector<2x16x1xf32>
    %50 = vector.broadcast %49 : vector<2x16x1xf32> to vector<2x16x16xf32>
    %51 = arith.mulf %46, %50 : vector<2x16x16xf32>
    %52 = vector.extract_strided_slice %38 {offsets = [0, 0, 0], sizes = [2, 16, 32], strides = [1, 1, 1]} : vector<2x16x128xf32> to vector<2x16x32xf32>
    "tpu.trace_start"() <{level = 10 : i32, message = "bqk,bkd->bqd"}> : () -> ()
    %cst_19 = arith.constant dense<0.000000e+00> : vector<2x16x32xf32>
    %53 = tpu.matmul %51, %52, %cst_19 {dimension_numbers = #tpu.dot_dimension_numbers<[2], [1], [1], [2], [0, 0, 0, 1, 1, 2], [0], [0]>} : vector<2x16x16xf32>, vector<2x16x32xf32>, vector<2x16x32xf32> -> vector<2x16x32xf32>
    "tpu.trace_stop"() : () -> ()
    %54 = vector.extract_strided_slice %36 {offsets = [0, 0, 32], sizes = [2, 16, 32], strides = [1, 1, 1]} : vector<2x16x128xf32> to vector<2x16x32xf32>
    %55 = vector.extract_strided_slice %37 {offsets = [0, 0, 32], sizes = [2, 16, 32], strides = [1, 1, 1]} : vector<2x16x128xf32> to vector<2x16x32xf32>
    "tpu.trace_start"() <{level = 10 : i32, message = "bqd,bkd->bqk"}> : () -> ()
    %cst_20 = arith.constant dense<0.000000e+00> : vector<2x16x16xf32>
    %56 = tpu.matmul %54, %55, %cst_20 {dimension_numbers = #tpu.dot_dimension_numbers<[2], [2], [1], [1], [0, 0, 0, 1, 1, 1], [0], [0]>} : vector<2x16x32xf32>, vector<2x16x32xf32>, vector<2x16x16xf32> -> vector<2x16x16xf32>
    "tpu.trace_stop"() : () -> ()
    %cst_21 = arith.constant dense<0xFF800000> : vector<2x16xf32>
    %57 = vector.multi_reduction <maximumf>, %56, %cst_21 [2] : vector<2x16x16xf32> to vector<2x16xf32>
    %58 = vector.shape_cast %57 : vector<2x16xf32> to vector<2x16x1xf32>
    %59 = vector.broadcast %58 : vector<2x16x1xf32> to vector<2x16x16xf32>
    %60 = arith.subf %56, %59 : vector<2x16x16xf32>
    %61 = math.exp %60 : vector<2x16x16xf32>
    %cst_22 = arith.constant dense<0.000000e+00> : vector<2x16xf32>
    %62 = vector.multi_reduction <add>, %61, %cst_22 [2] : vector<2x16x16xf32> to vector<2x16xf32>
    %63 = vector.shape_cast %62 : vector<2x16xf32> to vector<2x16x1xf32>
    %64 = tpu.reciprocal %63 {approx = true} : vector<2x16x1xf32> -> vector<2x16x1xf32>
    %65 = vector.broadcast %64 : vector<2x16x1xf32> to vector<2x16x16xf32>
    %66 = arith.mulf %61, %65 : vector<2x16x16xf32>
    %67 = vector.extract_strided_slice %38 {offsets = [0, 0, 32], sizes = [2, 16, 32], strides = [1, 1, 1]} : vector<2x16x128xf32> to vector<2x16x32xf32>
    "tpu.trace_start"() <{level = 10 : i32, message = "bqk,bkd->bqd"}> : () -> ()
    %cst_23 = arith.constant dense<0.000000e+00> : vector<2x16x32xf32>
    %68 = tpu.matmul %66, %67, %cst_23 {dimension_numbers = #tpu.dot_dimension_numbers<[2], [1], [1], [2], [0, 0, 0, 1, 1, 2], [0], [0]>} : vector<2x16x16xf32>, vector<2x16x32xf32>, vector<2x16x32xf32> -> vector<2x16x32xf32>
    "tpu.trace_stop"() : () -> ()
    %69 = vector.extract_strided_slice %36 {offsets = [0, 0, 64], sizes = [2, 16, 32], strides = [1, 1, 1]} : vector<2x16x128xf32> to vector<2x16x32xf32>
    %70 = vector.extract_strided_slice %37 {offsets = [0, 0, 64], sizes = [2, 16, 32], strides = [1, 1, 1]} : vector<2x16x128xf32> to vector<2x16x32xf32>
    "tpu.trace_start"() <{level = 10 : i32, message = "bqd,bkd->bqk"}> : () -> ()
    %cst_24 = arith.constant dense<0.000000e+00> : vector<2x16x16xf32>
    %71 = tpu.matmul %69, %70, %cst_24 {dimension_numbers = #tpu.dot_dimension_numbers<[2], [2], [1], [1], [0, 0, 0, 1, 1, 1], [0], [0]>} : vector<2x16x32xf32>, vector<2x16x32xf32>, vector<2x16x16xf32> -> vector<2x16x16xf32>
    "tpu.trace_stop"() : () -> ()
    %cst_25 = arith.constant dense<0xFF800000> : vector<2x16xf32>
    %72 = vector.multi_reduction <maximumf>, %71, %cst_25 [2] : vector<2x16x16xf32> to vector<2x16xf32>
    %73 = vector.shape_cast %72 : vector<2x16xf32> to vector<2x16x1xf32>
    %74 = vector.broadcast %73 : vector<2x16x1xf32> to vector<2x16x16xf32>
    %75 = arith.subf %71, %74 : vector<2x16x16xf32>
    %76 = math.exp %75 : vector<2x16x16xf32>
    %cst_26 = arith.constant dense<0.000000e+00> : vector<2x16xf32>
    %77 = vector.multi_reduction <add>, %76, %cst_26 [2] : vector<2x16x16xf32> to vector<2x16xf32>
    %78 = vector.shape_cast %77 : vector<2x16xf32> to vector<2x16x1xf32>
    %79 = tpu.reciprocal %78 {approx = true} : vector<2x16x1xf32> -> vector<2x16x1xf32>
    %80 = vector.broadcast %79 : vector<2x16x1xf32> to vector<2x16x16xf32>
    %81 = arith.mulf %76, %80 : vector<2x16x16xf32>
    %82 = vector.extract_strided_slice %38 {offsets = [0, 0, 64], sizes = [2, 16, 32], strides = [1, 1, 1]} : vector<2x16x128xf32> to vector<2x16x32xf32>
    "tpu.trace_start"() <{level = 10 : i32, message = "bqk,bkd->bqd"}> : () -> ()
    %cst_27 = arith.constant dense<0.000000e+00> : vector<2x16x32xf32>
    %83 = tpu.matmul %81, %82, %cst_27 {dimension_numbers = #tpu.dot_dimension_numbers<[2], [1], [1], [2], [0, 0, 0, 1, 1, 2], [0], [0]>} : vector<2x16x16xf32>, vector<2x16x32xf32>, vector<2x16x32xf32> -> vector<2x16x32xf32>
    "tpu.trace_stop"() : () -> ()
    %84 = vector.extract_strided_slice %36 {offsets = [0, 0, 96], sizes = [2, 16, 32], strides = [1, 1, 1]} : vector<2x16x128xf32> to vector<2x16x32xf32>
    %85 = vector.extract_strided_slice %37 {offsets = [0, 0, 96], sizes = [2, 16, 32], strides = [1, 1, 1]} : vector<2x16x128xf32> to vector<2x16x32xf32>
    "tpu.trace_start"() <{level = 10 : i32, message = "bqd,bkd->bqk"}> : () -> ()
    %cst_28 = arith.constant dense<0.000000e+00> : vector<2x16x16xf32>
    %86 = tpu.matmul %84, %85, %cst_28 {dimension_numbers = #tpu.dot_dimension_numbers<[2], [2], [1], [1], [0, 0, 0, 1, 1, 1], [0], [0]>} : vector<2x16x32xf32>, vector<2x16x32xf32>, vector<2x16x16xf32> -> vector<2x16x16xf32>
    "tpu.trace_stop"() : () -> ()
    %cst_29 = arith.constant dense<0xFF800000> : vector<2x16xf32>
    %87 = vector.multi_reduction <maximumf>, %86, %cst_29 [2] : vector<2x16x16xf32> to vector<2x16xf32>
    %88 = vector.shape_cast %87 : vector<2x16xf32> to vector<2x16x1xf32>
    %89 = vector.broadcast %88 : vector<2x16x1xf32> to vector<2x16x16xf32>
    %90 = arith.subf %86, %89 : vector<2x16x16xf32>
    %91 = math.exp %90 : vector<2x16x16xf32>
    %cst_30 = arith.constant dense<0.000000e+00> : vector<2x16xf32>
    %92 = vector.multi_reduction <add>, %91, %cst_30 [2] : vector<2x16x16xf32> to vector<2x16xf32>
    %93 = vector.shape_cast %92 : vector<2x16xf32> to vector<2x16x1xf32>
    %94 = tpu.reciprocal %93 {approx = true} : vector<2x16x1xf32> -> vector<2x16x1xf32>
    %95 = vector.broadcast %94 : vector<2x16x1xf32> to vector<2x16x16xf32>
    %96 = arith.mulf %91, %95 : vector<2x16x16xf32>
    %97 = vector.extract_strided_slice %38 {offsets = [0, 0, 96], sizes = [2, 16, 32], strides = [1, 1, 1]} : vector<2x16x128xf32> to vector<2x16x32xf32>
    "tpu.trace_start"() <{level = 10 : i32, message = "bqk,bkd->bqd"}> : () -> ()
    %cst_31 = arith.constant dense<0.000000e+00> : vector<2x16x32xf32>
    %98 = tpu.matmul %96, %97, %cst_31 {dimension_numbers = #tpu.dot_dimension_numbers<[2], [1], [1], [2], [0, 0, 0, 1, 1, 2], [0], [0]>} : vector<2x16x16xf32>, vector<2x16x32xf32>, vector<2x16x32xf32> -> vector<2x16x32xf32>
    "tpu.trace_stop"() : () -> ()
    %99 = tpu.concatenate %53, %68, %83, %98 in 2 : vector<2x16x32xf32>, vector<2x16x32xf32>, vector<2x16x32xf32>, vector<2x16x32xf32> -> vector<2x16x128xf32>
    %100 = vector.shape_cast %99 : vector<2x16x128xf32> to vector<32x128xf32>
    %101 = arith.truncf %100 : vector<32x128xf32> to vector<32x128xbf16>
    %c0_32 = arith.constant 0 : index
    %c0_33 = arith.constant 0 : index
    %102 = vector.load %arg6[%c0_32, %c0_33] : memref<128x128xbf16, #tpu.memory_space<vmem>>, vector<128x128xbf16>
    %cst_34 = arith.constant dense<0.000000e+00> : vector<32x128xf32>
    %103 = tpu.matmul %101, %102, %cst_34 {dimension_numbers = #tpu.dot_dimension_numbers<[1], [0], [0], [1], [0, 0, 1, 1], [], []>} : vector<32x128xbf16>, vector<128x128xbf16>, vector<32x128xf32> -> vector<32x128xf32>
    %c0_35 = arith.constant 0 : index
    %c0_36 = arith.constant 0 : index
    %104 = vector.load %arg7[%c0_35, %c0_36] : memref<1x128xf32, #tpu.memory_space<vmem>>, vector<1x128xf32>
    %105 = vector.broadcast %104 : vector<1x128xf32> to vector<32x128xf32>
    %106 = arith.addf %103, %105 : vector<32x128xf32>
    %107 = arith.addf %2, %106 : vector<32x128xf32>
    %cst_37 = arith.constant dense<0.000000e+00> : vector<32xf32>
    %108 = vector.multi_reduction <add>, %107, %cst_37 [1] : vector<32x128xf32> to vector<32xf32>
    %109 = vector.shape_cast %108 : vector<32xf32> to vector<32x1xf32>
    %cst_38 = arith.constant 1.280000e+02 : f32
    %110 = vector.broadcast %cst_38 : f32 to vector<32x1xf32>
    %111 = arith.divf %109, %110 : vector<32x1xf32>
    %112 = vector.broadcast %111 : vector<32x1xf32> to vector<32x128xf32>
    %113 = arith.subf %107, %112 : vector<32x128xf32>
    %114 = arith.mulf %113, %113 : vector<32x128xf32>
    %cst_39 = arith.constant dense<0.000000e+00> : vector<32xf32>
    %115 = vector.multi_reduction <add>, %114, %cst_39 [1] : vector<32x128xf32> to vector<32xf32>
    %116 = vector.shape_cast %115 : vector<32xf32> to vector<32x1xf32>
    %cst_40 = arith.constant 1.280000e+02 : f32
    %117 = vector.broadcast %cst_40 : f32 to vector<32x1xf32>
    %118 = arith.divf %116, %117 : vector<32x1xf32>
    %119 = vector.broadcast %111 : vector<32x1xf32> to vector<32x128xf32>
    %120 = arith.subf %107, %119 : vector<32x128xf32>
    %cst_41 = arith.constant 9.99999974E-6 : f32
    %121 = vector.broadcast %cst_41 : f32 to vector<32x1xf32>
    %122 = arith.addf %118, %121 : vector<32x1xf32>
    %123 = math.rsqrt %122 : vector<32x1xf32>
    %124 = vector.broadcast %123 : vector<32x1xf32> to vector<32x128xf32>
    %125 = arith.mulf %120, %124 : vector<32x128xf32>
    %c0_42 = arith.constant 0 : index
    %c0_43 = arith.constant 0 : index
    %126 = vector.load %arg8[%c0_42, %c0_43] : memref<1x128xf32, #tpu.memory_space<vmem>>, vector<1x128xf32>
    %127 = vector.broadcast %126 : vector<1x128xf32> to vector<32x128xf32>
    %128 = arith.mulf %125, %127 : vector<32x128xf32>
    %c0_44 = arith.constant 0 : index
    %c0_45 = arith.constant 0 : index
    %129 = vector.load %arg9[%c0_44, %c0_45] : memref<1x128xf32, #tpu.memory_space<vmem>>, vector<1x128xf32>
    %130 = vector.broadcast %129 : vector<1x128xf32> to vector<32x128xf32>
    %131 = arith.addf %128, %130 : vector<32x128xf32>
    %132 = arith.truncf %131 : vector<32x128xf32> to vector<32x128xbf16>
    %c0_46 = arith.constant 0 : index
    %c0_47 = arith.constant 0 : index
    %133 = vector.load %arg10[%c0_46, %c0_47] : memref<128x256xbf16, #tpu.memory_space<vmem>>, vector<128x256xbf16>
    %cst_48 = arith.constant dense<0.000000e+00> : vector<32x256xf32>
    %134 = tpu.matmul %132, %133, %cst_48 {dimension_numbers = #tpu.dot_dimension_numbers<[1], [0], [0], [1], [0, 0, 1, 1], [], []>} : vector<32x128xbf16>, vector<128x256xbf16>, vector<32x256xf32> -> vector<32x256xf32>
    %c0_49 = arith.constant 0 : index
    %c0_50 = arith.constant 0 : index
    %135 = vector.load %arg11[%c0_49, %c0_50] : memref<1x256xf32, #tpu.memory_space<vmem>>, vector<1x256xf32>
    %136 = vector.broadcast %135 : vector<1x256xf32> to vector<32x256xf32>
    %137 = arith.addf %134, %136 : vector<32x256xf32>
    %cst_51 = arith.constant 0.000000e+00 : f32
    %138 = vector.broadcast %cst_51 : f32 to vector<32x256xf32>
    %139 = arith.maximumf %137, %138 : vector<32x256xf32>
    %140 = arith.truncf %139 : vector<32x256xf32> to vector<32x256xbf16>
    %c0_52 = arith.constant 0 : index
    %c0_53 = arith.constant 0 : index
    %141 = vector.load %arg12[%c0_52, %c0_53] : memref<256x128xbf16, #tpu.memory_space<vmem>>, vector<256x128xbf16>
    %cst_54 = arith.constant dense<0.000000e+00> : vector<32x128xf32>
    %142 = tpu.matmul %140, %141, %cst_54 {dimension_numbers = #tpu.dot_dimension_numbers<[1], [0], [0], [1], [0, 0, 1, 1], [], []>} : vector<32x256xbf16>, vector<256x128xbf16>, vector<32x128xf32> -> vector<32x128xf32>
    %c0_55 = arith.constant 0 : index
    %c0_56 = arith.constant 0 : index
    %143 = vector.load %arg13[%c0_55, %c0_56] : memref<1x128xf32, #tpu.memory_space<vmem>>, vector<1x128xf32>
    %144 = vector.broadcast %143 : vector<1x128xf32> to vector<32x128xf32>
    %145 = arith.addf %142, %144 : vector<32x128xf32>
    %146 = arith.addf %107, %145 : vector<32x128xf32>
    %147 = vector.shape_cast %146 : vector<32x128xf32> to vector<2x16x128xf32>
    %148 = arith.truncf %147 : vector<2x16x128xf32> to vector<2x16x128xbf16>
    %c0_57 = arith.constant 0 : index
    %c0_58 = arith.constant 0 : index
    %c0_59 = arith.constant 0 : index
    %149 = vector.load %arg14[%c0_57, %c0_58, %c0_59] : memref<2x16x128xbf16, #tpu.memory_space<vmem>>, vector<2x16x128xbf16>
    tpu.vector_store %arg14[%c0_57, %c0_58, %c0_59], %148 {strides = array<i32>} : memref<2x16x128xbf16, #tpu.memory_space<vmem>>, vector<2x16x128xbf16>,
    %cst_60 = arith.constant dense<0.000000e+00> : vector<2x128xf32>
    %150 = vector.multi_reduction <add>, %147, %cst_60 [1] : vector<2x16x128xf32> to vector<2x128xf32>
    %cst_61 = arith.constant 1.600000e+01 : f32
    %151 = vector.broadcast %cst_61 : f32 to vector<2x128xf32>
    %152 = arith.divf %150, %151 : vector<2x128xf32>
    %c0_62 = arith.constant 0 : index
    %c0_63 = arith.constant 0 : index
    %153 = vector.load %arg15[%c0_62, %c0_63] : memref<2x128xf32, #tpu.memory_space<vmem>>, vector<2x128xf32>
    tpu.vector_store %arg15[%c0_62, %c0_63], %152 {strides = array<i32>} : memref<2x128xf32, #tpu.memory_space<vmem>>, vector<2x128xf32>,
    return
  }
  func.func @transform_0(%arg0: i32) -> (i32, i32, i32) {
    %c0_i32 = arith.constant 0 : i32
    %c0_i32_0 = arith.constant 0 : i32
    %c0_i32_1 = arith.constant 0 : i32
    %c0_i32_2 = arith.constant 0 : i32
    return %c0_i32, %c0_i32_0, %c0_i32_1 : i32, i32, i32
  }
  func.func @transform_1(%arg0: i32) -> (i32, i32) {
    %c0_i32 = arith.constant 0 : i32
    %c0_i32_0 = arith.constant 0 : i32
    %c0_i32_1 = arith.constant 0 : i32
    return %c0_i32, %c0_i32_0 : i32, i32
  }
  func.func @transform_2(%arg0: i32) -> (i32, i32) {
    %c0_i32 = arith.constant 0 : i32
    %c0_i32_0 = arith.constant 0 : i32
    %c0_i32_1 = arith.constant 0 : i32
    return %c0_i32, %c0_i32_0 : i32, i32
  }
  func.func @transform_3(%arg0: i32) -> (i32, i32) {
    %c0_i32 = arith.constant 0 : i32
    %c0_i32_0 = arith.constant 0 : i32
    %c0_i32_1 = arith.constant 0 : i32
    return %c0_i32, %c0_i32_0 : i32, i32
  }
  func.func @transform_4(%arg0: i32) -> (i32, i32) {
    %c0_i32 = arith.constant 0 : i32
    %c0_i32_0 = arith.constant 0 : i32
    %c0_i32_1 = arith.constant 0 : i32
    return %c0_i32, %c0_i32_0 : i32, i32
  }
  func.func @transform_5(%arg0: i32) -> (i32, i32) {
    %c0_i32 = arith.constant 0 : i32
    %c0_i32_0 = arith.constant 0 : i32
    %c0_i32_1 = arith.constant 0 : i32
    return %c0_i32, %c0_i32_0 : i32, i32
  }
  func.func @transform_6(%arg0: i32) -> (i32, i32) {
    %c0_i32 = arith.constant 0 : i32
    %c0_i32_0 = arith.constant 0 : i32
    %c0_i32_1 = arith.constant 0 : i32
    return %c0_i32, %c0_i32_0 : i32, i32
  }
  func.func @transform_7(%arg0: i32) -> (i32, i32) {
    %c0_i32 = arith.constant 0 : i32
    %c0_i32_0 = arith.constant 0 : i32
    %c0_i32_1 = arith.constant 0 : i32
    return %c0_i32, %c0_i32_0 : i32, i32
  }
  func.func @transform_8(%arg0: i32) -> (i32, i32) {
    %c0_i32 = arith.constant 0 : i32
    %c0_i32_0 = arith.constant 0 : i32
    %c0_i32_1 = arith.constant 0 : i32
    return %c0_i32, %c0_i32_0 : i32, i32
  }
  func.func @transform_9(%arg0: i32) -> (i32, i32) {
    %c0_i32 = arith.constant 0 : i32
    %c0_i32_0 = arith.constant 0 : i32
    %c0_i32_1 = arith.constant 0 : i32
    return %c0_i32, %c0_i32_0 : i32, i32
  }
  func.func @transform_10(%arg0: i32) -> (i32, i32) {
    %c0_i32 = arith.constant 0 : i32
    %c0_i32_0 = arith.constant 0 : i32
    %c0_i32_1 = arith.constant 0 : i32
    return %c0_i32, %c0_i32_0 : i32, i32
  }
  func.func @transform_11(%arg0: i32) -> (i32, i32) {
    %c0_i32 = arith.constant 0 : i32
    %c0_i32_0 = arith.constant 0 : i32
    %c0_i32_1 = arith.constant 0 : i32
    return %c0_i32, %c0_i32_0 : i32, i32
  }
  func.func @transform_12(%arg0: i32) -> (i32, i32) {
    %c0_i32 = arith.constant 0 : i32
    %c0_i32_0 = arith.constant 0 : i32
    %c0_i32_1 = arith.constant 0 : i32
    return %c0_i32, %c0_i32_0 : i32, i32
  }
  func.func @transform_13(%arg0: i32) -> (i32, i32, i32) {
    %c0_i32 = arith.constant 0 : i32
    %c0_i32_0 = arith.constant 0 : i32
    %c0_i32_1 = arith.constant 0 : i32
    %c0_i32_2 = arith.constant 0 : i32
    return %c0_i32, %c0_i32_0, %c0_i32_1 : i32, i32, i32
  }
  func.func @transform_14(%arg0: i32) -> (i32, i32) {
    %c0_i32 = arith.constant 0 : i32
    %c0_i32_0 = arith.constant 0 : i32
    %c0_i32_1 = arith.constant 0 : i32
    return %c0_i32, %c0_i32_0 : i32, i32
  }
}

module attributes {stable_mosaic.version = 11 : i64} {
  func.func @_head_kernel(%arg0: i32, %arg1: memref<2x128xf32, #tpu.memory_space<vmem>>, %arg2: memref<2x128xf32, #tpu.memory_space<vmem>>, %arg3: memref<128x128xbf16, #tpu.memory_space<vmem>>, %arg4: memref<128x128xbf16, #tpu.memory_space<vmem>>, %arg5: memref<1x128xf32, #tpu.memory_space<vmem>>, %arg6: memref<128x128xbf16, #tpu.memory_space<vmem>>, %arg7: memref<1x128xf32, #tpu.memory_space<vmem>>, %arg8: memref<128x32xbf16, #tpu.memory_space<vmem>>, %arg9: memref<1x32xf32, #tpu.memory_space<vmem>>, %arg10: memref<32x4xbf16, #tpu.memory_space<vmem>>, %arg11: memref<1x4xf32, #tpu.memory_space<vmem>>, %arg12: memref<1x128x64xbf16, #tpu.memory_space<vmem>>, %arg13: memref<1x1x64xf32, #tpu.memory_space<vmem>>, %arg14: memref<1x64x32xbf16, #tpu.memory_space<vmem>>, %arg15: memref<1x1x32xf32, #tpu.memory_space<vmem>>, %arg16: memref<1x32x16xbf16, #tpu.memory_space<vmem>>, %arg17: memref<1x1x16xf32, #tpu.memory_space<vmem>>, %arg18: memref<1x16x32xbf16, #tpu.memory_space<vmem>>, %arg19: memref<1x32xf32, #tpu.memory_space<vmem>>, %arg20: memref<32x32xbf16, #tpu.memory_space<vmem>>, %arg21: memref<1x32xf32, #tpu.memory_space<vmem>>, %arg22: memref<32x16xbf16, #tpu.memory_space<vmem>>, %arg23: memref<1x16xf32, #tpu.memory_space<vmem>>, %arg24: memref<16x128xbf16, #tpu.memory_space<vmem>>, %arg25: memref<1x128xf32, #tpu.memory_space<vmem>>, %arg26: memref<2x128xf32, #tpu.memory_space<vmem>>, %arg27: memref<2x128xf32, #tpu.memory_space<vmem>>, %arg28: memref<2x4xf32, #tpu.memory_space<vmem>>, %arg29: memref<2x32xf32, #tpu.memory_space<vmem>>) attributes {dimension_semantics = [#tpu.dimension_semantics<arbitrary>], iteration_bounds = array<i64: 4>, scalar_prefetch = 0 : i64, scratch_operands = 3 : i64, tpu.core_type = #tpu.core_type<tc>, window_params = [{pipeline_mode = #tpu.pipeline_mode<synchronous>, transform_indices = @transform_0, window_bounds = array<i64: 2, 128>}, {pipeline_mode = #tpu.pipeline_mode<synchronous>, transform_indices = @transform_1, window_bounds = array<i64: 2, 128>}, {pipeline_mode = #tpu.pipeline_mode<synchronous>, transform_indices = @transform_2, window_bounds = array<i64: 128, 128>}, {pipeline_mode = #tpu.pipeline_mode<synchronous>, transform_indices = @transform_3, window_bounds = array<i64: 128, 128>}, {pipeline_mode = #tpu.pipeline_mode<synchronous>, transform_indices = @transform_4, window_bounds = array<i64: 1, 128>}, {pipeline_mode = #tpu.pipeline_mode<synchronous>, transform_indices = @transform_5, window_bounds = array<i64: 128, 128>}, {pipeline_mode = #tpu.pipeline_mode<synchronous>, transform_indices = @transform_6, window_bounds = array<i64: 1, 128>}, {pipeline_mode = #tpu.pipeline_mode<synchronous>, transform_indices = @transform_7, window_bounds = array<i64: 128, 32>}, {pipeline_mode = #tpu.pipeline_mode<synchronous>, transform_indices = @transform_8, window_bounds = array<i64: 1, 32>}, {pipeline_mode = #tpu.pipeline_mode<synchronous>, transform_indices = @transform_9, window_bounds = array<i64: 32, 4>}, {pipeline_mode = #tpu.pipeline_mode<synchronous>, transform_indices = @transform_10, window_bounds = array<i64: 1, 4>}, {transform_indices = @transform_11, window_bounds = array<i64: 1, 128, 64>}, {transform_indices = @transform_12, window_bounds = array<i64: 1, 1, 64>}, {transform_indices = @transform_13, window_bounds = array<i64: 1, 64, 32>}, {transform_indices = @transform_14, window_bounds = array<i64: 1, 1, 32>}, {transform_indices = @transform_15, window_bounds = array<i64: 1, 32, 16>}, {transform_indices = @transform_16, window_bounds = array<i64: 1, 1, 16>}, {transform_indices = @transform_17, window_bounds = array<i64: 1, 16, 32>}, {pipeline_mode = #tpu.pipeline_mode<synchronous>, transform_indices = @transform_18, window_bounds = array<i64: 1, 32>}, {pipeline_mode = #tpu.pipeline_mode<synchronous>, transform_indices = @transform_19, window_bounds = array<i64: 32, 32>}, {pipeline_mode = #tpu.pipeline_mode<synchronous>, transform_indices = @transform_20, window_bounds = array<i64: 1, 32>}, {pipeline_mode = #tpu.pipeline_mode<synchronous>, transform_indices = @transform_21, window_bounds = array<i64: 32, 16>}, {pipeline_mode = #tpu.pipeline_mode<synchronous>, transform_indices = @transform_22, window_bounds = array<i64: 1, 16>}, {pipeline_mode = #tpu.pipeline_mode<synchronous>, transform_indices = @transform_23, window_bounds = array<i64: 16, 128>}, {pipeline_mode = #tpu.pipeline_mode<synchronous>, transform_indices = @transform_24, window_bounds = array<i64: 1, 128>}, {pipeline_mode = #tpu.pipeline_mode<synchronous>, transform_indices = @transform_25, window_bounds = array<i64: 2, 128>}]} {
    %c0_i32 = arith.constant 0 : i32
    %0 = arith.cmpi eq, %arg0, %c0_i32 : i32
    %1 = arith.extui %0 : i1 to i32
    %c0_i32_0 = arith.constant 0 : i32
    %2 = arith.cmpi ne, %1, %c0_i32_0 : i32
    scf.if %2 {
      %c0_37 = arith.constant 0 : index
      %c0_38 = arith.constant 0 : index
      %52 = vector.load %arg1[%c0_37, %c0_38] : memref<2x128xf32, #tpu.memory_space<vmem>>, vector<2x128xf32>
      %c0_39 = arith.constant 0 : index
      %c0_40 = arith.constant 0 : index
      %53 = vector.load %arg2[%c0_39, %c0_40] : memref<2x128xf32, #tpu.memory_space<vmem>>, vector<2x128xf32>
      %54 = arith.truncf %52 : vector<2x128xf32> to vector<2x128xbf16>
      %c0_41 = arith.constant 0 : index
      %c0_42 = arith.constant 0 : index
      %55 = vector.load %arg3[%c0_41, %c0_42] : memref<128x128xbf16, #tpu.memory_space<vmem>>, vector<128x128xbf16>
      %cst_43 = arith.constant dense<0.000000e+00> : vector<2x128xf32>
      %56 = tpu.matmul %54, %55, %cst_43 {dimension_numbers = #tpu.dot_dimension_numbers<[1], [0], [0], [1], [0, 0, 1, 1], [], []>} : vector<2x128xbf16>, vector<128x128xbf16>, vector<2x128xf32> -> vector<2x128xf32>
      %57 = arith.truncf %53 : vector<2x128xf32> to vector<2x128xbf16>
      %c0_44 = arith.constant 0 : index
      %c0_45 = arith.constant 0 : index
      %58 = vector.load %arg4[%c0_44, %c0_45] : memref<128x128xbf16, #tpu.memory_space<vmem>>, vector<128x128xbf16>
      %cst_46 = arith.constant dense<0.000000e+00> : vector<2x128xf32>
      %59 = tpu.matmul %57, %58, %cst_46 {dimension_numbers = #tpu.dot_dimension_numbers<[1], [0], [0], [1], [0, 0, 1, 1], [], []>} : vector<2x128xbf16>, vector<128x128xbf16>, vector<2x128xf32> -> vector<2x128xf32>
      %60 = arith.addf %56, %59 : vector<2x128xf32>
      %c0_47 = arith.constant 0 : index
      %c0_48 = arith.constant 0 : index
      %61 = vector.load %arg5[%c0_47, %c0_48] : memref<1x128xf32, #tpu.memory_space<vmem>>, vector<1x128xf32>
      %62 = vector.broadcast %61 : vector<1x128xf32> to vector<2x128xf32>
      %63 = arith.addf %60, %62 : vector<2x128xf32>
      %cst_49 = arith.constant 0.000000e+00 : f32
      %64 = vector.broadcast %cst_49 : f32 to vector<2x128xf32>
      %65 = arith.maximumf %63, %64 : vector<2x128xf32>
      %66 = arith.truncf %65 : vector<2x128xf32> to vector<2x128xbf16>
      %c0_50 = arith.constant 0 : index
      %c0_51 = arith.constant 0 : index
      %67 = vector.load %arg6[%c0_50, %c0_51] : memref<128x128xbf16, #tpu.memory_space<vmem>>, vector<128x128xbf16>
      %cst_52 = arith.constant dense<0.000000e+00> : vector<2x128xf32>
      %68 = tpu.matmul %66, %67, %cst_52 {dimension_numbers = #tpu.dot_dimension_numbers<[1], [0], [0], [1], [0, 0, 1, 1], [], []>} : vector<2x128xbf16>, vector<128x128xbf16>, vector<2x128xf32> -> vector<2x128xf32>
      %c0_53 = arith.constant 0 : index
      %c0_54 = arith.constant 0 : index
      %69 = vector.load %arg7[%c0_53, %c0_54] : memref<1x128xf32, #tpu.memory_space<vmem>>, vector<1x128xf32>
      %70 = vector.broadcast %69 : vector<1x128xf32> to vector<2x128xf32>
      %71 = arith.addf %68, %70 : vector<2x128xf32>
      %cst_55 = arith.constant 1.000000e-01 : f32
      %72 = vector.broadcast %cst_55 : f32 to vector<2x128xf32>
      %73 = arith.mulf %72, %71 : vector<2x128xf32>
      %74 = arith.addf %52, %73 : vector<2x128xf32>
      %c0_56 = arith.constant 0 : index
      %c0_57 = arith.constant 0 : index
      %75 = vector.load %arg27[%c0_56, %c0_57] : memref<2x128xf32, #tpu.memory_space<vmem>>, vector<2x128xf32>
      tpu.vector_store %arg27[%c0_56, %c0_57], %74 {strides = array<i32>} : memref<2x128xf32, #tpu.memory_space<vmem>>, vector<2x128xf32>,
      %c0_58 = arith.constant 0 : index
      %c0_59 = arith.constant 0 : index
      %76 = vector.load %arg27[%c0_58, %c0_59] : memref<2x128xf32, #tpu.memory_space<vmem>>, vector<2x128xf32>
      %77 = arith.truncf %76 : vector<2x128xf32> to vector<2x128xbf16>
      %c0_60 = arith.constant 0 : index
      %c0_61 = arith.constant 0 : index
      %78 = vector.load %arg8[%c0_60, %c0_61] : memref<128x32xbf16, #tpu.memory_space<vmem>>, vector<128x32xbf16>
      %cst_62 = arith.constant dense<0.000000e+00> : vector<2x32xf32>
      %79 = tpu.matmul %77, %78, %cst_62 {dimension_numbers = #tpu.dot_dimension_numbers<[1], [0], [0], [1], [0, 0, 1, 1], [], []>} : vector<2x128xbf16>, vector<128x32xbf16>, vector<2x32xf32> -> vector<2x32xf32>
      %c0_63 = arith.constant 0 : index
      %c0_64 = arith.constant 0 : index
      %80 = vector.load %arg9[%c0_63, %c0_64] : memref<1x32xf32, #tpu.memory_space<vmem>>, vector<1x32xf32>
      %81 = vector.broadcast %80 : vector<1x32xf32> to vector<2x32xf32>
      %82 = arith.addf %79, %81 : vector<2x32xf32>
      %cst_65 = arith.constant 0.000000e+00 : f32
      %83 = vector.broadcast %cst_65 : f32 to vector<2x32xf32>
      %84 = arith.maximumf %82, %83 : vector<2x32xf32>
      %85 = arith.truncf %84 : vector<2x32xf32> to vector<2x32xbf16>
      %c0_66 = arith.constant 0 : index
      %c0_67 = arith.constant 0 : index
      %86 = vector.load %arg10[%c0_66, %c0_67] : memref<32x4xbf16, #tpu.memory_space<vmem>>, vector<32x4xbf16>
      %cst_68 = arith.constant dense<0.000000e+00> : vector<2x4xf32>
      %87 = tpu.matmul %85, %86, %cst_68 {dimension_numbers = #tpu.dot_dimension_numbers<[1], [0], [0], [1], [0, 0, 1, 1], [], []>} : vector<2x32xbf16>, vector<32x4xbf16>, vector<2x4xf32> -> vector<2x4xf32>
      %c0_69 = arith.constant 0 : index
      %c0_70 = arith.constant 0 : index
      %88 = vector.load %arg11[%c0_69, %c0_70] : memref<1x4xf32, #tpu.memory_space<vmem>>, vector<1x4xf32>
      %89 = vector.broadcast %88 : vector<1x4xf32> to vector<2x4xf32>
      %90 = arith.addf %87, %89 : vector<2x4xf32>
      %cst_71 = arith.constant dense<0xFF800000> : vector<2xf32>
      %91 = vector.multi_reduction <maximumf>, %90, %cst_71 [1] : vector<2x4xf32> to vector<2xf32>
      %92 = vector.shape_cast %91 : vector<2xf32> to vector<2x1xf32>
      %93 = vector.broadcast %92 : vector<2x1xf32> to vector<2x4xf32>
      %94 = arith.subf %90, %93 : vector<2x4xf32>
      %95 = math.exp %94 : vector<2x4xf32>
      %cst_72 = arith.constant dense<0.000000e+00> : vector<2xf32>
      %96 = vector.multi_reduction <add>, %95, %cst_72 [1] : vector<2x4xf32> to vector<2xf32>
      %97 = vector.shape_cast %96 : vector<2xf32> to vector<2x1xf32>
      %98 = tpu.reciprocal %97 {approx = true} : vector<2x1xf32> -> vector<2x1xf32>
      %99 = vector.broadcast %98 : vector<2x1xf32> to vector<2x4xf32>
      %100 = arith.mulf %95, %99 : vector<2x4xf32>
      %c0_73 = arith.constant 0 : index
      %c0_74 = arith.constant 0 : index
      %101 = vector.load %arg28[%c0_73, %c0_74] : memref<2x4xf32, #tpu.memory_space<vmem>>, vector<2x4xf32>
      tpu.vector_store %arg28[%c0_73, %c0_74], %100 {strides = array<i32>} : memref<2x4xf32, #tpu.memory_space<vmem>>, vector<2x4xf32>,
      %cst_75 = arith.constant 0.000000e+00 : f32
      %102 = vector.broadcast %cst_75 : f32 to vector<2x32xf32>
      %c0_76 = arith.constant 0 : index
      %c0_77 = arith.constant 0 : index
      %103 = vector.load %arg29[%c0_76, %c0_77] : memref<2x32xf32, #tpu.memory_space<vmem>>, vector<2x32xf32>
      tpu.vector_store %arg29[%c0_76, %c0_77], %102 {strides = array<i32>} : memref<2x32xf32, #tpu.memory_space<vmem>>, vector<2x32xf32>,
    } else {
    }
    %c0 = arith.constant 0 : index
    %c0_1 = arith.constant 0 : index
    %3 = vector.load %arg27[%c0, %c0_1] : memref<2x128xf32, #tpu.memory_space<vmem>>, vector<2x128xf32>
    %4 = arith.truncf %3 : vector<2x128xf32> to vector<2x128xbf16>
    %c0_2 = arith.constant 0 : index
    %c0_3 = arith.constant 0 : index
    %c0_4 = arith.constant 0 : index
    %5 = vector.load %arg12[%c0_2, %c0_3, %c0_4] : memref<1x128x64xbf16, #tpu.memory_space<vmem>>, vector<1x128x64xbf16>
    %6 = vector.shape_cast %5 : vector<1x128x64xbf16> to vector<128x64xbf16>
    %cst = arith.constant dense<0.000000e+00> : vector<2x64xf32>
    %7 = tpu.matmul %4, %6, %cst {dimension_numbers = #tpu.dot_dimension_numbers<[1], [0], [0], [1], [0, 0, 1, 1], [], []>} : vector<2x128xbf16>, vector<128x64xbf16>, vector<2x64xf32> -> vector<2x64xf32>
    %c0_5 = arith.constant 0 : index
    %c0_6 = arith.constant 0 : index
    %c0_7 = arith.constant 0 : index
    %8 = vector.load %arg13[%c0_5, %c0_6, %c0_7] : memref<1x1x64xf32, #tpu.memory_space<vmem>>, vector<1x1x64xf32>
    %9 = vector.shape_cast %8 : vector<1x1x64xf32> to vector<1x64xf32>
    %10 = vector.broadcast %9 : vector<1x64xf32> to vector<2x64xf32>
    %11 = arith.addf %7, %10 : vector<2x64xf32>
    %cst_8 = arith.constant 0.000000e+00 : f32
    %12 = vector.broadcast %cst_8 : f32 to vector<2x64xf32>
    %13 = arith.maximumf %11, %12 : vector<2x64xf32>
    %14 = arith.truncf %13 : vector<2x64xf32> to vector<2x64xbf16>
    %c0_9 = arith.constant 0 : index
    %c0_10 = arith.constant 0 : index
    %c0_11 = arith.constant 0 : index
    %15 = vector.load %arg14[%c0_9, %c0_10, %c0_11] : memref<1x64x32xbf16, #tpu.memory_space<vmem>>, vector<1x64x32xbf16>
    %16 = vector.shape_cast %15 : vector<1x64x32xbf16> to vector<64x32xbf16>
    %cst_12 = arith.constant dense<0.000000e+00> : vector<2x32xf32>
    %17 = tpu.matmul %14, %16, %cst_12 {dimension_numbers = #tpu.dot_dimension_numbers<[1], [0], [0], [1], [0, 0, 1, 1], [], []>} : vector<2x64xbf16>, vector<64x32xbf16>, vector<2x32xf32> -> vector<2x32xf32>
    %c0_13 = arith.constant 0 : index
    %c0_14 = arith.constant 0 : index
    %c0_15 = arith.constant 0 : index
    %18 = vector.load %arg15[%c0_13, %c0_14, %c0_15] : memref<1x1x32xf32, #tpu.memory_space<vmem>>, vector<1x1x32xf32>
    %19 = vector.shape_cast %18 : vector<1x1x32xf32> to vector<1x32xf32>
    %20 = vector.broadcast %19 : vector<1x32xf32> to vector<2x32xf32>
    %21 = arith.addf %17, %20 : vector<2x32xf32>
    %cst_16 = arith.constant 0.000000e+00 : f32
    %22 = vector.broadcast %cst_16 : f32 to vector<2x32xf32>
    %23 = arith.maximumf %21, %22 : vector<2x32xf32>
    %24 = arith.truncf %23 : vector<2x32xf32> to vector<2x32xbf16>
    %c0_17 = arith.constant 0 : index
    %c0_18 = arith.constant 0 : index
    %c0_19 = arith.constant 0 : index
    %25 = vector.load %arg16[%c0_17, %c0_18, %c0_19] : memref<1x32x16xbf16, #tpu.memory_space<vmem>>, vector<1x32x16xbf16>
    %26 = vector.shape_cast %25 : vector<1x32x16xbf16> to vector<32x16xbf16>
    %cst_20 = arith.constant dense<0.000000e+00> : vector<2x16xf32>
    %27 = tpu.matmul %24, %26, %cst_20 {dimension_numbers = #tpu.dot_dimension_numbers<[1], [0], [0], [1], [0, 0, 1, 1], [], []>} : vector<2x32xbf16>, vector<32x16xbf16>, vector<2x16xf32> -> vector<2x16xf32>
    %c0_21 = arith.constant 0 : index
    %c0_22 = arith.constant 0 : index
    %c0_23 = arith.constant 0 : index
    %28 = vector.load %arg17[%c0_21, %c0_22, %c0_23] : memref<1x1x16xf32, #tpu.memory_space<vmem>>, vector<1x1x16xf32>
    %29 = vector.shape_cast %28 : vector<1x1x16xf32> to vector<1x16xf32>
    %30 = vector.broadcast %29 : vector<1x16xf32> to vector<2x16xf32>
    %31 = arith.addf %27, %30 : vector<2x16xf32>
    %32 = tpu.iota {dimensions = array<i32: 1>} : vector<2x4xi32>
    %33 = vector.broadcast %arg0 : i32 to vector<2x4xi32>
    %34 = arith.cmpi eq, %32, %33 : vector<2x4xi32>
    %c0_24 = arith.constant 0 : index
    %c0_25 = arith.constant 0 : index
    %35 = vector.load %arg28[%c0_24, %c0_25] : memref<2x4xf32, #tpu.memory_space<vmem>>, vector<2x4xf32>
    %cst_26 = arith.constant 0.000000e+00 : f32
    %36 = vector.broadcast %cst_26 : f32 to vector<2x4xf32>
    %37 = arith.select %34, %35, %36 : vector<2x4xi1>, vector<2x4xf32>
    %cst_27 = arith.constant dense<0.000000e+00> : vector<2xf32>
    %38 = vector.multi_reduction <add>, %37, %cst_27 [1] : vector<2x4xf32> to vector<2xf32>
    %39 = vector.shape_cast %38 : vector<2xf32> to vector<2x1xf32>
    %c0_28 = arith.constant 0 : index
    %c0_29 = arith.constant 0 : index
    %40 = vector.load %arg29[%c0_28, %c0_29] : memref<2x32xf32, #tpu.memory_space<vmem>>, vector<2x32xf32>
    %41 = vector.broadcast %39 : vector<2x1xf32> to vector<2x16xf32>
    %42 = arith.mulf %31, %41 : vector<2x16xf32>
    %43 = arith.truncf %42 : vector<2x16xf32> to vector<2x16xbf16>
    %c0_30 = arith.constant 0 : index
    %c0_31 = arith.constant 0 : index
    %c0_32 = arith.constant 0 : index
    %44 = vector.load %arg18[%c0_30, %c0_31, %c0_32] : memref<1x16x32xbf16, #tpu.memory_space<vmem>>, vector<1x16x32xbf16>
    %45 = vector.shape_cast %44 : vector<1x16x32xbf16> to vector<16x32xbf16>
    %cst_33 = arith.constant dense<0.000000e+00> : vector<2x32xf32>
    %46 = tpu.matmul %43, %45, %cst_33 {dimension_numbers = #tpu.dot_dimension_numbers<[1], [0], [0], [1], [0, 0, 1, 1], [], []>} : vector<2x16xbf16>, vector<16x32xbf16>, vector<2x32xf32> -> vector<2x32xf32>
    %47 = arith.addf %40, %46 : vector<2x32xf32>
    %c0_34 = arith.constant 0 : index
    %c0_35 = arith.constant 0 : index
    %48 = vector.load %arg29[%c0_34, %c0_35] : memref<2x32xf32, #tpu.memory_space<vmem>>, vector<2x32xf32>
    tpu.vector_store %arg29[%c0_34, %c0_35], %47 {strides = array<i32>} : memref<2x32xf32, #tpu.memory_space<vmem>>, vector<2x32xf32>,
    %c3_i32 = arith.constant 3 : i32
    %49 = arith.cmpi eq, %arg0, %c3_i32 : i32
    %50 = arith.extui %49 : i1 to i32
    %c0_i32_36 = arith.constant 0 : i32
    %51 = arith.cmpi ne, %50, %c0_i32_36 : i32
    scf.if %51 {
      %c0_37 = arith.constant 0 : index
      %c0_38 = arith.constant 0 : index
      %52 = vector.load %arg29[%c0_37, %c0_38] : memref<2x32xf32, #tpu.memory_space<vmem>>, vector<2x32xf32>
      %c0_39 = arith.constant 0 : index
      %c0_40 = arith.constant 0 : index
      %53 = vector.load %arg19[%c0_39, %c0_40] : memref<1x32xf32, #tpu.memory_space<vmem>>, vector<1x32xf32>
      %54 = vector.broadcast %53 : vector<1x32xf32> to vector<2x32xf32>
      %55 = arith.addf %52, %54 : vector<2x32xf32>
      %cst_41 = arith.constant 0.000000e+00 : f32
      %56 = vector.broadcast %cst_41 : f32 to vector<2x32xf32>
      %57 = arith.maximumf %55, %56 : vector<2x32xf32>
      %58 = arith.truncf %57 : vector<2x32xf32> to vector<2x32xbf16>
      %c0_42 = arith.constant 0 : index
      %c0_43 = arith.constant 0 : index
      %59 = vector.load %arg20[%c0_42, %c0_43] : memref<32x32xbf16, #tpu.memory_space<vmem>>, vector<32x32xbf16>
      %cst_44 = arith.constant dense<0.000000e+00> : vector<2x32xf32>
      %60 = tpu.matmul %58, %59, %cst_44 {dimension_numbers = #tpu.dot_dimension_numbers<[1], [0], [0], [1], [0, 0, 1, 1], [], []>} : vector<2x32xbf16>, vector<32x32xbf16>, vector<2x32xf32> -> vector<2x32xf32>
      %c0_45 = arith.constant 0 : index
      %c0_46 = arith.constant 0 : index
      %61 = vector.load %arg21[%c0_45, %c0_46] : memref<1x32xf32, #tpu.memory_space<vmem>>, vector<1x32xf32>
      %62 = vector.broadcast %61 : vector<1x32xf32> to vector<2x32xf32>
      %63 = arith.addf %60, %62 : vector<2x32xf32>
      %cst_47 = arith.constant 0.000000e+00 : f32
      %64 = vector.broadcast %cst_47 : f32 to vector<2x32xf32>
      %65 = arith.maximumf %63, %64 : vector<2x32xf32>
      %66 = arith.truncf %65 : vector<2x32xf32> to vector<2x32xbf16>
      %c0_48 = arith.constant 0 : index
      %c0_49 = arith.constant 0 : index
      %67 = vector.load %arg22[%c0_48, %c0_49] : memref<32x16xbf16, #tpu.memory_space<vmem>>, vector<32x16xbf16>
      %cst_50 = arith.constant dense<0.000000e+00> : vector<2x16xf32>
      %68 = tpu.matmul %66, %67, %cst_50 {dimension_numbers = #tpu.dot_dimension_numbers<[1], [0], [0], [1], [0, 0, 1, 1], [], []>} : vector<2x32xbf16>, vector<32x16xbf16>, vector<2x16xf32> -> vector<2x16xf32>
      %c0_51 = arith.constant 0 : index
      %c0_52 = arith.constant 0 : index
      %69 = vector.load %arg23[%c0_51, %c0_52] : memref<1x16xf32, #tpu.memory_space<vmem>>, vector<1x16xf32>
      %70 = vector.broadcast %69 : vector<1x16xf32> to vector<2x16xf32>
      %71 = arith.addf %68, %70 : vector<2x16xf32>
      %72 = arith.truncf %71 : vector<2x16xf32> to vector<2x16xbf16>
      %c0_53 = arith.constant 0 : index
      %c0_54 = arith.constant 0 : index
      %73 = vector.load %arg24[%c0_53, %c0_54] : memref<16x128xbf16, #tpu.memory_space<vmem>>, vector<16x128xbf16>
      %cst_55 = arith.constant dense<0.000000e+00> : vector<2x128xf32>
      %74 = tpu.matmul %72, %73, %cst_55 {dimension_numbers = #tpu.dot_dimension_numbers<[1], [0], [0], [1], [0, 0, 1, 1], [], []>} : vector<2x16xbf16>, vector<16x128xbf16>, vector<2x128xf32> -> vector<2x128xf32>
      %c0_56 = arith.constant 0 : index
      %c0_57 = arith.constant 0 : index
      %75 = vector.load %arg25[%c0_56, %c0_57] : memref<1x128xf32, #tpu.memory_space<vmem>>, vector<1x128xf32>
      %76 = vector.broadcast %75 : vector<1x128xf32> to vector<2x128xf32>
      %77 = arith.addf %74, %76 : vector<2x128xf32>
      %78 = tpu.iota {dimensions = array<i32: 1>} : vector<2x128xi32>
      %c1_i32 = arith.constant 1 : i32
      %79 = vector.broadcast %c1_i32 : i32 to vector<2x128xi32>
      %80 = arith.cmpi eq, %78, %79 : vector<2x128xi32>
      %c2_i32 = arith.constant 2 : i32
      %81 = vector.broadcast %c2_i32 : i32 to vector<2x128xi32>
      %82 = arith.cmpi eq, %78, %81 : vector<2x128xi32>
      %83 = arith.ori %80, %82 : vector<2x128xi1>
      %c3_i32_58 = arith.constant 3 : i32
      %84 = vector.broadcast %c3_i32_58 : i32 to vector<2x128xi32>
      %85 = arith.cmpi sge, %78, %84 : vector<2x128xi32>
      %c13_i32 = arith.constant 13 : i32
      %86 = vector.broadcast %c13_i32 : i32 to vector<2x128xi32>
      %87 = arith.cmpi slt, %78, %86 : vector<2x128xi32>
      %88 = arith.andi %85, %87 : vector<2x128xi1>
      %cst_59 = arith.constant -1.000000e+30 : f32
      %89 = vector.broadcast %cst_59 : f32 to vector<2x128xf32>
      %90 = arith.select %88, %77, %89 : vector<2x128xi1>, vector<2x128xf32>
      %cst_60 = arith.constant dense<0xFF800000> : vector<2xf32>
      %91 = vector.multi_reduction <maximumf>, %90, %cst_60 [1] : vector<2x128xf32> to vector<2xf32>
      %92 = vector.shape_cast %91 : vector<2xf32> to vector<2x1xf32>
      %93 = vector.broadcast %92 : vector<2x1xf32> to vector<2x128xf32>
      %94 = arith.subf %90, %93 : vector<2x128xf32>
      %95 = math.exp %94 : vector<2x128xf32>
      %cst_61 = arith.constant dense<0.000000e+00> : vector<2xf32>
      %96 = vector.multi_reduction <add>, %95, %cst_61 [1] : vector<2x128xf32> to vector<2xf32>
      %97 = vector.shape_cast %96 : vector<2xf32> to vector<2x1xf32>
      %98 = tpu.reciprocal %97 {approx = true} : vector<2x1xf32> -> vector<2x1xf32>
      %99 = vector.broadcast %98 : vector<2x1xf32> to vector<2x128xf32>
      %100 = arith.mulf %95, %99 : vector<2x128xf32>
      %101 = arith.negf %77 : vector<2x128xf32>
      %102 = math.exp %101 : vector<2x128xf32>
      %cst_62 = arith.constant 1.000000e+00 : f32
      %103 = vector.broadcast %cst_62 : f32 to vector<2x128xf32>
      %104 = arith.addf %103, %102 : vector<2x128xf32>
      %105 = arith.divf %103, %104 : vector<2x128xf32>
      %106 = arith.select %88, %100, %77 : vector<2x128xi1>, vector<2x128xf32>
      %107 = arith.select %83, %105, %106 : vector<2x128xi1>, vector<2x128xf32>
      %c0_63 = arith.constant 0 : index
      %c0_64 = arith.constant 0 : index
      %108 = vector.load %arg26[%c0_63, %c0_64] : memref<2x128xf32, #tpu.memory_space<vmem>>, vector<2x128xf32>
      tpu.vector_store %arg26[%c0_63, %c0_64], %107 {strides = array<i32>} : memref<2x128xf32, #tpu.memory_space<vmem>>, vector<2x128xf32>,
    } else {
    }
    return
  }
  func.func @transform_0(%arg0: i32) -> (i32, i32) {
    %c0_i32 = arith.constant 0 : i32
    %c0_i32_0 = arith.constant 0 : i32
    %c0_i32_1 = arith.constant 0 : i32
    return %c0_i32, %c0_i32_0 : i32, i32
  }
  func.func @transform_1(%arg0: i32) -> (i32, i32) {
    %c0_i32 = arith.constant 0 : i32
    %c0_i32_0 = arith.constant 0 : i32
    %c0_i32_1 = arith.constant 0 : i32
    return %c0_i32, %c0_i32_0 : i32, i32
  }
  func.func @transform_2(%arg0: i32) -> (i32, i32) {
    %c0_i32 = arith.constant 0 : i32
    %c0_i32_0 = arith.constant 0 : i32
    %c0_i32_1 = arith.constant 0 : i32
    return %c0_i32, %c0_i32_0 : i32, i32
  }
  func.func @transform_3(%arg0: i32) -> (i32, i32) {
    %c0_i32 = arith.constant 0 : i32
    %c0_i32_0 = arith.constant 0 : i32
    %c0_i32_1 = arith.constant 0 : i32
    return %c0_i32, %c0_i32_0 : i32, i32
  }
  func.func @transform_4(%arg0: i32) -> (i32, i32) {
    %c0_i32 = arith.constant 0 : i32
    %c0_i32_0 = arith.constant 0 : i32
    %c0_i32_1 = arith.constant 0 : i32
    return %c0_i32, %c0_i32_0 : i32, i32
  }
  func.func @transform_5(%arg0: i32) -> (i32, i32) {
    %c0_i32 = arith.constant 0 : i32
    %c0_i32_0 = arith.constant 0 : i32
    %c0_i32_1 = arith.constant 0 : i32
    return %c0_i32, %c0_i32_0 : i32, i32
  }
  func.func @transform_6(%arg0: i32) -> (i32, i32) {
    %c0_i32 = arith.constant 0 : i32
    %c0_i32_0 = arith.constant 0 : i32
    %c0_i32_1 = arith.constant 0 : i32
    return %c0_i32, %c0_i32_0 : i32, i32
  }
  func.func @transform_7(%arg0: i32) -> (i32, i32) {
    %c0_i32 = arith.constant 0 : i32
    %c0_i32_0 = arith.constant 0 : i32
    %c0_i32_1 = arith.constant 0 : i32
    return %c0_i32, %c0_i32_0 : i32, i32
  }
  func.func @transform_8(%arg0: i32) -> (i32, i32) {
    %c0_i32 = arith.constant 0 : i32
    %c0_i32_0 = arith.constant 0 : i32
    %c0_i32_1 = arith.constant 0 : i32
    return %c0_i32, %c0_i32_0 : i32, i32
  }
  func.func @transform_9(%arg0: i32) -> (i32, i32) {
    %c0_i32 = arith.constant 0 : i32
    %c0_i32_0 = arith.constant 0 : i32
    %c0_i32_1 = arith.constant 0 : i32
    return %c0_i32, %c0_i32_0 : i32, i32
  }
  func.func @transform_10(%arg0: i32) -> (i32, i32) {
    %c0_i32 = arith.constant 0 : i32
    %c0_i32_0 = arith.constant 0 : i32
    %c0_i32_1 = arith.constant 0 : i32
    return %c0_i32, %c0_i32_0 : i32, i32
  }
  func.func @transform_11(%arg0: i32) -> (i32, i32, i32) {
    %c0_i32 = arith.constant 0 : i32
    %c0_i32_0 = arith.constant 0 : i32
    %c0_i32_1 = arith.constant 0 : i32
    return %arg0, %c0_i32, %c0_i32_0 : i32, i32, i32
  }
  func.func @transform_12(%arg0: i32) -> (i32, i32, i32) {
    %c0_i32 = arith.constant 0 : i32
    %c0_i32_0 = arith.constant 0 : i32
    %c0_i32_1 = arith.constant 0 : i32
    return %arg0, %c0_i32, %c0_i32_0 : i32, i32, i32
  }
  func.func @transform_13(%arg0: i32) -> (i32, i32, i32) {
    %c0_i32 = arith.constant 0 : i32
    %c0_i32_0 = arith.constant 0 : i32
    %c0_i32_1 = arith.constant 0 : i32
    return %arg0, %c0_i32, %c0_i32_0 : i32, i32, i32
  }
  func.func @transform_14(%arg0: i32) -> (i32, i32, i32) {
    %c0_i32 = arith.constant 0 : i32
    %c0_i32_0 = arith.constant 0 : i32
    %c0_i32_1 = arith.constant 0 : i32
    return %arg0, %c0_i32, %c0_i32_0 : i32, i32, i32
  }
  func.func @transform_15(%arg0: i32) -> (i32, i32, i32) {
    %c0_i32 = arith.constant 0 : i32
    %c0_i32_0 = arith.constant 0 : i32
    %c0_i32_1 = arith.constant 0 : i32
    return %arg0, %c0_i32, %c0_i32_0 : i32, i32, i32
  }
  func.func @transform_16(%arg0: i32) -> (i32, i32, i32) {
    %c0_i32 = arith.constant 0 : i32
    %c0_i32_0 = arith.constant 0 : i32
    %c0_i32_1 = arith.constant 0 : i32
    return %arg0, %c0_i32, %c0_i32_0 : i32, i32, i32
  }
  func.func @transform_17(%arg0: i32) -> (i32, i32, i32) {
    %c0_i32 = arith.constant 0 : i32
    %c0_i32_0 = arith.constant 0 : i32
    %c0_i32_1 = arith.constant 0 : i32
    return %arg0, %c0_i32, %c0_i32_0 : i32, i32, i32
  }
  func.func @transform_18(%arg0: i32) -> (i32, i32) {
    %c0_i32 = arith.constant 0 : i32
    %c0_i32_0 = arith.constant 0 : i32
    %c0_i32_1 = arith.constant 0 : i32
    return %c0_i32, %c0_i32_0 : i32, i32
  }
  func.func @transform_19(%arg0: i32) -> (i32, i32) {
    %c0_i32 = arith.constant 0 : i32
    %c0_i32_0 = arith.constant 0 : i32
    %c0_i32_1 = arith.constant 0 : i32
    return %c0_i32, %c0_i32_0 : i32, i32
  }
  func.func @transform_20(%arg0: i32) -> (i32, i32) {
    %c0_i32 = arith.constant 0 : i32
    %c0_i32_0 = arith.constant 0 : i32
    %c0_i32_1 = arith.constant 0 : i32
    return %c0_i32, %c0_i32_0 : i32, i32
  }
  func.func @transform_21(%arg0: i32) -> (i32, i32) {
    %c0_i32 = arith.constant 0 : i32
    %c0_i32_0 = arith.constant 0 : i32
    %c0_i32_1 = arith.constant 0 : i32
    return %c0_i32, %c0_i32_0 : i32, i32
  }
  func.func @transform_22(%arg0: i32) -> (i32, i32) {
    %c0_i32 = arith.constant 0 : i32
    %c0_i32_0 = arith.constant 0 : i32
    %c0_i32_1 = arith.constant 0 : i32
    return %c0_i32, %c0_i32_0 : i32, i32
  }
  func.func @transform_23(%arg0: i32) -> (i32, i32) {
    %c0_i32 = arith.constant 0 : i32
    %c0_i32_0 = arith.constant 0 : i32
    %c0_i32_1 = arith.constant 0 : i32
    return %c0_i32, %c0_i32_0 : i32, i32
  }
  func.func @transform_24(%arg0: i32) -> (i32, i32) {
    %c0_i32 = arith.constant 0 : i32
    %c0_i32_0 = arith.constant 0 : i32
    %c0_i32_1 = arith.constant 0 : i32
    return %c0_i32, %c0_i32_0 : i32, i32
  }
  func.func @transform_25(%arg0: i32) -> (i32, i32) {
    %c0_i32 = arith.constant 0 : i32
    %c0_i32_0 = arith.constant 0 : i32
    %c0_i32_1 = arith.constant 0 : i32
    return %c0_i32, %c0_i32_0 : i32, i32
  }
}

module attributes {stable_mosaic.version = 11 : i64} {
  func.func @_encoder_layer_kernel(%arg0: i32, %arg1: memref<2x16x128xbf16, #tpu.memory_space<vmem>>, %arg2: memref<1x128xf32, #tpu.memory_space<vmem>>, %arg3: memref<1x128xf32, #tpu.memory_space<vmem>>, %arg4: memref<128x384xbf16, #tpu.memory_space<vmem>>, %arg5: memref<1x384xf32, #tpu.memory_space<vmem>>, %arg6: memref<128x128xbf16, #tpu.memory_space<vmem>>, %arg7: memref<1x128xf32, #tpu.memory_space<vmem>>, %arg8: memref<1x128xf32, #tpu.memory_space<vmem>>, %arg9: memref<1x128xf32, #tpu.memory_space<vmem>>, %arg10: memref<128x256xbf16, #tpu.memory_space<vmem>>, %arg11: memref<1x256xf32, #tpu.memory_space<vmem>>, %arg12: memref<256x128xbf16, #tpu.memory_space<vmem>>, %arg13: memref<1x128xf32, #tpu.memory_space<vmem>>, %arg14: memref<2x16x128xbf16, #tpu.memory_space<vmem>>, %arg15: memref<2x128xf32, #tpu.memory_space<vmem>>) attributes {dimension_semantics = [#tpu.dimension_semantics<arbitrary>], iteration_bounds = array<i64: 1>, scalar_prefetch = 0 : i64, scratch_operands = 0 : i64, tpu.core_type = #tpu.core_type<tc>, window_params = [{pipeline_mode = #tpu.pipeline_mode<synchronous>, transform_indices = @transform_0, window_bounds = array<i64: 2, 16, 128>}, {pipeline_mode = #tpu.pipeline_mode<synchronous>, transform_indices = @transform_1, window_bounds = array<i64: 1, 128>}, {pipeline_mode = #tpu.pipeline_mode<synchronous>, transform_indices = @transform_2, window_bounds = array<i64: 1, 128>}, {pipeline_mode = #tpu.pipeline_mode<synchronous>, transform_indices = @transform_3, window_bounds = array<i64: 128, 384>}, {pipeline_mode = #tpu.pipeline_mode<synchronous>, transform_indices = @transform_4, window_bounds = array<i64: 1, 384>}, {pipeline_mode = #tpu.pipeline_mode<synchronous>, transform_indices = @transform_5, window_bounds = array<i64: 128, 128>}, {pipeline_mode = #tpu.pipeline_mode<synchronous>, transform_indices = @transform_6, window_bounds = array<i64: 1, 128>}, {pipeline_mode = #tpu.pipeline_mode<synchronous>, transform_indices = @transform_7, window_bounds = array<i64: 1, 128>}, {pipeline_mode = #tpu.pipeline_mode<synchronous>, transform_indices = @transform_8, window_bounds = array<i64: 1, 128>}, {pipeline_mode = #tpu.pipeline_mode<synchronous>, transform_indices = @transform_9, window_bounds = array<i64: 128, 256>}, {pipeline_mode = #tpu.pipeline_mode<synchronous>, transform_indices = @transform_10, window_bounds = array<i64: 1, 256>}, {pipeline_mode = #tpu.pipeline_mode<synchronous>, transform_indices = @transform_11, window_bounds = array<i64: 256, 128>}, {pipeline_mode = #tpu.pipeline_mode<synchronous>, transform_indices = @transform_12, window_bounds = array<i64: 1, 128>}, {pipeline_mode = #tpu.pipeline_mode<synchronous>, transform_indices = @transform_13, window_bounds = array<i64: 2, 16, 128>}, {pipeline_mode = #tpu.pipeline_mode<synchronous>, transform_indices = @transform_14, window_bounds = array<i64: 2, 128>}]} {
    %c0 = arith.constant 0 : index
    %c0_0 = arith.constant 0 : index
    %c0_1 = arith.constant 0 : index
    %0 = vector.load %arg1[%c0, %c0_0, %c0_1] : memref<2x16x128xbf16, #tpu.memory_space<vmem>>, vector<2x16x128xbf16>
    %1 = arith.extf %0 : vector<2x16x128xbf16> to vector<2x16x128xf32>
    %2 = vector.shape_cast %1 : vector<2x16x128xf32> to vector<32x128xf32>
    %cst = arith.constant dense<0.000000e+00> : vector<32xf32>
    %3 = vector.multi_reduction <add>, %2, %cst [1] : vector<32x128xf32> to vector<32xf32>
    %4 = vector.shape_cast %3 : vector<32xf32> to vector<32x1xf32>
    %cst_2 = arith.constant 1.280000e+02 : f32
    %5 = vector.broadcast %cst_2 : f32 to vector<32x1xf32>
    %6 = arith.divf %4, %5 : vector<32x1xf32>
    %7 = vector.broadcast %6 : vector<32x1xf32> to vector<32x128xf32>
    %8 = arith.subf %2, %7 : vector<32x128xf32>
    %9 = arith.mulf %8, %8 : vector<32x128xf32>
    %cst_3 = arith.constant dense<0.000000e+00> : vector<32xf32>
    %10 = vector.multi_reduction <add>, %9, %cst_3 [1] : vector<32x128xf32> to vector<32xf32>
    %11 = vector.shape_cast %10 : vector<32xf32> to vector<32x1xf32>
    %cst_4 = arith.constant 1.280000e+02 : f32
    %12 = vector.broadcast %cst_4 : f32 to vector<32x1xf32>
    %13 = arith.divf %11, %12 : vector<32x1xf32>
    %14 = vector.broadcast %6 : vector<32x1xf32> to vector<32x128xf32>
    %15 = arith.subf %2, %14 : vector<32x128xf32>
    %cst_5 = arith.constant 9.99999974E-6 : f32
    %16 = vector.broadcast %cst_5 : f32 to vector<32x1xf32>
    %17 = arith.addf %13, %16 : vector<32x1xf32>
    %18 = math.rsqrt %17 : vector<32x1xf32>
    %19 = vector.broadcast %18 : vector<32x1xf32> to vector<32x128xf32>
    %20 = arith.mulf %15, %19 : vector<32x128xf32>
    %c0_6 = arith.constant 0 : index
    %c0_7 = arith.constant 0 : index
    %21 = vector.load %arg2[%c0_6, %c0_7] : memref<1x128xf32, #tpu.memory_space<vmem>>, vector<1x128xf32>
    %22 = vector.broadcast %21 : vector<1x128xf32> to vector<32x128xf32>
    %23 = arith.mulf %20, %22 : vector<32x128xf32>
    %c0_8 = arith.constant 0 : index
    %c0_9 = arith.constant 0 : index
    %24 = vector.load %arg3[%c0_8, %c0_9] : memref<1x128xf32, #tpu.memory_space<vmem>>, vector<1x128xf32>
    %25 = vector.broadcast %24 : vector<1x128xf32> to vector<32x128xf32>
    %26 = arith.addf %23, %25 : vector<32x128xf32>
    %27 = arith.truncf %26 : vector<32x128xf32> to vector<32x128xbf16>
    %c0_10 = arith.constant 0 : index
    %c0_11 = arith.constant 0 : index
    %28 = vector.load %arg4[%c0_10, %c0_11] : memref<128x384xbf16, #tpu.memory_space<vmem>>, vector<128x384xbf16>
    %cst_12 = arith.constant dense<0.000000e+00> : vector<32x384xf32>
    %29 = tpu.matmul %27, %28, %cst_12 {dimension_numbers = #tpu.dot_dimension_numbers<[1], [0], [0], [1], [0, 0, 1, 1], [], []>} : vector<32x128xbf16>, vector<128x384xbf16>, vector<32x384xf32> -> vector<32x384xf32>
    %c0_13 = arith.constant 0 : index
    %c0_14 = arith.constant 0 : index
    %30 = vector.load %arg5[%c0_13, %c0_14] : memref<1x384xf32, #tpu.memory_space<vmem>>, vector<1x384xf32>
    %31 = vector.broadcast %30 : vector<1x384xf32> to vector<32x384xf32>
    %32 = arith.addf %29, %31 : vector<32x384xf32>
    %33 = vector.shape_cast %32 : vector<32x384xf32> to vector<2x16x384xf32>
    %34 = vector.extract_strided_slice %33 {offsets = [0, 0, 0], sizes = [2, 16, 128], strides = [1, 1, 1]} : vector<2x16x384xf32> to vector<2x16x128xf32>
    %cst_15 = arith.constant 0.176776692 : f32
    %35 = vector.broadcast %cst_15 : f32 to vector<2x16x128xf32>
    %36 = arith.mulf %34, %35 : vector<2x16x128xf32>
    %37 = vector.extract_strided_slice %33 {offsets = [0, 0, 128], sizes = [2, 16, 128], strides = [1, 1, 1]} : vector<2x16x384xf32> to vector<2x16x128xf32>
    %38 = vector.extract_strided_slice %33 {offsets = [0, 0, 256], sizes = [2, 16, 128], strides = [1, 1, 1]} : vector<2x16x384xf32> to vector<2x16x128xf32>
    %39 = vector.extract_strided_slice %36 {offsets = [0, 0, 0], sizes = [2, 16, 32], strides = [1, 1, 1]} : vector<2x16x128xf32> to vector<2x16x32xf32>
    %40 = vector.extract_strided_slice %37 {offsets = [0, 0, 0], sizes = [2, 16, 32], strides = [1, 1, 1]} : vector<2x16x128xf32> to vector<2x16x32xf32>
    "tpu.trace_start"() <{level = 10 : i32, message = "bqd,bkd->bqk"}> : () -> ()
    %cst_16 = arith.constant dense<0.000000e+00> : vector<2x16x16xf32>
    %41 = tpu.matmul %39, %40, %cst_16 {dimension_numbers = #tpu.dot_dimension_numbers<[2], [2], [1], [1], [0, 0, 0, 1, 1, 1], [0], [0]>} : vector<2x16x32xf32>, vector<2x16x32xf32>, vector<2x16x16xf32> -> vector<2x16x16xf32>
    "tpu.trace_stop"() : () -> ()
    %cst_17 = arith.constant dense<0xFF800000> : vector<2x16xf32>
    %42 = vector.multi_reduction <maximumf>, %41, %cst_17 [2] : vector<2x16x16xf32> to vector<2x16xf32>
    %43 = vector.shape_cast %42 : vector<2x16xf32> to vector<2x16x1xf32>
    %44 = vector.broadcast %43 : vector<2x16x1xf32> to vector<2x16x16xf32>
    %45 = arith.subf %41, %44 : vector<2x16x16xf32>
    %46 = math.exp %45 : vector<2x16x16xf32>
    %cst_18 = arith.constant dense<0.000000e+00> : vector<2x16xf32>
    %47 = vector.multi_reduction <add>, %46, %cst_18 [2] : vector<2x16x16xf32> to vector<2x16xf32>
    %48 = vector.shape_cast %47 : vector<2x16xf32> to vector<2x16x1xf32>
    %49 = tpu.reciprocal %48 {approx = true} : vector<2x16x1xf32> -> vector<2x16x1xf32>
    %50 = vector.broadcast %49 : vector<2x16x1xf32> to vector<2x16x16xf32>
    %51 = arith.mulf %46, %50 : vector<2x16x16xf32>
    %52 = vector.extract_strided_slice %38 {offsets = [0, 0, 0], sizes = [2, 16, 32], strides = [1, 1, 1]} : vector<2x16x128xf32> to vector<2x16x32xf32>
    "tpu.trace_start"() <{level = 10 : i32, message = "bqk,bkd->bqd"}> : () -> ()
    %cst_19 = arith.constant dense<0.000000e+00> : vector<2x16x32xf32>
    %53 = tpu.matmul %51, %52, %cst_19 {dimension_numbers = #tpu.dot_dimension_numbers<[2], [1], [1], [2], [0, 0, 0, 1, 1, 2], [0], [0]>} : vector<2x16x16xf32>, vector<2x16x32xf32>, vector<2x16x32xf32> -> vector<2x16x32xf32>
    "tpu.trace_stop"() : () -> ()
    %54 = vector.extract_strided_slice %36 {offsets = [0, 0, 32], sizes = [2, 16, 32], strides = [1, 1, 1]} : vector<2x16x128xf32> to vector<2x16x32xf32>
    %55 = vector.extract_strided_slice %37 {offsets = [0, 0, 32], sizes = [2, 16, 32], strides = [1, 1, 1]} : vector<2x16x128xf32> to vector<2x16x32xf32>
    "tpu.trace_start"() <{level = 10 : i32, message = "bqd,bkd->bqk"}> : () -> ()
    %cst_20 = arith.constant dense<0.000000e+00> : vector<2x16x16xf32>
    %56 = tpu.matmul %54, %55, %cst_20 {dimension_numbers = #tpu.dot_dimension_numbers<[2], [2], [1], [1], [0, 0, 0, 1, 1, 1], [0], [0]>} : vector<2x16x32xf32>, vector<2x16x32xf32>, vector<2x16x16xf32> -> vector<2x16x16xf32>
    "tpu.trace_stop"() : () -> ()
    %cst_21 = arith.constant dense<0xFF800000> : vector<2x16xf32>
    %57 = vector.multi_reduction <maximumf>, %56, %cst_21 [2] : vector<2x16x16xf32> to vector<2x16xf32>
    %58 = vector.shape_cast %57 : vector<2x16xf32> to vector<2x16x1xf32>
    %59 = vector.broadcast %58 : vector<2x16x1xf32> to vector<2x16x16xf32>
    %60 = arith.subf %56, %59 : vector<2x16x16xf32>
    %61 = math.exp %60 : vector<2x16x16xf32>
    %cst_22 = arith.constant dense<0.000000e+00> : vector<2x16xf32>
    %62 = vector.multi_reduction <add>, %61, %cst_22 [2] : vector<2x16x16xf32> to vector<2x16xf32>
    %63 = vector.shape_cast %62 : vector<2x16xf32> to vector<2x16x1xf32>
    %64 = tpu.reciprocal %63 {approx = true} : vector<2x16x1xf32> -> vector<2x16x1xf32>
    %65 = vector.broadcast %64 : vector<2x16x1xf32> to vector<2x16x16xf32>
    %66 = arith.mulf %61, %65 : vector<2x16x16xf32>
    %67 = vector.extract_strided_slice %38 {offsets = [0, 0, 32], sizes = [2, 16, 32], strides = [1, 1, 1]} : vector<2x16x128xf32> to vector<2x16x32xf32>
    "tpu.trace_start"() <{level = 10 : i32, message = "bqk,bkd->bqd"}> : () -> ()
    %cst_23 = arith.constant dense<0.000000e+00> : vector<2x16x32xf32>
    %68 = tpu.matmul %66, %67, %cst_23 {dimension_numbers = #tpu.dot_dimension_numbers<[2], [1], [1], [2], [0, 0, 0, 1, 1, 2], [0], [0]>} : vector<2x16x16xf32>, vector<2x16x32xf32>, vector<2x16x32xf32> -> vector<2x16x32xf32>
    "tpu.trace_stop"() : () -> ()
    %69 = vector.extract_strided_slice %36 {offsets = [0, 0, 64], sizes = [2, 16, 32], strides = [1, 1, 1]} : vector<2x16x128xf32> to vector<2x16x32xf32>
    %70 = vector.extract_strided_slice %37 {offsets = [0, 0, 64], sizes = [2, 16, 32], strides = [1, 1, 1]} : vector<2x16x128xf32> to vector<2x16x32xf32>
    "tpu.trace_start"() <{level = 10 : i32, message = "bqd,bkd->bqk"}> : () -> ()
    %cst_24 = arith.constant dense<0.000000e+00> : vector<2x16x16xf32>
    %71 = tpu.matmul %69, %70, %cst_24 {dimension_numbers = #tpu.dot_dimension_numbers<[2], [2], [1], [1], [0, 0, 0, 1, 1, 1], [0], [0]>} : vector<2x16x32xf32>, vector<2x16x32xf32>, vector<2x16x16xf32> -> vector<2x16x16xf32>
    "tpu.trace_stop"() : () -> ()
    %cst_25 = arith.constant dense<0xFF800000> : vector<2x16xf32>
    %72 = vector.multi_reduction <maximumf>, %71, %cst_25 [2] : vector<2x16x16xf32> to vector<2x16xf32>
    %73 = vector.shape_cast %72 : vector<2x16xf32> to vector<2x16x1xf32>
    %74 = vector.broadcast %73 : vector<2x16x1xf32> to vector<2x16x16xf32>
    %75 = arith.subf %71, %74 : vector<2x16x16xf32>
    %76 = math.exp %75 : vector<2x16x16xf32>
    %cst_26 = arith.constant dense<0.000000e+00> : vector<2x16xf32>
    %77 = vector.multi_reduction <add>, %76, %cst_26 [2] : vector<2x16x16xf32> to vector<2x16xf32>
    %78 = vector.shape_cast %77 : vector<2x16xf32> to vector<2x16x1xf32>
    %79 = tpu.reciprocal %78 {approx = true} : vector<2x16x1xf32> -> vector<2x16x1xf32>
    %80 = vector.broadcast %79 : vector<2x16x1xf32> to vector<2x16x16xf32>
    %81 = arith.mulf %76, %80 : vector<2x16x16xf32>
    %82 = vector.extract_strided_slice %38 {offsets = [0, 0, 64], sizes = [2, 16, 32], strides = [1, 1, 1]} : vector<2x16x128xf32> to vector<2x16x32xf32>
    "tpu.trace_start"() <{level = 10 : i32, message = "bqk,bkd->bqd"}> : () -> ()
    %cst_27 = arith.constant dense<0.000000e+00> : vector<2x16x32xf32>
    %83 = tpu.matmul %81, %82, %cst_27 {dimension_numbers = #tpu.dot_dimension_numbers<[2], [1], [1], [2], [0, 0, 0, 1, 1, 2], [0], [0]>} : vector<2x16x16xf32>, vector<2x16x32xf32>, vector<2x16x32xf32> -> vector<2x16x32xf32>
    "tpu.trace_stop"() : () -> ()
    %84 = vector.extract_strided_slice %36 {offsets = [0, 0, 96], sizes = [2, 16, 32], strides = [1, 1, 1]} : vector<2x16x128xf32> to vector<2x16x32xf32>
    %85 = vector.extract_strided_slice %37 {offsets = [0, 0, 96], sizes = [2, 16, 32], strides = [1, 1, 1]} : vector<2x16x128xf32> to vector<2x16x32xf32>
    "tpu.trace_start"() <{level = 10 : i32, message = "bqd,bkd->bqk"}> : () -> ()
    %cst_28 = arith.constant dense<0.000000e+00> : vector<2x16x16xf32>
    %86 = tpu.matmul %84, %85, %cst_28 {dimension_numbers = #tpu.dot_dimension_numbers<[2], [2], [1], [1], [0, 0, 0, 1, 1, 1], [0], [0]>} : vector<2x16x32xf32>, vector<2x16x32xf32>, vector<2x16x16xf32> -> vector<2x16x16xf32>
    "tpu.trace_stop"() : () -> ()
    %cst_29 = arith.constant dense<0xFF800000> : vector<2x16xf32>
    %87 = vector.multi_reduction <maximumf>, %86, %cst_29 [2] : vector<2x16x16xf32> to vector<2x16xf32>
    %88 = vector.shape_cast %87 : vector<2x16xf32> to vector<2x16x1xf32>
    %89 = vector.broadcast %88 : vector<2x16x1xf32> to vector<2x16x16xf32>
    %90 = arith.subf %86, %89 : vector<2x16x16xf32>
    %91 = math.exp %90 : vector<2x16x16xf32>
    %cst_30 = arith.constant dense<0.000000e+00> : vector<2x16xf32>
    %92 = vector.multi_reduction <add>, %91, %cst_30 [2] : vector<2x16x16xf32> to vector<2x16xf32>
    %93 = vector.shape_cast %92 : vector<2x16xf32> to vector<2x16x1xf32>
    %94 = tpu.reciprocal %93 {approx = true} : vector<2x16x1xf32> -> vector<2x16x1xf32>
    %95 = vector.broadcast %94 : vector<2x16x1xf32> to vector<2x16x16xf32>
    %96 = arith.mulf %91, %95 : vector<2x16x16xf32>
    %97 = vector.extract_strided_slice %38 {offsets = [0, 0, 96], sizes = [2, 16, 32], strides = [1, 1, 1]} : vector<2x16x128xf32> to vector<2x16x32xf32>
    "tpu.trace_start"() <{level = 10 : i32, message = "bqk,bkd->bqd"}> : () -> ()
    %cst_31 = arith.constant dense<0.000000e+00> : vector<2x16x32xf32>
    %98 = tpu.matmul %96, %97, %cst_31 {dimension_numbers = #tpu.dot_dimension_numbers<[2], [1], [1], [2], [0, 0, 0, 1, 1, 2], [0], [0]>} : vector<2x16x16xf32>, vector<2x16x32xf32>, vector<2x16x32xf32> -> vector<2x16x32xf32>
    "tpu.trace_stop"() : () -> ()
    %99 = tpu.concatenate %53, %68, %83, %98 in 2 : vector<2x16x32xf32>, vector<2x16x32xf32>, vector<2x16x32xf32>, vector<2x16x32xf32> -> vector<2x16x128xf32>
    %100 = vector.shape_cast %99 : vector<2x16x128xf32> to vector<32x128xf32>
    %101 = arith.truncf %100 : vector<32x128xf32> to vector<32x128xbf16>
    %c0_32 = arith.constant 0 : index
    %c0_33 = arith.constant 0 : index
    %102 = vector.load %arg6[%c0_32, %c0_33] : memref<128x128xbf16, #tpu.memory_space<vmem>>, vector<128x128xbf16>
    %cst_34 = arith.constant dense<0.000000e+00> : vector<32x128xf32>
    %103 = tpu.matmul %101, %102, %cst_34 {dimension_numbers = #tpu.dot_dimension_numbers<[1], [0], [0], [1], [0, 0, 1, 1], [], []>} : vector<32x128xbf16>, vector<128x128xbf16>, vector<32x128xf32> -> vector<32x128xf32>
    %c0_35 = arith.constant 0 : index
    %c0_36 = arith.constant 0 : index
    %104 = vector.load %arg7[%c0_35, %c0_36] : memref<1x128xf32, #tpu.memory_space<vmem>>, vector<1x128xf32>
    %105 = vector.broadcast %104 : vector<1x128xf32> to vector<32x128xf32>
    %106 = arith.addf %103, %105 : vector<32x128xf32>
    %107 = arith.addf %2, %106 : vector<32x128xf32>
    %cst_37 = arith.constant dense<0.000000e+00> : vector<32xf32>
    %108 = vector.multi_reduction <add>, %107, %cst_37 [1] : vector<32x128xf32> to vector<32xf32>
    %109 = vector.shape_cast %108 : vector<32xf32> to vector<32x1xf32>
    %cst_38 = arith.constant 1.280000e+02 : f32
    %110 = vector.broadcast %cst_38 : f32 to vector<32x1xf32>
    %111 = arith.divf %109, %110 : vector<32x1xf32>
    %112 = vector.broadcast %111 : vector<32x1xf32> to vector<32x128xf32>
    %113 = arith.subf %107, %112 : vector<32x128xf32>
    %114 = arith.mulf %113, %113 : vector<32x128xf32>
    %cst_39 = arith.constant dense<0.000000e+00> : vector<32xf32>
    %115 = vector.multi_reduction <add>, %114, %cst_39 [1] : vector<32x128xf32> to vector<32xf32>
    %116 = vector.shape_cast %115 : vector<32xf32> to vector<32x1xf32>
    %cst_40 = arith.constant 1.280000e+02 : f32
    %117 = vector.broadcast %cst_40 : f32 to vector<32x1xf32>
    %118 = arith.divf %116, %117 : vector<32x1xf32>
    %119 = vector.broadcast %111 : vector<32x1xf32> to vector<32x128xf32>
    %120 = arith.subf %107, %119 : vector<32x128xf32>
    %cst_41 = arith.constant 9.99999974E-6 : f32
    %121 = vector.broadcast %cst_41 : f32 to vector<32x1xf32>
    %122 = arith.addf %118, %121 : vector<32x1xf32>
    %123 = math.rsqrt %122 : vector<32x1xf32>
    %124 = vector.broadcast %123 : vector<32x1xf32> to vector<32x128xf32>
    %125 = arith.mulf %120, %124 : vector<32x128xf32>
    %c0_42 = arith.constant 0 : index
    %c0_43 = arith.constant 0 : index
    %126 = vector.load %arg8[%c0_42, %c0_43] : memref<1x128xf32, #tpu.memory_space<vmem>>, vector<1x128xf32>
    %127 = vector.broadcast %126 : vector<1x128xf32> to vector<32x128xf32>
    %128 = arith.mulf %125, %127 : vector<32x128xf32>
    %c0_44 = arith.constant 0 : index
    %c0_45 = arith.constant 0 : index
    %129 = vector.load %arg9[%c0_44, %c0_45] : memref<1x128xf32, #tpu.memory_space<vmem>>, vector<1x128xf32>
    %130 = vector.broadcast %129 : vector<1x128xf32> to vector<32x128xf32>
    %131 = arith.addf %128, %130 : vector<32x128xf32>
    %132 = arith.truncf %131 : vector<32x128xf32> to vector<32x128xbf16>
    %c0_46 = arith.constant 0 : index
    %c0_47 = arith.constant 0 : index
    %133 = vector.load %arg10[%c0_46, %c0_47] : memref<128x256xbf16, #tpu.memory_space<vmem>>, vector<128x256xbf16>
    %cst_48 = arith.constant dense<0.000000e+00> : vector<32x256xf32>
    %134 = tpu.matmul %132, %133, %cst_48 {dimension_numbers = #tpu.dot_dimension_numbers<[1], [0], [0], [1], [0, 0, 1, 1], [], []>} : vector<32x128xbf16>, vector<128x256xbf16>, vector<32x256xf32> -> vector<32x256xf32>
    %c0_49 = arith.constant 0 : index
    %c0_50 = arith.constant 0 : index
    %135 = vector.load %arg11[%c0_49, %c0_50] : memref<1x256xf32, #tpu.memory_space<vmem>>, vector<1x256xf32>
    %136 = vector.broadcast %135 : vector<1x256xf32> to vector<32x256xf32>
    %137 = arith.addf %134, %136 : vector<32x256xf32>
    %cst_51 = arith.constant 0.000000e+00 : f32
    %138 = vector.broadcast %cst_51 : f32 to vector<32x256xf32>
    %139 = arith.maximumf %137, %138 : vector<32x256xf32>
    %140 = arith.truncf %139 : vector<32x256xf32> to vector<32x256xbf16>
    %c0_52 = arith.constant 0 : index
    %c0_53 = arith.constant 0 : index
    %141 = vector.load %arg12[%c0_52, %c0_53] : memref<256x128xbf16, #tpu.memory_space<vmem>>, vector<256x128xbf16>
    %cst_54 = arith.constant dense<0.000000e+00> : vector<32x128xf32>
    %142 = tpu.matmul %140, %141, %cst_54 {dimension_numbers = #tpu.dot_dimension_numbers<[1], [0], [0], [1], [0, 0, 1, 1], [], []>} : vector<32x256xbf16>, vector<256x128xbf16>, vector<32x128xf32> -> vector<32x128xf32>
    %c0_55 = arith.constant 0 : index
    %c0_56 = arith.constant 0 : index
    %143 = vector.load %arg13[%c0_55, %c0_56] : memref<1x128xf32, #tpu.memory_space<vmem>>, vector<1x128xf32>
    %144 = vector.broadcast %143 : vector<1x128xf32> to vector<32x128xf32>
    %145 = arith.addf %142, %144 : vector<32x128xf32>
    %146 = arith.addf %107, %145 : vector<32x128xf32>
    %147 = vector.shape_cast %146 : vector<32x128xf32> to vector<2x16x128xf32>
    %148 = arith.truncf %147 : vector<2x16x128xf32> to vector<2x16x128xbf16>
    %c0_57 = arith.constant 0 : index
    %c0_58 = arith.constant 0 : index
    %c0_59 = arith.constant 0 : index
    %149 = vector.load %arg14[%c0_57, %c0_58, %c0_59] : memref<2x16x128xbf16, #tpu.memory_space<vmem>>, vector<2x16x128xbf16>
    tpu.vector_store %arg14[%c0_57, %c0_58, %c0_59], %148 {strides = array<i32>} : memref<2x16x128xbf16, #tpu.memory_space<vmem>>, vector<2x16x128xbf16>,
    %cst_60 = arith.constant dense<0.000000e+00> : vector<2x128xf32>
    %150 = vector.multi_reduction <add>, %147, %cst_60 [1] : vector<2x16x128xf32> to vector<2x128xf32>
    %cst_61 = arith.constant 1.600000e+01 : f32
    %151 = vector.broadcast %cst_61 : f32 to vector<2x128xf32>
    %152 = arith.divf %150, %151 : vector<2x128xf32>
    %c0_62 = arith.constant 0 : index
    %c0_63 = arith.constant 0 : index
    %153 = vector.load %arg15[%c0_62, %c0_63] : memref<2x128xf32, #tpu.memory_space<vmem>>, vector<2x128xf32>
    tpu.vector_store %arg15[%c0_62, %c0_63], %152 {strides = array<i32>} : memref<2x128xf32, #tpu.memory_space<vmem>>, vector<2x128xf32>,
    return
  }
  func.func @transform_0(%arg0: i32) -> (i32, i32, i32) {
    %c0_i32 = arith.constant 0 : i32
    %c0_i32_0 = arith.constant 0 : i32
    %c0_i32_1 = arith.constant 0 : i32
    %c0_i32_2 = arith.constant 0 : i32
    return %c0_i32, %c0_i32_0, %c0_i32_1 : i32, i32, i32
  }
  func.func @transform_1(%arg0: i32) -> (i32, i32) {
    %c0_i32 = arith.constant 0 : i32
    %c0_i32_0 = arith.constant 0 : i32
    %c0_i32_1 = arith.constant 0 : i32
    return %c0_i32, %c0_i32_0 : i32, i32
  }
  func.func @transform_2(%arg0: i32) -> (i32, i32) {
    %c0_i32 = arith.constant 0 : i32
    %c0_i32_0 = arith.constant 0 : i32
    %c0_i32_1 = arith.constant 0 : i32
    return %c0_i32, %c0_i32_0 : i32, i32
  }
  func.func @transform_3(%arg0: i32) -> (i32, i32) {
    %c0_i32 = arith.constant 0 : i32
    %c0_i32_0 = arith.constant 0 : i32
    %c0_i32_1 = arith.constant 0 : i32
    return %c0_i32, %c0_i32_0 : i32, i32
  }
  func.func @transform_4(%arg0: i32) -> (i32, i32) {
    %c0_i32 = arith.constant 0 : i32
    %c0_i32_0 = arith.constant 0 : i32
    %c0_i32_1 = arith.constant 0 : i32
    return %c0_i32, %c0_i32_0 : i32, i32
  }
  func.func @transform_5(%arg0: i32) -> (i32, i32) {
    %c0_i32 = arith.constant 0 : i32
    %c0_i32_0 = arith.constant 0 : i32
    %c0_i32_1 = arith.constant 0 : i32
    return %c0_i32, %c0_i32_0 : i32, i32
  }
  func.func @transform_6(%arg0: i32) -> (i32, i32) {
    %c0_i32 = arith.constant 0 : i32
    %c0_i32_0 = arith.constant 0 : i32
    %c0_i32_1 = arith.constant 0 : i32
    return %c0_i32, %c0_i32_0 : i32, i32
  }
  func.func @transform_7(%arg0: i32) -> (i32, i32) {
    %c0_i32 = arith.constant 0 : i32
    %c0_i32_0 = arith.constant 0 : i32
    %c0_i32_1 = arith.constant 0 : i32
    return %c0_i32, %c0_i32_0 : i32, i32
  }
  func.func @transform_8(%arg0: i32) -> (i32, i32) {
    %c0_i32 = arith.constant 0 : i32
    %c0_i32_0 = arith.constant 0 : i32
    %c0_i32_1 = arith.constant 0 : i32
    return %c0_i32, %c0_i32_0 : i32, i32
  }
  func.func @transform_9(%arg0: i32) -> (i32, i32) {
    %c0_i32 = arith.constant 0 : i32
    %c0_i32_0 = arith.constant 0 : i32
    %c0_i32_1 = arith.constant 0 : i32
    return %c0_i32, %c0_i32_0 : i32, i32
  }
  func.func @transform_10(%arg0: i32) -> (i32, i32) {
    %c0_i32 = arith.constant 0 : i32
    %c0_i32_0 = arith.constant 0 : i32
    %c0_i32_1 = arith.constant 0 : i32
    return %c0_i32, %c0_i32_0 : i32, i32
  }
  func.func @transform_11(%arg0: i32) -> (i32, i32) {
    %c0_i32 = arith.constant 0 : i32
    %c0_i32_0 = arith.constant 0 : i32
    %c0_i32_1 = arith.constant 0 : i32
    return %c0_i32, %c0_i32_0 : i32, i32
  }
  func.func @transform_12(%arg0: i32) -> (i32, i32) {
    %c0_i32 = arith.constant 0 : i32
    %c0_i32_0 = arith.constant 0 : i32
    %c0_i32_1 = arith.constant 0 : i32
    return %c0_i32, %c0_i32_0 : i32, i32
  }
  func.func @transform_13(%arg0: i32) -> (i32, i32, i32) {
    %c0_i32 = arith.constant 0 : i32
    %c0_i32_0 = arith.constant 0 : i32
    %c0_i32_1 = arith.constant 0 : i32
    %c0_i32_2 = arith.constant 0 : i32
    return %c0_i32, %c0_i32_0, %c0_i32_1 : i32, i32, i32
  }
  func.func @transform_14(%arg0: i32) -> (i32, i32) {
    %c0_i32 = arith.constant 0 : i32
    %c0_i32_0 = arith.constant 0 : i32
    %c0_i32_1 = arith.constant 0 : i32
    return %c0_i32, %c0_i32_0 : i32, i32
  }
}

</mosaic_0001>

<bundles_post_ra>
// kernel: _lambda_.4
= control target key start
LH: loop header
LB: loop body
LE: loop exit
PB: predicated region body
PF: predicated region fallthrough
CT: control target
= control target key end

     0   :  { %vm35_vm0 = vcmask 1046528   ;;  %vm58_vm1 = vcmask 1045504   ;;  %vm81_vm2 = vcmask 1044480   ;;  %s1326_s11 = smov 8   ;;  %s1327_s12 = smov 16   ;;  %vm104_vm3 = vcmask 1043456   ;;  %s2128_s0 = inlined_call_operand.vmem [shape: f32[2,46,8], index: 0, kind: input, shape index: {}]   ;;  %s2129_s1 = inlined_call_operand.vmem [shape: bf16[248,128], index: 1, kind: input, shape index: {}]   ;;  %s2130_s2 = inlined_call_operand.vmem [shape: f32[1,128], index: 2, kind: input, shape index: {}]   ;;  %s2131_s3 = inlined_call_operand.vmem [shape: bf16[2,16,128], index: 3, kind: output, shape index: {0}]   ;;  %s2132_s4 = inlined_call_operand.vmem [shape: f32[2,128], index: 4, kind: output, shape index: {1}]  }
   0x1   :  { %v1369_v0 = vld [vmem:[%s2128_s0 + $0x18] sm:$0xff]  ;;  %v1374_v1 = vld [vmem:[%s2128_s0 + $0x20] sm:$0xff]  ;;  %v1379_v2 = vld [vmem:[%s2128_s0 + $0x28] sm:$0x3f]  ;;  %s1328_s13 = smov 24   ;;  %vm127_vm4 = vcmask 1042432  }
   0x2   :  { %v210_v3 = vrot.slane %v1369_v0, 1  ;;  %v399_v4 = vrot.slane %v1374_v1, 1  ;;  %v525_v5 = vrot.slane %v1379_v2, 1  ;;  %v1387_v6 = vld [vmem:[%s2128_s0 + $0x10] sm:$0xff]  ;;  %v1392_v7 = vld [vmem:[%s2128_s0 + $0x8] sm:$0xff]  ;;  %v1397_v8 = vld [vmem:[%s2128_s0] sm:$0xff] }
   0x3   :  { %2157 = vst [vmem:[#allocation2_spill] sm:$0xff] %v1397_v8  ;;  %v39_v9 = vrot.slane %v1387_v6, 1  ;;  %v37_v10 = vrot.slane %v1392_v7, 1  ;;  %v36_v11 = vrot.slane %v1397_v8, 1  ;;  %v1405_v12 = vld [vmem:[%s2128_s0 + $0x40] sm:$0xff]  ;;  %v1410_v13 = vld [vmem:[%s2128_s0 + $0x48] sm:$0xff] }
   0x4   :  { %v1413_v14 = vsel %vm35_vm0, %v210_v3, %v399_v4  ;;  %v1416_v15 = vsel %vm35_vm0, %v399_v4, %v525_v5  ;;  %v1421_v16 = vld [vmem:[%s2128_s0 + $0x50] sm:$0xff]  ;;  %v44_v17 = vrot.slane %v1405_v12, 1  ;;  %v212_v18 = vrot.slane %v1410_v13, 1  ;;  %v1433_v20 = vld [vmem:[%s2128_s0 + $0x38] sm:$0xff]  ;;  %s1329_s14 = smov 32   ;;  %s1330_s15 = smov 40  }
   0x5   :  { %v1428_v19 = vld [vmem:[%s2128_s0 + $0x30] sm:$0xff]  ;;  %v1438_v22 = vsel %vm35_vm0, %v39_v9, %v210_v3  ;;  %v1441_v23 = vsel %vm35_vm0, %v37_v10, %v39_v9  ;;  %v38_v24 = vsel %vm35_vm0, %v36_v11, %v37_v10  ;;  %v2143_v29 = vrot.slane %v1421_v16, 1  ;;  %s1332_s18 = smov 56   ;;  %s1333_s19 = smov 64  }
   0x6   :  { %2158 = vst [vmem:[#allocation3_spill] sm:$0xff] %v1428_v19  ;;  %v1030_v25 = vpack.i.bf16 %v1413_v14, %v1438_v22  ;;  %v1020_v27 = vpack.i.bf16 %v1441_v23, %v38_v24  ;;  %v1450_v28 = vsel %vm35_vm0, %v44_v17, %v212_v18  ;;  %v41_v30 = vrot.slane %v1428_v19, 1  ;;  %s1334_s20 = smov 72   ;;  %s1335_s25 = smov 80  }
   0x7   :  { %v42_v31 = vrot.slane %v1433_v20, 1  ;;  %v64_v32 = vrot.slane %v1428_v19, 2  ;;  %v65_v33 = vrot.slane %v1433_v20, 2  ;;  %v67_v34 = vrot.slane %v1405_v12, 2  ;;  %s1336_s8 = smov 88   ;;  %s1337_s17 = smov 96  }
   0x8   :  { %1031 = vrot.lane.b32.xlu1 %v1030_v25, %s1326_s11  ;;  %1021 = vrot.lane.b32.xlu0 %v1020_v27, %s1326_s11  ;;  %v59_v35 = vrot.slane %v1397_v8, 2  ;;  %v60_v36 = vrot.slane %v1392_v7, 2  ;;  %v1463_v37 = vsel %vm35_vm0, %v212_v18, %v2143_v29  ;;  %v62_v40 = vrot.slane %v1387_v6, 2  ;;  %s1340_s30 = smov 120  }
   0x9   :  { %v43_v38 = vsel %vm35_vm0, %v41_v30, %v42_v31  ;;  %v1467_v39 = vsel %vm35_vm0, %v42_v31, %v44_v17  ;;  %v1035_v41 = vpack.i.bf16 %v1463_v37, %v1450_v28  ;;  %v66_v43 = vsel %vm58_vm1, %v64_v32, %v65_v33 }
   0xa   :  { %v1025_v42 = vpack.i.bf16 %v1467_v39, %v43_v38  ;;  %v1475_v44 = vsel %vm58_vm1, %v65_v33, %v67_v34  ;;  %v61_v46 = vsel %vm58_vm1, %v59_v35, %v60_v36  ;;  %v1480_v47 = vsel %vm58_vm1, %v60_v36, %v62_v40 }
   0xb   :  { %v1045_v45 = vpack.i.bf16 %v1475_v44, %v66_v43  ;;  %v228_v48 = vrot.slane %v1410_v13, 2  ;;  %v1040_v49 = vpack.i.bf16 %v1480_v47, %v61_v46  ;;  %v2138_v50 = vrot.slane %v1421_v16, 2 }
   0xc   :  { %1036 = vrot.lane.b32.xlu1 %v1035_v41, %s1326_s11  ;;  %1026 = vrot.lane.b32.xlu0 %v1025_v42, %s1326_s11  ;;  %v226_v51 = vrot.slane %v1369_v0, 2  ;;  %v2137_v52 = vrot.slane %v1374_v1, 2  ;;  %v87_v54 = vrot.slane %v1428_v19, 3  ;;  %v88_v55 = vrot.slane %v1433_v20, 3 }
   0xd   :  { %v1488_v53 = vsel %vm58_vm1, %v67_v34, %v228_v48  ;;  %v90_v56 = vrot.slane %v1405_v12, 3  ;;  %v1496_v57 = vsel %vm58_vm1, %v228_v48, %v2138_v50  ;;  %v82_v60 = vrot.slane %v1397_v8, 3 }
   0xe   :  { %v1499_v58 = vsel %vm58_vm1, %v62_v40, %v226_v51  ;;  %v1504_v59 = vsel %vm58_vm1, %v226_v51, %v2137_v52  ;;  %v1055_v61 = vpack.i.bf16 %v1496_v57, %v1488_v53  ;;  %v89_v62 = vsel %vm81_vm2, %v87_v54, %v88_v55 }
   0xf   :  { %v1511_v63 = vsel %vm81_vm2, %v88_v55, %v90_v56  ;;  %v1050_v3 = vpack.i.bf16 %v1504_v59, %v1499_v58  ;;  %v83_v4 = vrot.slane %v1392_v7, 3  ;;  %v85_v5 = vrot.slane %v1387_v6, 3 }
  0x10   :  { %1046 = vrot.lane.b32.xlu1 %v1045_v45, %s1327_s12  ;;  %1041 = vrot.lane.b32.xlu0 %v1040_v49, %s1327_s12  ;;  %v244_v9 = vrot.slane %v1410_v13, 3  ;;  %v2136_v10 = vrot.slane %v1421_v16, 3  ;;  %v242_v11 = vrot.slane %v1369_v0, 3  ;;  %v2135_v17 = vrot.slane %v1374_v1, 3 }
  0x11   :  { %v1065_v18 = vpack.i.bf16 %v1511_v63, %v89_v62  ;;  %v84_v24 = vsel %vm81_vm2, %v82_v60, %v83_v4  ;;  %v1524_v25 = vsel %vm81_vm2, %v83_v4, %v85_v5  ;;  %v110_v31 = vrot.slane %v1428_v19, 4 }
  0x12   :  { %v1060_v27 = vpack.i.bf16 %v1524_v25, %v84_v24  ;;  %v1528_v30 = vsel %vm81_vm2, %v90_v56, %v244_v9  ;;  %v111_v32 = vrot.slane %v1433_v20, 4  ;;  %v1535_v33 = vsel %vm81_vm2, %v244_v9, %v2136_v10 }
  0x13   :  { %v1538_v34 = vsel %vm81_vm2, %v85_v5, %v242_v11  ;;  %v1543_v35 = vsel %vm81_vm2, %v242_v11, %v2135_v17  ;;  %v113_v36 = vrot.slane %v1405_v12, 4  ;;  %v105_v38 = vrot.slane %v1397_v8, 4 }
  0x14   :  { %1056 = vrot.lane.b32.xlu1 %v1055_v61, %s1327_s12  ;;  %1051 = vrot.lane.b32.xlu0 %v1050_v3, %s1327_s12  ;;  %v106_v40 = vrot.slane %v1392_v7, 4  ;;  %v108_v41 = vrot.slane %v1387_v6, 4  ;;  %v260_v42 = vrot.slane %v1410_v13, 4  ;;  %v2134_v43 = vrot.slane %v1421_v16, 4 }
  0x15   :  { %v258_v45 = vrot.slane %v1369_v0, 4  ;;  %v1075_v46 = vpack.i.bf16 %v1535_v33, %v1528_v30  ;;  %v2133_v48 = vrot.slane %v1374_v1, 4  ;;  %v1070_v49 = vpack.i.bf16 %v1543_v35, %v1538_v34 }
  0x16   :  { %v112_v51 = vsel %vm104_vm3, %v110_v31, %v111_v32  ;;  %v1559_v54 = vsel %vm104_vm3, %v111_v32, %v113_v36  ;;  %v107_v55 = vsel %vm104_vm3, %v105_v38, %v106_v40  ;;  %v1563_v56 = vsel %vm104_vm3, %v106_v40, %v108_v41 }
  0x17   :  { %v1566_v60 = vsel %vm104_vm3, %v113_v36, %v260_v42  ;;  %v1571_v61 = vsel %vm104_vm3, %v260_v42, %v2134_v43  ;;  %v1574_v62 = vsel %vm104_vm3, %v108_v41, %v258_v45  ;;  %v133_v3 = vrot.slane %v1428_v19, 5 }
  0x18   :  { %1066 = vrot.lane.b32.xlu1 %v1065_v18, %s1328_s13  ;;  %1061 = vrot.lane.b32.xlu0 %v1060_v27, %s1328_s13  ;;  %2159 = vst [vmem:[#allocation4_spill] sm:$0xff] %v1574_v62  ;;  %v134_v4 = vrot.slane %v1433_v20, 5  ;;  %v1581_v5 = vsel %vm104_vm3, %v258_v45, %v2133_v48  ;;  %v136_v9 = vrot.slane %v1405_v12, 5  ;;  %v128_v11 = vrot.slane %v1397_v8, 5 }
  0x19   :  { %v129_v18 = vrot.slane %v1392_v7, 5  ;;  %v1085_v24 = vpack.i.bf16 %v1559_v54, %v112_v51  ;;  %v1080_v27 = vpack.i.bf16 %v1563_v56, %v107_v55  ;;  %v131_v31 = vrot.slane %v1387_v6, 5 }
  0x1a   :  { %v1095_v32 = vpack.i.bf16 %v1571_v61, %v1566_v60  ;;  %v1090_v36 = vpack.i.bf16 %v1581_v5, %v1574_v62  ;;  %v135_v38 = vsel %vm127_vm4, %v133_v3, %v134_v4  ;;  %v276_v40 = vrot.slane %v1410_v13, 5 }
  0x1b   :  { %v1596_v41 = vsel %vm127_vm4, %v134_v4, %v136_v9  ;;  %v130_v42 = vsel %vm127_vm4, %v128_v11, %v129_v18  ;;  %v2142_v45 = vrot.slane %v1421_v16, 5  ;;  %v2141_v51 = vrot.slane %v1374_v1, 5 }
  0x1c   :  { %1076 = vrot.lane.b32.xlu1 %v1075_v46, %s1328_s13  ;;  %1071 = vrot.lane.b32.xlu0 %v1070_v49, %s1328_s13  ;;  %2160 = vst [vmem:[#allocation5_spill] sm:$0xff] %v1596_v41  ;;  %v274_v46 = vrot.slane %v1369_v0, 5  ;;  %v1602_v49 = vsel %vm127_vm4, %v129_v18, %v131_v31  ;;  %vm150_vm5 = vcmask 1041408   ;;  %v156_v55 = vrot.slane %v1428_v19, 6 }
  0x1d   :  { %2161 = vst [vmem:[#allocation6_spill] sm:$0xff] %v1602_v49  ;;  %v157_v3 = vrot.slane %v1433_v20, 6  ;;  %v159_v4 = vrot.slane %v1405_v12, 6  ;;  %v151_v11 = vrot.slane %v1397_v8, 6  ;;  %v152_v21 = vrot.slane %v1392_v7, 6 }
  0x1e   :  { %v154_v26 = vrot.slane %v1387_v6, 6  ;;  %v2140_v18 = vrot.slane %v1421_v16, 6  ;;  %v1105_v48 = vpack.i.bf16 %v1596_v41, %v135_v38  ;;  %v1616_v43 = vsel %vm127_vm4, %v136_v9, %v276_v40 }
  0x1f   :  { %2162 = vst [vmem:[#allocation7_spill] sm:$0xff] %v1616_v43  ;;  %v2139_v17 = vrot.slane %v1374_v1, 6  ;;  %v1100_v10 = vpack.i.bf16 %v1602_v49, %v130_v42  ;;  %v1623_v52 = vsel %vm127_vm4, %v276_v40, %v2142_v45  ;;  %v1626_v50 = vsel %vm127_vm4, %v131_v31, %v274_v46 }
  0x20   :  { %1086 = vrot.lane.b32.xlu1 %v1085_v24, %s1329_s14  ;;  %1081 = vrot.lane.b32.xlu0 %v1080_v27, %s1329_s14  ;;  %v292_v24 = vrot.slane %v1410_v13, 6  ;;  %v290_v27 = vrot.slane %v1369_v0, 6  ;;  %2163 = vst [vmem:[#allocation8_spill] sm:$0xff] %v1626_v50  ;;  %v1631_v38 = vsel %vm127_vm4, %v274_v46, %v2141_v51  ;;  %v158_v9 = vsel %vm150_vm5, %v156_v55, %v157_v3 }
  0x21   :  { %v1639_v42 = vsel %vm150_vm5, %v152_v21, %v154_v26  ;;  %vm173_vm6 = vcmask 1040384   ;;  %v177_v45 = vrot.slane %v1387_v6, 7  ;;  %v557_v49 = vrot.slane %v1379_v2, 3 }
  0x22   :  { %2165 = vst [vmem:[#allocation10_spill] sm:$0xff] %v1639_v42  ;;  %v1642_v40 = vsel %vm150_vm5, %v159_v4, %v292_v24  ;;  %v1647_v31 = vsel %vm150_vm5, %v292_v24, %v2140_v18  ;;  %v1650_v46 = vsel %vm150_vm5, %v154_v26, %v290_v27  ;;  %v1655_v55 = vsel %vm150_vm5, %v290_v27, %v2139_v17  ;;  %v28_v24 = vld [vmem:[%s2128_s0 + $0x58] sm:$0x3f]  ;;  %s1331_s0 = smov 48  }
  0x23   :  { %2166 = vst [vmem:[#allocation11_spill] sm:$0xff] %v1642_v40  ;;  %2167 = vst [vmem:[#allocation12_spill] sm:$0xff] %v1650_v46  ;;  %v1110_v26 = vpack.i.bf16 %v1631_v38, %v1626_v50  ;;  %v174_v17 = vrot.slane %v1397_v8, 7  ;;  %v175_v18 = vrot.slane %v1392_v7, 7  ;;  %v1130_v51 = vpack.i.bf16 %v1655_v55, %v1650_v46 }
  0x24   :  { %1096 = vrot.lane.b32.xlu1 %v1095_v32, %s1329_s14  ;;  %1091 = vrot.lane.b32.xlu0 %v1090_v36, %s1329_s14  ;;  %v1635_v32 = vsel %vm150_vm5, %v157_v3, %v159_v4  ;;  %v153_v36 = vsel %vm150_vm5, %v151_v11, %v152_v21  ;;  %v179_v3 = vrot.slane %v1428_v19, 7  ;;  %v180_v21 = vrot.slane %v1433_v20, 7 }
  0x25   :  { %2164 = vst [vmem:[#allocation9_spill] sm:$0xff] %v1635_v32  ;;  %v182_v4 = vrot.slane %v1405_v12, 7  ;;  %v1115_v11 = vpack.i.bf16 %v1623_v52, %v1616_v43  ;;  %v1125_v27 = vpack.i.bf16 %v1635_v32, %v158_v9  ;;  %v308_v9 = vrot.slane %v1410_v13, 7 }
  0x26   :  { %v181_v29 = vsel %vm173_vm6, %v179_v3, %v180_v21  ;;  %v527_v8 = vrot.slane %v28_v24, 1  ;;  %v541_v32 = vrot.slane %v1379_v2, 2  ;;  %v176_v46 = vsel %vm173_vm6, %v174_v17, %v175_v18 }
  0x27   :  { %v1678_v19 = vsel %vm173_vm6, %v180_v21, %v182_v4  ;;  %v2169_v50 = vrot.slane %v1421_v16, 1  ;;  %v559_v21 = vrot.slane %v28_v24, 3  ;;  %v2171_v43 = vrot.slane %v1421_v16, 2 }
  0x28   :  { %1106 = vrot.lane.b32.xlu1 %v1105_v48, %s1330_s15  ;;  %1101 = vrot.lane.b32.xlu0 %v1100_v10, %s1330_s15  ;;  %v1120_v48 = vpack.i.bf16 %v1639_v42, %v153_v36  ;;  %v1135_v10 = vpack.i.bf16 %v1647_v31, %v1642_v40  ;;  %2168 = vst [vmem:[#allocation13_spill] sm:$0xff] %v1678_v19  ;;  %v497_v36 = vrot.slane %v1421_v16, 7  ;;  %v306_v42 = vrot.slane %v1369_v0, 7 }
  0x29   :  { %v543_v40 = vrot.slane %v28_v24, 2  ;;  %v1688_v3 = vsel %vm35_vm0, %v2169_v50, %v527_v8  ;;  %v2172_v17 = vrot.slane %v1374_v1, 2  ;;  %v575_v50 = vrot.slane %v28_v24, 4 }
  0x2a   :  { %v573_v8 = vrot.slane %v1379_v2, 4  ;;  %vm322_vm7 = vcmask 64512   ;;  %vm327_vm8 = vcmask 130048   ;;  %vm332_vm9 = vcmask 195584  }
  0x2b   :  { %v1699_v41 = vsel %vm58_vm1, %v2171_v43, %v543_v40  ;;  %v1704_v62 = vsel %vm58_vm1, %v2172_v17, %v541_v32  ;;  %v1145_v32 = vpack.i.bf16 %v1678_v19, %v181_v29  ;;  %v2175_v29 = vrot.slane %v1421_v16, 4 }
  0x2c   :  { %1116 = vrot.lane.b32.xlu1 %v1115_v11, %s1330_s15  ;;  %1111 = vrot.lane.b32.xlu0 %v1110_v26, %s1330_s15  ;;  %v1692_v11 = vsel %vm173_vm6, %v175_v18, %v177_v45  ;;  %v1195_v26 = vpack.i.bf16 %v1688_v3, %v1463_v37  ;;  %v2173_v18 = vrot.slane %v1421_v16, 3  ;;  %v2174_v3 = vrot.slane %v1374_v1, 3 }
  0x2d   :  { %2170 = vst [vmem:[#allocation14_spill] sm:$0xff] %v1692_v11  ;;  %v589_v17 = vrot.slane %v1379_v2, 5  ;;  %v2176_v40 = vrot.slane %v1374_v1, 4  ;;  %vm337_vm10 = vcmask 261120   ;;  %vm342_vm11 = vcmask 326656  }
  0x2e   :  { %v1713_v37 = vsel %vm81_vm2, %v2173_v18, %v559_v21  ;;  %v1718_v43 = vsel %vm81_vm2, %v2174_v3, %v557_v49  ;;  %v1140_v21 = vpack.i.bf16 %v1692_v11, %v176_v46  ;;  %v495_v18 = vrot.slane %v1374_v1, 7 }
  0x2f   :  { %v591_v49 = vrot.slane %v28_v24, 5  ;;  %v1729_v3 = vsel %vm173_vm6, %v182_v4, %v308_v9  ;;  %v1743_v11 = vsel %vm104_vm3, %v2176_v40, %v573_v8  ;;  %v2177_v4 = vrot.slane %v1421_v16, 5 }
  0x30   :  { %1126 = vrot.lane.b32.xlu1 %v1125_v27, %s1331_s0  ;;  %1121 = vrot.lane.b32.xlu0 %v1120_v48, %s1331_s0  ;;  %v498_v27 = vsel %vm173_vm6, %v308_v9, %v497_v36  ;;  %v1735_v48 = vsel %vm104_vm3, %v2175_v29, %v575_v50  ;;  %v607_v9 = vrot.slane %v28_v24, 6  ;;  %v1250_v36 = vpack.i.bf16 %v1743_v11, %v1581_v5  ;;  %v1324_v5 = vld [vmem:[%s2129_s1 + $0x78] ss:$0 sps:$4 sm:$0xff]  }
  0x31   :  { %v1748_v19 = vsel %vm127_vm4, %v2177_v4, %v591_v49  ;;  %v2178_v29 = vrot.slane %v1374_v1, 5  ;;  %v605_v8 = vrot.slane %v1379_v2, 6  ;;  %v1761_v40 = vsel %vm173_vm6, %v177_v45, %v306_v42  ;;  %v1325_v11 = vld [vmem:[%s2129_s1 + $0x38] sm:$0xff]  }
  0x32   :  { %v1275_v50 = vpack.i.bf16 %v1748_v19, %v1623_v52  ;;  %v496_v24 = vsel %vm173_vm6, %v306_v42, %v495_v18  ;;  %v1155_v42 = vpack.i.bf16 %v498_v27, %v1729_v3  ;;  %v2181_v27 = vpack.i.bf16 %v1438_v22, %v1441_v23  ;;  %v1311_v22 = vld [vmem:[%s2129_s1] sm:$0xff]   ;;  %v2197_v19 = vld [vmem:[#allocation13_spill] sm:$0xff] }
  0x33   :  { %v1757_v46 = vsel %vm127_vm4, %v2178_v29, %v589_v17  ;;  %v2180_v17 = vrot.slane %v1374_v1, 6  ;;  %v1150_v18 = vpack.i.bf16 %v496_v24, %v1761_v40  ;;  %v1160_v29 = vpack.i.bf16 %v1387_v6, %v1392_v7 }
  0x34   :  { %1136 = vrot.lane.b32.xlu1 %v1135_v10, %s1331_s0  ;;  %1131 = vrot.lane.b32.xlu0 %v1130_v51, %s1331_s0  ;;  %v1270_v51 = vpack.i.bf16 %v1757_v46, %v1631_v38  ;;  %v2179_v10 = vrot.slane %v1421_v16, 6  ;;  %v2182_v24 = vpack.i.bf16 %v1416_v15, %v1413_v14  ;;  %v1312_v14 = vld [vmem:[%s2129_s1 + $0x48] sm:$0xff]   ;;  %v2183_v23 = vpack.i.bf16 %v1699_v41, %v1496_v57  ;;  %v1315_v57 = vld [vmem:[%s2129_s1 + $0x10] sm:$0xff]   ;;  %v2198_v38 = vld [vmem:[#allocation14_spill] sm:$0xff] }
  0x35   :  { %v1776_v2 = vsel %vm150_vm5, %v2180_v17, %v605_v8  ;;  %v1175_v8 = vpack.i.bf16 %v1421_v16, %v1410_v13  ;;  %v1205_v16 = vpack.i.bf16 %v1488_v53, %v1475_v44  ;;  %v1313_v15 = vld [vmem:[%s2129_s1 + $0x8] sm:$0xff]   ;;  %v1225_v44 = vpack.i.bf16 %v1528_v30, %v1511_v63  ;;  %v1314_v53 = vld [vmem:[%s2129_s1 + $0x50] sm:$0xff]   ;;  %v1318_v41 = vld [vmem:[%s2129_s1 + $0x60] sm:$0xff]  }
  0x36   :  { %v1769_v49 = vsel %vm150_vm5, %v2179_v10, %v607_v9  ;;  %v1290_v45 = vpack.i.bf16 %v1776_v2, %v1655_v55  ;;  %v1165_v9 = vpack.i.bf16 %v1405_v12, %v1433_v20  ;;  %v2185_v63 = vpack.i.bf16 %v1713_v37, %v1535_v33  ;;  %v1319_v33 = vld [vmem:[%s2129_s1 + $0x20] sm:$0xff]   ;;  %v2192_v10 = vld [vmem:[#allocation8_spill] sm:$0xff] }
  0x37   :  { %v1295_v4 = vpack.i.bf16 %v1769_v49, %v1647_v31  ;;  %v1245_v30 = vpack.i.bf16 %v1566_v60, %v1559_v54  ;;  %v1321_v54 = vld [vmem:[%s2129_s1 + $0x28] sm:$0xff]   ;;  %v2189_v60 = vld [vmem:[#allocation5_spill] sm:$0xff]  ;;  %v1305_v52 = vpack.i.bf16 %v1729_v3, %v2197_v19  ;;  %v1300_v46 = vpack.i.bf16 %v1761_v40, %v2198_v38 }
  0x38   :  { %1146 = vrot.lane.b32.xlu1 %v1145_v32, %s1332_s18  ;;  %1141 = vrot.lane.b32.xlu0 %v1140_v21, %s1332_s18  ;;  %v1170_v32 = vpack.i.bf16 %v1374_v1, %v1369_v0  ;;  %v1185_v21 = vpack.i.bf16 %v1450_v28, %v1467_v39  ;;  %v1200_v1 = vpack.i.bf16 %v1499_v58, %v1480_v47  ;;  %v1310_v28 = vld [vmem:[%s2129_s1 + $0x40] sm:$0xff]   ;;  %v1316_v58 = vld [vmem:[%s2129_s1 + $0x58] sm:$0xff]   ;;  %vm347_vm12 = vcmask 392192  }
  0x39   :  { %959 = vmatprep.subr.bf16.mxu0 %v1310_v28  ;;  %987 = vmatprep.subr.bf16.mxu1 %v1310_v28  ;;  %v2184_v39 = vpack.i.bf16 %v1704_v62, %v1504_v59  ;;  %v1220_v47 = vpack.i.bf16 %v1538_v34, %v1524_v25  ;;  %v1317_v59 = vld [vmem:[%s2129_s1 + $0x18] sm:$0xff]   ;;  %v2186_v25 = vpack.i.bf16 %v1718_v43, %v1543_v35  ;;  %v2187_v34 = vld [vmem:[#allocation4_spill] sm:$0xff]  ;;  %v1320_v35 = vld [vmem:[%s2129_s1 + $0x68] sm:$0xff]   ;;  %vm352_vm13 = vcmask 457728  }
  0x3a   :  { %960 = vmatpush3.bf16.msra.mxu0 %v1311_v22  ;;  %995 = vmatpush3.bf16.msra.mxu1 %v1311_v22  ;;  %v1240_v62 = vpack.i.bf16 %v2187_v34, %v1563_v56  ;;  %v2188_v56 = vpack.i.bf16 %v1735_v48, %v1571_v61  ;;  %v2191_v43 = vld [vmem:[#allocation6_spill] sm:$0xff]  ;;  %v1323_v61 = vld [vmem:[%s2129_s1 + $0x30] sm:$0xff]   ;;  %v2193_v48 = vld [vmem:[#allocation9_spill] sm:$0xff]  ;;  %vm357_vm14 = vcmask 523264   ;;  %vm362_vm15 = vcmask 588800  }
  0x3b   :  { %961 = vmatprep.subr.bf16.mxu0 %v1312_v14  ;;  %988 = vmatprep.subr.bf16.mxu1 %v1312_v14  ;;  %v1260_v17 = vpack.i.bf16 %v2192_v10, %v2191_v43  ;;  %vm367_vm0 = vcmask 654336   ;;  %vm372_vm1 = vcmask 719872   ;;  %vm377_vm2 = vcmask 785408  }
  0x3c   :  { %1156 = vrot.lane.b32.xlu1 %v1155_v42, %s1332_s18  ;;  %1151 = vrot.lane.b32.xlu0 %v1150_v18, %s1332_s18  ;;  %v1322_v42 = vld [vmem:[%s2129_s1 + $0x70] sm:$0xff]   ;;  %s1339_s1 = smov 112   ;;  %vm387_vm4 = vcmask 916480   ;;  %vm392_vm5 = vcmask 982016   ;;  %vm909_vm6 = vcmask 1041409  }
  0x3e   :  { %962 = vmatpush3.bf16.msra.mxu0 %v1313_v15  ;;  %996 = vmatpush3.bf16.msra.mxu1 %v1313_v15 }
  0x3f   :  { %963 = vmatprep.subr.bf16.mxu0 %v1314_v53  ;;  %989 = vmatprep.subr.bf16.mxu1 %v1314_v53 }
  0x40   :  { %1166 = vrot.lane.b32.xlu1 %v1165_v9, %s1333_s19  ;;  %1161 = vrot.lane.b32.xlu0 %v1160_v29, %s1333_s19  ;;  %v2195_v9 = vld [vmem:[#allocation10_spill] sm:$0xff]  ;;  %v2196_v29 = vld [vmem:[#allocation12_spill] sm:$0xff] }
  0x42   :  { %964 = vmatpush3.bf16.msra.mxu0 %v1315_v57  ;;  %997 = vmatpush3.bf16.msra.mxu1 %v1315_v57 }
  0x43   :  { %965 = vmatprep.subr.bf16.mxu0 %v1316_v58  ;;  %990 = vmatprep.subr.bf16.mxu1 %v1316_v58 }
  0x44   :  { %1176 = vrot.lane.b32.xlu1 %v1175_v8, %s1333_s19  ;;  %1171 = vrot.lane.b32.xlu0 %v1170_v32, %s1333_s19  ;;  %v1280_v8 = vpack.i.bf16 %v2196_v29, %v2195_v9 }
  0x46   :  { %966 = vmatpush3.bf16.msra.mxu0 %v1317_v59  ;;  %998 = vmatpush3.bf16.msra.mxu1 %v1317_v59 }
  0x47   :  { %967 = vmatprep.subr.bf16.mxu0 %v1318_v41  ;;  %991 = vmatprep.subr.bf16.mxu1 %v1318_v41 }
  0x48   :  { %1186 = vrot.lane.b32.xlu1 %v1185_v21, %s1334_s20  ;;  %1181 = vrot.lane.b32.xlu0 %v2181_v27, %s1334_s20 }
  0x4a   :  { %968 = vmatpush3.bf16.msra.mxu0 %v1319_v33  ;;  %999 = vmatpush3.bf16.msra.mxu1 %v1319_v33 }
  0x4b   :  { %969 = vmatprep.subr.bf16.mxu0 %v1320_v35  ;;  %992 = vmatprep.subr.bf16.mxu1 %v1320_v35 }
  0x4c   :  { %1196 = vrot.lane.b32.xlu1 %v1195_v26, %s1334_s20  ;;  %1191 = vrot.lane.b32.xlu0 %v2182_v24, %s1334_s20  ;;  %v2190_v26 = vld [vmem:[#allocation7_spill] sm:$0xff] }
  0x4d   :  { %v1265_v37 = vpack.i.bf16 %v2190_v26, %v2189_v60 }
  0x4e   :  { %970 = vmatpush3.bf16.msra.mxu0 %v1321_v54  ;;  %1000 = vmatpush3.bf16.msra.mxu1 %v1321_v54 }
  0x4f   :  { %971 = vmatprep.subr.bf16.mxu0 %v1322_v42  ;;  %993 = vmatprep.subr.bf16.mxu1 %v1322_v42 }
  0x50   :  { %1206 = vrot.lane.b32.xlu1 %v1205_v16, %s1335_s25  ;;  %1201 = vrot.lane.b32.xlu0 %v1200_v1, %s1335_s25 }
  0x52   :  { %972 = vmatpush3.bf16.msra.mxu0 %v1323_v61  ;;  %1001 = vmatpush3.bf16.msra.mxu1 %v1323_v61 }
  0x53   :  { %1003 = vmatprep.subr.msk.bf16.mxu0 %vm104_vm3, %v1324_v5  ;;  %1004 = vmatprep.subr.msk.bf16.mxu1 %vm104_vm3, %v1324_v5  ;;  %vm382_vm3 = vcmask 850944  }
  0x54   :  { %1216 = vrot.lane.b32.xlu1 %v2183_v23, %s1335_s25  ;;  %1211 = vrot.lane.b32.xlu0 %v2184_v39, %s1335_s25  ;;  %s1338_s25 = smov 104  }
  0x56   :  { %974 = vmatpush3.bf16.msra.mxu0 %v1325_v11  ;;  %1002 = vmatpush3.bf16.msra.mxu1 %v1325_v11 }
  0x58   :  { %1226 = vrot.lane.b32.xlu1 %v1225_v44, %s1336_s8  ;;  %1221 = vrot.lane.b32.xlu0 %v1220_v47, %s1336_s8  ;;  %v2200_v44 = vld [vmem:[#allocation3_spill] sm:$0xff] }
  0x5c   :  { %1236 = vrot.lane.b32.xlu1 %v2185_v63, %s1336_s8  ;;  %1231 = vrot.lane.b32.xlu0 %v2186_v25, %s1336_s8 }
  0x60   :  { %1246 = vrot.lane.b32.xlu1 %v1245_v30, %s1337_s17  ;;  %1241 = vrot.lane.b32.xlu0 %v1240_v62, %s1337_s17 }
  0x64   :  { %1256 = vrot.lane.b32.xlu1 %v2188_v56, %s1337_s17  ;;  %1251 = vrot.lane.b32.xlu0 %v1250_v36, %s1337_s17  ;;  %v2194_v36 = vld [vmem:[#allocation11_spill] sm:$0xff] }
  0x65   :  { %v1285_v18 = vpack.i.bf16 %v2194_v36, %v2193_v48 }
  0x68   :  { %1266 = vrot.lane.b32.xlu1 %v1265_v37, %s1338_s25  ;;  %1261 = vrot.lane.b32.xlu0 %v1260_v17, %s1338_s25 }
  0x6c   :  { %1276 = vrot.lane.b32.xlu1 %v1275_v50, %s1338_s25  ;;  %1271 = vrot.lane.b32.xlu0 %v1270_v51, %s1338_s25 }
  0x70   :  { %1286 = vrot.lane.b32.xlu1 %v1285_v18, %s1339_s1  ;;  %1281 = vrot.lane.b32.xlu0 %v1280_v8, %s1339_s1 }
  0x74   :  { %1296 = vrot.lane.b32.xlu1 %v1295_v4, %s1339_s1  ;;  %1291 = vrot.lane.b32.xlu0 %v1290_v45, %s1339_s1  ;;  %v2199_v45 = vld [vmem:[#allocation2_spill] sm:$0xff] }
  0x78   :  { %1306 = vrot.lane.b32.xlu1 %v1305_v52, %s1340_s30  ;;  %1301 = vrot.lane.b32.xlu0 %v1300_v46, %s1340_s30 }
  0x7a   :  { %v1032_v50 = vpop.permute.xlu1 %1031  ;;  %v1022_v51 = vpop.permute.xlu0 %1021 }
  0x7b   :  { %v1024_v32 = vunpack.i.h.bf16 %v1022_v51  ;;  %v1023_v21 = vunpack.i.l.bf16 %v1022_v51  ;;  %v1034_v55 = vunpack.i.h.bf16 %v1032_v50  ;;  %v1033_v2 = vunpack.i.l.bf16 %v1032_v50 }
  0x7d   :  { %v324_v3 = vsel %vm322_vm7, %v1392_v7, %v1024_v32  ;;  %v323_v40 = vsel %vm322_vm7, %v2199_v45, %v1023_v21  ;;  %v621_v41 = vsel %vm322_vm7, %v1387_v6, %v1033_v2 }
  0x7e   :  { %v1037_v27 = vpop.permute.xlu1 %1036  ;;  %v1027_v31 = vpop.permute.xlu0 %1026 }
  0x7f   :  { %v1029_v49 = vunpack.i.h.bf16 %v1027_v31  ;;  %v1028_v4 = vunpack.i.l.bf16 %v1027_v31  ;;  %v1039_v15 = vunpack.i.h.bf16 %v1037_v27  ;;  %v1038_v23 = vunpack.i.l.bf16 %v1037_v27 }
  0x81   :  { %v326_v39 = vsel %vm322_vm7, %v1433_v20, %v1029_v49  ;;  %v325_v47 = vsel %vm322_vm7, %v2200_v44, %v1028_v4  ;;  %v622_v20 = vsel %vm322_vm7, %v1369_v0, %v1034_v55  ;;  %v624_v33 = vsel %vm322_vm7, %v1410_v13, %v1039_v15 }
  0x82   :  { %v1047_v24 = vpop.permute.xlu1 %1046  ;;  %v1042_v16 = vpop.permute.xlu0 %1041  ;;  %v623_v35 = vsel %vm322_vm7, %v1405_v12, %v1038_v23 }
  0x83   :  { %v1049_v1 = vunpack.i.h.bf16 %v1047_v24  ;;  %v1048_v28 = vunpack.i.l.bf16 %v1047_v24  ;;  %v1044_v22 = vunpack.i.h.bf16 %v1042_v16  ;;  %v1043_v14 = vunpack.i.l.bf16 %v1042_v16 }
  0x85   :  { %v330_v53 = vsel %vm327_vm8, %v325_v47, %v1048_v28  ;;  %v331_v7 = vsel %vm327_vm8, %v326_v39, %v1049_v1  ;;  %v328_v57 = vsel %vm327_vm8, %v323_v40, %v1043_v14  ;;  %v329_v58 = vsel %vm327_vm8, %v324_v3, %v1044_v22 }
  0x86   :  { %v1057_v59 = vpop.permute.xlu1 %1056  ;;  %v1052_v63 = vpop.permute.xlu0 %1051 }
  0x87   :  { %v1059_v25 = vunpack.i.h.bf16 %v1057_v59  ;;  %v1058_v30 = vunpack.i.l.bf16 %v1057_v59  ;;  %v1054_v34 = vunpack.i.h.bf16 %v1052_v63  ;;  %v1053_v62 = vunpack.i.l.bf16 %v1052_v63 }
  0x89   :  { %v627_v54 = vsel %vm327_vm8, %v623_v35, %v1058_v30  ;;  %v628_v56 = vsel %vm327_vm8, %v624_v33, %v1059_v25  ;;  %v626_v60 = vsel %vm327_vm8, %v622_v20, %v1054_v34  ;;  %v625_v26 = vsel %vm327_vm8, %v621_v41, %v1053_v62 }
  0x8a   :  { %v1067_v37 = vpop.permute.xlu1 %1066  ;;  %v1062_v0 = vpop.permute.xlu0 %1061 }
  0x8b   :  { %v1069_v43 = vunpack.i.h.bf16 %v1067_v37  ;;  %v1068_v10 = vunpack.i.l.bf16 %v1067_v37  ;;  %v1064_v6 = vunpack.i.h.bf16 %v1062_v0  ;;  %v1063_v17 = vunpack.i.l.bf16 %v1062_v0 }
  0x8d   :  { %v335_v13 = vsel %vm332_vm9, %v330_v53, %v1068_v10  ;;  %v336_v42 = vsel %vm332_vm9, %v331_v7, %v1069_v43  ;;  %v333_v12 = vsel %vm332_vm9, %v328_v57, %v1063_v17  ;;  %v334_v61 = vsel %vm332_vm9, %v329_v58, %v1064_v6 }
  0x8e   :  { %v1077_v5 = vpop.permute.xlu1 %1076  ;;  %v1072_v11 = vpop.permute.xlu0 %1071 }
  0x8f   :  { %v1079_v48 = vunpack.i.h.bf16 %v1077_v5  ;;  %v1078_v36 = vunpack.i.l.bf16 %v1077_v5  ;;  %v1074_v18 = vunpack.i.h.bf16 %v1072_v11  ;;  %v1073_v9 = vunpack.i.l.bf16 %v1072_v11 }
  0x91   :  { %v631_v29 = vsel %vm332_vm9, %v627_v54, %v1078_v36  ;;  %v632_v8 = vsel %vm332_vm9, %v628_v56, %v1079_v48  ;;  %v629_v19 = vsel %vm332_vm9, %v625_v26, %v1073_v9  ;;  %v630_v52 = vsel %vm332_vm9, %v626_v60, %v1074_v18 }
  0x92   :  { %v1087_v38 = vpop.permute.xlu1 %1086  ;;  %v1082_v46 = vpop.permute.xlu0 %1081 }
  0x93   :  { %v1089_v50 = vunpack.i.h.bf16 %v1087_v38  ;;  %v1088_v51 = vunpack.i.l.bf16 %v1087_v38  ;;  %v1084_v32 = vunpack.i.h.bf16 %v1082_v46  ;;  %v1083_v21 = vunpack.i.l.bf16 %v1082_v46 }
  0x95   :  { %v340_v27 = vsel %vm337_vm10, %v335_v13, %v1088_v51  ;;  %v341_v31 = vsel %vm337_vm10, %v336_v42, %v1089_v50  ;;  %v338_v49 = vsel %vm337_vm10, %v333_v12, %v1083_v21  ;;  %v339_v4 = vsel %vm337_vm10, %v334_v61, %v1084_v32 }
  0x96   :  { %v1097_v55 = vpop.permute.xlu1 %1096  ;;  %v1092_v2 = vpop.permute.xlu0 %1091 }
  0x97   :  { %v1099_v3 = vunpack.i.h.bf16 %v1097_v55  ;;  %v1098_v45 = vunpack.i.l.bf16 %v1097_v55  ;;  %v1094_v40 = vunpack.i.h.bf16 %v1092_v2  ;;  %v1093_v24 = vunpack.i.l.bf16 %v1092_v2 }
  0x99   :  { %v635_v16 = vsel %vm337_vm10, %v631_v29, %v1098_v45  ;;  %v636_v1 = vsel %vm337_vm10, %v632_v8, %v1099_v3  ;;  %v633_v28 = vsel %vm337_vm10, %v629_v19, %v1093_v24  ;;  %v634_v22 = vsel %vm337_vm10, %v630_v52, %v1094_v40 }
  0x9a   :  { %v1107_v14 = vpop.permute.xlu1 %1106  ;;  %v1102_v15 = vpop.permute.xlu0 %1101 }
  0x9b   :  { %v1109_v23 = vunpack.i.h.bf16 %v1107_v14  ;;  %v1108_v39 = vunpack.i.l.bf16 %v1107_v14  ;;  %v1104_v44 = vunpack.i.h.bf16 %v1102_v15  ;;  %v1103_v47 = vunpack.i.l.bf16 %v1102_v15 }
  0x9d   :  { %v345_v53 = vsel %vm342_vm11, %v340_v27, %v1108_v39  ;;  %v346_v7 = vsel %vm342_vm11, %v341_v31, %v1109_v23  ;;  %v343_v57 = vsel %vm342_vm11, %v338_v49, %v1103_v47  ;;  %v344_v58 = vsel %vm342_vm11, %v339_v4, %v1104_v44 }
  0x9e   :  { %v1117_v59 = vpop.permute.xlu1 %1116  ;;  %v1112_v63 = vpop.permute.xlu0 %1111 }
  0x9f   :  { %v1119_v6 = vunpack.i.h.bf16 %v1117_v59  ;;  %v1118_v17 = vunpack.i.l.bf16 %v1117_v59  ;;  %v1113_v12 = vunpack.i.l.bf16 %v1112_v63  ;;  %v1114_v61 = vunpack.i.h.bf16 %v1112_v63 }
  0xa1   :  { %v639_v5 = vsel %vm342_vm11, %v635_v16, %v1118_v17  ;;  %v640_v11 = vsel %vm342_vm11, %v636_v1, %v1119_v6  ;;  %v637_v52 = vsel %vm342_vm11, %v633_v28, %v1113_v12  ;;  %v638_v51 = vsel %vm342_vm11, %v634_v22, %v1114_v61 }
  0xa2   :  { %v1127_v25 = vpop.permute.xlu1 %1126  ;;  %v1122_v30 = vpop.permute.xlu0 %1121 }
  0xa3   :  { %v1128_v48 = vunpack.i.l.bf16 %v1127_v25  ;;  %v1129_v9 = vunpack.i.h.bf16 %v1127_v25  ;;  %v1124_v29 = vunpack.i.h.bf16 %v1122_v30  ;;  %v1123_v8 = vunpack.i.l.bf16 %v1122_v30 }
  0xa5   :  { %v350_v31 = vsel %vm347_vm12, %v345_v53, %v1128_v48  ;;  %v351_v45 = vsel %vm347_vm12, %v346_v7, %v1129_v9  ;;  %v348_v40 = vsel %vm347_vm12, %v343_v57, %v1123_v8  ;;  %v349_v24 = vsel %vm347_vm12, %v344_v58, %v1124_v29 }
  0xa6   :  { %v1137_v34 = vpop.permute.xlu1 %1136  ;;  %v1132_v62 = vpop.permute.xlu0 %1131 }
  0xa7   :  { %v1138_v19 = vunpack.i.l.bf16 %v1137_v34  ;;  %v1139_v38 = vunpack.i.h.bf16 %v1137_v34  ;;  %v1134_v46 = vunpack.i.h.bf16 %v1132_v62  ;;  %v1133_v50 = vunpack.i.l.bf16 %v1132_v62 }
  0xa9   :  { %v643_v16 = vsel %vm347_vm12, %v639_v5, %v1138_v19  ;;  %v644_v1 = vsel %vm347_vm12, %v640_v11, %v1139_v38  ;;  %v641_v28 = vsel %vm347_vm12, %v637_v52, %v1133_v50  ;;  %v642_v22 = vsel %vm347_vm12, %v638_v51, %v1134_v46 }
  0xaa   :  { %v1147_v20 = vpop.permute.xlu1 %1146  ;;  %v1142_v41 = vpop.permute.xlu0 %1141 }
  0xab   :  { %v1149_v32 = vunpack.i.h.bf16 %v1147_v20  ;;  %v1148_v21 = vunpack.i.l.bf16 %v1147_v20  ;;  %v1143_v27 = vunpack.i.l.bf16 %v1142_v41  ;;  %v1144_v49 = vunpack.i.h.bf16 %v1142_v41 }
  0xad   :  { %v355_v15 = vsel %vm352_vm13, %v350_v31, %v1148_v21  ;;  %v356_v23 = vsel %vm352_vm13, %v351_v45, %v1149_v32  ;;  %v353_v39 = vsel %vm352_vm13, %v348_v40, %v1143_v27  ;;  %v354_v47 = vsel %vm352_vm13, %v349_v24, %v1144_v49 }
  0xae   :  { %v1157_v33 = vpop.permute.xlu1 %1156  ;;  %v1946_v35 = vpop.permute.xlu0 %1151 }
  0xaf   :  { %v1159_v4 = vunpack.i.h.bf16 %v1157_v33  ;;  %v1158_v55 = vunpack.i.l.bf16 %v1157_v33  ;;  %v1153_v14 = vunpack.i.l.bf16 %v1946_v35  ;;  %v1154_v44 = vunpack.i.h.bf16 %v1946_v35 }
  0xb1   :  { %v647_v53 = vsel %vm352_vm13, %v643_v16, %v1158_v55  ;;  %v648_v7 = vsel %vm352_vm13, %v644_v1, %v1159_v4  ;;  %v645_v62 = vsel %vm352_vm13, %v641_v28, %v1153_v14  ;;  %v646_v35 = vsel %vm352_vm13, %v642_v22, %v1154_v44 }
  0xb2   :  { %v1948_v54 = vpop.permute.xlu1 %1166  ;;  %v1950_v56 = vpop.permute.xlu0 %1161 }
  0xb3   :  { %v1168_v57 = vunpack.i.l.bf16 %v1948_v54  ;;  %v1169_v63 = vunpack.i.h.bf16 %v1948_v54  ;;  %v1164_v25 = vunpack.i.h.bf16 %v1950_v56  ;;  %v1163_v30 = vunpack.i.l.bf16 %v1950_v56 }
  0xb5   :  { %v360_v56 = vsel %vm357_vm14, %v355_v15, %v1168_v57  ;;  %v361_v11 = vsel %vm357_vm14, %v356_v23, %v1169_v63  ;;  %v358_v48 = vsel %vm357_vm14, %v353_v39, %v1163_v30 }
  0xb6   :  { %v1952_v60 = vpop.permute.xlu1 %1176  ;;  %v1954_v26 = vpop.permute.xlu0 %1171 }
  0xb7   :  { %v1178_v34 = vunpack.i.l.bf16 %v1952_v60  ;;  %v1179_v20 = vunpack.i.h.bf16 %v1952_v60  ;;  %v1174_v41 = vunpack.i.h.bf16 %v1954_v26  ;;  %v1173_v33 = vunpack.i.l.bf16 %v1954_v26 }
  0xb9   :  { %v651_v9 = vsel %vm357_vm14, %v647_v53, %v1178_v34  ;;  %v652_v29 = vsel %vm357_vm14, %v648_v7, %v1179_v20  ;;  %v650_v8 = vsel %vm357_vm14, %v646_v35, %v1174_v41 }
  0xba   :  { %v1956_v37 = vpop.permute.xlu1 %1186  ;;  %v1958_v0 = vpop.permute.xlu0 %1181 }
  0xbb   :  { %v1189_v6 = vunpack.i.h.bf16 %v1956_v37  ;;  %v1188_v54 = vunpack.i.l.bf16 %v1956_v37  ;;  %v1183_v17 = vunpack.i.l.bf16 %v1958_v0  ;;  %v1184_v12 = vunpack.i.h.bf16 %v1958_v0 }
  0xbc   :  { %v359_v37 = vsel %vm357_vm14, %v354_v47, %v1164_v25  ;;  %v649_v0 = vsel %vm357_vm14, %v645_v62, %v1173_v33 }
  0xbd   :  { %v365_v19 = vsel %vm362_vm15, %v360_v56, %v1188_v54  ;;  %v366_v52 = vsel %vm362_vm15, %v361_v11, %v1189_v6  ;;  %v363_v38 = vsel %vm362_vm15, %v358_v48, %v1183_v17  ;;  %v364_v50 = vsel %vm362_vm15, %v359_v37, %v1184_v12 }
  0xbe   :  { %v1960_v43 = vpop.permute.xlu1 %1196  ;;  %v1962_v10 = vpop.permute.xlu0 %1191 }
  0xbf   :  { %v1199_v61 = vunpack.i.h.bf16 %v1960_v43  ;;  %v1198_v60 = vunpack.i.l.bf16 %v1960_v43  ;;  %v1193_v43 = vunpack.i.l.bf16 %v1962_v10  ;;  %v1194_v46 = vunpack.i.h.bf16 %v1962_v10 }
  0xc1   :  { %v655_v51 = vsel %vm362_vm15, %v651_v9, %v1198_v60  ;;  %v656_v32 = vsel %vm362_vm15, %v652_v29, %v1199_v61  ;;  %v653_v45 = vsel %vm362_vm15, %v649_v0, %v1193_v43  ;;  %v654_v1 = vsel %vm362_vm15, %v650_v8, %v1194_v46 }
  0xc2   :  { %v1964_v13 = vpop.permute.xlu1 %1206  ;;  %v1966_v42 = vpop.permute.xlu0 %1201 }
  0xc3   :  { %v1208_v21 = vunpack.i.l.bf16 %v1964_v13  ;;  %v1209_v49 = vunpack.i.h.bf16 %v1964_v13  ;;  %v1204_v4 = vunpack.i.h.bf16 %v1966_v42  ;;  %v1203_v55 = vunpack.i.l.bf16 %v1966_v42 }
  0xc5   :  { %v370_v42 = vsel %vm367_vm0, %v365_v19, %v1208_v21  ;;  %v368_v44 = vsel %vm367_vm0, %v363_v38, %v1203_v55 }
  0xc6   :  { %v1970_v36 = vpop.permute.xlu1 %1216  ;;  %v1972_v18 = vpop.permute.xlu0 %1211 }
  0xc7   :  { %v1218_v10 = vunpack.i.l.bf16 %v1970_v36  ;;  %v1219_v40 = vunpack.i.h.bf16 %v1970_v36  ;;  %v1214_v24 = vunpack.i.h.bf16 %v1972_v18  ;;  %v1213_v16 = vunpack.i.l.bf16 %v1972_v18 }
  0xc8   :  { %v371_v18 = vsel %vm367_vm0, %v366_v52, %v1209_v49 }
  0xc9   :  { %v659_v47 = vsel %vm367_vm0, %v655_v51, %v1218_v10  ;;  %v660_v53 = vsel %vm367_vm0, %v656_v32, %v1219_v40  ;;  %v658_v7 = vsel %vm367_vm0, %v654_v1, %v1214_v24 }
  0xca   :  { %v1977_v2 = vpop.permute.xlu1 %1226  ;;  %v1979_v3 = vpop.permute.xlu0 %1221 }
  0xcb   :  { %v1229_v28 = vunpack.i.h.bf16 %v1977_v2  ;;  %v1228_v13 = vunpack.i.l.bf16 %v1977_v2  ;;  %v1223_v22 = vunpack.i.l.bf16 %v1979_v3  ;;  %v1224_v14 = vunpack.i.h.bf16 %v1979_v3 }
  0xcc   :  { %v369_v2 = vsel %vm367_vm0, %v364_v50, %v1204_v4  ;;  %v657_v3 = vsel %vm367_vm0, %v653_v45, %v1213_v16 }
  0xcd   :  { %v376_v63 = vsel %vm372_vm1, %v371_v18, %v1229_v28  ;;  %v373_v25 = vsel %vm372_vm1, %v368_v44, %v1223_v22  ;;  %v374_v34 = vsel %vm372_vm1, %v369_v2, %v1224_v14 }
  0xce   :  { %v1997_v58 = vpop.permute.xlu1 %1236  ;;  %v1999_v59 = vpop.permute.xlu0 %1231 }
  0xcf   :  { %v1239_v15 = vunpack.i.h.bf16 %v1997_v58  ;;  %v1238_v36 = vunpack.i.l.bf16 %v1997_v58  ;;  %v1233_v57 = vunpack.i.l.bf16 %v1999_v59  ;;  %v375_v58 = vsel %vm372_vm1, %v370_v42, %v1228_v13 }
  0xd0   :  { %v1234_v30 = vunpack.i.h.bf16 %v1999_v59 }
  0xd1   :  { %v663_v62 = vsel %vm372_vm1, %v659_v47, %v1238_v36  ;;  %v664_v20 = vsel %vm372_vm1, %v660_v53, %v1239_v15  ;;  %v661_v59 = vsel %vm372_vm1, %v657_v3, %v1233_v57 }
  0xd2   :  { %v2017_v5 = vpop.permute.xlu1 %1246  ;;  %v2019_v26 = vpop.permute.xlu0 %1241  ;;  %v662_v11 = vsel %vm372_vm1, %v658_v7, %v1234_v30 }
  0xd3   :  { %v1248_v41 = vunpack.i.l.bf16 %v2017_v5  ;;  %v1249_v6 = vunpack.i.h.bf16 %v2017_v5  ;;  %v1244_v54 = vunpack.i.h.bf16 %v2019_v26  ;;  %v1243_v17 = vunpack.i.l.bf16 %v2019_v26 }
  0xd5   :  { %v380_v26 = vsel %vm377_vm2, %v375_v58, %v1248_v41  ;;  %v381_v19 = vsel %vm377_vm2, %v376_v63, %v1249_v6  ;;  %v378_v52 = vsel %vm377_vm2, %v373_v25, %v1243_v17  ;;  %v379_v38 = vsel %vm377_vm2, %v374_v34, %v1244_v54 }
  0xd6   :  { %v2037_v27 = vpop.permute.xlu1 %1256  ;;  %v2039_v31 = vpop.permute.xlu0 %1251 }
  0xd7   :  { %v1258_v56 = vunpack.i.l.bf16 %v2037_v27  ;;  %v1259_v12 = vunpack.i.h.bf16 %v2037_v27  ;;  %v1254_v61 = vunpack.i.h.bf16 %v2039_v31  ;;  %v1253_v60 = vunpack.i.l.bf16 %v2039_v31 }
  0xd9   :  { %v667_v46 = vsel %vm377_vm2, %v663_v62, %v1258_v56  ;;  %v668_v50 = vsel %vm377_vm2, %v664_v20, %v1259_v12  ;;  %v665_v51 = vsel %vm377_vm2, %v661_v59, %v1253_v60  ;;  %v666_v32 = vsel %vm377_vm2, %v662_v11, %v1254_v61 }
  0xda   :  { %v1267_v23 = vpop.permute.xlu1 %1266  ;;  %v2057_v39 = vpop.permute.xlu0 %1261 }
  0xdb   :  { %v1269_v48 = vunpack.i.h.bf16 %v1267_v23  ;;  %v1268_v37 = vunpack.i.l.bf16 %v1267_v23  ;;  %v1263_v5 = vunpack.i.l.bf16 %v2057_v39  ;;  %v1264_v49 = vunpack.i.h.bf16 %v2057_v39 }
  0xdd   :  { %v385_v27 = vsel %vm382_vm3, %v380_v26, %v1268_v37  ;;  %v386_v31 = vsel %vm382_vm3, %v381_v19, %v1269_v48  ;;  %v383_v4 = vsel %vm382_vm3, %v378_v52, %v1263_v5  ;;  %v384_v2 = vsel %vm382_vm3, %v379_v38, %v1264_v49  ;;  %v921_v5 = vld [vmem:[%s2130_s2] ss:$0 sm:$0xff] }
  0xde   :  { %v1277_v33 = vpop.permute.xlu1 %1276  ;;  %v1272_v35 = vpop.permute.xlu0 %1271 }
  0xdf   :  { %v1278_v9 = vunpack.i.l.bf16 %v1277_v33  ;;  %v1274_v29 = vunpack.i.h.bf16 %v1272_v35  ;;  %v1273_v0 = vunpack.i.l.bf16 %v1272_v35  ;;  %v1279_v21 = vunpack.i.h.bf16 %v1277_v33 }
  0xe1   :  { %v669_v40 = vsel %vm382_vm3, %v665_v51, %v1273_v0  ;;  %v670_v24 = vsel %vm382_vm3, %v666_v32, %v1274_v29  ;;  %v671_v16 = vsel %vm382_vm3, %v667_v46, %v1278_v9  ;;  %v672_v36 = vsel %vm382_vm3, %v668_v50, %v1279_v21 }
  0xe2   :  { %v1287_v8 = vpop.permute.xlu1 %1286  ;;  %v1282_v43 = vpop.permute.xlu0 %1281 }
  0xe3   :  { %v1288_v55 = vunpack.i.l.bf16 %v1287_v8  ;;  %v1289_v42 = vunpack.i.h.bf16 %v1287_v8  ;;  %v1284_v14 = vunpack.i.h.bf16 %v1282_v43  ;;  %v1283_v15 = vunpack.i.l.bf16 %v1282_v43 }
  0xe5   :  { %v390_v47 = vsel %vm387_vm4, %v385_v27, %v1288_v55  ;;  %v391_v34 = vsel %vm387_vm4, %v386_v31, %v1289_v42  ;;  %v388_v62 = vsel %vm387_vm4, %v383_v4, %v1283_v15  ;;  %v389_v20 = vsel %vm387_vm4, %v384_v2, %v1284_v14 }
  0xe6   :  { %v1297_v10 = vpop.permute.xlu1 %1296  ;;  %v1292_v45 = vpop.permute.xlu0 %1291 }
  0xe7   :  { %v1299_v1 = vunpack.i.h.bf16 %v1297_v10  ;;  %v1298_v28 = vunpack.i.l.bf16 %v1297_v10  ;;  %v1294_v13 = vunpack.i.h.bf16 %v1292_v45  ;;  %v1293_v22 = vunpack.i.l.bf16 %v1292_v45 }
  0xe9   :  { %v673_v23 = vsel %vm387_vm4, %v669_v40, %v1293_v22  ;;  %v674_v39 = vsel %vm387_vm4, %v670_v24, %v1294_v13  ;;  %v675_v18 = vsel %vm387_vm4, %v671_v16, %v1298_v28  ;;  %v676_v44 = vsel %vm387_vm4, %v672_v36, %v1299_v1 }
  0xea   :  { %v1307_v53 = vpop.permute.xlu1 %1306  ;;  %v1302_v3 = vpop.permute.xlu0 %1301  ;;  %v678_v7 = vpack.c.bf16 %v674_v39, %v673_v23  ;;  %v680_v57 = vpack.c.bf16 %v676_v44, %v675_v18 }
  0xeb   :  { %v1309_v58 = vunpack.i.h.bf16 %v1307_v53  ;;  %v1308_v63 = vunpack.i.l.bf16 %v1307_v53  ;;  %v1304_v25 = vunpack.i.h.bf16 %v1302_v3  ;;  %v1303_v30 = vunpack.i.l.bf16 %v1302_v3 }
  0xec   :  { %938 = vmatprep.mubr.msk.bf16.mxu0 %vm392_vm5, %v678_v7  ;;  %939 = vmatprep.mubr.msk.bf16.mxu1 %vm392_vm5, %v680_v57 }
  0xed   :  { %v393_v41 = vsel %vm392_vm5, %v388_v62, %v1303_v30  ;;  %v394_v33 = vsel %vm392_vm5, %v389_v20, %v1304_v25  ;;  %v395_v35 = vsel %vm392_vm5, %v390_v47, %v1308_v63  ;;  %v396_v6 = vsel %vm392_vm5, %v391_v34, %v1309_v58 }
  0xee   :  { %v677_v54 = vpack.c.bf16 %v394_v33, %v393_v41  ;;  %v679_v17 = vpack.c.bf16 %v396_v6, %v395_v35 }
  0xf0   :  { %854 = vmatmul.mubr.bf16.vlgmr.msra.gmra.mrb[0].mxu0 %v677_v54  ;;  %862 = vmatmul.mubr.bf16.vlgmr.msra.gmra.mrb[0].mxu1 %v679_v17 }
 0x1c3   :  { %v975_v56 = vpop.f32.mrb[0].mxu0  ;;  %v981_v59 = vpop.f32.mrb[0].mxu1 }
 0x1c4   :  { %v976_v12 = vpop.f32.mrb[1].mxu0  ;;  %v982_v61 = vpop.f32.mrb[1].mxu1 }
 0x1c5   :  { %v977_v60 = vadd.f32 %v976_v12, %v975_v56  ;;  %v983_v11 = vadd.f32 %v982_v61, %v981_v59  ;;  %v978_v48 = vpop.f32.mrb[2].mxu0  ;;  %v984_v37 = vpop.f32.mrb[2].mxu1 }
 0x1c6   :  { %v979_v26 = vpop.f32.mrb[3].mxu0  ;;  %v985_v9 = vpop.f32.mrb[3].mxu1 }
 0x1c7   :  { %v980_v29 = vadd.f32 %v979_v26, %v978_v48  ;;  %v986_v0 = vadd.f32 %v985_v9, %v984_v37  ;;  %v856_v8 = vadd.f32 %v977_v60, %v921_v5  ;;  %v864_v43 = vadd.f32 %v983_v11, %v921_v5 }
 0x1c9   :  { %v859_v19 = vadd.f32 %v980_v29, %v921_v5  ;;  %v867_v52 = vadd.f32 %v986_v0, %v921_v5 }
 0x1cb   :  { %v951_v38 = vpack.c.bf16 %v859_v19, %v856_v8  ;;  %v890_v46 = vadd.f32 %v859_v19, %v856_v8  ;;  %v956_v50 = vpack.c.bf16 %v867_v52, %v864_v43  ;;  %v897_v51 = vadd.f32 %v867_v52, %v864_v43 }
 0x1cd   :  { %952 = vst [vmem:[%s2131_s3] sm:$0xff] %v951_v38   ;;  %v891_v32 = vrot.slane %v890_v46, 4  ;;  %958 = vst [vmem:[%s2131_s3 + $0x8] sm:$0xff] %v956_v50   ;;  %v898_v21 = vrot.slane %v897_v51, 4 }
 0x1cf   :  { %v892_v27 = vadd.f32 %v891_v32, %v890_v46  ;;  %v899_v31 = vadd.f32 %v898_v21, %v897_v51 }
 0x1d1   :  { %v893_v49 = vrot.slane %v892_v27, 2  ;;  %v900_v4 = vrot.slane %v899_v31, 2 }
 0x1d3   :  { %v894_v55 = vadd.f32 %v893_v49, %v892_v27  ;;  %v901_v10 = vadd.f32 %v900_v4, %v899_v31 }
 0x1d5   :  { %v895_v45 = vrot.slane %v894_v55, 1  ;;  %v902_v40 = vrot.slane %v901_v10, 1 }
 0x1d7   :  { %v896_v24 = vadd.f32 %v895_v45, %v894_v55  ;;  %v903_v16 = vadd.f32 %v902_v40, %v901_v10 }
 0x1d9   :  { %v905_v1 = vmul.f32 0.0625, %v896_v24  ;;  %v906_v28 = vmul.f32 0.0625, %v903_v16 }
 0x1db   :  { %v910_v13 = vsel %vm909_vm6, %v906_v28, %v905_v1 }
 0x1dc   :  { %912 = vst [vmem:[%s2132_s4] sm:$0x3] %v910_v13 }

// kernel: _lambda_.7
= control target key start
LH: loop header
LB: loop body
LE: loop exit
PB: predicated region body
PF: predicated region fallthrough
CT: control target
= control target key end

     0   :  { %s2591_s29 = smov 0   ;;  %s2923_s0 = inlined_call_operand.vmem [shape: f32[2,128], index: 0, kind: input, shape index: {}]   ;;  %s2924_s1 = inlined_call_operand.vmem [shape: f32[2,128], index: 1, kind: input, shape index: {}]   ;;  %s2925_s2 = inlined_call_operand.vmem [shape: bf16[128,128], index: 2, kind: input, shape index: {}]   ;;  %s2926_s3 = inlined_call_operand.vmem [shape: bf16[128,128], index: 3, kind: input, shape index: {}]   ;;  %s2927_s4 = inlined_call_operand.vmem [shape: f32[1,128], index: 4, kind: input, shape index: {}]   ;;  %s2928_s5 = inlined_call_operand.vmem [shape: bf16[128,128], index: 5, kind: input, shape index: {}]   ;;  %s2929_s6 = inlined_call_operand.vmem [shape: f32[1,128], index: 6, kind: input, shape index: {}]   ;;  %s2930_s7 = inlined_call_operand.vmem [shape: bf16[128,32], index: 7, kind: input, shape index: {}]   ;;  %s2931_s8 = inlined_call_operand.vmem [shape: f32[1,32], index: 8, kind: input, shape index: {}]   ;;  %s2932_s9 = inlined_call_operand.vmem [shape: bf16[32,4], index: 9, kind: input, shape index: {}]   ;;  %s2933_s10 = inlined_call_operand.vmem [shape: f32[1,4], index: 10, kind: input, shape index: {}]   ;;  %s2934_s11 = inlined_call_operand.vmem [shape: bf16[4,128,64], index: 11, kind: input, shape index: {}]   ;;  %s2935_s12 = inlined_call_operand.vmem [shape: f32[4,1,64], index: 12, kind: input, shape index: {}]   ;;  %s2936_s13 = inlined_call_operand.vmem [shape: bf16[4,64,32], index: 13, kind: input, shape index: {}]   ;;  %s2937_s14 = inlined_call_operand.vmem [shape: f32[4,1,32], index: 14, kind: input, shape index: {}]   ;;  %s2938_s15 = inlined_call_operand.vmem [shape: bf16[4,32,16], index: 15, kind: input, shape index: {}]   ;;  %s2939_s16 = inlined_call_operand.vmem [shape: f32[4,1,16], index: 16, kind: input, shape index: {}]   ;;  %s2940_s17 = inlined_call_operand.vmem [shape: bf16[4,16,32], index: 17, kind: input, shape index: {}]   ;;  %s2941_s18 = inlined_call_operand.vmem [shape: f32[1,32], index: 18, kind: input, shape index: {}]   ;;  %s2942_s19 = inlined_call_operand.vmem [shape: bf16[32,32], index: 19, kind: input, shape index: {}]   ;;  %s2943_s20 = inlined_call_operand.vmem [shape: f32[1,32], index: 20, kind: input, shape index: {}]   ;;  %s2944_s21 = inlined_call_operand.vmem [shape: bf16[32,16], index: 21, kind: input, shape index: {}]   ;;  %s2945_s22 = inlined_call_operand.vmem [shape: f32[1,16], index: 22, kind: input, shape index: {}]   ;;  %s2946_s23 = inlined_call_operand.vmem [shape: bf16[16,128], index: 23, kind: input, shape index: {}]   ;;  %s2947_s24 = inlined_call_operand.vmem [shape: f32[1,128], index: 24, kind: input, shape index: {}]   ;;  %s2948_s25 = inlined_call_operand.vmem [shape: f32[2,128], index: 25, kind: output, shape index: {}]  }
   0x1   :  { %2955 = sst [smem:[#allocation6_spill]] %s2923_s0 }
   0x2   :  { %2956 = sst [smem:[#allocation7_spill]] %s2924_s1 }
   0x3   :  { %2957 = sst [smem:[#allocation8_spill]] %s2925_s2 }
   0x4   :  { %2958 = sst [smem:[#allocation9_spill]] %s2926_s3 }
   0x5   :  { %2959 = sst [smem:[#allocation10_spill]] %s2927_s4 }
   0x6   :  { %2960 = sst [smem:[#allocation11_spill]] %s2928_s5 }
   0x7   :  { %2961 = sst [smem:[#allocation12_spill]] %s2929_s6 }
   0x8   :  { %2962 = sst [smem:[#allocation13_spill]] %s2930_s7 }
   0x9   :  { %2963 = sst [smem:[#allocation14_spill]] %s2931_s8 }
   0xa   :  { %2964 = sst [smem:[#allocation15_spill]] %s2932_s9 }
   0xb   :  { %2965 = sst [smem:[#allocation16_spill]] %s2934_s11 }
   0xc   :  { %2966 = sst [smem:[#allocation17_spill]] %s2943_s20 }
   0xd   :  { %2967 = sst [smem:[#allocation18_spill]] %s2945_s22 }
   0xe   :  { %2968 = sst [smem:[#allocation19_spill]] %s2947_s24 }
   0xf   :  { %2969 = sst [smem:[#allocation20_spill]] %s2948_s25 }
  0x10 LB: > { %2970 = sst [smem:[#allocation5_spill]] %s2453_s29  ;;  %s2597_s2 = sadd.s32 4294967295, %s2453_s29   ;;  %s2453_s29 = sphi %s2591_s29, %s35_s29  }
  0x11   : > { %p2055_p0 = scmp.ge.s32.totalorder %s2453_s29, 1  ;;  %p736_p1 = scmp.lt.s32.totalorder %s2453_s29, 5 }
  0x13   : > { %p737_p2 = pnand %p2055_p0, %p736_p1 }
  0x14   : > { %p823_p3 = scmp.lt.s32.totalorder (!%p737_p2), %s2597_s2, 3  ;;  %s2971_s11 = sld [smem:[#allocation16_spill]] (!%p737_p2) }
  0x15   : > { %740 = sbr.rel (%p737_p2) target bundleno = 3148 (0xc4c), region = 120  ;;  %p2064_p4 = scmp.ne.s32.totalorder (!%p737_p2), %s2597_s2, 0 }
  0x1c   : > { %s2603_s6 = scalar_select %p823_p3, %s2597_s2, 3 }
  0x1d   : > { %856 = sbr.rel (%p2064_p4) target bundleno = 1267 (0x4f3), region = 124  ;;  %s2972_s9 = sld [smem:[#allocation9_spill]] (!%p2064_p4)  ;;  %v2455_v1 = vmov (!%p2064_p4), 0.0   ;;  %vm2456_vm0 = vmmov (!%p2064_p4), 0   ;;  %vm1331_vm1 = vcmask (!%p2064_p4), 261120   ;;  %vm1375_vm2 = vcmask (!%p2064_p4), 25600  }
  0x1e   : > { %s2141_s30 = sshll.u32 %s2603_s6, 6  ;;  %s2142_s4 = sshll.u32 %s2603_s6, 5  ;;  %2211 = vmatprep.subr.bf16.mxu0 (!%p2064_p4), %v2455_v1  ;;  %2231 = vmatprep.subr.bf16.mxu1 (!%p2064_p4), %v2455_v1  ;;  %vm1388_vm3 = vcmask (!%p2064_p4), 254976  }
  0x1f   : > { %s2613_s27 = scalar_lea.vmem %s2971_s11, %s2141_s30  ;;  %s2619_s5 = scalar_lea.vmem %s2936_s13, %s2142_s4  ;;  %2227 = vmatprep.mubr.msk.bf16.mxu0 (!%p2064_p4), %vm2456_vm0, %v2455_v1  ;;  %2247 = vmatprep.mubr.msk.bf16.mxu1 (!%p2064_p4), %vm2456_vm0, %v2455_v1  ;;  %1389 = vst.msk [vmem:[#allocation4] sm:$0x3] (!%p2064_p4), %vm1388_vm3, %v2455_v1 }
  0x20   : > { %s2143_s24 = sshll.u32 %s2603_s6, 4  ;;  %s2144_s1 = sshll.u32 %s2603_s6, 3 }
  0x21   : > { %s2633_s30 = scalar_lea.vmem %s2938_s15, %s2143_s24  ;;  %s2639_s4 = scalar_lea.vmem %s2940_s17, %s2144_s1 }
  0x22   : > { %s2973_s24 = sld [smem:[#allocation8_spill]] (!%p2064_p4)  ;;  %s2974_s20 = sld [smem:[#allocation7_spill]] (!%p2064_p4) }
  0x23   : > { %v2381_v0 = vld [vmem:[%s2972_s9] sm:$0xff] (!%p2064_p4)   ;;  %v2383_v3 = vld [vmem:[%s2972_s9 + $0x8] sm:$0xff] (!%p2064_p4)   ;;  %v2385_v5 = vld [vmem:[%s2972_s9 + $0x10] sm:$0xff] (!%p2064_p4)   ;;  %s2975_s3 = sld [smem:[#allocation6_spill]] (!%p2064_p4)  ;;  %s2976_s29 = sld [smem:[#allocation11_spill]] (!%p2064_p4) }
  0x24   : > { %2212 = vmatpush3.bf16.msra.mxu0 %v2381_v0  ;;  %v2387_v7 = vld [vmem:[%s2972_s9 + $0x18] sm:$0xff]   ;;  %v2389_v9 = vld [vmem:[%s2972_s9 + $0x20] sm:$0xff]   ;;  %v2391_v11 = vld [vmem:[%s2972_s9 + $0x28] sm:$0xff]   ;;  %s2978_s8 = sld [smem:[#allocation13_spill]]  ;;  %s2980_s7 = sld [smem:[#allocation15_spill]] }
  0x25   : > { %2213 = vmatprep.subr.bf16.mxu0 %v2455_v1  ;;  %v2393_v13 = vld [vmem:[%s2972_s9 + $0x30] sm:$0xff]   ;;  %v2395_v15 = vld [vmem:[%s2972_s9 + $0x38] sm:$0xff]   ;;  %s2981_s25 = sld [smem:[#allocation12_spill]] }
  0x28   : > { %v2382_v2 = vld [vmem:[%s2973_s24] sm:$0xff]   ;;  %v2384_v4 = vld [vmem:[%s2973_s24 + $0x8] sm:$0xff]   ;;  %2214 = vmatpush3.bf16.msra.mxu0 %v2383_v3  ;;  %v2386_v6 = vld [vmem:[%s2973_s24 + $0x10] sm:$0xff]  }
  0x29   : > { %2232 = vmatpush3.bf16.msra.mxu1 %v2382_v2  ;;  %2215 = vmatprep.subr.bf16.mxu0 %v2455_v1  ;;  %v2388_v8 = vld [vmem:[%s2973_s24 + $0x18] sm:$0xff]   ;;  %v2390_v10 = vld [vmem:[%s2973_s24 + $0x20] sm:$0xff]   ;;  %v2392_v12 = vld [vmem:[%s2973_s24 + $0x28] sm:$0xff]   ;;  %s2977_s28 = smov %s2976_s29 }
  0x2a   : > { %2233 = vmatprep.subr.bf16.mxu1 %v2455_v1  ;;  %v2394_v14 = vld [vmem:[%s2973_s24 + $0x30] sm:$0xff]   ;;  %v858_v16 = vld [vmem:[%s2974_s20] sm:$0x3]  ;;  %v2396_v17 = vld [vmem:[%s2973_s24 + $0x38] sm:$0xff]  }
  0x2b   : > { %v2714_v18 = vld [vmem:[%s2975_s3] sm:$0x3]  ;;  %v876_v19 = vpack.c.bf16 %v858_v16, %v858_v16  ;;  %v2398_v22 = vld [vmem:[%s2977_s28 + $0x8] sm:$0xff]   ;;  %v2399_v23 = vld [vmem:[%s2977_s28 + $0x10] sm:$0xff]  }
  0x2c   : > { %2216 = vmatpush3.bf16.msra.mxu0 %v2385_v5  ;;  %v859_v20 = vpack.c.bf16 %v2714_v18, %v2714_v18  ;;  %v2397_v21 = vld [vmem:[%s2976_s29] sm:$0xff]   ;;  %v2400_v24 = vld [vmem:[%s2977_s28 + $0x18] sm:$0xff]   ;;  %v2402_v26 = vld [vmem:[%s2977_s28 + $0x28] sm:$0xff]   ;;  %s2979_s29 = sld [smem:[#allocation10_spill]] }
  0x2d   : > { %2234 = vmatpush3.bf16.msra.mxu1 %v2384_v4  ;;  %2217 = vmatprep.subr.bf16.mxu0 %v2455_v1  ;;  %v2401_v25 = vld [vmem:[%s2977_s28 + $0x20] sm:$0xff]   ;;  %v2403_v27 = vld [vmem:[%s2977_s28 + $0x30] sm:$0xff]   ;;  %v2404_v28 = vld [vmem:[%s2977_s28 + $0x38] sm:$0xff]  }
  0x2e   : > { %2235 = vmatprep.subr.bf16.mxu1 %v2455_v1  ;;  %v2405_v29 = vld [vmem:[%s2978_s8] sm:$0xff]   ;;  %v2406_v30 = vld [vmem:[%s2978_s8 + $0x8] sm:$0xff]   ;;  %v2407_v31 = vld [vmem:[%s2978_s8 + $0x10] sm:$0xff]  }
  0x2f   : > { %v2408_v32 = vld [vmem:[%s2978_s8 + $0x18] sm:$0xff]   ;;  %v2409_v46 = vld [vmem:[%s2978_s8 + $0x20] sm:$0xff]   ;;  %v2410_v47 = vld [vmem:[%s2978_s8 + $0x28] sm:$0xff]  }
  0x30   : > { %2218 = vmatpush3.bf16.msra.mxu0 %v2387_v7  ;;  %v2411_v48 = vld [vmem:[%s2978_s8 + $0x30] sm:$0xff]   ;;  %v2412_v49 = vld [vmem:[%s2978_s8 + $0x38] sm:$0xff]   ;;  %v2413_v50 = vld [vmem:[%s2980_s7] sm:$0xff]  }
  0x31   : > { %2236 = vmatpush3.bf16.msra.mxu1 %v2386_v6  ;;  %2219 = vmatprep.subr.bf16.mxu0 %v2455_v1  ;;  %v2082_v51 = vld [vmem:[%s2981_s25] ss:$0 sm:$0xff]  ;;  %v2414_v61 = vld [vmem:[%s2980_s7 + $0x8] sm:$0xff]   ;;  %s2982_s25 = sld [smem:[#allocation14_spill]] }
  0x32   : > { %2237 = vmatprep.subr.bf16.mxu1 %v2455_v1  ;;  %v2081_v35 = vld [vmem:[%s2979_s29] ss:$0 sm:$0xff] }
  0x33   : > { %v2100_v7 = vld [vmem:[%s2933_s10] ss:$0 sm:$0xff] }
  0x34   : > { %2220 = vmatpush3.bf16.msra.mxu0 %v2389_v9 }
  0x35   : > { %2238 = vmatpush3.bf16.msra.mxu1 %v2388_v8  ;;  %2221 = vmatprep.subr.bf16.mxu0 %v2455_v1 }
  0x36   : > { %2239 = vmatprep.subr.bf16.mxu1 %v2455_v1 }
  0x37   : > { %v2091_v62 = vld [vmem:[%s2982_s25] ss:$0 sm:$0xff] }
  0x38   : > { %2222 = vmatpush3.bf16.msra.mxu0 %v2391_v11 }
  0x39   : > { %2240 = vmatpush3.bf16.msra.mxu1 %v2390_v10  ;;  %2223 = vmatprep.subr.bf16.mxu0 %v2455_v1 }
  0x3a   : > { %2241 = vmatprep.subr.bf16.mxu1 %v2455_v1 }
  0x3c   : > { %2224 = vmatpush3.bf16.msra.mxu0 %v2393_v13 }
  0x3d   : > { %2242 = vmatpush3.bf16.msra.mxu1 %v2392_v12  ;;  %2225 = vmatprep.subr.bf16.mxu0 %v2455_v1 }
  0x3e   : > { %2243 = vmatprep.subr.bf16.mxu1 %v2455_v1 }
  0x40   : > { %2226 = vmatpush3.bf16.msra.mxu0 %v2395_v15 }
  0x41   : > { %2244 = vmatpush3.bf16.msra.mxu1 %v2394_v14  ;;  %2251 = vmatprep.subr.bf16.mxu0 %v2455_v1 }
  0x42   : > { %2245 = vmatprep.subr.bf16.mxu1 %v2455_v1 }
  0x43   : > { %2228 = vmatmul.mubr.bf16.vlgmr.msra.gmra.mrb[0].mxu0 %v876_v19 }
  0x44   : > { %2252 = vmatpush3.bf16.msra.mxu0 %v2397_v21  ;;  %2267 = vmatprep.mubr.msk.bf16.mxu0 %vm2456_vm0, %v2455_v1 }
  0x45   : > { %2246 = vmatpush3.bf16.msra.mxu1 %v2396_v17  ;;  %2253 = vmatprep.subr.bf16.mxu0 %v2455_v1 }
  0x46   : > { %2271 = vmatprep.subr.bf16.mxu1 %v2455_v1 }
  0x48   : > { %2248 = vmatmul.mubr.bf16.vlgmr.msra.gmra.mrb[0].mxu1 %v859_v20  ;;  %2254 = vmatpush3.bf16.msra.mxu0 %v2398_v22 }
  0x49   : > { %2287 = vmatprep.mubr.msk.bf16.mxu1 %vm2456_vm0, %v2455_v1  ;;  %2255 = vmatprep.subr.bf16.mxu0 %v2455_v1 }
  0x4a   : > { %2272 = vmatpush3.bf16.msra.mxu1 %v2405_v29 }
  0x4b   : > { %2273 = vmatprep.subr.bf16.mxu1 %v2455_v1 }
  0x4c   : > { %2256 = vmatpush3.bf16.msra.mxu0 %v2399_v23 }
  0x4d   : > { %2257 = vmatprep.subr.bf16.mxu0 %v2455_v1 }
  0x4e   : > { %2274 = vmatpush3.bf16.msra.mxu1 %v2406_v30 }
  0x4f   : > { %2275 = vmatprep.subr.bf16.mxu1 %v2455_v1 }
  0x50   : > { %2258 = vmatpush3.bf16.msra.mxu0 %v2400_v24 }
  0x51   : > { %2259 = vmatprep.subr.bf16.mxu0 %v2455_v1 }
  0x52   : > { %2276 = vmatpush3.bf16.msra.mxu1 %v2407_v31 }
  0x53   : > { %2277 = vmatprep.subr.bf16.mxu1 %v2455_v1 }
  0x54   : > { %2260 = vmatpush3.bf16.msra.mxu0 %v2401_v25 }
  0x55   : > { %2261 = vmatprep.subr.bf16.mxu0 %v2455_v1 }
  0x56   : > { %2278 = vmatpush3.bf16.msra.mxu1 %v2408_v32 }
  0x57   : > { %2279 = vmatprep.subr.bf16.mxu1 %v2455_v1 }
  0x58   : > { %2262 = vmatpush3.bf16.msra.mxu0 %v2402_v26 }
  0x59   : > { %2263 = vmatprep.subr.bf16.mxu0 %v2455_v1 }
  0x5a   : > { %2280 = vmatpush3.bf16.msra.mxu1 %v2409_v46 }
  0x5b   : > { %2281 = vmatprep.subr.bf16.mxu1 %v2455_v1 }
  0x5c   : > { %2264 = vmatpush3.bf16.msra.mxu0 %v2403_v27 }
  0x5d   : > { %2265 = vmatprep.subr.bf16.mxu0 %v2455_v1 }
  0x5e   : > { %2282 = vmatpush3.bf16.msra.mxu1 %v2410_v47 }
  0x5f   : > { %2283 = vmatprep.subr.bf16.mxu1 %v2455_v1 }
  0x60   : > { %2266 = vmatpush3.bf16.msra.mxu0 %v2404_v28 }
  0x61   : > { %2291 = vmatprep.subr.bf16.mxu0 %v2455_v1 }
  0x62   : > { %2284 = vmatpush3.bf16.msra.mxu1 %v2411_v48 }
  0x63   : > { %2285 = vmatprep.subr.bf16.mxu1 %v2455_v1 }
  0x66   : > { %2286 = vmatpush3.bf16.msra.mxu1 %v2412_v49 }
 0x116   : > { %v975_v33 = vpop.f32.mrb[0].mxu0 }
 0x117   : > { %v2229_v36 = vpop.f32.mrb[1].mxu0 }
 0x118   : > { %v978_v39 = vpop.f32.mrb[2].mxu0 }
 0x119   : > { %v2230_v41 = vpop.f32.mrb[3].mxu0 }
 0x11b   : > { %v1063_v34 = vpop.f32.mrb[0].mxu1 }
 0x11c   : > { %v1064_v37 = vadd.f32 %v1063_v34, %v975_v33  ;;  %v2249_v38 = vpop.f32.mrb[1].mxu1 }
 0x11d   : > { %v1066_v40 = vpop.f32.mrb[2].mxu1 }
 0x11e   : > { %v1076_v42 = vadd.f32 %v2081_v35, %v1064_v37  ;;  %v2250_v43 = vpop.f32.mrb[3].mxu1 }
 0x120   : > { %v1077_v44 = vmax.f32 %v1076_v42, 0.0 }
 0x122   : > { %v1078_v45 = vpack.c.bf16 %v1077_v44, %v1077_v44 }
 0x124   : > { %2268 = vmatmul.mubr.bf16.vlgmr.msra.gmra.mrb[4].mxu0 %v1078_v45 }
 0x125   : > { %2295 = vmatprep.mubr.msk.bf16.mxu0 %vm2456_vm0, %v2455_v1  ;;  %2292 = vmatpush3.bf16.msra.mxu0 %v2413_v50 }
 0x126   : > { %2293 = vmatprep.subr.bf16.mxu0 %v2455_v1 }
 0x129   : > { %2294 = vmatpush3.bf16.msra.mxu0 %v2414_v61 }
 0x1f7   : > { %v1184_v52 = vpop.f32.mrb[4].mxu0 }
 0x1f8   : > { %v1185_v53 = vadd.f32 %v2082_v51, %v1184_v52  ;;  %v2269_v54 = vpop.f32.mrb[5].mxu0 }
 0x1f9   : > { %v1187_v55 = vpop.f32.mrb[6].mxu0 }
 0x1fa   : > { %v1190_v56 = vmul.f32 0.1, %v1185_v53  ;;  %v2270_v57 = vpop.f32.mrb[7].mxu0 }
 0x1fc   : > { %v1191_v58 = vadd.f32 %v1190_v56, %v2714_v18 }
 0x1fe   : > { %1192 = vst [vmem:[#allocation2] sm:$0x3] %v1191_v58 }
 0x205   : > { %v1193_v59 = vld [vmem:[#allocation2] sm:$0x3] }
 0x206   : > { %v1194_v60 = vpack.c.bf16 %v1193_v59, %v1193_v59 }
 0x208   : > { %2288 = vmatmul.mubr.bf16.vlgmr.msra.gmra.mrb[4].mxu1 %v1194_v60 }
 0x2db   : > { %v1300_v63 = vpop.f32.mrb[4].mxu1 }
 0x2dc   : > { %v1301_v0 = vadd.f32 %v2091_v62, %v1300_v63  ;;  %v2289_v2 = vpop.f32.mrb[5].mxu1 }
 0x2dd   : > { %v1303_v3 = vpop.f32.mrb[6].mxu1 }
 0x2de   : > { %v1306_v4 = vmax.f32 %v1301_v0, 0.0  ;;  %v2290_v5 = vpop.f32.mrb[7].mxu1 }
 0x2e0   : > { %v1307_v6 = vpack.c.bf16 %v1306_v4, %v1306_v4 }
 0x2e2   : > { %2296 = vmatmul.mubr.msk.bf16.vlgmr.msra.gmra.mrb[8].mxu0 %vm1331_vm1, %v1307_v6 }
 0x3b5   : > { %v1369_v8 = vpop.f32.mrb[8].mxu0 }
 0x3b6   : > { %v1370_v9 = vadd.f32 %v2100_v7, %v1369_v8  ;;  %v2297_v10 = vpop.f32.mrb[9].mxu0 }
 0x3b7   : > { %v1372_v11 = vpop.f32.mrb[10].mxu0 }
 0x3b8   : > { %v2298_v12 = vpop.f32.mrb[11].mxu0  ;;  %v1376_v13 = vsel %vm1375_vm2, %v1370_v9, -inf }
 0x3b9   : > { %1377 = vmax.xlane.f32.xlu0 %v1376_v13 }
 0x446   : > { %v1378_v14 = vpop.xlane.xlu0 %1377 }
 0x447   : > { %v1379_v15 = vsub.f32 %v1370_v9, %v1378_v14 }
 0x449   : > { %v1380_v16 = vmul.f32 1.442695, %v1379_v15 }
 0x44b   : > { %2415 = vpow2.f32 %v1380_v16 }
 0x455   : > { %v2416_v17 = vpop.eup %2415 }
 0x456   : > { %v1382_v18 = vsel %vm1375_vm2, %v2416_v17, 0.0 }
 0x457   : > { %1383 = vadd.xlane.f32.xlu0 %v1382_v18 }
 0x4e4   : > { %v1384_v19 = vpop.xlane.xlu0 %1383 }
 0x4e5   : > { %2417 = vrcp.f32 %v1384_v19 }
 0x4ef   : > { %v2418_v20 = vpop.eup %2417 }
 0x4f0   : > { %v1386_v21 = vmul.f32 %v2418_v20, %v2416_v17 }
 0x4f2   : > { %1387 = vst.msk [vmem:[#allocation3] sm:$0x3] %vm1375_vm2, %v1386_v21 }
 0x4f3 PF: > { %v2419_v22 = vld [vmem:[%s2613_s27] sm:$0xff]   ;;  %v2457_v23 = vmov 0.0   ;;  %v2420_v1 = vld [vmem:[%s2613_s27 + $0x8] sm:$0xff]   ;;  %vm2458_vm4 = vmmov 0   ;;  %v2421_v24 = vld [vmem:[%s2613_s27 + $0x10] sm:$0xff]   ;;  %vm1544_vm5 = vcmask 523264   ;;  %v1657_v46 = vlaneseq  ;;  %s2985_s29 = scalar_lea.vmem %s2939_s16, %s2603_s6 }
 0x4f4   : > { %2299 = vmatprep.subr.bf16.mxu0 %v2457_v23  ;;  %2319 = vmatprep.subr.bf16.mxu1 %v2457_v23  ;;  %v2427_v25 = vld [vmem:[%s2619_s5] sm:$0xff]   ;;  %v2422_v26 = vld [vmem:[%s2613_s27 + $0x18] sm:$0xff]   ;;  %v2428_v27 = vld [vmem:[%s2619_s5 + $0x8] sm:$0xff]   ;;  %v1659_v47 = vstv %s2597_s2  ;;  %vm1663_vm6 = vcmask 25600   ;;  %vm1613_vm8 = vcmask 261120   ;;  %vm1678_vm9 = vcmask 130048  }
 0x4f5   : > { %2300 = vmatpush3.bf16.msra.mxu0 %v2419_v22  ;;  %2315 = vmatprep.mubr.msk.bf16.mxu0 %vm2458_vm4, %v2457_v23  ;;  %v2423_v28 = vld [vmem:[%s2613_s27 + $0x20] sm:$0xff]   ;;  %v2424_v29 = vld [vmem:[%s2613_s27 + $0x28] sm:$0xff]   ;;  %v2425_v30 = vld [vmem:[%s2613_s27 + $0x30] sm:$0xff]   ;;  %v2856_v48 = vand.u32 127, %v1657_v46  ;;  %vm1723_vm10 = vcmask 254976   ;;  %p2125_p5 = scmp.ne.s32.totalorder %s2597_s2, 3 }
 0x4f6   : > { %2301 = vmatprep.subr.bf16.mxu0 %v2457_v23  ;;  %2327 = vmatprep.mubr.msk.bf16.mxu1 %vm2458_vm4, %v2457_v23  ;;  %v2426_v31 = vld [vmem:[%s2613_s27 + $0x38] sm:$0xff]   ;;  %v1390_v32 = vld [vmem:[#allocation2] sm:$0x3]  ;;  %v2429_v34 = vld [vmem:[%s2619_s5 + $0x10] sm:$0xff]   ;;  %s2983_s27 = scalar_lea.vmem %s2935_s12, %s2603_s6  ;;  %v2459_v14 = vmov (!%p2125_p5), 0.0   ;;  %vm2460_vm11 = vmmov (!%p2125_p5), 0  }
 0x4f7   : > { %2320 = vmatpush3.bf16.msra.mxu1 %v2427_v25  ;;  %v1391_v33 = vpack.c.bf16 %v1390_v32, %v1390_v32  ;;  %v2430_v35 = vld [vmem:[%s2619_s5 + $0x18] sm:$0xff]   ;;  %v2104_v36 = vld [vmem:[%s2983_s27] ss:$0 sm:$0xff]  ;;  %v2432_v45 = vld [vmem:[%s2633_s30 + $0x8] sm:$0xff]   ;;  %vm1660_vm7 = vcmp.eq.s32.totalorder %v2856_v48, %v1659_v47  ;;  %s2987_s25 = sld [smem:[#allocation18_spill]] (!%p2125_p5)  ;;  %vm1936_vm12 = vcmp.ge.s32.totalorder (!%p2125_p5), %v2856_v48, 3 }
 0x4f8   : > { %2321 = vmatprep.subr.bf16.mxu1 %v2457_v23  ;;  %v2431_v43 = vld [vmem:[%s2633_s30] sm:$0xff]   ;;  %s2984_s30 = scalar_lea.vmem %s2937_s14, %s2603_s6  ;;  %v2435_v15 = vld [vmem:[%s2942_s19 + $0x8] sm:$0xff] (!%p2125_p5)   ;;  %vm1937_vm13 = vcmp.lt.s32.totalorder (!%p2125_p5), %v2856_v48, 13  ;;  %s2988_s11 = sld [smem:[#allocation19_spill]] (!%p2125_p5)  ;;  %vm1940_vm15 = vcmask (!%p2125_p5), 1041408   ;;  %vm1933_vm0 = vcmp.eq.s32.totalorder (!%p2125_p5), %v2856_v48, 1 }
 0x4f9   : > { %2302 = vmatpush3.bf16.msra.mxu0 %v2420_v1  ;;  %v1661_v49 = vld [vmem:[#allocation3] sm:$0x3]  ;;  %v2113_v52 = vld [vmem:[%s2984_s30] ss:$0 sm:$0xff]  ;;  %v1667_v7 = vld [vmem:[#allocation4] sm:$0x3] }
 0x4fa   : > { %2303 = vmatprep.subr.bf16.mxu0 %v2457_v23  ;;  %v1662_v50 = vsel %vm1660_vm7, %v1661_v49, 0.0  ;;  %v2433_v59 = vld [vmem:[%s2639_s4] sm:$0xff]   ;;  %v2437_v22 = vld [vmem:[%s2944_s21 + $0x8] sm:$0xff] (!%p2125_p5)   ;;  %vm2907_vm14 = vmand (!%p2125_p5), %vm1936_vm12, %vm1937_vm13  ;;  %vm1934_vm1 = vcmp.eq.s32.totalorder (!%p2125_p5), %v2856_v48, 2  ;;  %s2991_s27 = sld [smem:[#allocation20_spill]] (!%p2125_p5) }
 0x4fb   : > { %2322 = vmatpush3.bf16.msra.mxu1 %v2428_v27  ;;  %v1664_v51 = vsel %vm1663_vm6, %v1662_v50, 0.0  ;;  %v2119_v61 = vld [vmem:[%s2985_s29] ss:$0 sm:$0xff]  ;;  %s2986_s29 = sld [smem:[#allocation17_spill]] (!%p2125_p5)  ;;  %vm1935_vm2 = vmor (!%p2125_p5), %vm1933_vm0, %vm1934_vm1 }
 0x4fc   : > { %2323 = vmatprep.subr.bf16.mxu1 %v2457_v23  ;;  %1665 = vadd.xlane.f32.xlu0 %v1664_v51  ;;  %v2434_v13 = vld [vmem:[%s2942_s19] sm:$0xff] (!%p2125_p5)  }
 0x4fd   : > { %2304 = vmatpush3.bf16.msra.mxu0 %v2421_v24  ;;  %v2126_v17 = vld [vmem:[%s2941_s18] ss:$0 sm:$0xff] (!%p2125_p5) }
 0x4fe   : > { %2305 = vmatprep.subr.bf16.mxu0 %v2457_v23  ;;  %v2436_v21 = vld [vmem:[%s2944_s21] sm:$0xff] (!%p2125_p5)  }
 0x4ff   : > { %2324 = vmatpush3.bf16.msra.mxu1 %v2429_v34 }
 0x500   : > { %2325 = vmatprep.subr.bf16.mxu1 %v2457_v23 }
 0x501   : > { %2306 = vmatpush3.bf16.msra.mxu0 %v2422_v26  ;;  %v2127_v1 = vld [vmem:[%s2986_s29] ss:$0 sm:$0xff] (!%p2125_p5) }
 0x502   : > { %2307 = vmatprep.subr.bf16.mxu0 %v2457_v23 }
 0x503   : > { %2326 = vmatpush3.bf16.msra.mxu1 %v2430_v35 }
 0x504   : > { %2331 = vmatprep.subr.bf16.mxu1 %v2457_v23 }
 0x505   : > { %2308 = vmatpush3.bf16.msra.mxu0 %v2423_v28 }
 0x506   : > { %2309 = vmatprep.subr.bf16.mxu0 %v2457_v23 }
 0x509   : > { %2310 = vmatpush3.bf16.msra.mxu0 %v2424_v29 }
 0x50a   : > { %2311 = vmatprep.subr.bf16.mxu0 %v2457_v23 }
 0x50d   : > { %2312 = vmatpush3.bf16.msra.mxu0 %v2425_v30 }
 0x50e   : > { %2313 = vmatprep.subr.bf16.mxu0 %v2457_v23 }
 0x511   : > { %2314 = vmatpush3.bf16.msra.mxu0 %v2426_v31  ;;  %v2131_v31 = vld [vmem:[%s2987_s25] ss:$0 sm:$0xff] (!%p2125_p5) }
 0x512   : > { %2345 = vmatprep.subr.bf16.mxu0 (!%p2125_p5), %v2459_v14 }
 0x514   : > { %2316 = vmatmul.mubr.bf16.vlgmr.msra.gmra.mrb[0].mxu0 %v1391_v33 }
 0x515   : > { %2346 = vmatpush3.bf16.msra.mxu0 (!%p2125_p5), %v2434_v13  ;;  %2349 = vmatprep.mubr.msk.bf16.mxu0 (!%p2125_p5), %vm2460_vm11, %v2459_v14 }
 0x516   : > { %2347 = vmatprep.subr.bf16.mxu0 (!%p2125_p5), %v2459_v14 }
 0x519   : > { %2348 = vmatpush3.bf16.msra.mxu0 (!%p2125_p5), %v2435_v15 }
 0x51a   : > { %2361 = vmatprep.subr.bf16.mxu0 (!%p2125_p5), %v2459_v14 }
 0x589   : > { %v1666_v63 = vpop.xlane.xlu0 %1665 }
 0x5e7   : > { %v1497_v37 = vpop.f32.mrb[0].mxu0 }
 0x5e8   : > { %v1498_v38 = vadd.f32 %v2104_v36, %v1497_v37  ;;  %v2317_v39 = vpop.f32.mrb[1].mxu0 }
 0x5e9   : > { %v1500_v40 = vpop.f32.mrb[2].mxu0 }
 0x5ea   : > { %v1503_v41 = vmax.f32 %v1498_v38, 0.0  ;;  %v2318_v42 = vpop.f32.mrb[3].mxu0  ;;  %v2135_v38 = vld [vmem:[%s2988_s11] ss:$0 sm:$0xff] (!%p2125_p5) }
 0x5ec   : > { %v1504_v44 = vpack.c.bf16 %v1503_v41, %v1503_v41 }
 0x5ee   : > { %2328 = vmatmul.mubr.msk.bf16.vlgmr.msra.gmra.mrb[0].mxu1 %vm1544_vm5, %v1504_v44 }
 0x5ef   : > { %2332 = vmatpush3.bf16.msra.mxu1 %v2431_v43  ;;  %2335 = vmatprep.mubr.msk.bf16.mxu1 %vm2458_vm4, %v2457_v23 }
 0x5f0   : > { %2333 = vmatprep.subr.bf16.mxu1 %v2457_v23 }
 0x5f3   : > { %2334 = vmatpush3.bf16.msra.mxu1 %v2432_v45 }
 0x5f4   : > { %2339 = vmatprep.subr.bf16.mxu1 %v2457_v23 }
 0x6c1   : > { %v1582_v53 = vpop.f32.mrb[0].mxu1 }
 0x6c2   : > { %v1583_v54 = vadd.f32 %v2113_v52, %v1582_v53  ;;  %v2329_v55 = vpop.f32.mrb[1].mxu1 }
 0x6c3   : > { %v1585_v56 = vpop.f32.mrb[2].mxu1 }
 0x6c4   : > { %v1588_v57 = vmax.f32 %v1583_v54, 0.0  ;;  %v2330_v58 = vpop.f32.mrb[3].mxu1 }
 0x6c6   : > { %v1589_v60 = vpack.c.bf16 %v1588_v57, %v1588_v57 }
 0x6c8   : > { %2336 = vmatmul.mubr.msk.bf16.vlgmr.msra.gmra.mrb[4].mxu1 %vm1613_vm8, %v1589_v60 }
 0x6c9   : > { %2340 = vmatpush3.bf16.msra.mxu1 %v2433_v59  ;;  %2341 = vmatprep.mubr.msk.bf16.mxu1 %vm2458_vm4, %v2457_v23  ;;  %v2438_v23 = vld [vmem:[%s2946_s23] sm:$0xff] (!%p2125_p5)  }
 0x6ca   : > { %2353 = vmatprep.subr.bf16.mxu1 (!%p2125_p5), %v2459_v14 }
 0x79b   : > { %v1651_v62 = vpop.f32.mrb[4].mxu1 }
 0x79c   : > { %v1652_v0 = vadd.f32 %v2119_v61, %v1651_v62  ;;  %v2337_v2 = vpop.f32.mrb[5].mxu1 }
 0x79d   : > { %v1654_v3 = vpop.f32.mrb[6].mxu1 }
 0x79e   : > { %v1668_v4 = vmul.f32 %v1666_v63, %v1652_v0  ;;  %v2338_v5 = vpop.f32.mrb[7].mxu1 }
 0x7a0   : > { %v1669_v6 = vpack.c.bf16 %v1668_v4, %v1668_v4 }
 0x7a2   : > { %2342 = vmatmul.mubr.msk.bf16.vlgmr.msra.gmra.mrb[8].mxu1 %vm1678_vm9, %v1669_v6 }
 0x7a3   : > { %2357 = vmatprep.mubr.msk.bf16.mxu1 (!%p2125_p5), %vm2460_vm11, %v2459_v14  ;;  %2354 = vmatpush3.bf16.msra.mxu1 (!%p2125_p5), %v2436_v21 }
 0x7a4   : > { %2355 = vmatprep.subr.bf16.mxu1 (!%p2125_p5), %v2459_v14 }
 0x7a7   : > { %2356 = vmatpush3.bf16.msra.mxu1 (!%p2125_p5), %v2437_v22 }
 0x872   : > { %1728 = sbr.rel (%p2125_p5) target bundleno = 3148 (0xc4c), region = 128 }
 0x875   : > { %v1716_v8 = vpop.f32.mrb[8].mxu1 }
 0x876   : > { %v1722_v9 = vadd.f32 %v1716_v8, %v1667_v7  ;;  %v2343_v10 = vpop.f32.mrb[9].mxu1 }
 0x877   : > { %v1719_v11 = vpop.f32.mrb[10].mxu1 }
 0x878   : > { %1724 = vst.msk [vmem:[#allocation4] sm:$0x3] %vm1723_vm10, %v1722_v9  ;;  %v2344_v12 = vpop.f32.mrb[11].mxu1 }
 0x87f   : > { %v1729_v16 = vld [vmem:[#allocation4] sm:$0x3] }
 0x880   : > { %v1737_v18 = vadd.f32 %v2126_v17, %v1729_v16 }
 0x882   : > { %v1738_v19 = vmax.f32 %v1737_v18, 0.0 }
 0x884   : > { %v1739_v20 = vpack.c.bf16 %v1738_v19, %v1738_v19 }
 0x886   : > { %2350 = vmatmul.mubr.msk.bf16.vlgmr.msra.gmra.mrb[0].mxu0 %vm1613_vm8, %v1739_v20 }
 0x887   : > { %2363 = vmatprep.mubr.msk.bf16.mxu0 %vm2460_vm11, %v2459_v14  ;;  %2362 = vmatpush3.bf16.msra.mxu0 %v2438_v23 }
 0x959   : > { %v1800_v24 = vpop.f32.mrb[0].mxu0 }
 0x95a   : > { %v1801_v25 = vadd.f32 %v2127_v1, %v1800_v24  ;;  %v2351_v26 = vpop.f32.mrb[1].mxu0 }
 0x95b   : > { %v1803_v27 = vpop.f32.mrb[2].mxu0 }
 0x95c   : > { %v1806_v28 = vmax.f32 %v1801_v25, 0.0  ;;  %v2352_v29 = vpop.f32.mrb[3].mxu0 }
 0x95e   : > { %v1807_v30 = vpack.c.bf16 %v1806_v28, %v1806_v28 }
 0x960   : > { %2358 = vmatmul.mubr.msk.bf16.vlgmr.msra.gmra.mrb[0].mxu1 %vm1613_vm8, %v1807_v30 }
 0xa33   : > { %v1868_v32 = vpop.f32.mrb[0].mxu1 }
 0xa34   : > { %v1869_v33 = vadd.f32 %v2131_v31, %v1868_v32  ;;  %v2359_v34 = vpop.f32.mrb[1].mxu1 }
 0xa35   : > { %v1871_v35 = vpop.f32.mrb[2].mxu1 }
 0xa36   : > { %v1874_v36 = vpack.c.bf16 %v1869_v33, %v1869_v33  ;;  %v2360_v37 = vpop.f32.mrb[3].mxu1 }
 0xa38   : > { %2364 = vmatmul.mubr.msk.bf16.vlgmr.msra.gmra.mrb[4].mxu0 %vm1678_vm9, %v1874_v36 }
 0xb0b   : > { %v1927_v39 = vpop.f32.mrb[4].mxu0 }
 0xb0c   : > { %v1928_v41 = vadd.f32 %v2135_v38, %v1927_v39  ;;  %v2365_v42 = vpop.f32.mrb[5].mxu0 }
 0xb0d   : > { %v1930_v43 = vpop.f32.mrb[6].mxu0 }
 0xb0e   : > { %v2366_v44 = vpop.f32.mrb[7].mxu0  ;;  %v1939_v45 = vsel %vm2907_vm14, %v1928_v41, -1e+30  ;;  %v2138_v53 = vmul.f32 -1.442695, %v1928_v41 }
 0xb0f   : > { %v1941_v46 = vsel %vm1940_vm15, %v1939_v45, -inf }
 0xb10   : > { %1942 = vmax.xlane.f32.xlu0 %v1941_v46 }
 0xb9d   : > { %v1943_v47 = vpop.xlane.xlu0 %1942 }
 0xb9e   : > { %v1944_v49 = vsub.f32 %v1939_v45, %v1943_v47 }
 0xba0   : > { %v1945_v50 = vmul.f32 1.442695, %v1944_v49 }
 0xba2   : > { %2439 = vpow2.f32 %v1945_v50 }
 0xba3   : > { %2441 = vpow2.f32 %v2138_v53 }
 0xbac   : > { %v2440_v51 = vpop.eup %2439 }
 0xbad   : > { %v1947_v52 = vsel %vm1940_vm15, %v2440_v51, 0.0  ;;  %v2442_v54 = vpop.eup %2441 }
 0xbae   : > { %1948 = vadd.xlane.f32.xlu0 %v1947_v52  ;;  %v1955_v55 = vadd.f32 1.0, %v2442_v54 }
 0xc3b   : > { %v1949_v56 = vpop.xlane.xlu0 %1948 }
 0xc3c   : > { %2443 = vrcp.f32 %v1949_v56 }
 0xc3d   : > { %2445 = vrcp.f32 %v1955_v55 }
 0xc46   : > { %v2444_v57 = vpop.eup %2443 }
 0xc47   : > { %v1951_v58 = vmul.f32 %v2444_v57, %v2440_v51  ;;  %v2446_v59 = vpop.eup %2445 }
 0xc49   : > { %v1958_v60 = vsel %vm2907_vm14, %v1951_v58, %v1928_v41 }
 0xc4a   : > { %v1959_v61 = vsel %vm1935_vm2, %v2446_v59, %v1958_v60 }
 0xc4b   : > { %1960 = vst [vmem:[%s2991_s27] sm:$0x3] %v1959_v61 }
 0xc4c PF: > { %s2992_s5 = sld [smem:[#allocation5_spill]] }
 0xc52   : > { %s35_s29 = sadd.s32 1, %s2992_s5  }
 0xc53   : > { %p32_p6 = scmp.ge.s32.totalorder %s35_s29, 6  }
 0xc55   :  { %34 = sbr.rel (!%p32_p6) target bundleno = 16 (0x10), region = 172 }

// kernel: _lambda_.5
= control target key start
LH: loop header
LB: loop body
LE: loop exit
PB: predicated region body
PF: predicated region fallthrough
CT: control target
= control target key end

     0   :  { %s4083_s0 = inlined_call_operand.vmem [shape: bf16[2,16,128], index: 0, kind: input, shape index: {}]   ;;  %s4084_s1 = inlined_call_operand.vmem [shape: f32[1,128], index: 1, kind: input, shape index: {}, may-alias: {1,7}]   ;;  %s4085_s2 = inlined_call_operand.vmem [shape: f32[1,128], index: 2, kind: input, shape index: {}, may-alias: {2,8}]   ;;  %s4086_s3 = inlined_call_operand.vmem [shape: bf16[128,384], index: 3, kind: input, shape index: {}]   ;;  %s4087_s4 = inlined_call_operand.vmem [shape: f32[1,384], index: 4, kind: input, shape index: {}]   ;;  %s4088_s5 = inlined_call_operand.vmem [shape: bf16[128,128], index: 5, kind: input, shape index: {}]   ;;  %s4089_s6 = inlined_call_operand.vmem [shape: f32[1,128], index: 6, kind: input, shape index: {}]   ;;  %s4090_s7 = inlined_call_operand.vmem [shape: f32[1,128], index: 7, kind: input, shape index: {}, may-alias: {1,7}]   ;;  %s4091_s8 = inlined_call_operand.vmem [shape: f32[1,128], index: 8, kind: input, shape index: {}, may-alias: {2,8}]   ;;  %s4092_s9 = inlined_call_operand.vmem [shape: bf16[128,256], index: 9, kind: input, shape index: {}]   ;;  %s4093_s10 = inlined_call_operand.vmem [shape: f32[1,256], index: 10, kind: input, shape index: {}]   ;;  %s4094_s11 = inlined_call_operand.vmem [shape: bf16[256,128], index: 11, kind: input, shape index: {}]   ;;  %s4095_s12 = inlined_call_operand.vmem [shape: f32[1,128], index: 12, kind: input, shape index: {}]   ;;  %s4096_s13 = inlined_call_operand.vmem [shape: bf16[2,16,128], index: 13, kind: output, shape index: {0}]   ;;  %s4097_s14 = inlined_call_operand.hbm [shape: f32[2,128], index: 14, kind: output, shape index: {1}]  }
   0x1   :  { %v2799_v0 = vld [vmem:[%s4083_s0] sm:$0xff]   ;;  %v2816_v1 = vld [vmem:[%s4083_s0 + $0x8] sm:$0xff]  }
   0x2   :  { %v3527_v2 = vunpack.c.l.bf16 %v2799_v0  ;;  %v3529_v3 = vunpack.c.l.bf16 %v2816_v1  ;;  %v3533_v4 = vunpack.c.h.bf16 %v2799_v0  ;;  %v3535_v5 = vunpack.c.h.bf16 %v2816_v1  ;;  %v3257_v6 = vld [vmem:[%s4086_s3 + $0x4] ss:$12 sps:$4 sm:$0xff]   ;;  %v3259_v7 = vld [vmem:[%s4086_s3] ss:$12 sps:$4 sm:$0xff]   ;;  %v3260_v8 = vld [vmem:[%s4086_s3 + $0x1c] ss:$12 sps:$4 sm:$0xff]  }
   0x3   :  { %v3262_v9 = vld [vmem:[%s4086_s3 + $0x8] ss:$12 sps:$4 sm:$0xff]   ;;  %302 = vmatprep.subr.bf16.mxu0 %v3257_v6 }
   0x4   :  { %56 = vadd.xlane.f32.xlu0 %v3527_v2  ;;  %60 = vadd.xlane.f32.xlu1 %v3529_v3 }
   0x5   :  { %303 = vmatpush1.bf16.msra.mxu0 %v3259_v7  ;;  %2930 = vmatprep.subr.bf16.mxu1 %v3262_v9 }
   0x8   :  { %58 = vadd.xlane.f32.xlu0 %v3533_v4  ;;  %62 = vadd.xlane.f32.xlu1 %v3535_v5 }
   0x9   :  { %20 = vsyncpa [#allocation3], 0  ;;  %304 = vmatprep.subr.bf16.mxu0 %v3260_v8  ;;  %2931 = vmatpush3.bf16.msra.mxu1 %v3262_v9  ;;  %v3263_v26 = vld [vmem:[%s4086_s3 + $0x18] ss:$12 sps:$4 sm:$0xff]   ;;  %v3264_v27 = vld [vmem:[%s4086_s3 + $0x34] ss:$12 sps:$4 sm:$0xff]  }
   0xa   :  { %305 = vmatpush1.bf16.msra.mxu0 %v3263_v26  ;;  %v3266_v28 = vld [vmem:[%s4086_s3 + $0x20] ss:$12 sps:$4 sm:$0xff]   ;;  %v3267_v29 = vld [vmem:[%s4086_s3 + $0x30] ss:$12 sps:$4 sm:$0xff]   ;;  %v3270_v31 = vld [vmem:[%s4086_s3 + $0x38] ss:$12 sps:$4 sm:$0xff]  }
   0xb   :  { %306 = vmatprep.subr.bf16.mxu0 %v3264_v27  ;;  %2932 = vmatprep.subr.bf16.mxu1 %v3266_v28  ;;  %v3268_v30 = vld [vmem:[%s4086_s3 + $0x4c] ss:$12 sps:$4 sm:$0xff]   ;;  %v3271_v32 = vld [vmem:[%s4086_s3 + $0x48] ss:$12 sps:$4 sm:$0xff]   ;;  %v3272_v33 = vld [vmem:[%s4086_s3 + $0x64] ss:$12 sps:$4 sm:$0xff]  }
   0xc   :  { %v3274_v34 = vld [vmem:[%s4086_s3 + $0x50] ss:$12 sps:$4 sm:$0xff]   ;;  %v3275_v35 = vld [vmem:[%s4086_s3 + $0x60] ss:$12 sps:$4 sm:$0xff]   ;;  %v3278_v37 = vld [vmem:[%s4086_s3 + $0x68] ss:$12 sps:$4 sm:$0xff]  }
   0xd   :  { %2933 = vmatpush3.bf16.msra.mxu1 %v3266_v28  ;;  %v3276_v36 = vld [vmem:[%s4086_s3 + $0x7c] ss:$12 sps:$4 sm:$0xff]   ;;  %v3279_v38 = vld [vmem:[%s4086_s3 + $0x78] ss:$12 sps:$4 sm:$0xff]   ;;  %v3280_v39 = vld [vmem:[%s4086_s3 + $0x94] ss:$12 sps:$4 sm:$0xff]  }
   0xe   :  { %307 = vmatpush1.bf16.msra.mxu0 %v3267_v29  ;;  %2934 = vmatprep.subr.bf16.mxu1 %v3270_v31  ;;  %v3282_v40 = vld [vmem:[%s4086_s3 + $0x80] ss:$12 sps:$4 sm:$0xff]   ;;  %v3441_v41 = vmov 0   ;;  %v3283_v42 = vld [vmem:[%s4086_s3 + $0x90] ss:$12 sps:$4 sm:$0xff]   ;;  %vm408_vm0 = vcmask 261120  }
   0xf   :  { %308 = vmatprep.subr.bf16.mxu0 %v3268_v30  ;;  %334 = vmatprep.mubr.bf16.mxu0 %v3441_v41  ;;  %v3284_v43 = vld [vmem:[%s4086_s3 + $0xac] ss:$12 sps:$4 sm:$0xff]   ;;  %v3287_v45 = vld [vmem:[%s4086_s3 + $0xa8] ss:$12 sps:$4 sm:$0xff]   ;;  %v3288_v46 = vld [vmem:[%s4086_s3 + $0xb0] ss:$12 sps:$4 sm:$0xff]  }
  0x10   :  { %v3286_v44 = vld [vmem:[%s4086_s3 + $0x98] ss:$12 sps:$4 sm:$0xff]   ;;  %v2672_v61 = vld [vmem:[%s4084_s1] ss:$0 sm:$0xff]  ;;  %vm3661_vm1 = vmpackc.low %vm408_vm0, %vm408_vm0  ;;  %vm583_vm2 = vcmask 130048   ;;  %s3443_s17 = smov 64  }
  0x11   :  { %2935 = vmatpush3.bf16.msra.mxu1 %v3270_v31  ;;  %v2673_v6 = vld [vmem:[%s4085_s2] ss:$0 sm:$0xff]  ;;  %s3444_s18 = smov 32   ;;  %vm2046_vm3 = vcmask 523264   ;;  %vm2051_vm4 = vcmask 785408   ;;  %vm2650_vm5 = vcmask 1041409  }
  0x12   :  { %309 = vmatpush1.bf16.msra.mxu0 %v3271_v32  ;;  %2936 = vmatprep.subr.bf16.mxu1 %v3274_v34 }
  0x13   :  { %310 = vmatprep.subr.bf16.mxu0 %v3272_v33 }
  0x15   :  { %2937 = vmatpush3.bf16.msra.mxu1 %v3274_v34 }
  0x16   :  { %311 = vmatpush1.bf16.msra.mxu0 %v3275_v35  ;;  %2938 = vmatprep.subr.bf16.mxu1 %v3278_v37 }
  0x17   :  { %312 = vmatprep.subr.bf16.mxu0 %v3276_v36 }
  0x19   :  { %2939 = vmatpush3.bf16.msra.mxu1 %v3278_v37 }
  0x1a   :  { %313 = vmatpush1.bf16.msra.mxu0 %v3279_v38  ;;  %2940 = vmatprep.subr.bf16.mxu1 %v3282_v40 }
  0x1b   :  { %314 = vmatprep.subr.bf16.mxu0 %v3280_v39 }
  0x1d   :  { %2941 = vmatpush3.bf16.msra.mxu1 %v3282_v40 }
  0x1e   :  { %315 = vmatpush1.bf16.msra.mxu0 %v3283_v42  ;;  %2942 = vmatprep.subr.bf16.mxu1 %v3286_v44 }
  0x1f   :  { %316 = vmatprep.subr.bf16.mxu0 %v3284_v43 }
  0x21   :  { %2943 = vmatpush3.bf16.msra.mxu1 %v3286_v44 }
  0x22   :  { %317 = vmatpush1.bf16.msra.mxu0 %v3287_v45  ;;  %2944 = vmatprep.subr.bf16.mxu1 %v3288_v46 }
  0x25   :  { %2945 = vmatpush3.bf16.msra.mxu1 %v3288_v46 }
  0x91   :  { %v57_v10 = vpop.xlane.xlu0 %56  ;;  %v61_v11 = vpop.xlane.xlu1 %60 }
  0x92   :  { %v65_v12 = vmul.f32 0.0078125, %v57_v10  ;;  %v67_v13 = vmul.f32 0.0078125, %v61_v11 }
  0x94   :  { %v3552_v14 = vsub.f32 %v3527_v2, %v65_v12  ;;  %v3555_v15 = vsub.f32 %v3529_v3, %v67_v13 }
  0x95   :  { %v59_v16 = vpop.xlane.xlu0 %58  ;;  %v63_v17 = vpop.xlane.xlu1 %62 }
  0x96   :  { %v66_v18 = vmul.f32 0.0078125, %v59_v16  ;;  %v73_v19 = vmul.f32 %v3552_v14, %v3552_v14  ;;  %v68_v20 = vmul.f32 0.0078125, %v63_v17  ;;  %v75_v23 = vmul.f32 %v3555_v15, %v3555_v15 }
  0x98   :  { %v3560_v21 = vsub.f32 %v3533_v4, %v66_v18  ;;  %77 = vadd.xlane.f32.xlu0 %v73_v19  ;;  %v3563_v22 = vsub.f32 %v3535_v5, %v68_v20  ;;  %v159_v20 = vlaneseq }
  0x9a   :  { %v74_v24 = vmul.f32 %v3560_v21, %v3560_v21  ;;  %v76_v25 = vmul.f32 %v3563_v22, %v3563_v22 }
  0x9c   :  { %81 = vadd.xlane.f32.xlu0 %v75_v23  ;;  %79 = vadd.xlane.f32.xlu1 %v74_v24 }
  0xa0   :  { %83 = vadd.xlane.f32.xlu1 %v76_v25 }
 0x125   :  { %v78_v47 = vpop.xlane.xlu0 %77 }
 0x126   :  { %v85_v48 = vmul.f32 0.0078125, %v78_v47 }
 0x128   :  { %v89_v49 = vadd.f32 1e-05, %v85_v48 }
 0x129   :  { %v80_v50 = vpop.xlane.xlu1 %79  ;;  %v82_v51 = vpop.xlane.xlu0 %81 }
 0x12a   :  { %3337 = vrsqrt.f32 %v89_v49  ;;  %v86_v52 = vmul.f32 0.0078125, %v80_v50  ;;  %v87_v53 = vmul.f32 0.0078125, %v82_v51 }
 0x12c   :  { %v90_v54 = vadd.f32 1e-05, %v86_v52  ;;  %v91_v55 = vadd.f32 1e-05, %v87_v53 }
 0x12d   :  { %v84_v56 = vpop.xlane.xlu1 %83 }
 0x12e   :  { %3339 = vrsqrt.f32 %v90_v54  ;;  %v88_v57 = vmul.f32 0.0078125, %v84_v56 }
 0x12f   :  { %3341 = vrsqrt.f32 %v91_v55 }
 0x130   :  { %v92_v58 = vadd.f32 1e-05, %v88_v57 }
 0x132   :  { %3343 = vrsqrt.f32 %v92_v58 }
 0x134   :  { %v3338_v59 = vpop.eup %3337 }
 0x135   :  { %v97_v60 = vmul.f32 %v3338_v59, %v3552_v14 }
 0x137   :  { %v108_v1 = vmul.f32 %v2672_v61, %v97_v60 }
 0x138   :  { %v3340_v62 = vpop.eup %3339 }
 0x139   :  { %v3342_v63 = vpop.eup %3341  ;;  %v98_v0 = vmul.f32 %v3340_v62, %v3560_v21  ;;  %v119_v10 = vadd.f32 %v2673_v6, %v108_v1 }
 0x13a   :  { %v99_v7 = vmul.f32 %v3342_v63, %v3555_v15  ;;  %v3643_v15 = vshrl.u32 %v159_v20, 7 }
 0x13b   :  { %v109_v8 = vmul.f32 %v2672_v61, %v98_v0 }
 0x13c   :  { %v3344_v9 = vpop.eup %3343  ;;  %v110_v13 = vmul.f32 %v2672_v61, %v99_v7  ;;  %v161_v21 = vsub.s32 0, %v3643_v15  ;;  %v165_v23 = vsub.s32 1, %v3643_v15  ;;  %v169_v25 = vsub.s32 2, %v3643_v15 }
 0x13d   :  { %v120_v11 = vadd.f32 %v2673_v6, %v109_v8  ;;  %v100_v12 = vmul.f32 %v3344_v9, %v3563_v22  ;;  %v157_v22 = vld [vmem:[%s4087_s4] sm:$0x7]  ;;  %s3442_s4 = smov 96  }
 0x13e   :  { %v121_v17 = vadd.f32 %v2673_v6, %v110_v13  ;;  %v162_v24 = vrot.slane %v157_v22, %v161_v21  ;;  %v166_v27 = vrot.slane %v157_v22, %v165_v23  ;;  %v170_v33 = vrot.slane %v157_v22, %v169_v25 }
 0x13f   :  { %v123_v14 = vpack.c.bf16 %v120_v11, %v119_v10  ;;  %v111_v16 = vmul.f32 %v2672_v61, %v100_v12 }
 0x141   :  { %335 = vmatmul.mubr.bf16.vlgmr.msra.gmra.mrb[0].mxu0 %v123_v14  ;;  %2946 = vmatprep.mubr.bf16.mxu1 %v123_v14  ;;  %v122_v18 = vadd.f32 %v2673_v6, %v111_v16 }
 0x142   :  { %344 = vmatprep.mubr.bf16.mxu0 %v3441_v41 }
 0x143   :  { %v124_v19 = vpack.c.bf16 %v122_v18, %v121_v17 }
 0x145   :  { %2947 = vmatmul.mubr.bf16.vlgmr.msra.gmra.mrb[0].mxu1 %v124_v19 }
 0x149   :  { %345 = vmatmul.mubr.bf16.gmra.mrb[4].mxu0 %v124_v19 }
 0x214   :  { %v336_v26 = vpop.f32.mrb[0].mxu0 }
 0x215   :  { %v337_v28 = vadd.f32 %v336_v26, %v162_v24  ;;  %v338_v29 = vpop.f32.mrb[1].mxu0 }
 0x216   :  { %v340_v30 = vpop.f32.mrb[2].mxu0  ;;  %v339_v34 = vadd.f32 %v338_v29, %v166_v27 }
 0x217   :  { %v3655_v31 = vmul.f32 0.17677669, %v337_v28  ;;  %v342_v32 = vpop.f32.mrb[3].mxu0  ;;  %v341_v49 = vadd.f32 %v340_v30, %v162_v24 }
 0x218   :  { %v343_v35 = vadd.f32 %v342_v32, %v166_v27  ;;  %v2948_v36 = vpop.f32.mrb[0].mxu1 }
 0x219   :  { %v389_v37 = vpop.f32.mrb[1].mxu1  ;;  %2954 = vmatprep.mubr.msk.f32.mxu1 %vm408_vm0, %v3655_v31  ;;  %v398_v43 = vadd.f32 %v2948_v36, %v170_v33  ;;  %v3677_v60 = vmul.f32 0.17677669, %v341_v49 }
 0x21a   :  { %v2949_v39 = vpop.f32.mrb[2].mxu1  ;;  %v3082_v40 = vpack.c.bf16 %v343_v35, %v339_v34  ;;  %v3665_v42 = vpack.i.bf16 %v343_v35, %v339_v34  ;;  %v390_v46 = vadd.f32 %v389_v37, %v170_v33 }
 0x21b   :  { %v401_v44 = vadd.f32 %v2949_v39, %v170_v33  ;;  %v392_v45 = vpop.f32.mrb[3].mxu1 }
 0x21c   :  { %v393_v47 = vadd.f32 %v392_v45, %v170_v33  ;;  %v346_v48 = vpop.f32.mrb[4].mxu0  ;;  %3084 = vmatprep.subr.msk.bf16.mxu1 %vm3661_vm1, %v3082_v40 }
 0x21d   :  { %v348_v50 = vpop.f32.mrb[5].mxu0  ;;  %3087 = vmatpush3.bf16.xpose.msk.msra.mxu1 %vm3661_vm1, %v3082_v40  ;;  %v3671_v51 = vpack.c.bf16 %v401_v44, %v398_v43  ;;  %v3673_v52 = vpack.i.bf16 %v401_v44, %v398_v43  ;;  %v347_v56 = vadd.f32 %v346_v48, %v162_v24 }
 0x21e   :  { %v350_v53 = vpop.f32.mrb[6].mxu0  ;;  %v3094_v54 = vpack.c.bf16 %v393_v47, %v390_v46  ;;  %v3675_v55 = vpack.i.bf16 %v393_v47, %v390_v46  ;;  %v349_v58 = vadd.f32 %v348_v50, %v166_v27 }
 0x21f   :  { %v352_v57 = vpop.f32.mrb[7].mxu0  ;;  %v3681_v63 = vmul.f32 0.17677669, %v347_v56  ;;  %v351_v0 = vadd.f32 %v350_v53, %v162_v24 }
 0x220   :  { %v353_v59 = vadd.f32 %v352_v57, %v166_v27 }
 0x221   :  { %v3691_v1 = vmul.f32 0.17677669, %v351_v0 }
 0x222   :  { %v3088_v61 = vpack.c.bf16 %v353_v59, %v349_v58  ;;  %v3679_v62 = vpack.i.bf16 %v353_v59, %v349_v58 }
 0x224   :  { %2955 = vmatmul.mubr.msk.f32.vlgmr.msra.gmra.mrb[4].mxu1 %vm408_vm0, %v3677_v60  ;;  %3090 = vmatprep.subr.msk.bf16.mxu1 %vm3661_vm1, %v3088_v61 }
 0x225   :  { %3093 = vmatpush3.bf16.xpose.msk.msra.mxu1 %vm3661_vm1, %v3088_v61  ;;  %2961 = vmatprep.mubr.msk.f32.mxu1 %vm408_vm0, %v3681_v63 }
 0x226   :  { %3095 = vmatprep.subr.bf16.mxu1 %v3094_v54 }
 0x22c   :  { %2962 = vmatmul.mubr.msk.f32.vlgmr.msra.gmra.mrb[6].mxu1 %vm408_vm0, %v3691_v1 }
 0x22d   :  { %3097 = vmatpush3.bf16.msra.mxu1 %v3094_v54 }
 0x22e   :  { %3099 = vmatprep.subr.bf16.mxu1 %v3671_v51 }
 0x2f7   :  { %v2956_v6 = vpop.f32.mrb[4].mxu1 }
 0x2f8   :  { %v487_v7 = vpop.f32.mrb[5].mxu1  ;;  %v587_v8 = vsel %vm583_vm2, %v2956_v6, -inf }
 0x2f9   :  { %588 = vmax.xlane.f32.xlu1 %v587_v8  ;;  %v584_v9 = vsel %vm583_vm2, %v487_v7, -inf }
 0x2fa   :  { %585 = vmax.xlane.f32.xlu0 %v584_v9 }
 0x2ff   :  { %v2963_v10 = vpop.f32.mrb[6].mxu1 }
 0x300   :  { %v574_v11 = vpop.f32.mrb[7].mxu1  ;;  %v593_v12 = vsel %vm583_vm2, %v2963_v10, -inf }
 0x301   :  { %594 = vmax.xlane.f32.xlu1 %v593_v12  ;;  %v590_v13 = vsel %vm583_vm2, %v574_v11, -inf }
 0x302   :  { %591 = vmax.xlane.f32.xlu0 %v590_v13 }
 0x386   :  { %v589_v14 = vpop.xlane.xlu1 %588 }
 0x387   :  { %v597_v16 = vsub.f32 %v2956_v6, %v589_v14  ;;  %v586_v17 = vpop.xlane.xlu0 %585 }
 0x388   :  { %v596_v18 = vsub.f32 %v487_v7, %v586_v17 }
 0x389   :  { %v602_v19 = vmul.f32 1.442695, %v597_v16 }
 0x38a   :  { %v600_v20 = vmul.f32 1.442695, %v596_v18 }
 0x38b   :  { %3345 = vpow2.f32 %v602_v19 }
 0x38c   :  { %3347 = vpow2.f32 %v600_v20 }
 0x38e   :  { %v595_v22 = vpop.xlane.xlu1 %594 }
 0x38f   :  { %v599_v24 = vsub.f32 %v2963_v10, %v595_v22  ;;  %v592_v25 = vpop.xlane.xlu0 %591 }
 0x390   :  { %v598_v26 = vsub.f32 %v574_v11, %v592_v25 }
 0x391   :  { %v606_v27 = vmul.f32 1.442695, %v599_v24 }
 0x392   :  { %v604_v28 = vmul.f32 1.442695, %v598_v26 }
 0x393   :  { %3349 = vpow2.f32 %v606_v27 }
 0x394   :  { %3351 = vpow2.f32 %v604_v28 }
 0x395   :  { %v3346_v29 = vpop.eup %3345 }
 0x396   :  { %v3348_v30 = vpop.eup %3347  ;;  %v611_v32 = vsel %vm583_vm2, %v3346_v29, 0.0 }
 0x397   :  { %612 = vadd.xlane.f32.xlu1 %v611_v32  ;;  %v608_v33 = vsel %vm583_vm2, %v3348_v30, 0.0 }
 0x398   :  { %609 = vadd.xlane.f32.xlu0 %v608_v33 }
 0x39d   :  { %v3350_v34 = vpop.eup %3349 }
 0x39e   :  { %v3352_v35 = vpop.eup %3351  ;;  %v617_v36 = vsel %vm583_vm2, %v3350_v34, 0.0 }
 0x39f   :  { %618 = vadd.xlane.f32.xlu1 %v617_v36  ;;  %v614_v37 = vsel %vm583_vm2, %v3352_v35, 0.0 }
 0x3a0   :  { %615 = vadd.xlane.f32.xlu0 %v614_v37 }
 0x3b0   :  { %881 = vrot.lane.b32.xlu1 %v3681_v63, %s3442_s4 }
 0x3b4   :  { %883 = vrot.lane.b32.xlu1 %v3691_v1, %s3442_s4 }
 0x3b6   :  { %3168 = vrot.lane.b32.xlu0 %v3679_v62, %s3442_s4 }
 0x424   :  { %v613_v39 = vpop.xlane.xlu1 %612 }
 0x425   :  { %3353 = vrcp.f32 %v613_v39  ;;  %v610_v40 = vpop.xlane.xlu0 %609 }
 0x426   :  { %3355 = vrcp.f32 %v610_v40 }
 0x42c   :  { %v619_v43 = vpop.xlane.xlu1 %618 }
 0x42d   :  { %3357 = vrcp.f32 %v619_v43  ;;  %v616_v44 = vpop.xlane.xlu0 %615 }
 0x42e   :  { %3359 = vrcp.f32 %v616_v44 }
 0x42f   :  { %v3354_v45 = vpop.eup %3353 }
 0x430   :  { %v3356_v46 = vpop.eup %3355  ;;  %v625_v49 = vmul.f32 %v3354_v45, %v3346_v29  ;;  %v882_v61 = vpop.permute.xlu1 %881 }
 0x431   :  { %v3169_v47 = vpop.permute.xlu0 %3168  ;;  %v624_v48 = vmul.f32 %v3356_v46, %v3348_v30 }
 0x432   :  { %v3171_v50 = vunpack.i.h.bf16 %v3169_v47  ;;  %v3170_v53 = vunpack.i.l.bf16 %v3169_v47 }
 0x433   :  { %2968 = vmatprep.mubr.msk.f32.mxu1 %vm583_vm2, %v624_v48 }
 0x434   :  { %v3108_v54 = vpack.c.bf16 %v3171_v50, %v3170_v53  ;;  %2969 = vmatmul.mubr.msk.f32.vlgmr.msra.gmra.mrb[8].mxu1 %vm583_vm2, %v625_v49  ;;  %v884_v0 = vpop.permute.xlu1 %883 }
 0x435   :  { %3101 = vmatpush3.bf16.msra.mxu1 %v3671_v51 }
 0x436   :  { %3110 = vmatprep.subr.msk.bf16.mxu1 %vm3661_vm1, %v3108_v54 }
 0x437   :  { %v3358_v56 = vpop.eup %3357 }
 0x438   :  { %v3360_v57 = vpop.eup %3359  ;;  %v627_v59 = vmul.f32 %v3358_v56, %v3350_v34 }
 0x439   :  { %v626_v58 = vmul.f32 %v3360_v57, %v3352_v35 }
 0x43b   :  { %2975 = vmatprep.mubr.msk.f32.mxu1 %vm583_vm2, %v626_v58 }
 0x43c   :  { %2976 = vmatmul.mubr.msk.f32.vlgmr.msra.gmra.mrb[10].mxu1 %vm583_vm2, %v627_v59 }
 0x43d   :  { %2989 = vmatprep.mubr.msk.f32.mxu1 %vm408_vm0, %v882_v61 }
 0x43e   :  { %3113 = vmatpush3.bf16.xpose.msk.msra.mxu1 %vm3661_vm1, %v3108_v54 }
 0x445   :  { %2990 = vmatmul.mubr.msk.f32.vlgmr.msra.gmra.mrb[12].mxu1 %vm408_vm0, %v884_v0 }
 0x507   :  { %v3721_v51 = vpop.f32.mrb[8].mxu1 }
 0x508   :  { %v3723_v6 = vpop.f32.mrb[9].mxu1 }
 0x50f   :  { %v3725_v7 = vpop.f32.mrb[10].mxu1 }
 0x510   :  { %v3727_v8 = vpop.f32.mrb[11].mxu1 }
 0x518   :  { %v2991_v9 = vpop.f32.mrb[12].mxu1 }
 0x519   :  { %v963_v10 = vpop.f32.mrb[13].mxu1  ;;  %v981_v11 = vsel %vm583_vm2, %v2991_v9, -inf }
 0x51a   :  { %982 = vmax.xlane.f32.xlu0 %v981_v11  ;;  %v978_v12 = vsel %vm583_vm2, %v963_v10, -inf }
 0x51b   :  { %979 = vmax.xlane.f32.xlu1 %v978_v12 }
 0x52c   :  { %3173 = vrot.lane.b32.xlu1 %v3673_v52, %s3442_s4 }
 0x530   :  { %3183 = vrot.lane.b32.xlu1 %v3665_v42, %s3443_s17 }
 0x534   :  { %790 = vrot.lane.b32.xlu1 %v3655_v31, %s3442_s4 }
 0x538   :  { %792 = vrot.lane.b32.xlu1 %v3677_v60, %s3442_s4 }
 0x53c   :  { %1194 = vrot.lane.b32.xlu1 %v3655_v31, %s3443_s17 }
 0x540   :  { %1285 = vrot.lane.b32.xlu1 %v3681_v63, %s3443_s17 }
 0x5a7   :  { %v983_v13 = vpop.xlane.xlu0 %982 }
 0x5a8   :  { %v987_v14 = vsub.f32 %v2991_v9, %v983_v13  ;;  %v980_v16 = vpop.xlane.xlu1 %979 }
 0x5a9   :  { %v986_v17 = vsub.f32 %v963_v10, %v980_v16 }
 0x5aa   :  { %v994_v18 = vmul.f32 1.442695, %v987_v14 }
 0x5ab   :  { %v992_v19 = vmul.f32 1.442695, %v986_v17 }
 0x5ac   :  { %3361 = vpow2.f32 %v994_v18  ;;  %v3174_v20 = vpop.permute.xlu1 %3173 }
 0x5ad   :  { %v3176_v22 = vunpack.i.h.bf16 %v3174_v20  ;;  %v3175_v24 = vunpack.i.l.bf16 %v3174_v20  ;;  %3363 = vpow2.f32 %v992_v19 }
 0x5af   :  { %v3118_v25 = vpack.c.bf16 %v3176_v22, %v3175_v24 }
 0x5b0   :  { %v3184_v26 = vpop.permute.xlu1 %3183 }
 0x5b1   :  { %v3186_v27 = vunpack.i.h.bf16 %v3184_v26  ;;  %v3185_v28 = vunpack.i.l.bf16 %v3184_v26  ;;  %3119 = vmatprep.subr.bf16.mxu1 %v3118_v25 }
 0x5b2   :  { %3121 = vmatpush3.bf16.msra.mxu1 %v3118_v25 }
 0x5b3   :  { %v3122_v29 = vpack.c.bf16 %v3186_v27, %v3185_v28 }
 0x5b4   :  { %v791_v30 = vpop.permute.xlu1 %790 }
 0x5b5   :  { %2982 = vmatprep.mubr.msk.f32.mxu0 %vm408_vm0, %v791_v30  ;;  %3124 = vmatprep.subr.msk.bf16.mxu1 %vm3661_vm1, %v3122_v29 }
 0x5b6   :  { %v3362_v32 = vpop.eup %3361 }
 0x5b7   :  { %v1005_v33 = vsel %vm583_vm2, %v3362_v32, 0.0  ;;  %v3364_v34 = vpop.eup %3363 }
 0x5b8   :  { %1006 = vadd.xlane.f32.xlu0 %v1005_v33  ;;  %v1002_v35 = vsel %vm583_vm2, %v3364_v34, 0.0  ;;  %v793_v46 = vpop.permute.xlu1 %792 }
 0x5bc   :  { %1003 = vadd.xlane.f32.xlu0 %v1002_v35  ;;  %v1195_v56 = vpop.permute.xlu1 %1194 }
 0x5c0   :  { %v1286_v59 = vpop.permute.xlu1 %1285 }
 0x5d2   :  { %3178 = vrot.lane.b32.xlu0 %v3665_v42, %s3442_s4 }
 0x5d6   :  { %3188 = vrot.lane.b32.xlu0 %v3679_v62, %s3443_s17 }
 0x5da   :  { %1196 = vrot.lane.b32.xlu0 %v3677_v60, %s3443_s17 }
 0x5de   :  { %1287 = vrot.lane.b32.xlu0 %v3691_v1, %s3443_s17 }
 0x645   :  { %v1007_v36 = vpop.xlane.xlu0 %1006 }
 0x646   :  { %3365 = vrcp.f32 %v1007_v36 }
 0x649   :  { %v1004_v37 = vpop.xlane.xlu0 %1003 }
 0x64a   :  { %3367 = vrcp.f32 %v1004_v37 }
 0x64d   :  { %v3179_v39 = vpop.permute.xlu0 %3178 }
 0x64e   :  { %v3181_v40 = vunpack.i.h.bf16 %v3179_v39  ;;  %v3180_v43 = vunpack.i.l.bf16 %v3179_v39 }
 0x650   :  { %v3102_v44 = vpack.c.bf16 %v3181_v40, %v3180_v43  ;;  %v3366_v47 = vpop.eup %3365 }
 0x651   :  { %v3189_v45 = vpop.permute.xlu0 %3188  ;;  %v1015_v54 = vmul.f32 %v3366_v47, %v3362_v32 }
 0x652   :  { %3104 = vmatprep.subr.msk.bf16.mxu0 %vm3661_vm1, %v3102_v44  ;;  %v3191_v49 = vunpack.i.h.bf16 %v3189_v45  ;;  %v3190_v50 = vunpack.i.l.bf16 %v3189_v45 }
 0x653   :  { %3107 = vmatpush3.bf16.xpose.msk.msra.mxu0 %vm3661_vm1, %v3102_v44 }
 0x654   :  { %v3368_v48 = vpop.eup %3367  ;;  %v3128_v57 = vpack.c.bf16 %v3191_v49, %v3190_v50 }
 0x655   :  { %v1014_v53 = vmul.f32 %v3368_v48, %v3364_v34  ;;  %v1197_v58 = vpop.permute.xlu0 %1196 }
 0x657   :  { %3003 = vmatprep.mubr.msk.f32.mxu1 %vm583_vm2, %v1014_v53 }
 0x658   :  { %3004 = vmatmul.mubr.msk.f32.vlgmr.msra.gmra.mrb[14].mxu1 %vm583_vm2, %v1015_v54 }
 0x659   :  { %3127 = vmatpush3.bf16.xpose.msk.msra.mxu1 %vm3661_vm1, %v3122_v29  ;;  %3010 = vmatprep.mubr.msk.f32.mxu1 %vm408_vm0, %v1195_v56  ;;  %v1288_v61 = vpop.permute.xlu0 %1287 }
 0x65a   :  { %3130 = vmatprep.subr.msk.bf16.mxu1 %vm3661_vm1, %v3128_v57  ;;  %2983 = vmatmul.mubr.msk.f32.vlgmr.msra.gmra.mrb[8].mxu0 %vm408_vm0, %v793_v46 }
 0x660   :  { %3011 = vmatmul.mubr.msk.f32.vlgmr.msra.gmra.mrb[16].mxu1 %vm408_vm0, %v1197_v58 }
 0x661   :  { %3133 = vmatpush3.bf16.xpose.msk.msra.mxu1 %vm3661_vm1, %v3128_v57  ;;  %3017 = vmatprep.mubr.msk.f32.mxu1 %vm408_vm0, %v1286_v59 }
 0x668   :  { %3018 = vmatmul.mubr.msk.f32.vlgmr.msra.gmra.mrb[18].mxu1 %vm408_vm0, %v1288_v61 }
 0x72b   :  { %v3773_v0 = vpop.f32.mrb[14].mxu1 }
 0x72c   :  { %v3775_v9 = vpop.f32.mrb[15].mxu1 }
 0x72d   :  { %v3232_v10 = vpack.i.bf16 %v3773_v0, %v3775_v9  ;;  %v2984_v11 = vpop.f32.mrb[8].mxu0 }
 0x72e   :  { %v872_v12 = vpop.f32.mrb[9].mxu0  ;;  %v975_v13 = vsel %vm583_vm2, %v2984_v11, -inf }
 0x72f   :  { %976 = vmax.xlane.f32.xlu0 %v975_v13  ;;  %v972_v14 = vsel %vm583_vm2, %v872_v12, -inf }
 0x730   :  { %973 = vmax.xlane.f32.xlu1 %v972_v14 }
 0x733   :  { %v3012_v16 = vpop.f32.mrb[16].mxu1 }
 0x734   :  { %v1276_v17 = vpop.f32.mrb[17].mxu1  ;;  %v1379_v18 = vsel %vm583_vm2, %v3012_v16, -inf }
 0x735   :  { %1380 = vmax.xlane.f32.xlu0 %v1379_v18  ;;  %v1376_v19 = vsel %vm583_vm2, %v1276_v17, -inf }
 0x739   :  { %1377 = vmax.xlane.f32.xlu0 %v1376_v19 }
 0x73b   :  { %v3019_v20 = vpop.f32.mrb[18].mxu1 }
 0x73c   :  { %v3783_v22 = vpop.f32.mrb[19].mxu1  ;;  %v1385_v24 = vsel %vm583_vm2, %v3019_v20, -inf }
 0x73d   :  { %1386 = vmax.xlane.f32.xlu0 %v1385_v24 }
 0x7bc   :  { %v977_v25 = vpop.xlane.xlu0 %976 }
 0x7bd   :  { %v985_v26 = vsub.f32 %v2984_v11, %v977_v25  ;;  %v974_v27 = vpop.xlane.xlu1 %973 }
 0x7be   :  { %v984_v28 = vsub.f32 %v872_v12, %v974_v27 }
 0x7bf   :  { %v990_v29 = vmul.f32 1.442695, %v985_v26 }
 0x7c0   :  { %v988_v30 = vmul.f32 1.442695, %v984_v28 }
 0x7c1   :  { %3369 = vpow2.f32 %v990_v29 }
 0x7c2   :  { %3371 = vpow2.f32 %v988_v30  ;;  %v1381_v36 = vpop.xlane.xlu0 %1380 }
 0x7c3   :  { %v1389_v39 = vsub.f32 %v3012_v16, %v1381_v36 }
 0x7c5   :  { %v1394_v43 = vmul.f32 1.442695, %v1389_v39 }
 0x7c6   :  { %v1378_v37 = vpop.xlane.xlu0 %1377 }
 0x7c7   :  { %3373 = vpow2.f32 %v1394_v43  ;;  %v1388_v50 = vsub.f32 %v1276_v17, %v1378_v37 }
 0x7c9   :  { %v1392_v53 = vmul.f32 1.442695, %v1388_v50 }
 0x7ca   :  { %v1387_v40 = vpop.xlane.xlu0 %1386 }
 0x7cb   :  { %v3370_v32 = vpop.eup %3369  ;;  %v1391_v44 = vsub.f32 %v3019_v20, %v1387_v40 }
 0x7cc   :  { %v3372_v33 = vpop.eup %3371  ;;  %v999_v34 = vsel %vm583_vm2, %v3370_v32, 0.0 }
 0x7cd   :  { %1000 = vadd.xlane.f32.xlu0 %v999_v34  ;;  %v996_v35 = vsel %vm583_vm2, %v3372_v33, 0.0  ;;  %v1398_v45 = vmul.f32 1.442695, %v1391_v44 }
 0x7ce   :  { %997 = vadd.xlane.f32.xlu1 %v996_v35 }
 0x7cf   :  { %3375 = vpow2.f32 %v1398_v45 }
 0x7d0   :  { %3377 = vpow2.f32 %v1392_v53 }
 0x7d1   :  { %v3796_v46 = vpop.eup %3373 }
 0x7d2   :  { %v1403_v47 = vsel %vm583_vm2, %v3796_v46, 0.0 }
 0x7d9   :  { %v3800_v48 = vpop.eup %3375 }
 0x7da   :  { %v1409_v49 = vsel %vm583_vm2, %v3800_v48, 0.0  ;;  %v3378_v54 = vpop.eup %3377 }
 0x7db   :  { %v1400_v56 = vsel %vm583_vm2, %v3378_v54, 0.0 }
 0x7df   :  { %3193 = vrot.lane.b32.xlu1 %v3675_v55, %s3442_s4 }
 0x7e3   :  { %3203 = vrot.lane.b32.xlu1 %v3673_v52, %s3443_s17  ;;  %3198 = vrot.lane.b32.xlu0 %v3675_v55, %s3443_s17 }
 0x7e7   :  { %3208 = vrot.lane.b32.xlu1 %v3665_v42, %s3444_s18  ;;  %v1382_v42 = vsel %vm583_vm2, %v3783_v22, -inf }
 0x802   :  { %1404 = vadd.xlane.f32.xlu0 %v1403_v47 }
 0x806   :  { %1410 = vadd.xlane.f32.xlu0 %v1409_v49 }
 0x80b   :  { %1383 = vmax.xlane.f32.xlu1 %v1382_v42 }
 0x81c   :  { %1594 = vrot.lane.b32.xlu0 %v3655_v31, %s3444_s18  ;;  %3213 = vrot.lane.b32.xlu1 %v3679_v62, %s3444_s18 }
 0x820   :  { %1685 = vrot.lane.b32.xlu0 %v3681_v63, %s3444_s18 }
 0x840   :  { %1401 = vadd.xlane.f32.xlu1 %v1400_v56 }
 0x851   :  { %1596 = vrot.lane.b32.xlu1 %v3677_v60, %s3444_s18 }
 0x85a   :  { %v1001_v57 = vpop.xlane.xlu0 %1000 }
 0x85b   :  { %3379 = vrcp.f32 %v1001_v57  ;;  %v998_v58 = vpop.xlane.xlu1 %997 }
 0x85c   :  { %3381 = vrcp.f32 %v998_v58 }
 0x85e   :  { %v3199_v31 = vpop.permute.xlu0 %3198 }
 0x85f   :  { %v3194_v59 = vpop.permute.xlu1 %3193  ;;  %v3201_v62 = vunpack.i.h.bf16 %v3199_v31  ;;  %v3200_v61 = vunpack.i.l.bf16 %v3199_v31 }
 0x860   :  { %v3196_v11 = vunpack.i.h.bf16 %v3194_v59  ;;  %v3195_v63 = vunpack.i.l.bf16 %v3194_v59 }
 0x861   :  { %v3134_v14 = vpack.c.bf16 %v3201_v62, %v3200_v61 }
 0x862   :  { %v3114_v12 = vpack.c.bf16 %v3196_v11, %v3195_v63 }
 0x863   :  { %v3204_v13 = vpop.permute.xlu1 %3203 }
 0x864   :  { %v3206_v16 = vunpack.i.h.bf16 %v3204_v13  ;;  %v3205_v17 = vunpack.i.l.bf16 %v3204_v13  ;;  %3115 = vmatprep.subr.bf16.mxu0 %v3114_v12 }
 0x865   :  { %v3380_v18 = vpop.eup %3379  ;;  %3117 = vmatpush3.bf16.msra.mxu0 %v3114_v12 }
 0x866   :  { %v3382_v19 = vpop.eup %3381  ;;  %v3138_v60 = vpack.c.bf16 %v3206_v16, %v3205_v17  ;;  %3135 = vmatprep.subr.bf16.mxu0 %v3134_v14  ;;  %v1013_v25 = vmul.f32 %v3380_v18, %v3370_v32 }
 0x867   :  { %v3209_v20 = vpop.permute.xlu1 %3208  ;;  %v1012_v24 = vmul.f32 %v3382_v19, %v3372_v33 }
 0x868   :  { %v3211_v26 = vunpack.i.h.bf16 %v3209_v20  ;;  %v3210_v27 = vunpack.i.l.bf16 %v3209_v20  ;;  %3139 = vmatprep.subr.bf16.mxu1 %v3138_v60 }
 0x869   :  { %2996 = vmatprep.mubr.msk.f32.mxu0 %vm583_vm2, %v1012_v24  ;;  %3141 = vmatpush3.bf16.msra.mxu1 %v3138_v60 }
 0x86a   :  { %v3142_v28 = vpack.c.bf16 %v3211_v26, %v3210_v27  ;;  %2997 = vmatmul.mubr.msk.f32.vlgmr.msra.gmra.mrb[10].mxu0 %vm583_vm2, %v1013_v25 }
 0x86b   :  { %3137 = vmatpush3.bf16.msra.mxu0 %v3134_v14 }
 0x86c   :  { %3144 = vmatprep.subr.msk.bf16.mxu0 %vm3661_vm1, %v3142_v28 }
 0x88f   :  { %v1405_v40 = vpop.xlane.xlu0 %1404 }
 0x898   :  { %v1384_v29 = vpop.xlane.xlu1 %1383 }
 0x899   :  { %v1390_v30 = vsub.f32 %v3783_v22, %v1384_v29  ;;  %v1411_v22 = vpop.xlane.xlu0 %1410 }
 0x89b   :  { %v1396_v34 = vmul.f32 1.442695, %v1390_v30 }
 0x89c   :  { %v3214_v35 = vpop.permute.xlu1 %3213 }
 0x89d   :  { %3383 = vpow2.f32 %v1396_v34  ;;  %v3216_v32 = vunpack.i.h.bf16 %v3214_v35  ;;  %v3215_v33 = vunpack.i.l.bf16 %v3214_v35  ;;  %v1595_v42 = vpop.permute.xlu0 %1594 }
 0x89e   :  { %3385 = vrcp.f32 %v1405_v40 }
 0x89f   :  { %v3148_v36 = vpack.c.bf16 %v3216_v32, %v3215_v33 }
 0x8a1   :  { %3150 = vmatprep.subr.msk.bf16.mxu1 %vm3661_vm1, %v3148_v36  ;;  %v1686_v59 = vpop.permute.xlu0 %1685 }
 0x8a7   :  { %v3384_v37 = vpop.eup %3383 }
 0x8a8   :  { %v1406_v39 = vsel %vm583_vm2, %v3384_v37, 0.0  ;;  %v3386_v44 = vpop.eup %3385 }
 0x8a9   :  { %1407 = vadd.xlane.f32.xlu1 %v1406_v39  ;;  %v1417_v49 = vmul.f32 %v3386_v44, %v3796_v46 }
 0x8ba   :  { %1687 = vrot.lane.b32.xlu1 %v3691_v1, %s3444_s18 }
 0x8cd   :  { %v1402_v43 = vpop.xlane.xlu1 %1401 }
 0x8ce   :  { %3387 = vrcp.f32 %v1402_v43 }
 0x8cf   :  { %3389 = vrcp.f32 %v1411_v22 }
 0x8d1   :  { %v1597_v1 = vpop.permute.xlu1 %1596 }
 0x8d8   :  { %v3388_v45 = vpop.eup %3387 }
 0x8d9   :  { %v1416_v47 = vmul.f32 %v3388_v45, %v3378_v54  ;;  %v3390_v46 = vpop.eup %3389 }
 0x8da   :  { %v1419_v31 = vmul.f32 %v3390_v46, %v3800_v48 }
 0x8db   :  { %3024 = vmatprep.mubr.msk.f32.mxu0 %vm583_vm2, %v1416_v47 }
 0x8dc   :  { %3025 = vmatmul.mubr.msk.f32.vlgmr.msra.gmra.mrb[12].mxu0 %vm583_vm2, %v1417_v49 }
 0x8dd   :  { %3147 = vmatpush3.bf16.xpose.msk.msra.mxu0 %vm3661_vm1, %v3142_v28  ;;  %3038 = vmatprep.mubr.msk.f32.mxu0 %vm408_vm0, %v1595_v42 }
 0x8e4   :  { %3039 = vmatmul.mubr.msk.f32.vlgmr.msra.gmra.mrb[14].mxu0 %vm408_vm0, %v1597_v1 }
 0x936   :  { %v1408_v50 = vpop.xlane.xlu1 %1407 }
 0x937   :  { %3391 = vrcp.f32 %v1408_v50 }
 0x93a   :  { %v1688_v62 = vpop.permute.xlu1 %1687 }
 0x93d   :  { %v2998_v53 = vpop.f32.mrb[10].mxu0 }
 0x93e   :  { %v1096_v54 = vpop.f32.mrb[11].mxu0 }
 0x93f   :  { %v3227_v56 = vpack.i.bf16 %v2998_v53, %v1096_v54 }
 0x941   :  { %v3392_v57 = vpop.eup %3391 }
 0x942   :  { %v1418_v58 = vmul.f32 %v3392_v57, %v3384_v37 }
 0x944   :  { %3031 = vmatprep.mubr.msk.f32.mxu1 %vm583_vm2, %v1418_v58 }
 0x945   :  { %3032 = vmatmul.mubr.msk.f32.vlgmr.msra.gmra.mrb[20].mxu1 %vm583_vm2, %v1419_v31 }
 0x946   :  { %3153 = vmatpush3.bf16.xpose.msk.msra.mxu1 %vm3661_vm1, %v3148_v36  ;;  %3045 = vmatprep.mubr.msk.f32.mxu1 %vm408_vm0, %v1686_v59 }
 0x94d   :  { %3046 = vmatmul.mubr.msk.f32.vlgmr.msra.gmra.mrb[22].mxu1 %vm408_vm0, %v1688_v62 }
 0x9af   :  { %v3026_v61 = vpop.f32.mrb[12].mxu0 }
 0x9b0   :  { %v1498_v11 = vpop.f32.mrb[13].mxu0 }
 0x9b1   :  { %v3237_v63 = vpack.i.bf16 %v3026_v61, %v1498_v11 }
 0x9b7   :  { %v3040_v12 = vpop.f32.mrb[14].mxu0 }
 0x9b8   :  { %v1676_v13 = vpop.f32.mrb[15].mxu0  ;;  %v1779_v48 = vsel %vm583_vm2, %v3040_v12, -inf }
 0x9b9   :  { %1780 = vmax.xlane.f32.xlu1 %v1779_v48  ;;  %v1776_v14 = vsel %vm583_vm2, %v1676_v13, -inf  ;;  %v3292_v48 = vld [vmem:[%s4088_s5 + $0x18] sm:$0xff]  }
 0x9ba   :  { %1777 = vmax.xlane.f32.xlu0 %v1776_v14  ;;  %v3293_v14 = vld [vmem:[%s4088_s5 + $0x20] sm:$0xff]  }
 0xa18   :  { %v3033_v16 = vpop.f32.mrb[20].mxu1 }
 0xa19   :  { %v1585_v17 = vpop.f32.mrb[21].mxu1 }
 0xa1a   :  { %v3242_v38 = vpack.i.bf16 %v3033_v16, %v1585_v17  ;;  %v3294_v16 = vld [vmem:[%s4088_s5 + $0x28] sm:$0xff]   ;;  %v3295_v17 = vld [vmem:[%s4088_s5 + $0x30] sm:$0xff]  }
 0xa20   :  { %v3047_v18 = vpop.f32.mrb[22].mxu1 }
 0xa21   :  { %v1767_v19 = vpop.f32.mrb[23].mxu1  ;;  %v1785_v20 = vsel %vm583_vm2, %v3047_v18, -inf }
 0xa22   :  { %v1782_v60 = vsel %vm583_vm2, %v1767_v19, -inf }
 0xa23   :  { %1783 = vmax.xlane.f32.xlu0 %v1782_v60 }
 0xa27   :  { %1786 = vmax.xlane.f32.xlu0 %v1785_v20 }
 0xa46   :  { %v1781_v24 = vpop.xlane.xlu1 %1780 }
 0xa47   :  { %v1789_v25 = vsub.f32 %v3040_v12, %v1781_v24  ;;  %v1778_v26 = vpop.xlane.xlu0 %1777  ;;  %v3290_v12 = vld [vmem:[%s4088_s5 + $0x8] sm:$0xff]  }
 0xa48   :  { %v1788_v27 = vsub.f32 %v1676_v13, %v1778_v26  ;;  %v3291_v13 = vld [vmem:[%s4088_s5 + $0x10] sm:$0xff]  }
 0xa49   :  { %v1794_v28 = vmul.f32 1.442695, %v1789_v25 }
 0xa4a   :  { %v1792_v29 = vmul.f32 1.442695, %v1788_v27 }
 0xa4b   :  { %3393 = vpow2.f32 %v1794_v28 }
 0xa4c   :  { %3395 = vpow2.f32 %v1792_v29 }
 0xa55   :  { %v3394_v30 = vpop.eup %3393 }
 0xa56   :  { %v3396_v34 = vpop.eup %3395  ;;  %v1803_v35 = vsel %vm583_vm2, %v3394_v30, 0.0 }
 0xa57   :  { %1804 = vadd.xlane.f32.xlu1 %v1803_v35  ;;  %v1800_v32 = vsel %vm583_vm2, %v3396_v34, 0.0 }
 0xa58   :  { %1801 = vadd.xlane.f32.xlu0 %v1800_v32 }
 0xab0   :  { %v1784_v33 = vpop.xlane.xlu0 %1783 }
 0xab1   :  { %v1790_v36 = vsub.f32 %v1767_v19, %v1784_v33 }
 0xab3   :  { %v1796_v37 = vmul.f32 1.442695, %v1790_v36 }
 0xab4   :  { %v1787_v39 = vpop.xlane.xlu0 %1786 }
 0xab5   :  { %3397 = vpow2.f32 %v1796_v37  ;;  %v1791_v40 = vsub.f32 %v3047_v18, %v1787_v39 }
 0xab7   :  { %v1798_v43 = vmul.f32 1.442695, %v1791_v40 }
 0xab9   :  { %3399 = vpow2.f32 %v1798_v43 }
 0xabf   :  { %v3398_v22 = vpop.eup %3397 }
 0xac0   :  { %v1806_v44 = vsel %vm583_vm2, %v3398_v22, 0.0 }
 0xac1   :  { %1807 = vadd.xlane.f32.xlu0 %v1806_v44 }
 0xac3   :  { %v3400_v45 = vpop.eup %3399 }
 0xac4   :  { %v1809_v47 = vsel %vm583_vm2, %v3400_v45, 0.0 }
 0xac5   :  { %1810 = vadd.xlane.f32.xlu1 %v1809_v47 }
 0xad6   :  { %3223 = vrot.lane.b32.xlu1 %v3673_v52, %s3444_s18 }
 0xad7   :  { %3218 = vrot.lane.b32.xlu0 %v3675_v55, %s3444_s18 }
 0xada   :  { %3228 = vrot.lane.b32.xlu1 %v3227_v56, %s3444_s18 }
 0xadb   :  { %3238 = vrot.lane.b32.xlu0 %v3237_v63, %s3443_s17  ;;  %v3289_v63 = vld [vmem:[%s4088_s5] sm:$0xff]  }
 0xade   :  { %3233 = vrot.lane.b32.xlu1 %v3232_v10, %s3444_s18 }
 0xae2   :  { %3243 = vrot.lane.b32.xlu1 %v3242_v38, %s3443_s17  ;;  %v3296_v38 = vld [vmem:[%s4088_s5 + $0x38] sm:$0xff]  }
 0xae4   :  { %v1805_v52 = vpop.xlane.xlu1 %1804 }
 0xae5   :  { %v1802_v49 = vpop.xlane.xlu0 %1801 }
 0xae6   :  { %3401 = vrcp.f32 %v1802_v49 }
 0xae7   :  { %3403 = vrcp.f32 %v1805_v52 }
 0xaf0   :  { %v3402_v42 = vpop.eup %3401 }
 0xaf1   :  { %v1816_v1 = vmul.f32 %v3402_v42, %v3396_v34  ;;  %v3404_v0 = vpop.eup %3403 }
 0xaf2   :  { %v1817_v31 = vmul.f32 %v3404_v0, %v3394_v30 }
 0xaf3   :  { %3052 = vmatprep.mubr.msk.f32.mxu0 %vm583_vm2, %v1816_v1 }
 0xb4e   :  { %v1808_v55 = vpop.xlane.xlu0 %1807 }
 0xb4f   :  { %3405 = vrcp.f32 %v1808_v55 }
 0xb52   :  { %v1811_v50 = vpop.xlane.xlu1 %1810  ;;  %v3219_v53 = vpop.permute.xlu0 %3218 }
 0xb53   :  { %3407 = vrcp.f32 %v1811_v50  ;;  %v3221_v54 = vunpack.i.h.bf16 %v3219_v53  ;;  %v3220_v56 = vunpack.i.l.bf16 %v3219_v53 }
 0xb55   :  { %v3154_v46 = vpack.c.bf16 %v3221_v54, %v3220_v56 }
 0xb56   :  { %v3224_v9 = vpop.permute.xlu1 %3223  ;;  %v3239_v30 = vpop.permute.xlu0 %3238 }
 0xb57   :  { %v3226_v10 = vunpack.i.h.bf16 %v3224_v9  ;;  %v3225_v57 = vunpack.i.l.bf16 %v3224_v9  ;;  %3155 = vmatprep.subr.bf16.mxu0 %v3154_v46  ;;  %v3241_v32 = vunpack.i.h.bf16 %v3239_v30  ;;  %v3240_v33 = vunpack.i.l.bf16 %v3239_v30 }
 0xb58   :  { %3157 = vmatpush3.bf16.msra.mxu0 %v3154_v46 }
 0xb59   :  { %v3406_v58 = vpop.eup %3405  ;;  %v3158_v59 = vpack.c.bf16 %v3226_v10, %v3225_v57  ;;  %3062 = vmatprep.subr.bf16.mxu0 %v3289_v63 }
 0xb5a   :  { %v1818_v62 = vmul.f32 %v3406_v58, %v3398_v22  ;;  %v3229_v26 = vpop.permute.xlu1 %3228 }
 0xb5b   :  { %3053 = vmatmul.mubr.msk.f32.vlgmr.msra.gmra.mrb[16].mxu0 %vm583_vm2, %v1817_v31  ;;  %3159 = vmatprep.subr.bf16.mxu1 %v3158_v59  ;;  %v3231_v28 = vunpack.i.h.bf16 %v3229_v26  ;;  %v3230_v29 = vunpack.i.l.bf16 %v3229_v26 }
 0xb5c   :  { %3161 = vmatpush3.bf16.msra.mxu1 %v3158_v59  ;;  %3059 = vmatprep.mubr.msk.f32.mxu1 %vm583_vm2, %v1818_v62 }
 0xb5d   :  { %v3408_v61 = vpop.eup %3407  ;;  %3063 = vmatpush3.bf16.msra.mxu0 %v3289_v63  ;;  %v2043_v34 = vsel %vm408_vm0, %v3721_v51, %v3231_v28  ;;  %v2042_v35 = vsel %vm408_vm0, %v3723_v6, %v3230_v29 }
 0xb5e   :  { %v1819_v11 = vmul.f32 %v3408_v61, %v3400_v45  ;;  %3064 = vmatprep.subr.bf16.mxu0 %v3290_v12  ;;  %v3234_v27 = vpop.permute.xlu1 %3233  ;;  %v2047_v44 = vsel %vm2046_vm3, %v2042_v35, %v3240_v33  ;;  %v2048_v45 = vsel %vm2046_vm3, %v2043_v34, %v3241_v32  ;;  %v3305_v34 = vld [vmem:[%s4092_s9 + $0x24] ss:$8 sps:$4 sm:$0xff]   ;;  %v3303_v35 = vld [vmem:[%s4092_s9 + $0x20] ss:$8 sps:$4 sm:$0xff]   ;;  %v3308_v32 = vld [vmem:[%s4092_s9 + $0x34] ss:$8 sps:$4 sm:$0xff]  }
 0xb5f   :  { %v3236_v43 = vunpack.i.h.bf16 %v3234_v27  ;;  %v3235_v22 = vunpack.i.l.bf16 %v3234_v27  ;;  %v3306_v33 = vld [vmem:[%s4092_s9 + $0x30] ss:$8 sps:$4 sm:$0xff]  }
 0xb60   :  { %3060 = vmatmul.mubr.msk.f32.vlgmr.msra.gmra.mrb[24].mxu1 %vm583_vm2, %v1819_v11 }
 0xb61   :  { %2390 = vmatprep.mubr.bf16.mxu1 %v3441_v41  ;;  %3065 = vmatpush3.bf16.msra.mxu0 %v3290_v12  ;;  %v2045_v52 = vsel %vm408_vm0, %v3725_v7, %v3236_v43  ;;  %v2044_v55 = vsel %vm408_vm0, %v3727_v8, %v3235_v22  ;;  %v2746_v7 = vld [vmem:[%s4089_s6] ss:$0 sm:$0xff]  ;;  %v3317_v43 = vld [vmem:[%s4092_s9 + $0x64] ss:$8 sps:$4 sm:$0xff]   ;;  %s3445_s6 = smov [#allocation2]  }
 0xb62   :  { %3066 = vmatprep.subr.bf16.mxu0 %v3291_v13  ;;  %v3244_v36 = vpop.permute.xlu1 %3243  ;;  %v3315_v22 = vld [vmem:[%s4092_s9 + $0x60] ss:$8 sps:$4 sm:$0xff]   ;;  %s2662_s2 = sshll.u32 %s3445_s6, 4  ;;  %s2663_s2 = int_to_ptr.vmem [resolvable:$true] %s2662_s2 }
 0xb63   :  { %v3246_v47 = vunpack.i.h.bf16 %v3244_v36  ;;  %v3245_v49 = vunpack.i.l.bf16 %v3244_v36  ;;  %v3311_v36 = vld [vmem:[%s4092_s9 + $0x44] ss:$8 sps:$4 sm:$0xff]   ;;  %p3422_p1 = scmp.lt.s32.totalorder %s2663_s2, %s2663_s2 }
 0xb65   :  { %3067 = vmatpush3.bf16.msra.mxu0 %v3291_v13  ;;  %v2049_v54 = vsel %vm2046_vm3, %v2044_v55, %v3245_v49  ;;  %v2050_v56 = vsel %vm2046_vm3, %v2045_v52, %v3246_v47  ;;  %v3321_v47 = vld [vmem:[%s4094_s11 + $0x40] sm:$0xff]   ;;  %v3327_v52 = vld [vmem:[%s4094_s11 + $0x58] sm:$0xff]  }
 0xb66   :  { %3068 = vmatprep.subr.bf16.mxu0 %v3292_v48  ;;  %v3322_v49 = vld [vmem:[%s4094_s11] sm:$0xff]   ;;  %v3328_v55 = vld [vmem:[%s4094_s11 + $0x18] sm:$0xff]  }
 0xb69   :  { %3069 = vmatpush3.bf16.msra.mxu0 %v3292_v48 }
 0xb6a   :  { %3070 = vmatprep.subr.bf16.mxu0 %v3293_v14 }
 0xb6d   :  { %3071 = vmatpush3.bf16.msra.mxu0 %v3293_v14 }
 0xb6e   :  { %3072 = vmatprep.subr.bf16.mxu0 %v3294_v16 }
 0xb71   :  { %3073 = vmatpush3.bf16.msra.mxu0 %v3294_v16 }
 0xb72   :  { %3074 = vmatprep.subr.bf16.mxu0 %v3295_v17 }
 0xb75   :  { %3075 = vmatpush3.bf16.msra.mxu0 %v3295_v17 }
 0xb76   :  { %3076 = vmatprep.subr.bf16.mxu0 %v3296_v38 }
 0xb79   :  { %3077 = vmatpush3.bf16.msra.mxu0 %v3296_v38 }
 0xb7a   :  { %2902 = vmatprep.subr.bf16.mxu0 %v3321_v47 }
 0xc2e   :  { %v3054_v18 = vpop.f32.mrb[16].mxu0 }
 0xc2f   :  { %v1898_v19 = vpop.f32.mrb[17].mxu0 }
 0xc30   :  { %v3247_v60 = vpack.i.bf16 %v3054_v18, %v1898_v19 }
 0xc32   :  { %3248 = vrot.lane.b32.xlu0 %v3247_v60, %s3442_s4 }
 0xc33   :  { %v3061_v20 = vpop.f32.mrb[24].mxu1 }
 0xc34   :  { %v1985_v24 = vpop.f32.mrb[25].mxu1 }
 0xc35   :  { %v3252_v25 = vpack.i.bf16 %v3061_v20, %v1985_v24 }
 0xc37   :  { %3253 = vrot.lane.b32.xlu1 %v3252_v25, %s3442_s4  ;;  %s3417_s4 = scalar_lea.vmem %s2663_s2, 32 }
 0xc38   :  { %p3418_p0 = scmp.ne.s32.totalorder %s2663_s2, %s3417_s4  ;;  %p3423_p2 = scmp.lt.s32.totalorder %s3417_s4, %s3417_s4 }
 0xc3a   :  { %p3424_p3 = por %p3423_p2, %p3422_p1 }
 0xc3c   :  { %p3425_p4 = pnand %p3424_p3, %p3418_p0 }
 0xca4   :  { %v3249_v37 = vpop.permute.xlu0 %3248 }
 0xca5   :  { %v3251_v39 = vunpack.i.h.bf16 %v3249_v37  ;;  %v3250_v40 = vunpack.i.l.bf16 %v3249_v37  ;;  %v3309_v37 = vld [vmem:[%s4092_s9 + $0x40] ss:$8 sps:$4 sm:$0xff]  }
 0xca7   :  { %v2052_v51 = vsel %vm2051_vm4, %v2047_v44, %v3250_v40  ;;  %v2053_v6 = vsel %vm2051_vm4, %v2048_v45, %v3251_v39  ;;  %v3314_v39 = vld [vmem:[%s4092_s9 + $0x54] ss:$8 sps:$4 sm:$0xff]   ;;  %v3312_v40 = vld [vmem:[%s4092_s9 + $0x50] ss:$8 sps:$4 sm:$0xff]  }
 0xca8   :  { %v2056_v42 = vpack.c.bf16 %v2053_v6, %v2052_v51  ;;  %v3320_v44 = vld [vmem:[%s4092_s9 + $0x74] ss:$8 sps:$4 sm:$0xff]   ;;  %v3318_v45 = vld [vmem:[%s4092_s9 + $0x70] ss:$8 sps:$4 sm:$0xff]   ;;  %v3323_v51 = vld [vmem:[%s4094_s11 + $0x48] sm:$0xff]  }
 0xca9   :  { %v3254_v1 = vpop.permute.xlu1 %3253  ;;  %v3324_v6 = vld [vmem:[%s4094_s11 + $0x8] sm:$0xff]  }
 0xcaa   :  { %v3256_v50 = vunpack.i.h.bf16 %v3254_v1  ;;  %v3255_v53 = vunpack.i.l.bf16 %v3254_v1  ;;  %3078 = vmatprep.mubr.bf16.mxu0 %v2056_v42  ;;  %v3325_v42 = vld [vmem:[%s4094_s11 + $0x50] sm:$0xff]  }
 0xcab   :  { %v3326_v1 = vld [vmem:[%s4094_s11 + $0x10] sm:$0xff]  }
 0xcac   :  { %v2055_v46 = vsel %vm2051_vm4, %v2050_v56, %v3256_v50  ;;  %v2054_v0 = vsel %vm2051_vm4, %v2049_v54, %v3255_v53  ;;  %v3329_v50 = vld [vmem:[%s4094_s11 + $0x60] sm:$0xff]   ;;  %v3331_v54 = vld [vmem:[%s4094_s11 + $0x68] sm:$0xff]  }
 0xcad   :  { %v2057_v9 = vpack.c.bf16 %v2055_v46, %v2054_v0  ;;  %v3330_v53 = vld [vmem:[%s4094_s11 + $0x20] sm:$0xff]  }
 0xcaf   :  { %3079 = vmatmul.mubr.bf16.vlgmr.msra.gmra.mrb[20].mxu0 %v2057_v9 }
 0xcb0   :  { %2903 = vmatpush3.bf16.msra.mxu0 %v3322_v49 }
 0xcb1   :  { %2904 = vmatprep.subr.bf16.mxu0 %v3323_v51 }
 0xcb4   :  { %2905 = vmatpush3.bf16.msra.mxu0 %v3324_v6 }
 0xcb5   :  { %2906 = vmatprep.subr.bf16.mxu0 %v3325_v42 }
 0xcb8   :  { %2907 = vmatpush3.bf16.msra.mxu0 %v3326_v1 }
 0xcb9   :  { %2908 = vmatprep.subr.bf16.mxu0 %v3327_v52 }
 0xcbc   :  { %2909 = vmatpush3.bf16.msra.mxu0 %v3328_v55 }
 0xcbd   :  { %2910 = vmatprep.subr.bf16.mxu0 %v3329_v50 }
 0xcc0   :  { %2911 = vmatpush3.bf16.msra.mxu0 %v3330_v53 }
 0xcc1   :  { %2912 = vmatprep.subr.bf16.mxu0 %v3331_v54 }
 0xd82   :  { %v3080_v10 = vpop.f32.mrb[20].mxu0 }
 0xd83   :  { %v2163_v57 = vpop.f32.mrb[21].mxu0  ;;  %v2172_v59 = vadd.f32 %v3080_v10, %v2746_v7 }
 0xd84   :  { %v2164_v8 = vadd.f32 %v2746_v7, %v2163_v57  ;;  %v3081_v58 = vpop.f32.mrb[22].mxu0 }
 0xd85   :  { %v2166_v31 = vpop.f32.mrb[23].mxu0  ;;  %v3916_v63 = vadd.f32 %v3529_v3, %v2172_v59  ;;  %v2175_v12 = vadd.f32 %v3081_v58, %v2746_v7  ;;  %v3302_v3 = vld [vmem:[%s4092_s9 + $0x14] ss:$8 sps:$4 sm:$0xff]  }
 0xd86   :  { %v3909_v62 = vadd.f32 %v3527_v2, %v2164_v8  ;;  %v2167_v61 = vadd.f32 %v2746_v7, %v2166_v31  ;;  %v3297_v2 = vld [vmem:[%s4092_s9] ss:$8 sps:$4 sm:$0xff]  }
 0xd87   :  { %v3921_v13 = vadd.f32 %v3535_v5, %v2175_v12  ;;  %v3300_v5 = vld [vmem:[%s4092_s9 + $0x10] ss:$8 sps:$4 sm:$0xff]  }
 0xd88   :  { %v3912_v11 = vadd.f32 %v3533_v4, %v2167_v61  ;;  %2182 = vadd.xlane.f32.xlu0 %v3909_v62  ;;  %v3299_v4 = vld [vmem:[%s4092_s9 + $0x4] ss:$8 sps:$4 sm:$0xff]  }
 0xd89   :  { %2358 = vmatprep.subr.bf16.mxu1 %v3299_v4 }
 0xd8a   :  { %2184 = vadd.xlane.f32.xlu1 %v3912_v11  ;;  %2359 = vmatpush1.bf16.msra.mxu1 %v3297_v2  ;;  %v2755_v2 = vld [vmem:[%s4090_s7] ss:$0 sm:$0xff] }
 0xd8b   :  { %2360 = vmatprep.subr.bf16.mxu1 %v3302_v3 }
 0xd8c   :  { %2186 = vadd.xlane.f32.xlu0 %v3916_v63 }
 0xd8e   :  { %2361 = vmatpush1.bf16.msra.mxu1 %v3300_v5 }
 0xd8f   :  { %2362 = vmatprep.subr.bf16.mxu1 %v3305_v34 }
 0xd90   :  { %2188 = vadd.xlane.f32.xlu0 %v3921_v13 }
 0xd92   :  { %2363 = vmatpush1.bf16.msra.mxu1 %v3303_v35  ;;  %v3332_v35 = vld [vmem:[%s4094_s11 + $0x28] sm:$0xff]  }
 0xd93   :  { %2364 = vmatprep.subr.bf16.mxu1 %v3308_v32  ;;  %2913 = vmatpush3.bf16.msra.mxu0 %v3332_v35  ;;  %v3336_v32 = vld [vmem:[%s4094_s11 + $0x38] sm:$0xff]  }
 0xd96   :  { %2365 = vmatpush1.bf16.msra.mxu1 %v3306_v33  ;;  %v2266_v33 = vld [vmem:[%s4093_s10] sm:$0x3] }
 0xd97   :  { %2366 = vmatprep.subr.bf16.mxu1 %v3311_v36  ;;  %v2271_v36 = vrot.slane %v2266_v33, %v161_v21 }
 0xd9a   :  { %2367 = vmatpush1.bf16.msra.mxu1 %v3309_v37  ;;  %v2275_v37 = vrot.slane %v2266_v33, %v165_v23 }
 0xd9b   :  { %2368 = vmatprep.subr.bf16.mxu1 %v3314_v39 }
 0xd9e   :  { %2369 = vmatpush1.bf16.msra.mxu1 %v3312_v40 }
 0xd9f   :  { %2370 = vmatprep.subr.bf16.mxu1 %v3317_v43 }
 0xda2   :  { %2371 = vmatpush1.bf16.msra.mxu1 %v3315_v22 }
 0xda3   :  { %2372 = vmatprep.subr.bf16.mxu1 %v3320_v44 }
 0xda6   :  { %2373 = vmatpush1.bf16.msra.mxu1 %v3318_v45 }
 0xe15   :  { %v2183_v48 = vpop.xlane.xlu0 %2182 }
 0xe16   :  { %v2190_v14 = vmul.f32 0.0078125, %v2183_v48 }
 0xe17   :  { %v2185_v16 = vpop.xlane.xlu1 %2184 }
 0xe18   :  { %v3937_v17 = vsub.f32 %v3909_v62, %v2190_v14  ;;  %v2191_v38 = vmul.f32 0.0078125, %v2185_v16  ;;  %v2756_v16 = vld [vmem:[%s4091_s8] ss:$0 sm:$0xff] }
 0xe19   :  { %v2187_v18 = vpop.xlane.xlu0 %2186 }
 0xe1a   :  { %v3940_v19 = vsub.f32 %v3912_v11, %v2191_v38  ;;  %v2192_v60 = vmul.f32 0.0078125, %v2187_v18  ;;  %v2198_v20 = vmul.f32 %v3937_v17, %v3937_v17 }
 0xe1c   :  { %v3945_v24 = vsub.f32 %v3916_v63, %v2192_v60  ;;  %2202 = vadd.xlane.f32.xlu0 %v2198_v20  ;;  %v2199_v25 = vmul.f32 %v3940_v19, %v3940_v19 }
 0xe1d   :  { %v2189_v26 = vpop.xlane.xlu0 %2188 }
 0xe1e   :  { %v2193_v27 = vmul.f32 0.0078125, %v2189_v26  ;;  %2204 = vadd.xlane.f32.xlu1 %v2199_v25  ;;  %v2200_v28 = vmul.f32 %v3945_v24, %v3945_v24 }
 0xe20   :  { %v3952_v29 = vsub.f32 %v3921_v13, %v2193_v27  ;;  %2206 = vadd.xlane.f32.xlu0 %v2200_v28 }
 0xe22   :  { %v2201_v30 = vmul.f32 %v3952_v29, %v3952_v29 }
 0xe24   :  { %2208 = vadd.xlane.f32.xlu1 %v2201_v30 }
 0xea9   :  { %v2203_v56 = vpop.xlane.xlu0 %2202 }
 0xeaa   :  { %v2210_v46 = vmul.f32 0.0078125, %v2203_v56 }
 0xeab   :  { %v2205_v0 = vpop.xlane.xlu1 %2204 }
 0xeac   :  { %v2214_v9 = vadd.f32 1e-05, %v2210_v46  ;;  %v2211_v7 = vmul.f32 0.0078125, %v2205_v0 }
 0xead   :  { %v2207_v10 = vpop.xlane.xlu0 %2206 }
 0xeae   :  { %3409 = vrsqrt.f32 %v2214_v9  ;;  %v2215_v57 = vadd.f32 1e-05, %v2211_v7  ;;  %v2212_v8 = vmul.f32 0.0078125, %v2207_v10 }
 0xeb0   :  { %3411 = vrsqrt.f32 %v2215_v57  ;;  %v2216_v58 = vadd.f32 1e-05, %v2212_v8 }
 0xeb1   :  { %v2209_v31 = vpop.xlane.xlu1 %2208 }
 0xeb2   :  { %3413 = vrsqrt.f32 %v2216_v58  ;;  %v2213_v59 = vmul.f32 0.0078125, %v2209_v31  ;;  %v2773_v31 = vld [vmem:[%s4095_s12] ss:$0 sm:$0xff] }
 0xeb4   :  { %v2217_v61 = vadd.f32 1e-05, %v2213_v59 }
 0xeb6   :  { %3415 = vrsqrt.f32 %v2217_v61 }
 0xeb8   :  { %v3410_v12 = vpop.eup %3409 }
 0xeb9   :  { %v2222_v4 = vmul.f32 %v3410_v12, %v3937_v17 }
 0xeba   :  { %v3412_v3 = vpop.eup %3411 }
 0xebb   :  { %v2223_v5 = vmul.f32 %v3412_v3, %v3940_v19  ;;  %v2233_v48 = vmul.f32 %v2755_v2, %v2222_v4 }
 0xebc   :  { %v3414_v14 = vpop.eup %3413 }
 0xebd   :  { %v2234_v38 = vmul.f32 %v2755_v2, %v2223_v5  ;;  %v2244_v18 = vadd.f32 %v2756_v16, %v2233_v48  ;;  %v2224_v20 = vmul.f32 %v3414_v14, %v3945_v24  ;;  %v3333_v24 = vld [vmem:[%s4094_s11 + $0x70] sm:$0xff]  }
 0xebe   :  { %2914 = vmatprep.subr.bf16.mxu0 %v3333_v24 }
 0xebf   :  { %v2245_v60 = vadd.f32 %v2756_v16, %v2234_v38  ;;  %v2235_v17 = vmul.f32 %v2755_v2, %v2224_v20 }
 0xec0   :  { %v3416_v25 = vpop.eup %3415 }
 0xec1   :  { %v2248_v26 = vpack.c.bf16 %v2245_v60, %v2244_v18  ;;  %v2225_v27 = vmul.f32 %v3416_v25, %v3952_v29  ;;  %v2246_v30 = vadd.f32 %v2756_v16, %v2235_v17  ;;  %v3334_v29 = vld [vmem:[%s4094_s11 + $0x30] sm:$0xff]  }
 0xec2   :  { %2915 = vmatpush3.bf16.msra.mxu0 %v3334_v29 }
 0xec3   :  { %2391 = vmatmul.mubr.bf16.vlgmr.msra.gmra.mrb[28].mxu1 %v2248_v26  ;;  %v2236_v28 = vmul.f32 %v2755_v2, %v2225_v27 }
 0xec4   :  { %2400 = vmatprep.mubr.bf16.mxu1 %v3441_v41  ;;  %v3335_v41 = vld [vmem:[%s4094_s11 + $0x78] sm:$0xff]  }
 0xec5   :  { %v2247_v19 = vadd.f32 %v2756_v16, %v2236_v28  ;;  %2916 = vmatprep.subr.bf16.mxu0 %v3335_v41 }
 0xec6   :  { %2917 = vmatpush3.bf16.msra.mxu0 %v3336_v32 }
 0xec7   :  { %v2249_v34 = vpack.c.bf16 %v2247_v19, %v2246_v30 }
 0xecb   :  { %2401 = vmatmul.mubr.bf16.gmra.mrb[32].mxu1 %v2249_v34 }
 0xf96   :  { %v2392_v39 = vpop.f32.mrb[28].mxu1 }
 0xf97   :  { %v2393_v40 = vadd.f32 %v2392_v39, %v2271_v36  ;;  %v2394_v43 = vpop.f32.mrb[29].mxu1 }
 0xf98   :  { %v2395_v22 = vadd.f32 %v2394_v43, %v2275_v37  ;;  %v2396_v44 = vpop.f32.mrb[30].mxu1 }
 0xf99   :  { %v2397_v45 = vadd.f32 %v2396_v44, %v2271_v36  ;;  %v2398_v47 = vpop.f32.mrb[31].mxu1  ;;  %v2411_v51 = vmax.f32 %v2393_v40, 0.0 }
 0xf9a   :  { %v2399_v49 = vadd.f32 %v2398_v47, %v2275_v37  ;;  %v2412_v42 = vmax.f32 %v2395_v22, 0.0 }
 0xf9b   :  { %v2413_v6 = vmax.f32 %v2397_v45, 0.0 }
 0xf9c   :  { %v2414_v1 = vmax.f32 %v2399_v49, 0.0 }
 0xf9d   :  { %v2419_v52 = vpack.c.bf16 %v2413_v6, %v2411_v51 }
 0xf9e   :  { %v2420_v55 = vpack.c.bf16 %v2414_v1, %v2412_v42  ;;  %v2402_v50 = vpop.f32.mrb[32].mxu1 }
 0xf9f   :  { %v2403_v53 = vadd.f32 %v2402_v50, %v2271_v36  ;;  %v2404_v21 = vpop.f32.mrb[33].mxu1 }
 0xfa0   :  { %v2405_v54 = vadd.f32 %v2404_v21, %v2275_v37  ;;  %v2406_v15 = vpop.f32.mrb[34].mxu1  ;;  %2590 = vmatprep.mubr.bf16.mxu0 %v2420_v55 }
 0xfa1   :  { %v2407_v23 = vadd.f32 %v2406_v15, %v2271_v36  ;;  %v2408_v56 = vpop.f32.mrb[35].mxu1  ;;  %2591 = vmatmul.mubr.bf16.vlgmr.msra.gmra.mrb[24].mxu0 %v2419_v52  ;;  %v2415_v0 = vmax.f32 %v2403_v53, 0.0 }
 0xfa2   :  { %v2409_v46 = vadd.f32 %v2408_v56, %v2275_v37  ;;  %v2416_v7 = vmax.f32 %v2405_v54, 0.0 }
 0xfa3   :  { %v2417_v9 = vmax.f32 %v2407_v23, 0.0 }
 0xfa4   :  { %v2418_v10 = vmax.f32 %v2409_v46, 0.0 }
 0xfa5   :  { %v2421_v57 = vpack.c.bf16 %v2417_v9, %v2415_v0 }
 0xfa6   :  { %v2422_v8 = vpack.c.bf16 %v2418_v10, %v2416_v7 }
 0xfa8   :  { %2598 = vmatprep.mubr.bf16.mxu0 %v2422_v8 }
 0xfa9   :  { %2599 = vmatmul.mubr.bf16.gmra.mrb[28].mxu0 %v2421_v57 }
0x1074   :  { %v2918_v58 = vpop.f32.mrb[24].mxu0 }
0x1075   :  { %v2919_v59 = vpop.f32.mrb[25].mxu0 }
0x1076   :  { %v2920_v61 = vadd.f32 %v2919_v59, %v2918_v58  ;;  %v2921_v12 = vpop.f32.mrb[26].mxu0 }
0x1077   :  { %v2922_v2 = vpop.f32.mrb[27].mxu0 }
0x1078   :  { %v2593_v4 = vadd.f32 %v2920_v61, %v2773_v31  ;;  %v2923_v3 = vadd.f32 %v2922_v2, %v2921_v12 }
0x107a   :  { %v2596_v5 = vadd.f32 %v2923_v3, %v2773_v31  ;;  %v2607_v48 = vadd.f32 %v2593_v4, %v3909_v62 }
0x107c   :  { %v2608_v14 = vadd.f32 %v2596_v5, %v3912_v11  ;;  %v2924_v16 = vpop.f32.mrb[28].mxu0 }
0x107d   :  { %v2925_v38 = vpop.f32.mrb[29].mxu0 }
0x107e   :  { %v2809_v18 = vpack.c.bf16 %v2608_v14, %v2607_v48  ;;  %v2631_v60 = vadd.f32 %v2608_v14, %v2607_v48  ;;  %v2926_v20 = vadd.f32 %v2925_v38, %v2924_v16  ;;  %v2927_v25 = vpop.f32.mrb[30].mxu0 }
0x107f   :  { %v2928_v26 = vpop.f32.mrb[31].mxu0 }
0x1080   :  { %2810 = vst [vmem:[%s4096_s13] sm:$0xff] %v2809_v18   ;;  %v2632_v27 = vrot.slane %v2631_v60, 4  ;;  %v2601_v17 = vadd.f32 %v2926_v20, %v2773_v31  ;;  %v2929_v28 = vadd.f32 %v2928_v26, %v2927_v25 }
0x1082   :  { %v2633_v19 = vadd.f32 %v2632_v27, %v2631_v60  ;;  %v2604_v30 = vadd.f32 %v2929_v28, %v2773_v31  ;;  %v2609_v62 = vadd.f32 %v2601_v17, %v3916_v63 }
0x1084   :  { %v2634_v34 = vrot.slane %v2633_v19, 2  ;;  %v2610_v11 = vadd.f32 %v2604_v30, %v3921_v13 }
0x1086   :  { %v2814_v35 = vpack.c.bf16 %v2610_v11, %v2609_v62  ;;  %v2638_v24 = vadd.f32 %v2610_v11, %v2609_v62  ;;  %v2635_v41 = vadd.f32 %v2634_v34, %v2633_v19 }
0x1088   :  { %2817 = vst [vmem:[%s4096_s13 + $0x8] sm:$0xff] %v2814_v35   ;;  %v2639_v29 = vrot.slane %v2638_v24, 4  ;;  %v2636_v36 = vrot.slane %v2635_v41, 1 }
0x108a   :  { %v2640_v32 = vadd.f32 %v2639_v29, %v2638_v24  ;;  %v2637_v39 = vadd.f32 %v2636_v36, %v2635_v41 }
0x108c   :  { %v2641_v33 = vrot.slane %v2640_v32, 2  ;;  %v2646_v63 = vmul.f32 0.0625, %v2637_v39 }
0x108e   :  { %v2642_v37 = vadd.f32 %v2641_v33, %v2640_v32 }
0x1090   :  { %v2643_v40 = vrot.slane %v2642_v37, 1 }
0x1092   :  { %v2644_v43 = vadd.f32 %v2643_v40, %v2642_v37 }
0x1094   :  { %v2647_v13 = vmul.f32 0.0625, %v2644_v43 }
0x1096   :  { %v2651_v22 = vsel %vm2650_vm5, %v2647_v13, %v2646_v63 }
0x1097   :  { %2653 = vst [vmem:[#allocation2] sm:$0x3] %v2651_v22 }
0x1098   :  { %3428 = shalt.err (!%p3425_p4)
}
0x1099   :  { %s3429_s18 = scalar_lea.hbm %s4097_s14, 32 }
0x109a   :  { %p3430_p5 = scmp.ne.s32.totalorder %s4097_s14, %s3429_s18  ;;  %p3433_p6 = scmp.lt.u32.totalorder %s3429_s18, %s4097_s14 }
0x109c   :  { %p3435_p7 = pnand %p3433_p6, %p3430_p5 }
0x109e   :  { %3438 = shalt.err (!%p3435_p7)
}
0x109f   :  { %2665 = dma.vmem_to_hbm [thread:$0]  %s2663_s2, 32, %s4097_s14, [#allocation3]  }
0x10a0   :  { %3439 = dma.done.wait [#allocation3], 32  }
0x10a1   :  { %3440 = vsyncadd [#allocation3], 4294967264 }
0x10a2   :  { %2671 = vsyncpa [#allocation3], 1 }

// kernel: _lambda_.6
= control target key start
LH: loop header
LB: loop body
LE: loop exit
PB: predicated region body
PF: predicated region fallthrough
CT: control target
= control target key end

     0   :  { %s4086_s0 = inlined_call_operand.vmem [shape: bf16[2,16,128], index: 0, kind: input, shape index: {}]   ;;  %s4087_s1 = inlined_call_operand.vmem [shape: f32[1,128], index: 1, kind: input, shape index: {}, may-alias: {1,7}]   ;;  %s4088_s2 = inlined_call_operand.vmem [shape: f32[1,128], index: 2, kind: input, shape index: {}, may-alias: {2,8}]   ;;  %s4089_s3 = inlined_call_operand.vmem [shape: bf16[128,384], index: 3, kind: input, shape index: {}]   ;;  %s4090_s4 = inlined_call_operand.vmem [shape: f32[1,384], index: 4, kind: input, shape index: {}]   ;;  %s4091_s5 = inlined_call_operand.vmem [shape: bf16[128,128], index: 5, kind: input, shape index: {}]   ;;  %s4092_s6 = inlined_call_operand.vmem [shape: f32[1,128], index: 6, kind: input, shape index: {}]   ;;  %s4093_s7 = inlined_call_operand.vmem [shape: f32[1,128], index: 7, kind: input, shape index: {}, may-alias: {1,7}]   ;;  %s4094_s8 = inlined_call_operand.vmem [shape: f32[1,128], index: 8, kind: input, shape index: {}, may-alias: {2,8}]   ;;  %s4095_s9 = inlined_call_operand.vmem [shape: bf16[128,256], index: 9, kind: input, shape index: {}]   ;;  %s4096_s10 = inlined_call_operand.vmem [shape: f32[1,256], index: 10, kind: input, shape index: {}]   ;;  %s4097_s11 = inlined_call_operand.vmem [shape: bf16[256,128], index: 11, kind: input, shape index: {}]   ;;  %s4098_s12 = inlined_call_operand.vmem [shape: f32[1,128], index: 12, kind: input, shape index: {}]   ;;  %s4099_s13 = inlined_call_operand.hbm [shape: bf16[2,16,128], index: 13, kind: output, shape index: {0}]   ;;  %s4100_s14 = inlined_call_operand.vmem [shape: f32[2,128], index: 14, kind: output, shape index: {1}]  }
   0x1   :  { %v2801_v0 = vld [vmem:[%s4086_s0] sm:$0xff]   ;;  %v2818_v1 = vld [vmem:[%s4086_s0 + $0x8] sm:$0xff]  }
   0x2   :  { %v3531_v2 = vunpack.c.l.bf16 %v2801_v0  ;;  %v3533_v3 = vunpack.c.l.bf16 %v2818_v1  ;;  %v3537_v4 = vunpack.c.h.bf16 %v2801_v0  ;;  %v3539_v5 = vunpack.c.h.bf16 %v2818_v1  ;;  %v3260_v6 = vld [vmem:[%s4089_s3 + $0x4] ss:$12 sps:$4 sm:$0xff]   ;;  %v3262_v7 = vld [vmem:[%s4089_s3] ss:$12 sps:$4 sm:$0xff]   ;;  %v3263_v8 = vld [vmem:[%s4089_s3 + $0x1c] ss:$12 sps:$4 sm:$0xff]  }
   0x3   :  { %v3265_v9 = vld [vmem:[%s4089_s3 + $0x8] ss:$12 sps:$4 sm:$0xff]   ;;  %302 = vmatprep.subr.bf16.mxu0 %v3260_v6 }
   0x4   :  { %56 = vadd.xlane.f32.xlu0 %v3531_v2  ;;  %60 = vadd.xlane.f32.xlu1 %v3533_v3 }
   0x5   :  { %303 = vmatpush1.bf16.msra.mxu0 %v3262_v7  ;;  %2932 = vmatprep.subr.bf16.mxu1 %v3265_v9 }
   0x8   :  { %58 = vadd.xlane.f32.xlu0 %v3537_v4  ;;  %62 = vadd.xlane.f32.xlu1 %v3539_v5 }
   0x9   :  { %20 = vsyncpa [#allocation3], 0  ;;  %304 = vmatprep.subr.bf16.mxu0 %v3263_v8  ;;  %2933 = vmatpush3.bf16.msra.mxu1 %v3265_v9  ;;  %v3266_v26 = vld [vmem:[%s4089_s3 + $0x18] ss:$12 sps:$4 sm:$0xff]   ;;  %v3267_v27 = vld [vmem:[%s4089_s3 + $0x34] ss:$12 sps:$4 sm:$0xff]  }
   0xa   :  { %305 = vmatpush1.bf16.msra.mxu0 %v3266_v26  ;;  %v3269_v28 = vld [vmem:[%s4089_s3 + $0x20] ss:$12 sps:$4 sm:$0xff]   ;;  %v3270_v29 = vld [vmem:[%s4089_s3 + $0x30] ss:$12 sps:$4 sm:$0xff]   ;;  %v3273_v31 = vld [vmem:[%s4089_s3 + $0x38] ss:$12 sps:$4 sm:$0xff]  }
   0xb   :  { %306 = vmatprep.subr.bf16.mxu0 %v3267_v27  ;;  %2934 = vmatprep.subr.bf16.mxu1 %v3269_v28  ;;  %v3271_v30 = vld [vmem:[%s4089_s3 + $0x4c] ss:$12 sps:$4 sm:$0xff]   ;;  %v3274_v32 = vld [vmem:[%s4089_s3 + $0x48] ss:$12 sps:$4 sm:$0xff]   ;;  %v3275_v33 = vld [vmem:[%s4089_s3 + $0x64] ss:$12 sps:$4 sm:$0xff]  }
   0xc   :  { %v3277_v34 = vld [vmem:[%s4089_s3 + $0x50] ss:$12 sps:$4 sm:$0xff]   ;;  %v3278_v35 = vld [vmem:[%s4089_s3 + $0x60] ss:$12 sps:$4 sm:$0xff]   ;;  %v3281_v37 = vld [vmem:[%s4089_s3 + $0x68] ss:$12 sps:$4 sm:$0xff]  }
   0xd   :  { %2935 = vmatpush3.bf16.msra.mxu1 %v3269_v28  ;;  %v3279_v36 = vld [vmem:[%s4089_s3 + $0x7c] ss:$12 sps:$4 sm:$0xff]   ;;  %v3282_v38 = vld [vmem:[%s4089_s3 + $0x78] ss:$12 sps:$4 sm:$0xff]   ;;  %v3283_v39 = vld [vmem:[%s4089_s3 + $0x94] ss:$12 sps:$4 sm:$0xff]  }
   0xe   :  { %307 = vmatpush1.bf16.msra.mxu0 %v3270_v29  ;;  %2936 = vmatprep.subr.bf16.mxu1 %v3273_v31  ;;  %v3285_v40 = vld [vmem:[%s4089_s3 + $0x80] ss:$12 sps:$4 sm:$0xff]   ;;  %v3444_v41 = vmov 0   ;;  %v3286_v42 = vld [vmem:[%s4089_s3 + $0x90] ss:$12 sps:$4 sm:$0xff]   ;;  %vm408_vm0 = vcmask 261120  }
   0xf   :  { %308 = vmatprep.subr.bf16.mxu0 %v3271_v30  ;;  %334 = vmatprep.mubr.bf16.mxu0 %v3444_v41  ;;  %v3287_v43 = vld [vmem:[%s4089_s3 + $0xac] ss:$12 sps:$4 sm:$0xff]   ;;  %v3290_v45 = vld [vmem:[%s4089_s3 + $0xa8] ss:$12 sps:$4 sm:$0xff]   ;;  %v3291_v46 = vld [vmem:[%s4089_s3 + $0xb0] ss:$12 sps:$4 sm:$0xff]  }
  0x10   :  { %v3289_v44 = vld [vmem:[%s4089_s3 + $0x98] ss:$12 sps:$4 sm:$0xff]   ;;  %v2674_v61 = vld [vmem:[%s4087_s1] ss:$0 sm:$0xff]  ;;  %vm3665_vm1 = vmpackc.low %vm408_vm0, %vm408_vm0  ;;  %vm583_vm2 = vcmask 130048   ;;  %s3446_s17 = smov 64  }
  0x11   :  { %2937 = vmatpush3.bf16.msra.mxu1 %v3273_v31  ;;  %v2675_v6 = vld [vmem:[%s4088_s2] ss:$0 sm:$0xff]  ;;  %s3447_s18 = smov 32   ;;  %vm2046_vm3 = vcmask 523264   ;;  %vm2051_vm4 = vcmask 785408  }
  0x12   :  { %309 = vmatpush1.bf16.msra.mxu0 %v3274_v32  ;;  %2938 = vmatprep.subr.bf16.mxu1 %v3277_v34 }
  0x13   :  { %310 = vmatprep.subr.bf16.mxu0 %v3275_v33 }
  0x15   :  { %2939 = vmatpush3.bf16.msra.mxu1 %v3277_v34 }
  0x16   :  { %311 = vmatpush1.bf16.msra.mxu0 %v3278_v35  ;;  %2940 = vmatprep.subr.bf16.mxu1 %v3281_v37 }
  0x17   :  { %312 = vmatprep.subr.bf16.mxu0 %v3279_v36 }
  0x19   :  { %2941 = vmatpush3.bf16.msra.mxu1 %v3281_v37 }
  0x1a   :  { %313 = vmatpush1.bf16.msra.mxu0 %v3282_v38  ;;  %2942 = vmatprep.subr.bf16.mxu1 %v3285_v40 }
  0x1b   :  { %314 = vmatprep.subr.bf16.mxu0 %v3283_v39 }
  0x1d   :  { %2943 = vmatpush3.bf16.msra.mxu1 %v3285_v40 }
  0x1e   :  { %315 = vmatpush1.bf16.msra.mxu0 %v3286_v42  ;;  %2944 = vmatprep.subr.bf16.mxu1 %v3289_v44 }
  0x1f   :  { %316 = vmatprep.subr.bf16.mxu0 %v3287_v43 }
  0x21   :  { %2945 = vmatpush3.bf16.msra.mxu1 %v3289_v44 }
  0x22   :  { %317 = vmatpush1.bf16.msra.mxu0 %v3290_v45  ;;  %2946 = vmatprep.subr.bf16.mxu1 %v3291_v46 }
  0x25   :  { %2947 = vmatpush3.bf16.msra.mxu1 %v3291_v46 }
  0x91   :  { %v57_v10 = vpop.xlane.xlu0 %56  ;;  %v61_v11 = vpop.xlane.xlu1 %60 }
  0x92   :  { %v65_v12 = vmul.f32 0.0078125, %v57_v10  ;;  %v67_v13 = vmul.f32 0.0078125, %v61_v11 }
  0x94   :  { %v3556_v14 = vsub.f32 %v3531_v2, %v65_v12  ;;  %v3559_v15 = vsub.f32 %v3533_v3, %v67_v13 }
  0x95   :  { %v59_v16 = vpop.xlane.xlu0 %58  ;;  %v63_v17 = vpop.xlane.xlu1 %62 }
  0x96   :  { %v66_v18 = vmul.f32 0.0078125, %v59_v16  ;;  %v73_v19 = vmul.f32 %v3556_v14, %v3556_v14  ;;  %v68_v20 = vmul.f32 0.0078125, %v63_v17  ;;  %v75_v23 = vmul.f32 %v3559_v15, %v3559_v15 }
  0x98   :  { %v3564_v21 = vsub.f32 %v3537_v4, %v66_v18  ;;  %77 = vadd.xlane.f32.xlu0 %v73_v19  ;;  %v3567_v22 = vsub.f32 %v3539_v5, %v68_v20  ;;  %v159_v20 = vlaneseq }
  0x9a   :  { %v74_v24 = vmul.f32 %v3564_v21, %v3564_v21  ;;  %v76_v25 = vmul.f32 %v3567_v22, %v3567_v22 }
  0x9c   :  { %81 = vadd.xlane.f32.xlu0 %v75_v23  ;;  %79 = vadd.xlane.f32.xlu1 %v74_v24 }
  0xa0   :  { %83 = vadd.xlane.f32.xlu1 %v76_v25 }
 0x125   :  { %v78_v47 = vpop.xlane.xlu0 %77 }
 0x126   :  { %v85_v48 = vmul.f32 0.0078125, %v78_v47 }
 0x128   :  { %v89_v49 = vadd.f32 1e-05, %v85_v48 }
 0x129   :  { %v80_v50 = vpop.xlane.xlu1 %79  ;;  %v82_v51 = vpop.xlane.xlu0 %81 }
 0x12a   :  { %3340 = vrsqrt.f32 %v89_v49  ;;  %v86_v52 = vmul.f32 0.0078125, %v80_v50  ;;  %v87_v53 = vmul.f32 0.0078125, %v82_v51 }
 0x12c   :  { %v90_v54 = vadd.f32 1e-05, %v86_v52  ;;  %v91_v55 = vadd.f32 1e-05, %v87_v53 }
 0x12d   :  { %v84_v56 = vpop.xlane.xlu1 %83 }
 0x12e   :  { %3342 = vrsqrt.f32 %v90_v54  ;;  %v88_v57 = vmul.f32 0.0078125, %v84_v56 }
 0x12f   :  { %3344 = vrsqrt.f32 %v91_v55 }
 0x130   :  { %v92_v58 = vadd.f32 1e-05, %v88_v57 }
 0x132   :  { %3346 = vrsqrt.f32 %v92_v58 }
 0x134   :  { %v3341_v59 = vpop.eup %3340 }
 0x135   :  { %v97_v60 = vmul.f32 %v3341_v59, %v3556_v14 }
 0x137   :  { %v108_v1 = vmul.f32 %v2674_v61, %v97_v60 }
 0x138   :  { %v3343_v62 = vpop.eup %3342 }
 0x139   :  { %v3345_v63 = vpop.eup %3344  ;;  %v98_v0 = vmul.f32 %v3343_v62, %v3564_v21  ;;  %v119_v10 = vadd.f32 %v2675_v6, %v108_v1 }
 0x13a   :  { %v99_v7 = vmul.f32 %v3345_v63, %v3559_v15  ;;  %v3647_v15 = vshrl.u32 %v159_v20, 7 }
 0x13b   :  { %v109_v8 = vmul.f32 %v2674_v61, %v98_v0 }
 0x13c   :  { %v3347_v9 = vpop.eup %3346  ;;  %v110_v13 = vmul.f32 %v2674_v61, %v99_v7  ;;  %v161_v21 = vsub.s32 0, %v3647_v15  ;;  %v165_v23 = vsub.s32 1, %v3647_v15  ;;  %v169_v25 = vsub.s32 2, %v3647_v15 }
 0x13d   :  { %v120_v11 = vadd.f32 %v2675_v6, %v109_v8  ;;  %v100_v12 = vmul.f32 %v3347_v9, %v3567_v22  ;;  %v157_v22 = vld [vmem:[%s4090_s4] sm:$0x7]  ;;  %s3445_s4 = smov 96  }
 0x13e   :  { %v121_v17 = vadd.f32 %v2675_v6, %v110_v13  ;;  %v162_v24 = vrot.slane %v157_v22, %v161_v21  ;;  %v166_v27 = vrot.slane %v157_v22, %v165_v23  ;;  %v170_v33 = vrot.slane %v157_v22, %v169_v25 }
 0x13f   :  { %v123_v14 = vpack.c.bf16 %v120_v11, %v119_v10  ;;  %v111_v16 = vmul.f32 %v2674_v61, %v100_v12 }
 0x141   :  { %335 = vmatmul.mubr.bf16.vlgmr.msra.gmra.mrb[0].mxu0 %v123_v14  ;;  %2948 = vmatprep.mubr.bf16.mxu1 %v123_v14  ;;  %v122_v18 = vadd.f32 %v2675_v6, %v111_v16 }
 0x142   :  { %344 = vmatprep.mubr.bf16.mxu0 %v3444_v41 }
 0x143   :  { %v124_v19 = vpack.c.bf16 %v122_v18, %v121_v17 }
 0x145   :  { %2949 = vmatmul.mubr.bf16.vlgmr.msra.gmra.mrb[0].mxu1 %v124_v19 }
 0x149   :  { %345 = vmatmul.mubr.bf16.gmra.mrb[4].mxu0 %v124_v19 }
 0x214   :  { %v336_v26 = vpop.f32.mrb[0].mxu0 }
 0x215   :  { %v337_v28 = vadd.f32 %v336_v26, %v162_v24  ;;  %v338_v29 = vpop.f32.mrb[1].mxu0 }
 0x216   :  { %v340_v30 = vpop.f32.mrb[2].mxu0  ;;  %v339_v34 = vadd.f32 %v338_v29, %v166_v27 }
 0x217   :  { %v3659_v31 = vmul.f32 0.17677669, %v337_v28  ;;  %v342_v32 = vpop.f32.mrb[3].mxu0  ;;  %v341_v49 = vadd.f32 %v340_v30, %v162_v24 }
 0x218   :  { %v343_v35 = vadd.f32 %v342_v32, %v166_v27  ;;  %v2950_v36 = vpop.f32.mrb[0].mxu1 }
 0x219   :  { %v389_v37 = vpop.f32.mrb[1].mxu1  ;;  %2956 = vmatprep.mubr.msk.f32.mxu1 %vm408_vm0, %v3659_v31  ;;  %v398_v43 = vadd.f32 %v2950_v36, %v170_v33  ;;  %v3681_v60 = vmul.f32 0.17677669, %v341_v49 }
 0x21a   :  { %v2951_v39 = vpop.f32.mrb[2].mxu1  ;;  %v3084_v40 = vpack.c.bf16 %v343_v35, %v339_v34  ;;  %v3669_v42 = vpack.i.bf16 %v343_v35, %v339_v34  ;;  %v390_v46 = vadd.f32 %v389_v37, %v170_v33 }
 0x21b   :  { %v401_v44 = vadd.f32 %v2951_v39, %v170_v33  ;;  %v392_v45 = vpop.f32.mrb[3].mxu1 }
 0x21c   :  { %v393_v47 = vadd.f32 %v392_v45, %v170_v33  ;;  %v346_v48 = vpop.f32.mrb[4].mxu0  ;;  %3086 = vmatprep.subr.msk.bf16.mxu1 %vm3665_vm1, %v3084_v40 }
 0x21d   :  { %v348_v50 = vpop.f32.mrb[5].mxu0  ;;  %3089 = vmatpush3.bf16.xpose.msk.msra.mxu1 %vm3665_vm1, %v3084_v40  ;;  %v3675_v51 = vpack.c.bf16 %v401_v44, %v398_v43  ;;  %v3677_v52 = vpack.i.bf16 %v401_v44, %v398_v43  ;;  %v347_v56 = vadd.f32 %v346_v48, %v162_v24 }
 0x21e   :  { %v350_v53 = vpop.f32.mrb[6].mxu0  ;;  %v3096_v54 = vpack.c.bf16 %v393_v47, %v390_v46  ;;  %v3679_v55 = vpack.i.bf16 %v393_v47, %v390_v46  ;;  %v349_v58 = vadd.f32 %v348_v50, %v166_v27 }
 0x21f   :  { %v352_v57 = vpop.f32.mrb[7].mxu0  ;;  %v3685_v63 = vmul.f32 0.17677669, %v347_v56  ;;  %v351_v0 = vadd.f32 %v350_v53, %v162_v24 }
 0x220   :  { %v353_v59 = vadd.f32 %v352_v57, %v166_v27 }
 0x221   :  { %v3695_v1 = vmul.f32 0.17677669, %v351_v0 }
 0x222   :  { %v3090_v61 = vpack.c.bf16 %v353_v59, %v349_v58  ;;  %v3683_v62 = vpack.i.bf16 %v353_v59, %v349_v58 }
 0x224   :  { %2957 = vmatmul.mubr.msk.f32.vlgmr.msra.gmra.mrb[4].mxu1 %vm408_vm0, %v3681_v60  ;;  %3092 = vmatprep.subr.msk.bf16.mxu1 %vm3665_vm1, %v3090_v61 }
 0x225   :  { %3095 = vmatpush3.bf16.xpose.msk.msra.mxu1 %vm3665_vm1, %v3090_v61  ;;  %2963 = vmatprep.mubr.msk.f32.mxu1 %vm408_vm0, %v3685_v63 }
 0x226   :  { %3097 = vmatprep.subr.bf16.mxu1 %v3096_v54 }
 0x22c   :  { %2964 = vmatmul.mubr.msk.f32.vlgmr.msra.gmra.mrb[6].mxu1 %vm408_vm0, %v3695_v1 }
 0x22d   :  { %3099 = vmatpush3.bf16.msra.mxu1 %v3096_v54 }
 0x22e   :  { %3101 = vmatprep.subr.bf16.mxu1 %v3675_v51 }
 0x2f7   :  { %v2958_v6 = vpop.f32.mrb[4].mxu1 }
 0x2f8   :  { %v487_v7 = vpop.f32.mrb[5].mxu1  ;;  %v587_v8 = vsel %vm583_vm2, %v2958_v6, -inf }
 0x2f9   :  { %588 = vmax.xlane.f32.xlu1 %v587_v8  ;;  %v584_v9 = vsel %vm583_vm2, %v487_v7, -inf }
 0x2fa   :  { %585 = vmax.xlane.f32.xlu0 %v584_v9 }
 0x2ff   :  { %v2965_v10 = vpop.f32.mrb[6].mxu1 }
 0x300   :  { %v574_v11 = vpop.f32.mrb[7].mxu1  ;;  %v593_v12 = vsel %vm583_vm2, %v2965_v10, -inf }
 0x301   :  { %594 = vmax.xlane.f32.xlu1 %v593_v12  ;;  %v590_v13 = vsel %vm583_vm2, %v574_v11, -inf }
 0x302   :  { %591 = vmax.xlane.f32.xlu0 %v590_v13 }
 0x386   :  { %v589_v14 = vpop.xlane.xlu1 %588 }
 0x387   :  { %v597_v16 = vsub.f32 %v2958_v6, %v589_v14  ;;  %v586_v17 = vpop.xlane.xlu0 %585 }
 0x388   :  { %v596_v18 = vsub.f32 %v487_v7, %v586_v17 }
 0x389   :  { %v602_v19 = vmul.f32 1.442695, %v597_v16 }
 0x38a   :  { %v600_v20 = vmul.f32 1.442695, %v596_v18 }
 0x38b   :  { %3348 = vpow2.f32 %v602_v19 }
 0x38c   :  { %3350 = vpow2.f32 %v600_v20 }
 0x38e   :  { %v595_v22 = vpop.xlane.xlu1 %594 }
 0x38f   :  { %v599_v24 = vsub.f32 %v2965_v10, %v595_v22  ;;  %v592_v25 = vpop.xlane.xlu0 %591 }
 0x390   :  { %v598_v26 = vsub.f32 %v574_v11, %v592_v25 }
 0x391   :  { %v606_v27 = vmul.f32 1.442695, %v599_v24 }
 0x392   :  { %v604_v28 = vmul.f32 1.442695, %v598_v26 }
 0x393   :  { %3352 = vpow2.f32 %v606_v27 }
 0x394   :  { %3354 = vpow2.f32 %v604_v28 }
 0x395   :  { %v3349_v29 = vpop.eup %3348 }
 0x396   :  { %v3351_v30 = vpop.eup %3350  ;;  %v611_v32 = vsel %vm583_vm2, %v3349_v29, 0.0 }
 0x397   :  { %612 = vadd.xlane.f32.xlu1 %v611_v32  ;;  %v608_v33 = vsel %vm583_vm2, %v3351_v30, 0.0 }
 0x398   :  { %609 = vadd.xlane.f32.xlu0 %v608_v33 }
 0x39d   :  { %v3353_v34 = vpop.eup %3352 }
 0x39e   :  { %v3355_v35 = vpop.eup %3354  ;;  %v617_v36 = vsel %vm583_vm2, %v3353_v34, 0.0 }
 0x39f   :  { %618 = vadd.xlane.f32.xlu1 %v617_v36  ;;  %v614_v37 = vsel %vm583_vm2, %v3355_v35, 0.0 }
 0x3a0   :  { %615 = vadd.xlane.f32.xlu0 %v614_v37 }
 0x3b0   :  { %881 = vrot.lane.b32.xlu1 %v3685_v63, %s3445_s4 }
 0x3b4   :  { %883 = vrot.lane.b32.xlu1 %v3695_v1, %s3445_s4 }
 0x3b6   :  { %3171 = vrot.lane.b32.xlu0 %v3683_v62, %s3445_s4 }
 0x424   :  { %v613_v39 = vpop.xlane.xlu1 %612 }
 0x425   :  { %3356 = vrcp.f32 %v613_v39  ;;  %v610_v40 = vpop.xlane.xlu0 %609 }
 0x426   :  { %3358 = vrcp.f32 %v610_v40 }
 0x42c   :  { %v619_v43 = vpop.xlane.xlu1 %618 }
 0x42d   :  { %3360 = vrcp.f32 %v619_v43  ;;  %v616_v44 = vpop.xlane.xlu0 %615 }
 0x42e   :  { %3362 = vrcp.f32 %v616_v44 }
 0x42f   :  { %v3357_v45 = vpop.eup %3356 }
 0x430   :  { %v3359_v46 = vpop.eup %3358  ;;  %v625_v49 = vmul.f32 %v3357_v45, %v3349_v29  ;;  %v882_v61 = vpop.permute.xlu1 %881 }
 0x431   :  { %v3172_v47 = vpop.permute.xlu0 %3171  ;;  %v624_v48 = vmul.f32 %v3359_v46, %v3351_v30 }
 0x432   :  { %v3174_v50 = vunpack.i.h.bf16 %v3172_v47  ;;  %v3173_v53 = vunpack.i.l.bf16 %v3172_v47 }
 0x433   :  { %2970 = vmatprep.mubr.msk.f32.mxu1 %vm583_vm2, %v624_v48 }
 0x434   :  { %v3110_v54 = vpack.c.bf16 %v3174_v50, %v3173_v53  ;;  %2971 = vmatmul.mubr.msk.f32.vlgmr.msra.gmra.mrb[8].mxu1 %vm583_vm2, %v625_v49  ;;  %v884_v0 = vpop.permute.xlu1 %883 }
 0x435   :  { %3103 = vmatpush3.bf16.msra.mxu1 %v3675_v51 }
 0x436   :  { %3112 = vmatprep.subr.msk.bf16.mxu1 %vm3665_vm1, %v3110_v54 }
 0x437   :  { %v3361_v56 = vpop.eup %3360 }
 0x438   :  { %v3363_v57 = vpop.eup %3362  ;;  %v627_v59 = vmul.f32 %v3361_v56, %v3353_v34 }
 0x439   :  { %v626_v58 = vmul.f32 %v3363_v57, %v3355_v35 }
 0x43b   :  { %2977 = vmatprep.mubr.msk.f32.mxu1 %vm583_vm2, %v626_v58 }
 0x43c   :  { %2978 = vmatmul.mubr.msk.f32.vlgmr.msra.gmra.mrb[10].mxu1 %vm583_vm2, %v627_v59 }
 0x43d   :  { %2991 = vmatprep.mubr.msk.f32.mxu1 %vm408_vm0, %v882_v61 }
 0x43e   :  { %3115 = vmatpush3.bf16.xpose.msk.msra.mxu1 %vm3665_vm1, %v3110_v54 }
 0x445   :  { %2992 = vmatmul.mubr.msk.f32.vlgmr.msra.gmra.mrb[12].mxu1 %vm408_vm0, %v884_v0 }
 0x507   :  { %v3725_v51 = vpop.f32.mrb[8].mxu1 }
 0x508   :  { %v3727_v6 = vpop.f32.mrb[9].mxu1 }
 0x50f   :  { %v3729_v7 = vpop.f32.mrb[10].mxu1 }
 0x510   :  { %v3731_v8 = vpop.f32.mrb[11].mxu1 }
 0x518   :  { %v2993_v9 = vpop.f32.mrb[12].mxu1 }
 0x519   :  { %v963_v10 = vpop.f32.mrb[13].mxu1  ;;  %v981_v11 = vsel %vm583_vm2, %v2993_v9, -inf }
 0x51a   :  { %982 = vmax.xlane.f32.xlu0 %v981_v11  ;;  %v978_v12 = vsel %vm583_vm2, %v963_v10, -inf }
 0x51b   :  { %979 = vmax.xlane.f32.xlu1 %v978_v12 }
 0x52c   :  { %3176 = vrot.lane.b32.xlu1 %v3677_v52, %s3445_s4 }
 0x530   :  { %3186 = vrot.lane.b32.xlu1 %v3669_v42, %s3446_s17 }
 0x534   :  { %790 = vrot.lane.b32.xlu1 %v3659_v31, %s3445_s4 }
 0x538   :  { %792 = vrot.lane.b32.xlu1 %v3681_v60, %s3445_s4 }
 0x53c   :  { %1194 = vrot.lane.b32.xlu1 %v3659_v31, %s3446_s17 }
 0x540   :  { %1285 = vrot.lane.b32.xlu1 %v3685_v63, %s3446_s17 }
 0x5a7   :  { %v983_v13 = vpop.xlane.xlu0 %982 }
 0x5a8   :  { %v987_v14 = vsub.f32 %v2993_v9, %v983_v13  ;;  %v980_v16 = vpop.xlane.xlu1 %979 }
 0x5a9   :  { %v986_v17 = vsub.f32 %v963_v10, %v980_v16 }
 0x5aa   :  { %v994_v18 = vmul.f32 1.442695, %v987_v14 }
 0x5ab   :  { %v992_v19 = vmul.f32 1.442695, %v986_v17 }
 0x5ac   :  { %3364 = vpow2.f32 %v994_v18  ;;  %v3177_v20 = vpop.permute.xlu1 %3176 }
 0x5ad   :  { %v3179_v22 = vunpack.i.h.bf16 %v3177_v20  ;;  %v3178_v24 = vunpack.i.l.bf16 %v3177_v20  ;;  %3366 = vpow2.f32 %v992_v19 }
 0x5af   :  { %v3120_v25 = vpack.c.bf16 %v3179_v22, %v3178_v24 }
 0x5b0   :  { %v3187_v26 = vpop.permute.xlu1 %3186 }
 0x5b1   :  { %v3189_v27 = vunpack.i.h.bf16 %v3187_v26  ;;  %v3188_v28 = vunpack.i.l.bf16 %v3187_v26  ;;  %3121 = vmatprep.subr.bf16.mxu1 %v3120_v25 }
 0x5b2   :  { %3123 = vmatpush3.bf16.msra.mxu1 %v3120_v25 }
 0x5b3   :  { %v3124_v29 = vpack.c.bf16 %v3189_v27, %v3188_v28 }
 0x5b4   :  { %v791_v30 = vpop.permute.xlu1 %790 }
 0x5b5   :  { %2984 = vmatprep.mubr.msk.f32.mxu0 %vm408_vm0, %v791_v30  ;;  %3126 = vmatprep.subr.msk.bf16.mxu1 %vm3665_vm1, %v3124_v29 }
 0x5b6   :  { %v3365_v32 = vpop.eup %3364 }
 0x5b7   :  { %v1005_v33 = vsel %vm583_vm2, %v3365_v32, 0.0  ;;  %v3367_v34 = vpop.eup %3366 }
 0x5b8   :  { %1006 = vadd.xlane.f32.xlu0 %v1005_v33  ;;  %v1002_v35 = vsel %vm583_vm2, %v3367_v34, 0.0  ;;  %v793_v46 = vpop.permute.xlu1 %792 }
 0x5bc   :  { %1003 = vadd.xlane.f32.xlu0 %v1002_v35  ;;  %v1195_v56 = vpop.permute.xlu1 %1194 }
 0x5c0   :  { %v1286_v59 = vpop.permute.xlu1 %1285 }
 0x5d2   :  { %3181 = vrot.lane.b32.xlu0 %v3669_v42, %s3445_s4 }
 0x5d6   :  { %3191 = vrot.lane.b32.xlu0 %v3683_v62, %s3446_s17 }
 0x5da   :  { %1196 = vrot.lane.b32.xlu0 %v3681_v60, %s3446_s17 }
 0x5de   :  { %1287 = vrot.lane.b32.xlu0 %v3695_v1, %s3446_s17 }
 0x645   :  { %v1007_v36 = vpop.xlane.xlu0 %1006 }
 0x646   :  { %3368 = vrcp.f32 %v1007_v36 }
 0x649   :  { %v1004_v37 = vpop.xlane.xlu0 %1003 }
 0x64a   :  { %3370 = vrcp.f32 %v1004_v37 }
 0x64d   :  { %v3182_v39 = vpop.permute.xlu0 %3181 }
 0x64e   :  { %v3184_v40 = vunpack.i.h.bf16 %v3182_v39  ;;  %v3183_v43 = vunpack.i.l.bf16 %v3182_v39 }
 0x650   :  { %v3104_v44 = vpack.c.bf16 %v3184_v40, %v3183_v43  ;;  %v3369_v47 = vpop.eup %3368 }
 0x651   :  { %v3192_v45 = vpop.permute.xlu0 %3191  ;;  %v1015_v54 = vmul.f32 %v3369_v47, %v3365_v32 }
 0x652   :  { %3106 = vmatprep.subr.msk.bf16.mxu0 %vm3665_vm1, %v3104_v44  ;;  %v3194_v49 = vunpack.i.h.bf16 %v3192_v45  ;;  %v3193_v50 = vunpack.i.l.bf16 %v3192_v45 }
 0x653   :  { %3109 = vmatpush3.bf16.xpose.msk.msra.mxu0 %vm3665_vm1, %v3104_v44 }
 0x654   :  { %v3371_v48 = vpop.eup %3370  ;;  %v3130_v57 = vpack.c.bf16 %v3194_v49, %v3193_v50 }
 0x655   :  { %v1014_v53 = vmul.f32 %v3371_v48, %v3367_v34  ;;  %v1197_v58 = vpop.permute.xlu0 %1196 }
 0x657   :  { %3005 = vmatprep.mubr.msk.f32.mxu1 %vm583_vm2, %v1014_v53 }
 0x658   :  { %3006 = vmatmul.mubr.msk.f32.vlgmr.msra.gmra.mrb[14].mxu1 %vm583_vm2, %v1015_v54 }
 0x659   :  { %3129 = vmatpush3.bf16.xpose.msk.msra.mxu1 %vm3665_vm1, %v3124_v29  ;;  %3012 = vmatprep.mubr.msk.f32.mxu1 %vm408_vm0, %v1195_v56  ;;  %v1288_v61 = vpop.permute.xlu0 %1287 }
 0x65a   :  { %3132 = vmatprep.subr.msk.bf16.mxu1 %vm3665_vm1, %v3130_v57  ;;  %2985 = vmatmul.mubr.msk.f32.vlgmr.msra.gmra.mrb[8].mxu0 %vm408_vm0, %v793_v46 }
 0x660   :  { %3013 = vmatmul.mubr.msk.f32.vlgmr.msra.gmra.mrb[16].mxu1 %vm408_vm0, %v1197_v58 }
 0x661   :  { %3135 = vmatpush3.bf16.xpose.msk.msra.mxu1 %vm3665_vm1, %v3130_v57  ;;  %3019 = vmatprep.mubr.msk.f32.mxu1 %vm408_vm0, %v1286_v59 }
 0x668   :  { %3020 = vmatmul.mubr.msk.f32.vlgmr.msra.gmra.mrb[18].mxu1 %vm408_vm0, %v1288_v61 }
 0x72b   :  { %v3777_v0 = vpop.f32.mrb[14].mxu1 }
 0x72c   :  { %v3779_v9 = vpop.f32.mrb[15].mxu1 }
 0x72d   :  { %v3235_v10 = vpack.i.bf16 %v3777_v0, %v3779_v9  ;;  %v2986_v11 = vpop.f32.mrb[8].mxu0 }
 0x72e   :  { %v872_v12 = vpop.f32.mrb[9].mxu0  ;;  %v975_v13 = vsel %vm583_vm2, %v2986_v11, -inf }
 0x72f   :  { %976 = vmax.xlane.f32.xlu0 %v975_v13  ;;  %v972_v14 = vsel %vm583_vm2, %v872_v12, -inf }
 0x730   :  { %973 = vmax.xlane.f32.xlu1 %v972_v14 }
 0x733   :  { %v3014_v16 = vpop.f32.mrb[16].mxu1 }
 0x734   :  { %v1276_v17 = vpop.f32.mrb[17].mxu1  ;;  %v1379_v18 = vsel %vm583_vm2, %v3014_v16, -inf }
 0x735   :  { %1380 = vmax.xlane.f32.xlu0 %v1379_v18  ;;  %v1376_v19 = vsel %vm583_vm2, %v1276_v17, -inf }
 0x739   :  { %1377 = vmax.xlane.f32.xlu0 %v1376_v19 }
 0x73b   :  { %v3021_v20 = vpop.f32.mrb[18].mxu1 }
 0x73c   :  { %v3787_v22 = vpop.f32.mrb[19].mxu1  ;;  %v1385_v24 = vsel %vm583_vm2, %v3021_v20, -inf }
 0x73d   :  { %1386 = vmax.xlane.f32.xlu0 %v1385_v24 }
 0x7bc   :  { %v977_v25 = vpop.xlane.xlu0 %976 }
 0x7bd   :  { %v985_v26 = vsub.f32 %v2986_v11, %v977_v25  ;;  %v974_v27 = vpop.xlane.xlu1 %973 }
 0x7be   :  { %v984_v28 = vsub.f32 %v872_v12, %v974_v27 }
 0x7bf   :  { %v990_v29 = vmul.f32 1.442695, %v985_v26 }
 0x7c0   :  { %v988_v30 = vmul.f32 1.442695, %v984_v28 }
 0x7c1   :  { %3372 = vpow2.f32 %v990_v29 }
 0x7c2   :  { %3374 = vpow2.f32 %v988_v30  ;;  %v1381_v36 = vpop.xlane.xlu0 %1380 }
 0x7c3   :  { %v1389_v39 = vsub.f32 %v3014_v16, %v1381_v36 }
 0x7c5   :  { %v1394_v43 = vmul.f32 1.442695, %v1389_v39 }
 0x7c6   :  { %v1378_v37 = vpop.xlane.xlu0 %1377 }
 0x7c7   :  { %3376 = vpow2.f32 %v1394_v43  ;;  %v1388_v50 = vsub.f32 %v1276_v17, %v1378_v37 }
 0x7c9   :  { %v1392_v53 = vmul.f32 1.442695, %v1388_v50 }
 0x7ca   :  { %v1387_v40 = vpop.xlane.xlu0 %1386 }
 0x7cb   :  { %v3373_v32 = vpop.eup %3372  ;;  %v1391_v44 = vsub.f32 %v3021_v20, %v1387_v40 }
 0x7cc   :  { %v3375_v33 = vpop.eup %3374  ;;  %v999_v34 = vsel %vm583_vm2, %v3373_v32, 0.0 }
 0x7cd   :  { %1000 = vadd.xlane.f32.xlu0 %v999_v34  ;;  %v996_v35 = vsel %vm583_vm2, %v3375_v33, 0.0  ;;  %v1398_v45 = vmul.f32 1.442695, %v1391_v44 }
 0x7ce   :  { %997 = vadd.xlane.f32.xlu1 %v996_v35 }
 0x7cf   :  { %3378 = vpow2.f32 %v1398_v45 }
 0x7d0   :  { %3380 = vpow2.f32 %v1392_v53 }
 0x7d1   :  { %v3800_v46 = vpop.eup %3376 }
 0x7d2   :  { %v1403_v47 = vsel %vm583_vm2, %v3800_v46, 0.0 }
 0x7d9   :  { %v3804_v48 = vpop.eup %3378 }
 0x7da   :  { %v1409_v49 = vsel %vm583_vm2, %v3804_v48, 0.0  ;;  %v3381_v54 = vpop.eup %3380 }
 0x7db   :  { %v1400_v56 = vsel %vm583_vm2, %v3381_v54, 0.0 }
 0x7df   :  { %3196 = vrot.lane.b32.xlu1 %v3679_v55, %s3445_s4 }
 0x7e3   :  { %3206 = vrot.lane.b32.xlu1 %v3677_v52, %s3446_s17  ;;  %3201 = vrot.lane.b32.xlu0 %v3679_v55, %s3446_s17 }
 0x7e7   :  { %3211 = vrot.lane.b32.xlu1 %v3669_v42, %s3447_s18  ;;  %v1382_v42 = vsel %vm583_vm2, %v3787_v22, -inf }
 0x802   :  { %1404 = vadd.xlane.f32.xlu0 %v1403_v47 }
 0x806   :  { %1410 = vadd.xlane.f32.xlu0 %v1409_v49 }
 0x80b   :  { %1383 = vmax.xlane.f32.xlu1 %v1382_v42 }
 0x81c   :  { %1594 = vrot.lane.b32.xlu0 %v3659_v31, %s3447_s18  ;;  %3216 = vrot.lane.b32.xlu1 %v3683_v62, %s3447_s18 }
 0x820   :  { %1685 = vrot.lane.b32.xlu0 %v3685_v63, %s3447_s18 }
 0x840   :  { %1401 = vadd.xlane.f32.xlu1 %v1400_v56 }
 0x851   :  { %1596 = vrot.lane.b32.xlu1 %v3681_v60, %s3447_s18 }
 0x85a   :  { %v1001_v57 = vpop.xlane.xlu0 %1000 }
 0x85b   :  { %3382 = vrcp.f32 %v1001_v57  ;;  %v998_v58 = vpop.xlane.xlu1 %997 }
 0x85c   :  { %3384 = vrcp.f32 %v998_v58 }
 0x85e   :  { %v3202_v31 = vpop.permute.xlu0 %3201 }
 0x85f   :  { %v3197_v59 = vpop.permute.xlu1 %3196  ;;  %v3204_v62 = vunpack.i.h.bf16 %v3202_v31  ;;  %v3203_v61 = vunpack.i.l.bf16 %v3202_v31 }
 0x860   :  { %v3199_v11 = vunpack.i.h.bf16 %v3197_v59  ;;  %v3198_v63 = vunpack.i.l.bf16 %v3197_v59 }
 0x861   :  { %v3136_v14 = vpack.c.bf16 %v3204_v62, %v3203_v61 }
 0x862   :  { %v3116_v12 = vpack.c.bf16 %v3199_v11, %v3198_v63 }
 0x863   :  { %v3207_v13 = vpop.permute.xlu1 %3206 }
 0x864   :  { %v3209_v16 = vunpack.i.h.bf16 %v3207_v13  ;;  %v3208_v17 = vunpack.i.l.bf16 %v3207_v13  ;;  %3117 = vmatprep.subr.bf16.mxu0 %v3116_v12 }
 0x865   :  { %v3383_v18 = vpop.eup %3382  ;;  %3119 = vmatpush3.bf16.msra.mxu0 %v3116_v12 }
 0x866   :  { %v3385_v19 = vpop.eup %3384  ;;  %v3140_v60 = vpack.c.bf16 %v3209_v16, %v3208_v17  ;;  %3137 = vmatprep.subr.bf16.mxu0 %v3136_v14  ;;  %v1013_v25 = vmul.f32 %v3383_v18, %v3373_v32 }
 0x867   :  { %v3212_v20 = vpop.permute.xlu1 %3211  ;;  %v1012_v24 = vmul.f32 %v3385_v19, %v3375_v33 }
 0x868   :  { %v3214_v26 = vunpack.i.h.bf16 %v3212_v20  ;;  %v3213_v27 = vunpack.i.l.bf16 %v3212_v20  ;;  %3141 = vmatprep.subr.bf16.mxu1 %v3140_v60 }
 0x869   :  { %2998 = vmatprep.mubr.msk.f32.mxu0 %vm583_vm2, %v1012_v24  ;;  %3143 = vmatpush3.bf16.msra.mxu1 %v3140_v60 }
 0x86a   :  { %v3144_v28 = vpack.c.bf16 %v3214_v26, %v3213_v27  ;;  %2999 = vmatmul.mubr.msk.f32.vlgmr.msra.gmra.mrb[10].mxu0 %vm583_vm2, %v1013_v25 }
 0x86b   :  { %3139 = vmatpush3.bf16.msra.mxu0 %v3136_v14 }
 0x86c   :  { %3146 = vmatprep.subr.msk.bf16.mxu0 %vm3665_vm1, %v3144_v28 }
 0x88f   :  { %v1405_v40 = vpop.xlane.xlu0 %1404 }
 0x898   :  { %v1384_v29 = vpop.xlane.xlu1 %1383 }
 0x899   :  { %v1390_v30 = vsub.f32 %v3787_v22, %v1384_v29  ;;  %v1411_v22 = vpop.xlane.xlu0 %1410 }
 0x89b   :  { %v1396_v34 = vmul.f32 1.442695, %v1390_v30 }
 0x89c   :  { %v3217_v35 = vpop.permute.xlu1 %3216 }
 0x89d   :  { %3386 = vpow2.f32 %v1396_v34  ;;  %v3219_v32 = vunpack.i.h.bf16 %v3217_v35  ;;  %v3218_v33 = vunpack.i.l.bf16 %v3217_v35  ;;  %v1595_v42 = vpop.permute.xlu0 %1594 }
 0x89e   :  { %3388 = vrcp.f32 %v1405_v40 }
 0x89f   :  { %v3150_v36 = vpack.c.bf16 %v3219_v32, %v3218_v33 }
 0x8a1   :  { %3152 = vmatprep.subr.msk.bf16.mxu1 %vm3665_vm1, %v3150_v36  ;;  %v1686_v59 = vpop.permute.xlu0 %1685 }
 0x8a7   :  { %v3387_v37 = vpop.eup %3386 }
 0x8a8   :  { %v1406_v39 = vsel %vm583_vm2, %v3387_v37, 0.0  ;;  %v3389_v44 = vpop.eup %3388 }
 0x8a9   :  { %1407 = vadd.xlane.f32.xlu1 %v1406_v39  ;;  %v1417_v49 = vmul.f32 %v3389_v44, %v3800_v46 }
 0x8ba   :  { %1687 = vrot.lane.b32.xlu1 %v3695_v1, %s3447_s18 }
 0x8cd   :  { %v1402_v43 = vpop.xlane.xlu1 %1401 }
 0x8ce   :  { %3390 = vrcp.f32 %v1402_v43 }
 0x8cf   :  { %3392 = vrcp.f32 %v1411_v22 }
 0x8d1   :  { %v1597_v1 = vpop.permute.xlu1 %1596 }
 0x8d8   :  { %v3391_v45 = vpop.eup %3390 }
 0x8d9   :  { %v1416_v47 = vmul.f32 %v3391_v45, %v3381_v54  ;;  %v3393_v46 = vpop.eup %3392 }
 0x8da   :  { %v1419_v31 = vmul.f32 %v3393_v46, %v3804_v48 }
 0x8db   :  { %3026 = vmatprep.mubr.msk.f32.mxu0 %vm583_vm2, %v1416_v47 }
 0x8dc   :  { %3027 = vmatmul.mubr.msk.f32.vlgmr.msra.gmra.mrb[12].mxu0 %vm583_vm2, %v1417_v49 }
 0x8dd   :  { %3149 = vmatpush3.bf16.xpose.msk.msra.mxu0 %vm3665_vm1, %v3144_v28  ;;  %3040 = vmatprep.mubr.msk.f32.mxu0 %vm408_vm0, %v1595_v42 }
 0x8e4   :  { %3041 = vmatmul.mubr.msk.f32.vlgmr.msra.gmra.mrb[14].mxu0 %vm408_vm0, %v1597_v1 }
 0x936   :  { %v1408_v50 = vpop.xlane.xlu1 %1407 }
 0x937   :  { %3394 = vrcp.f32 %v1408_v50 }
 0x93a   :  { %v1688_v62 = vpop.permute.xlu1 %1687 }
 0x93d   :  { %v3000_v53 = vpop.f32.mrb[10].mxu0 }
 0x93e   :  { %v1096_v54 = vpop.f32.mrb[11].mxu0 }
 0x93f   :  { %v3230_v56 = vpack.i.bf16 %v3000_v53, %v1096_v54 }
 0x941   :  { %v3395_v57 = vpop.eup %3394 }
 0x942   :  { %v1418_v58 = vmul.f32 %v3395_v57, %v3387_v37 }
 0x944   :  { %3033 = vmatprep.mubr.msk.f32.mxu1 %vm583_vm2, %v1418_v58 }
 0x945   :  { %3034 = vmatmul.mubr.msk.f32.vlgmr.msra.gmra.mrb[20].mxu1 %vm583_vm2, %v1419_v31 }
 0x946   :  { %3155 = vmatpush3.bf16.xpose.msk.msra.mxu1 %vm3665_vm1, %v3150_v36  ;;  %3047 = vmatprep.mubr.msk.f32.mxu1 %vm408_vm0, %v1686_v59 }
 0x94d   :  { %3048 = vmatmul.mubr.msk.f32.vlgmr.msra.gmra.mrb[22].mxu1 %vm408_vm0, %v1688_v62 }
 0x9af   :  { %v3028_v61 = vpop.f32.mrb[12].mxu0 }
 0x9b0   :  { %v1498_v11 = vpop.f32.mrb[13].mxu0 }
 0x9b1   :  { %v3240_v63 = vpack.i.bf16 %v3028_v61, %v1498_v11 }
 0x9b7   :  { %v3042_v12 = vpop.f32.mrb[14].mxu0 }
 0x9b8   :  { %v1676_v13 = vpop.f32.mrb[15].mxu0  ;;  %v1779_v48 = vsel %vm583_vm2, %v3042_v12, -inf }
 0x9b9   :  { %1780 = vmax.xlane.f32.xlu1 %v1779_v48  ;;  %v1776_v14 = vsel %vm583_vm2, %v1676_v13, -inf  ;;  %v3295_v48 = vld [vmem:[%s4091_s5 + $0x18] sm:$0xff]  }
 0x9ba   :  { %1777 = vmax.xlane.f32.xlu0 %v1776_v14  ;;  %v3296_v14 = vld [vmem:[%s4091_s5 + $0x20] sm:$0xff]  }
 0xa18   :  { %v3035_v16 = vpop.f32.mrb[20].mxu1 }
 0xa19   :  { %v1585_v17 = vpop.f32.mrb[21].mxu1 }
 0xa1a   :  { %v3245_v38 = vpack.i.bf16 %v3035_v16, %v1585_v17  ;;  %v3297_v16 = vld [vmem:[%s4091_s5 + $0x28] sm:$0xff]   ;;  %v3298_v17 = vld [vmem:[%s4091_s5 + $0x30] sm:$0xff]  }
 0xa20   :  { %v3049_v18 = vpop.f32.mrb[22].mxu1 }
 0xa21   :  { %v1767_v19 = vpop.f32.mrb[23].mxu1  ;;  %v1785_v20 = vsel %vm583_vm2, %v3049_v18, -inf }
 0xa22   :  { %v1782_v60 = vsel %vm583_vm2, %v1767_v19, -inf }
 0xa23   :  { %1783 = vmax.xlane.f32.xlu0 %v1782_v60 }
 0xa27   :  { %1786 = vmax.xlane.f32.xlu0 %v1785_v20 }
 0xa46   :  { %v1781_v24 = vpop.xlane.xlu1 %1780 }
 0xa47   :  { %v1789_v25 = vsub.f32 %v3042_v12, %v1781_v24  ;;  %v1778_v26 = vpop.xlane.xlu0 %1777  ;;  %v3293_v12 = vld [vmem:[%s4091_s5 + $0x8] sm:$0xff]  }
 0xa48   :  { %v1788_v27 = vsub.f32 %v1676_v13, %v1778_v26  ;;  %v3294_v13 = vld [vmem:[%s4091_s5 + $0x10] sm:$0xff]  }
 0xa49   :  { %v1794_v28 = vmul.f32 1.442695, %v1789_v25 }
 0xa4a   :  { %v1792_v29 = vmul.f32 1.442695, %v1788_v27 }
 0xa4b   :  { %3396 = vpow2.f32 %v1794_v28 }
 0xa4c   :  { %3398 = vpow2.f32 %v1792_v29 }
 0xa55   :  { %v3397_v30 = vpop.eup %3396 }
 0xa56   :  { %v3399_v34 = vpop.eup %3398  ;;  %v1803_v35 = vsel %vm583_vm2, %v3397_v30, 0.0 }
 0xa57   :  { %1804 = vadd.xlane.f32.xlu1 %v1803_v35  ;;  %v1800_v32 = vsel %vm583_vm2, %v3399_v34, 0.0 }
 0xa58   :  { %1801 = vadd.xlane.f32.xlu0 %v1800_v32 }
 0xab0   :  { %v1784_v33 = vpop.xlane.xlu0 %1783 }
 0xab1   :  { %v1790_v36 = vsub.f32 %v1767_v19, %v1784_v33 }
 0xab3   :  { %v1796_v37 = vmul.f32 1.442695, %v1790_v36 }
 0xab4   :  { %v1787_v39 = vpop.xlane.xlu0 %1786 }
 0xab5   :  { %3400 = vpow2.f32 %v1796_v37  ;;  %v1791_v40 = vsub.f32 %v3049_v18, %v1787_v39 }
 0xab7   :  { %v1798_v43 = vmul.f32 1.442695, %v1791_v40 }
 0xab9   :  { %3402 = vpow2.f32 %v1798_v43 }
 0xabf   :  { %v3401_v22 = vpop.eup %3400 }
 0xac0   :  { %v1806_v44 = vsel %vm583_vm2, %v3401_v22, 0.0 }
 0xac1   :  { %1807 = vadd.xlane.f32.xlu0 %v1806_v44 }
 0xac3   :  { %v3403_v45 = vpop.eup %3402 }
 0xac4   :  { %v1809_v47 = vsel %vm583_vm2, %v3403_v45, 0.0 }
 0xac5   :  { %1810 = vadd.xlane.f32.xlu1 %v1809_v47 }
 0xad6   :  { %3226 = vrot.lane.b32.xlu1 %v3677_v52, %s3447_s18 }
 0xad7   :  { %3221 = vrot.lane.b32.xlu0 %v3679_v55, %s3447_s18 }
 0xada   :  { %3231 = vrot.lane.b32.xlu1 %v3230_v56, %s3447_s18 }
 0xadb   :  { %3241 = vrot.lane.b32.xlu0 %v3240_v63, %s3446_s17  ;;  %v3292_v63 = vld [vmem:[%s4091_s5] sm:$0xff]  }
 0xade   :  { %3236 = vrot.lane.b32.xlu1 %v3235_v10, %s3447_s18 }
 0xae2   :  { %3246 = vrot.lane.b32.xlu1 %v3245_v38, %s3446_s17  ;;  %v3299_v38 = vld [vmem:[%s4091_s5 + $0x38] sm:$0xff]  }
 0xae4   :  { %v1805_v52 = vpop.xlane.xlu1 %1804 }
 0xae5   :  { %v1802_v49 = vpop.xlane.xlu0 %1801 }
 0xae6   :  { %3404 = vrcp.f32 %v1802_v49 }
 0xae7   :  { %3406 = vrcp.f32 %v1805_v52 }
 0xaf0   :  { %v3405_v42 = vpop.eup %3404 }
 0xaf1   :  { %v1816_v1 = vmul.f32 %v3405_v42, %v3399_v34  ;;  %v3407_v0 = vpop.eup %3406 }
 0xaf2   :  { %v1817_v31 = vmul.f32 %v3407_v0, %v3397_v30 }
 0xaf3   :  { %3054 = vmatprep.mubr.msk.f32.mxu0 %vm583_vm2, %v1816_v1 }
 0xb4e   :  { %v1808_v55 = vpop.xlane.xlu0 %1807 }
 0xb4f   :  { %3408 = vrcp.f32 %v1808_v55 }
 0xb52   :  { %v1811_v50 = vpop.xlane.xlu1 %1810  ;;  %v3222_v53 = vpop.permute.xlu0 %3221 }
 0xb53   :  { %3410 = vrcp.f32 %v1811_v50  ;;  %v3224_v54 = vunpack.i.h.bf16 %v3222_v53  ;;  %v3223_v56 = vunpack.i.l.bf16 %v3222_v53 }
 0xb55   :  { %v3156_v46 = vpack.c.bf16 %v3224_v54, %v3223_v56 }
 0xb56   :  { %v3227_v9 = vpop.permute.xlu1 %3226  ;;  %v3242_v30 = vpop.permute.xlu0 %3241 }
 0xb57   :  { %v3229_v10 = vunpack.i.h.bf16 %v3227_v9  ;;  %v3228_v57 = vunpack.i.l.bf16 %v3227_v9  ;;  %3157 = vmatprep.subr.bf16.mxu0 %v3156_v46  ;;  %v3244_v32 = vunpack.i.h.bf16 %v3242_v30  ;;  %v3243_v33 = vunpack.i.l.bf16 %v3242_v30 }
 0xb58   :  { %3159 = vmatpush3.bf16.msra.mxu0 %v3156_v46 }
 0xb59   :  { %v3409_v58 = vpop.eup %3408  ;;  %v3160_v59 = vpack.c.bf16 %v3229_v10, %v3228_v57  ;;  %3064 = vmatprep.subr.bf16.mxu0 %v3292_v63 }
 0xb5a   :  { %v1818_v62 = vmul.f32 %v3409_v58, %v3401_v22  ;;  %v3232_v26 = vpop.permute.xlu1 %3231 }
 0xb5b   :  { %3055 = vmatmul.mubr.msk.f32.vlgmr.msra.gmra.mrb[16].mxu0 %vm583_vm2, %v1817_v31  ;;  %3161 = vmatprep.subr.bf16.mxu1 %v3160_v59  ;;  %v3234_v28 = vunpack.i.h.bf16 %v3232_v26  ;;  %v3233_v29 = vunpack.i.l.bf16 %v3232_v26 }
 0xb5c   :  { %3163 = vmatpush3.bf16.msra.mxu1 %v3160_v59  ;;  %3061 = vmatprep.mubr.msk.f32.mxu1 %vm583_vm2, %v1818_v62 }
 0xb5d   :  { %v3411_v61 = vpop.eup %3410  ;;  %3065 = vmatpush3.bf16.msra.mxu0 %v3292_v63  ;;  %v2043_v34 = vsel %vm408_vm0, %v3725_v51, %v3234_v28  ;;  %v2042_v35 = vsel %vm408_vm0, %v3727_v6, %v3233_v29 }
 0xb5e   :  { %v1819_v11 = vmul.f32 %v3411_v61, %v3403_v45  ;;  %3066 = vmatprep.subr.bf16.mxu0 %v3293_v12  ;;  %v3237_v27 = vpop.permute.xlu1 %3236  ;;  %v2047_v44 = vsel %vm2046_vm3, %v2042_v35, %v3243_v33  ;;  %v2048_v45 = vsel %vm2046_vm3, %v2043_v34, %v3244_v32  ;;  %v3308_v34 = vld [vmem:[%s4095_s9 + $0x24] ss:$8 sps:$4 sm:$0xff]   ;;  %v3306_v35 = vld [vmem:[%s4095_s9 + $0x20] ss:$8 sps:$4 sm:$0xff]   ;;  %v3311_v32 = vld [vmem:[%s4095_s9 + $0x34] ss:$8 sps:$4 sm:$0xff]  }
 0xb5f   :  { %v3239_v43 = vunpack.i.h.bf16 %v3237_v27  ;;  %v3238_v22 = vunpack.i.l.bf16 %v3237_v27  ;;  %v3309_v33 = vld [vmem:[%s4095_s9 + $0x30] ss:$8 sps:$4 sm:$0xff]  }
 0xb60   :  { %3062 = vmatmul.mubr.msk.f32.vlgmr.msra.gmra.mrb[24].mxu1 %vm583_vm2, %v1819_v11 }
 0xb61   :  { %2390 = vmatprep.mubr.bf16.mxu1 %v3444_v41  ;;  %3067 = vmatpush3.bf16.msra.mxu0 %v3293_v12  ;;  %v2045_v52 = vsel %vm408_vm0, %v3729_v7, %v3239_v43  ;;  %v2044_v55 = vsel %vm408_vm0, %v3731_v8, %v3238_v22  ;;  %v2748_v7 = vld [vmem:[%s4092_s6] ss:$0 sm:$0xff]  ;;  %v3320_v43 = vld [vmem:[%s4095_s9 + $0x64] ss:$8 sps:$4 sm:$0xff]  }
 0xb62   :  { %3068 = vmatprep.subr.bf16.mxu0 %v3294_v13  ;;  %v3247_v36 = vpop.permute.xlu1 %3246  ;;  %v3318_v22 = vld [vmem:[%s4095_s9 + $0x60] ss:$8 sps:$4 sm:$0xff]  }
 0xb63   :  { %v3249_v47 = vunpack.i.h.bf16 %v3247_v36  ;;  %v3248_v49 = vunpack.i.l.bf16 %v3247_v36  ;;  %v3314_v36 = vld [vmem:[%s4095_s9 + $0x44] ss:$8 sps:$4 sm:$0xff]  }
 0xb65   :  { %3069 = vmatpush3.bf16.msra.mxu0 %v3294_v13  ;;  %v2049_v54 = vsel %vm2046_vm3, %v2044_v55, %v3248_v49  ;;  %v2050_v56 = vsel %vm2046_vm3, %v2045_v52, %v3249_v47  ;;  %v3324_v47 = vld [vmem:[%s4097_s11 + $0x40] sm:$0xff]   ;;  %v3330_v52 = vld [vmem:[%s4097_s11 + $0x58] sm:$0xff]  }
 0xb66   :  { %3070 = vmatprep.subr.bf16.mxu0 %v3295_v48  ;;  %v3325_v49 = vld [vmem:[%s4097_s11] sm:$0xff]   ;;  %v3331_v55 = vld [vmem:[%s4097_s11 + $0x18] sm:$0xff]  }
 0xb69   :  { %3071 = vmatpush3.bf16.msra.mxu0 %v3295_v48 }
 0xb6a   :  { %3072 = vmatprep.subr.bf16.mxu0 %v3296_v14 }
 0xb6d   :  { %3073 = vmatpush3.bf16.msra.mxu0 %v3296_v14 }
 0xb6e   :  { %3074 = vmatprep.subr.bf16.mxu0 %v3297_v16 }
 0xb71   :  { %3075 = vmatpush3.bf16.msra.mxu0 %v3297_v16 }
 0xb72   :  { %3076 = vmatprep.subr.bf16.mxu0 %v3298_v17 }
 0xb75   :  { %3077 = vmatpush3.bf16.msra.mxu0 %v3298_v17 }
 0xb76   :  { %3078 = vmatprep.subr.bf16.mxu0 %v3299_v38 }
 0xb79   :  { %3079 = vmatpush3.bf16.msra.mxu0 %v3299_v38 }
 0xb7a   :  { %2904 = vmatprep.subr.bf16.mxu0 %v3324_v47 }
 0xc2e   :  { %v3056_v18 = vpop.f32.mrb[16].mxu0 }
 0xc2f   :  { %v1898_v19 = vpop.f32.mrb[17].mxu0 }
 0xc30   :  { %v3250_v60 = vpack.i.bf16 %v3056_v18, %v1898_v19 }
 0xc32   :  { %3251 = vrot.lane.b32.xlu0 %v3250_v60, %s3445_s4 }
 0xc33   :  { %v3063_v20 = vpop.f32.mrb[24].mxu1 }
 0xc34   :  { %v1985_v24 = vpop.f32.mrb[25].mxu1 }
 0xc35   :  { %v3255_v25 = vpack.i.bf16 %v3063_v20, %v1985_v24 }
 0xc37   :  { %3256 = vrot.lane.b32.xlu1 %v3255_v25, %s3445_s4 }
 0xca4   :  { %v3252_v37 = vpop.permute.xlu0 %3251 }
 0xca5   :  { %v3254_v39 = vunpack.i.h.bf16 %v3252_v37  ;;  %v3253_v40 = vunpack.i.l.bf16 %v3252_v37  ;;  %v3312_v37 = vld [vmem:[%s4095_s9 + $0x40] ss:$8 sps:$4 sm:$0xff]  }
 0xca7   :  { %v2052_v51 = vsel %vm2051_vm4, %v2047_v44, %v3253_v40  ;;  %v2053_v6 = vsel %vm2051_vm4, %v2048_v45, %v3254_v39  ;;  %v3317_v39 = vld [vmem:[%s4095_s9 + $0x54] ss:$8 sps:$4 sm:$0xff]   ;;  %v3315_v40 = vld [vmem:[%s4095_s9 + $0x50] ss:$8 sps:$4 sm:$0xff]  }
 0xca8   :  { %v2056_v42 = vpack.c.bf16 %v2053_v6, %v2052_v51  ;;  %v3323_v44 = vld [vmem:[%s4095_s9 + $0x74] ss:$8 sps:$4 sm:$0xff]   ;;  %v3321_v45 = vld [vmem:[%s4095_s9 + $0x70] ss:$8 sps:$4 sm:$0xff]   ;;  %v3326_v51 = vld [vmem:[%s4097_s11 + $0x48] sm:$0xff]  }
 0xca9   :  { %v3257_v1 = vpop.permute.xlu1 %3256  ;;  %v3327_v6 = vld [vmem:[%s4097_s11 + $0x8] sm:$0xff]  }
 0xcaa   :  { %v3259_v50 = vunpack.i.h.bf16 %v3257_v1  ;;  %v3258_v53 = vunpack.i.l.bf16 %v3257_v1  ;;  %3080 = vmatprep.mubr.bf16.mxu0 %v2056_v42  ;;  %v3328_v42 = vld [vmem:[%s4097_s11 + $0x50] sm:$0xff]  }
 0xcab   :  { %v3329_v1 = vld [vmem:[%s4097_s11 + $0x10] sm:$0xff]  }
 0xcac   :  { %v2055_v46 = vsel %vm2051_vm4, %v2050_v56, %v3259_v50  ;;  %v2054_v0 = vsel %vm2051_vm4, %v2049_v54, %v3258_v53  ;;  %v3332_v50 = vld [vmem:[%s4097_s11 + $0x60] sm:$0xff]   ;;  %v3334_v54 = vld [vmem:[%s4097_s11 + $0x68] sm:$0xff]  }
 0xcad   :  { %v2057_v9 = vpack.c.bf16 %v2055_v46, %v2054_v0  ;;  %v3333_v53 = vld [vmem:[%s4097_s11 + $0x20] sm:$0xff]  }
 0xcaf   :  { %3081 = vmatmul.mubr.bf16.vlgmr.msra.gmra.mrb[20].mxu0 %v2057_v9 }
 0xcb0   :  { %2905 = vmatpush3.bf16.msra.mxu0 %v3325_v49 }
 0xcb1   :  { %2906 = vmatprep.subr.bf16.mxu0 %v3326_v51 }
 0xcb4   :  { %2907 = vmatpush3.bf16.msra.mxu0 %v3327_v6 }
 0xcb5   :  { %2908 = vmatprep.subr.bf16.mxu0 %v3328_v42 }
 0xcb8   :  { %2909 = vmatpush3.bf16.msra.mxu0 %v3329_v1 }
 0xcb9   :  { %2910 = vmatprep.subr.bf16.mxu0 %v3330_v52 }
 0xcbc   :  { %2911 = vmatpush3.bf16.msra.mxu0 %v3331_v55 }
 0xcbd   :  { %2912 = vmatprep.subr.bf16.mxu0 %v3332_v50 }
 0xcc0   :  { %2913 = vmatpush3.bf16.msra.mxu0 %v3333_v53 }
 0xcc1   :  { %2914 = vmatprep.subr.bf16.mxu0 %v3334_v54 }
 0xd82   :  { %v3082_v10 = vpop.f32.mrb[20].mxu0 }
 0xd83   :  { %v2163_v57 = vpop.f32.mrb[21].mxu0  ;;  %v2172_v59 = vadd.f32 %v3082_v10, %v2748_v7 }
 0xd84   :  { %v2164_v8 = vadd.f32 %v2748_v7, %v2163_v57  ;;  %v3083_v58 = vpop.f32.mrb[22].mxu0 }
 0xd85   :  { %v2166_v31 = vpop.f32.mrb[23].mxu0  ;;  %v3920_v63 = vadd.f32 %v3533_v3, %v2172_v59  ;;  %v2175_v12 = vadd.f32 %v3083_v58, %v2748_v7  ;;  %v3305_v3 = vld [vmem:[%s4095_s9 + $0x14] ss:$8 sps:$4 sm:$0xff]  }
 0xd86   :  { %v3913_v62 = vadd.f32 %v3531_v2, %v2164_v8  ;;  %v2167_v61 = vadd.f32 %v2748_v7, %v2166_v31  ;;  %v3300_v2 = vld [vmem:[%s4095_s9] ss:$8 sps:$4 sm:$0xff]  }
 0xd87   :  { %v3925_v13 = vadd.f32 %v3539_v5, %v2175_v12  ;;  %v3303_v5 = vld [vmem:[%s4095_s9 + $0x10] ss:$8 sps:$4 sm:$0xff]  }
 0xd88   :  { %v3916_v11 = vadd.f32 %v3537_v4, %v2167_v61  ;;  %2182 = vadd.xlane.f32.xlu0 %v3913_v62  ;;  %v3302_v4 = vld [vmem:[%s4095_s9 + $0x4] ss:$8 sps:$4 sm:$0xff]  }
 0xd89   :  { %2358 = vmatprep.subr.bf16.mxu1 %v3302_v4 }
 0xd8a   :  { %2184 = vadd.xlane.f32.xlu1 %v3916_v11  ;;  %2359 = vmatpush1.bf16.msra.mxu1 %v3300_v2  ;;  %v2757_v2 = vld [vmem:[%s4093_s7] ss:$0 sm:$0xff] }
 0xd8b   :  { %2360 = vmatprep.subr.bf16.mxu1 %v3305_v3 }
 0xd8c   :  { %2186 = vadd.xlane.f32.xlu0 %v3920_v63 }
 0xd8e   :  { %2361 = vmatpush1.bf16.msra.mxu1 %v3303_v5 }
 0xd8f   :  { %2362 = vmatprep.subr.bf16.mxu1 %v3308_v34 }
 0xd90   :  { %2188 = vadd.xlane.f32.xlu0 %v3925_v13 }
 0xd92   :  { %2363 = vmatpush1.bf16.msra.mxu1 %v3306_v35  ;;  %v3335_v35 = vld [vmem:[%s4097_s11 + $0x28] sm:$0xff]  }
 0xd93   :  { %2364 = vmatprep.subr.bf16.mxu1 %v3311_v32  ;;  %2915 = vmatpush3.bf16.msra.mxu0 %v3335_v35  ;;  %v3339_v32 = vld [vmem:[%s4097_s11 + $0x38] sm:$0xff]  }
 0xd96   :  { %2365 = vmatpush1.bf16.msra.mxu1 %v3309_v33  ;;  %v2266_v33 = vld [vmem:[%s4096_s10] sm:$0x3] }
 0xd97   :  { %2366 = vmatprep.subr.bf16.mxu1 %v3314_v36  ;;  %v2271_v36 = vrot.slane %v2266_v33, %v161_v21 }
 0xd9a   :  { %2367 = vmatpush1.bf16.msra.mxu1 %v3312_v37  ;;  %v2275_v37 = vrot.slane %v2266_v33, %v165_v23 }
 0xd9b   :  { %2368 = vmatprep.subr.bf16.mxu1 %v3317_v39 }
 0xd9e   :  { %2369 = vmatpush1.bf16.msra.mxu1 %v3315_v40 }
 0xd9f   :  { %2370 = vmatprep.subr.bf16.mxu1 %v3320_v43 }
 0xda2   :  { %2371 = vmatpush1.bf16.msra.mxu1 %v3318_v22 }
 0xda3   :  { %2372 = vmatprep.subr.bf16.mxu1 %v3323_v44 }
 0xda6   :  { %2373 = vmatpush1.bf16.msra.mxu1 %v3321_v45 }
 0xe15   :  { %v2183_v48 = vpop.xlane.xlu0 %2182 }
 0xe16   :  { %v2190_v14 = vmul.f32 0.0078125, %v2183_v48 }
 0xe17   :  { %v2185_v16 = vpop.xlane.xlu1 %2184 }
 0xe18   :  { %v3941_v17 = vsub.f32 %v3913_v62, %v2190_v14  ;;  %v2191_v38 = vmul.f32 0.0078125, %v2185_v16  ;;  %v2758_v16 = vld [vmem:[%s4094_s8] ss:$0 sm:$0xff] }
 0xe19   :  { %v2187_v18 = vpop.xlane.xlu0 %2186 }
 0xe1a   :  { %v3944_v19 = vsub.f32 %v3916_v11, %v2191_v38  ;;  %v2192_v60 = vmul.f32 0.0078125, %v2187_v18  ;;  %v2198_v20 = vmul.f32 %v3941_v17, %v3941_v17 }
 0xe1c   :  { %v3949_v24 = vsub.f32 %v3920_v63, %v2192_v60  ;;  %2202 = vadd.xlane.f32.xlu0 %v2198_v20  ;;  %v2199_v25 = vmul.f32 %v3944_v19, %v3944_v19 }
 0xe1d   :  { %v2189_v26 = vpop.xlane.xlu0 %2188 }
 0xe1e   :  { %v2193_v27 = vmul.f32 0.0078125, %v2189_v26  ;;  %2204 = vadd.xlane.f32.xlu1 %v2199_v25  ;;  %v2200_v28 = vmul.f32 %v3949_v24, %v3949_v24 }
 0xe20   :  { %v3956_v29 = vsub.f32 %v3925_v13, %v2193_v27  ;;  %2206 = vadd.xlane.f32.xlu0 %v2200_v28 }
 0xe22   :  { %v2201_v30 = vmul.f32 %v3956_v29, %v3956_v29 }
 0xe24   :  { %2208 = vadd.xlane.f32.xlu1 %v2201_v30 }
 0xea9   :  { %v2203_v56 = vpop.xlane.xlu0 %2202 }
 0xeaa   :  { %v2210_v46 = vmul.f32 0.0078125, %v2203_v56 }
 0xeab   :  { %v2205_v0 = vpop.xlane.xlu1 %2204 }
 0xeac   :  { %v2214_v9 = vadd.f32 1e-05, %v2210_v46  ;;  %v2211_v7 = vmul.f32 0.0078125, %v2205_v0 }
 0xead   :  { %v2207_v10 = vpop.xlane.xlu0 %2206 }
 0xeae   :  { %3412 = vrsqrt.f32 %v2214_v9  ;;  %v2215_v57 = vadd.f32 1e-05, %v2211_v7  ;;  %v2212_v8 = vmul.f32 0.0078125, %v2207_v10 }
 0xeb0   :  { %3414 = vrsqrt.f32 %v2215_v57  ;;  %v2216_v58 = vadd.f32 1e-05, %v2212_v8 }
 0xeb1   :  { %v2209_v31 = vpop.xlane.xlu1 %2208 }
 0xeb2   :  { %3416 = vrsqrt.f32 %v2216_v58  ;;  %v2213_v59 = vmul.f32 0.0078125, %v2209_v31  ;;  %v2775_v31 = vld [vmem:[%s4098_s12] ss:$0 sm:$0xff]  ;;  %s3448_s12 = smov [#allocation2]  }
 0xeb3   :  { %s2659_s6 = sshll.u32 %s3448_s12, 4  ;;  %s2660_s6 = int_to_ptr.vmem [resolvable:$true] %s2659_s6 }
 0xeb4   :  { %v2217_v61 = vadd.f32 1e-05, %v2213_v59  ;;  %s3420_s2 = scalar_lea.vmem %s2660_s6, 256  ;;  %p3425_p1 = scmp.lt.s32.totalorder %s2660_s6, %s2660_s6 }
 0xeb5   :  { %p3421_p0 = scmp.ne.s32.totalorder %s2660_s6, %s3420_s2  ;;  %p3426_p2 = scmp.lt.s32.totalorder %s3420_s2, %s3420_s2 }
 0xeb6   :  { %3418 = vrsqrt.f32 %v2217_v61 }
 0xeb7   :  { %p3427_p3 = por %p3426_p2, %p3425_p1 }
 0xeb8   :  { %v3413_v12 = vpop.eup %3412 }
 0xeb9   :  { %v2222_v4 = vmul.f32 %v3413_v12, %v3941_v17  ;;  %p3428_p4 = pnand %p3427_p3, %p3421_p0 }
 0xeba   :  { %v3415_v3 = vpop.eup %3414 }
 0xebb   :  { %v2223_v5 = vmul.f32 %v3415_v3, %v3944_v19  ;;  %v2233_v48 = vmul.f32 %v2757_v2, %v2222_v4 }
 0xebc   :  { %v3417_v14 = vpop.eup %3416 }
 0xebd   :  { %v2234_v38 = vmul.f32 %v2757_v2, %v2223_v5  ;;  %v2244_v18 = vadd.f32 %v2758_v16, %v2233_v48  ;;  %v2224_v20 = vmul.f32 %v3417_v14, %v3949_v24  ;;  %v3336_v24 = vld [vmem:[%s4097_s11 + $0x70] sm:$0xff]  }
 0xebe   :  { %2916 = vmatprep.subr.bf16.mxu0 %v3336_v24 }
 0xebf   :  { %v2245_v60 = vadd.f32 %v2758_v16, %v2234_v38  ;;  %v2235_v17 = vmul.f32 %v2757_v2, %v2224_v20 }
 0xec0   :  { %v3419_v25 = vpop.eup %3418 }
 0xec1   :  { %v2248_v26 = vpack.c.bf16 %v2245_v60, %v2244_v18  ;;  %v2225_v27 = vmul.f32 %v3419_v25, %v3956_v29  ;;  %v2246_v30 = vadd.f32 %v2758_v16, %v2235_v17  ;;  %v3337_v29 = vld [vmem:[%s4097_s11 + $0x30] sm:$0xff]  }
 0xec2   :  { %2917 = vmatpush3.bf16.msra.mxu0 %v3337_v29 }
 0xec3   :  { %2391 = vmatmul.mubr.bf16.vlgmr.msra.gmra.mrb[28].mxu1 %v2248_v26  ;;  %v2236_v28 = vmul.f32 %v2757_v2, %v2225_v27 }
 0xec4   :  { %2400 = vmatprep.mubr.bf16.mxu1 %v3444_v41  ;;  %v3338_v41 = vld [vmem:[%s4097_s11 + $0x78] sm:$0xff]  }
 0xec5   :  { %v2247_v19 = vadd.f32 %v2758_v16, %v2236_v28  ;;  %2918 = vmatprep.subr.bf16.mxu0 %v3338_v41 }
 0xec6   :  { %2919 = vmatpush3.bf16.msra.mxu0 %v3339_v32 }
 0xec7   :  { %v2249_v34 = vpack.c.bf16 %v2247_v19, %v2246_v30 }
 0xecb   :  { %2401 = vmatmul.mubr.bf16.gmra.mrb[32].mxu1 %v2249_v34 }
 0xf96   :  { %v2392_v39 = vpop.f32.mrb[28].mxu1 }
 0xf97   :  { %v2393_v40 = vadd.f32 %v2392_v39, %v2271_v36  ;;  %v2394_v43 = vpop.f32.mrb[29].mxu1 }
 0xf98   :  { %v2395_v22 = vadd.f32 %v2394_v43, %v2275_v37  ;;  %v2396_v44 = vpop.f32.mrb[30].mxu1 }
 0xf99   :  { %v2397_v45 = vadd.f32 %v2396_v44, %v2271_v36  ;;  %v2398_v47 = vpop.f32.mrb[31].mxu1  ;;  %v2411_v51 = vmax.f32 %v2393_v40, 0.0 }
 0xf9a   :  { %v2399_v49 = vadd.f32 %v2398_v47, %v2275_v37  ;;  %v2412_v42 = vmax.f32 %v2395_v22, 0.0 }
 0xf9b   :  { %v2413_v6 = vmax.f32 %v2397_v45, 0.0 }
 0xf9c   :  { %v2414_v1 = vmax.f32 %v2399_v49, 0.0 }
 0xf9d   :  { %v2419_v52 = vpack.c.bf16 %v2413_v6, %v2411_v51 }
 0xf9e   :  { %v2420_v55 = vpack.c.bf16 %v2414_v1, %v2412_v42  ;;  %v2402_v50 = vpop.f32.mrb[32].mxu1 }
 0xf9f   :  { %v2403_v53 = vadd.f32 %v2402_v50, %v2271_v36  ;;  %v2404_v21 = vpop.f32.mrb[33].mxu1 }
 0xfa0   :  { %v2405_v54 = vadd.f32 %v2404_v21, %v2275_v37  ;;  %v2406_v15 = vpop.f32.mrb[34].mxu1  ;;  %2590 = vmatprep.mubr.bf16.mxu0 %v2420_v55 }
 0xfa1   :  { %v2407_v23 = vadd.f32 %v2406_v15, %v2271_v36  ;;  %v2408_v56 = vpop.f32.mrb[35].mxu1  ;;  %2591 = vmatmul.mubr.bf16.vlgmr.msra.gmra.mrb[24].mxu0 %v2419_v52  ;;  %v2415_v0 = vmax.f32 %v2403_v53, 0.0 }
 0xfa2   :  { %v2409_v46 = vadd.f32 %v2408_v56, %v2275_v37  ;;  %v2416_v7 = vmax.f32 %v2405_v54, 0.0 }
 0xfa3   :  { %v2417_v9 = vmax.f32 %v2407_v23, 0.0 }
 0xfa4   :  { %v2418_v10 = vmax.f32 %v2409_v46, 0.0 }
 0xfa5   :  { %v2421_v57 = vpack.c.bf16 %v2417_v9, %v2415_v0 }
 0xfa6   :  { %v2422_v8 = vpack.c.bf16 %v2418_v10, %v2416_v7 }
 0xfa8   :  { %2598 = vmatprep.mubr.bf16.mxu0 %v2422_v8 }
 0xfa9   :  { %2599 = vmatmul.mubr.bf16.gmra.mrb[28].mxu0 %v2421_v57 }
0x1074   :  { %v2920_v58 = vpop.f32.mrb[24].mxu0 }
0x1075   :  { %v2921_v59 = vpop.f32.mrb[25].mxu0 }
0x1076   :  { %v2922_v61 = vadd.f32 %v2921_v59, %v2920_v58  ;;  %v2923_v12 = vpop.f32.mrb[26].mxu0 }
0x1077   :  { %v2924_v2 = vpop.f32.mrb[27].mxu0 }
0x1078   :  { %v2593_v4 = vadd.f32 %v2922_v61, %v2775_v31  ;;  %v2925_v3 = vadd.f32 %v2924_v2, %v2923_v12 }
0x107a   :  { %v2596_v5 = vadd.f32 %v2925_v3, %v2775_v31  ;;  %v2607_v48 = vadd.f32 %v2593_v4, %v3913_v62 }
0x107c   :  { %v2608_v14 = vadd.f32 %v2596_v5, %v3916_v11  ;;  %v2926_v16 = vpop.f32.mrb[28].mxu0 }
0x107d   :  { %v2927_v38 = vpop.f32.mrb[29].mxu0 }
0x107e   :  { %v2811_v18 = vpack.c.bf16 %v2608_v14, %v2607_v48  ;;  %v2631_v60 = vadd.f32 %v2608_v14, %v2607_v48  ;;  %v2928_v20 = vadd.f32 %v2927_v38, %v2926_v16  ;;  %v2929_v25 = vpop.f32.mrb[30].mxu0 }
0x107f   :  { %v2930_v26 = vpop.f32.mrb[31].mxu0 }
0x1080   :  { %2812 = vst [vmem:[#allocation2] sm:$0xff] %v2811_v18   ;;  %v2632_v27 = vrot.slane %v2631_v60, 4  ;;  %v2601_v17 = vadd.f32 %v2928_v20, %v2775_v31  ;;  %v2931_v28 = vadd.f32 %v2930_v26, %v2929_v25 }
0x1082   :  { %v2633_v19 = vadd.f32 %v2632_v27, %v2631_v60  ;;  %v2604_v30 = vadd.f32 %v2931_v28, %v2775_v31  ;;  %v2609_v62 = vadd.f32 %v2601_v17, %v3920_v63 }
0x1084   :  { %v2634_v34 = vrot.slane %v2633_v19, 2  ;;  %v2610_v11 = vadd.f32 %v2604_v30, %v3925_v13 }
0x1086   :  { %v2816_v35 = vpack.c.bf16 %v2610_v11, %v2609_v62  ;;  %v2638_v24 = vadd.f32 %v2610_v11, %v2609_v62  ;;  %v2635_v29 = vadd.f32 %v2634_v34, %v2633_v19 }
0x1088   :  { %2819 = vst [vmem:[#allocation2 + $0x8] sm:$0xff] %v2816_v35   ;;  %v2639_v41 = vrot.slane %v2638_v24, 4 }
0x1089   :  { %3431 = shalt.err (!%p3428_p4)
}
0x108a   :  { %s3432_s0 = scalar_lea.hbm %s4099_s13, 256 }
0x108b   :  { %p3433_p5 = scmp.ne.s32.totalorder %s4099_s13, %s3432_s0  ;;  %p3436_p6 = scmp.lt.u32.totalorder %s3432_s0, %s4099_s13 }
0x108d   :  { %p3438_p7 = pnand %p3436_p6, %p3433_p5 }
0x108f   :  { %3441 = shalt.err (!%p3438_p7)
}
0x1090   :  { %s3449_s23 = smov 4   ;;  %v2640_v63 = vadd.f32 %v2639_v41, %v2638_v24  ;;  %v2636_v13 = vrot.slane %v2635_v29, 1  ;;  %vm2650_vm5 = vcmask 1041409  }
0x1091   :  { %2665 = dma.vmem_to_hbm [thread:$0]  %s2660_s6, 256, %s4099_s13, [#allocation3], %s3446_s17, %s3446_s17, %s3449_s23  }
0x1092   :  { %v2641_v32 = vrot.slane %v2640_v63, 2  ;;  %v2637_v36 = vadd.f32 %v2636_v13, %v2635_v29 }
0x1094   :  { %v2642_v33 = vadd.f32 %v2641_v32, %v2640_v63  ;;  %v2646_v40 = vmul.f32 0.0625, %v2637_v36 }
0x1096   :  { %v2643_v37 = vrot.slane %v2642_v33, 1 }
0x1098   :  { %v2644_v39 = vadd.f32 %v2643_v37, %v2642_v33 }
0x109a   :  { %v2647_v43 = vmul.f32 0.0625, %v2644_v39 }
0x109c   :  { %v2651_v22 = vsel %vm2650_vm5, %v2647_v43, %v2646_v40 }
0x109d   :  { %2653 = vst [vmem:[%s4100_s14] sm:$0x3] %v2651_v22 }
0x109e   :  { %3442 = dma.done.wait [#allocation3], 256  }
0x109f   :  { %3443 = vsyncadd [#allocation3], 4294967040 }
0x10a0   :  { %2673 = vsyncpa [#allocation3], 1 }

</bundles_post_ra>
